<compile_context>
chip_gen: v7x
topology: tpu7x:2x2x1
jax: 0.10.0
libtpu: 0.0.40
codegen_flags: <defaults>
</compile_context>

<pallas_src>
import functools

import jax
import jax.numpy as jnp
from jax.experimental import pallas as pl
from jax.experimental.pallas import tpu as pltpu

BN_EPS = 1e-5
_TM = 256    # M tile for the fused conv matmul (fits v5e/v6e/v7x VMEM budgets)
_THW = 512   # spatial tile for GAP / gating kernels


def _round_up(x, m):
    return (x + m - 1) // m * m


# ----------------------------- Pallas kernels ------------------------------

def _mm_epilogue_kernel(x_ref, w_ref, scale_ref, shift_ref, o_ref, acc_ref, *, act):
    # out = act((X @ W) * scale + shift); bf16 operands, f32 accumulation.
    @pl.when(pl.program_id(1) == 0)
    def _():
        acc_ref[...] = jnp.zeros_like(acc_ref)

    acc_ref[...] += jnp.dot(x_ref[...], w_ref[...],
                            preferred_element_type=jnp.float32)

    @pl.when(pl.program_id(1) == pl.num_programs(1) - 1)
    def _():
        y = acc_ref[...] * scale_ref[...] + shift_ref[...]
        if act == "relu":
            y = jnp.maximum(y, 0.0)
        elif act == "sigmoid":
            y = jax.nn.sigmoid(y)
        o_ref[...] = y.astype(o_ref.dtype)


def _gap_kernel(x_ref, o_ref, acc_ref, *, inv_hw):
    # global average pool over a tiled spatial axis: (N, HW, C) -> (N, C)
    @pl.when(pl.program_id(0) == 0)
    def _():
        acc_ref[...] = jnp.zeros_like(acc_ref)

    acc_ref[...] += jnp.sum(x_ref[...].astype(jnp.float32), axis=1)

    @pl.when(pl.program_id(0) == pl.num_programs(0) - 1)
    def _():
        o_ref[...] = acc_ref[...] * inv_hw


def _gate_kernel(x_ref, a_ref, o_ref, *, add_residual):
    # (N, HW, C) * (N, 1, C) channel gating, optional "+ feature" residual.
    xv = x_ref[...].astype(jnp.float32)
    g = a_ref[...].astype(jnp.float32)
    y = xv * (g + 1.0) if add_residual else xv * g
    o_ref[...] = y.astype(o_ref.dtype)


# ------------------------------ Pallas wrappers -----------------------------

def matmul_scale_shift_act(x, w, scale, shift, act, out_dtype=jnp.float32):
    m, k = x.shape
    k2, n = w.shape
    assert k == k2
    x = x.astype(jnp.bfloat16)
    w = w.astype(jnp.bfloat16)
    scale2 = scale.reshape(1, n).astype(jnp.float32)
    shift2 = shift.reshape(1, n).astype(jnp.float32)

    # M tile: never pad tiny (pooled) gemms to 128; keep bf16-friendly 16 align.
    tm = min(_TM, _round_up(m, 16))
    m_pad = _round_up(m, tm)
    if m_pad != m:
        x = jnp.pad(x, ((0, m_pad - m), (0, 0)))

    # K tiling only for large reduction dims (bounds VMEM, esp. on v7x 64 MiB).
    if k > 2048 and k % 512 == 0:
        tk = 512
    elif k > 2048 and k % 256 == 0:
        tk = 256
    else:
        tk = k
    nk = k // tk

    out = pl.pallas_call(
        functools.partial(_mm_epilogue_kernel, act=act),
        out_shape=jax.ShapeDtypeStruct((m_pad, n), out_dtype),
        grid=(m_pad // tm, nk),
        in_specs=[
            pl.BlockSpec((tm, tk), lambda i, kk: (i, kk)),
            pl.BlockSpec((tk, n), lambda i, kk: (kk, 0)),
            pl.BlockSpec((1, n), lambda i, kk: (0, 0)),
            pl.BlockSpec((1, n), lambda i, kk: (0, 0)),
        ],
        out_specs=pl.BlockSpec((tm, n), lambda i, kk: (i, 0)),
        scratch_shapes=[pltpu.VMEM((tm, n), jnp.float32)],
        compiler_params=pltpu.CompilerParams(
            dimension_semantics=("parallel", "arbitrary")),
    )(x, w, scale2, shift2)
    return out[:m] if m_pad != m else out


def global_avg_pool(x_nhwc):
    n, h, w, c = x_nhwc.shape
    hw = h * w
    x2 = x_nhwc.reshape(n, hw, c)
    t_hw = hw if hw <= _THW else _THW
    hw_pad = _round_up(hw, t_hw)
    if hw_pad != hw:
        x2 = jnp.pad(x2, ((0, 0), (0, hw_pad - hw), (0, 0)))  # zeros don't change the sum
    return pl.pallas_call(
        functools.partial(_gap_kernel, inv_hw=1.0 / float(hw)),
        out_shape=jax.ShapeDtypeStruct((n, c), jnp.float32),
        grid=(hw_pad // t_hw,),
        in_specs=[pl.BlockSpec((n, t_hw, c), lambda i: (0, i, 0))],
        out_specs=pl.BlockSpec((n, c), lambda i: (0, 0)),
        scratch_shapes=[pltpu.VMEM((n, c), jnp.float32)],
        compiler_params=pltpu.CompilerParams(dimension_semantics=("arbitrary",)),
    )(x2)


def bcast_mul(x_nhwc, att_nc, add_residual=False):
    n, h, w, c = x_nhwc.shape
    hw = h * w
    x2 = x_nhwc.reshape(n, hw, c)
    a2 = att_nc.reshape(n, 1, c)
    t_hw = hw if hw <= _THW else _THW
    hw_pad = _round_up(hw, t_hw)
    if hw_pad != hw:
        x2 = jnp.pad(x2, ((0, 0), (0, hw_pad - hw), (0, 0)))
    out = pl.pallas_call(
        functools.partial(_gate_kernel, add_residual=add_residual),
        out_shape=jax.ShapeDtypeStruct((n, hw_pad, c), x_nhwc.dtype),
        grid=(hw_pad // t_hw,),
        in_specs=[pl.BlockSpec((n, t_hw, c), lambda i: (0, i, 0)),
                  pl.BlockSpec((n, 1, c), lambda i: (0, 0, 0))],
        out_specs=pl.BlockSpec((n, t_hw, c), lambda i: (0, i, 0)),
        compiler_params=pltpu.CompilerParams(dimension_semantics=("parallel",)),
    )(x2, a2)
    if hw_pad != hw:
        out = out[:, :hw]
    return out.reshape(n, h, w, c)


# --------------------------------- JAX glue ---------------------------------

def im2col(x, kh, kw, stride, padding):
    # x: (N, H, W, C) bf16 -> patches (N, Ho, Wo, kh*kw*C), ordering (dy, dx, c)
    # TODO(synk): fold the 3x3 window into the matmul grid (direct conv) to
    # avoid materializing the kh*kw-expanded patch tensor in HBM.
    n, h, w, c = x.shape
    x_p = jnp.pad(x, ((0, 0), (padding, padding), (padding, padding), (0, 0)))
    ho = (h + 2 * padding - kh) // stride + 1
    wo = (w + 2 * padding - kw) // stride + 1
    cols = []
    for dy in range(kh):
        for dx in range(kw):
            cols.append(x_p[:, dy:dy + stride * ho:stride,
                            dx:dx + stride * wo:stride, :])
    patches = jnp.concatenate(cols, axis=-1)
    return patches, ho, wo


def conv_block(x, prm, stride, padding=1, out_pad=None, out_dtype=jnp.bfloat16):
    # Conv2d(3x3, bias=False) + BatchNorm2d(eval) + ReLU, fused epilogue.
    w = prm["w"]
    bn = prm["bn"]
    cout, cin, kh, kw = w.shape
    scale = bn["gamma"] / jnp.sqrt(bn["var"] + BN_EPS)
    shift = bn["beta"] - bn["mean"] * scale
    W = jnp.transpose(w, (2, 3, 1, 0)).reshape(kh * kw * cin, cout)
    if out_pad is not None and out_pad > cout:
        W = jnp.pad(W, ((0, 0), (0, out_pad - cout)))
        scale = jnp.pad(scale, (0, out_pad - cout))
        shift = jnp.pad(shift, (0, out_pad - cout))
        cout = out_pad
    patches, ho, wo = im2col(x.astype(jnp.bfloat16), kh, kw, stride, padding)
    n = x.shape[0]
    X = patches.reshape(n * ho * wo, kh * kw * cin)
    y = matmul_scale_shift_act(X, W, scale, shift, act="relu", out_dtype=out_dtype)
    return y.reshape(n, ho, wo, cout)


def conv1x1(x, w, b, act="none", bn=None, out_pad=None, out_dtype=jnp.bfloat16):
    # Conv2d(1x1, bias=True) [+ BatchNorm(eval)] [+ activation], fused.
    n, h, wd, cin_x = x.shape
    cout, cin_w = w.shape
    W = jnp.transpose(w, (1, 0))                         # (cin, cout)
    if bn is None:
        scale = jnp.ones((cout,), jnp.float32)
        shift = b.astype(jnp.float32)
    else:
        scale = bn["gamma"] / jnp.sqrt(bn["var"] + BN_EPS)
        shift = (b - bn["mean"]) * scale + bn["beta"]
    if cin_x > cin_w:                                    # zero-padded input channels
        W = jnp.pad(W, ((0, cin_x - cin_w), (0, 0)))
    if out_pad is not None and out_pad > cout:           # lane-dense output channels
        W = jnp.pad(W, ((0, 0), (0, out_pad - cout)))
        scale = jnp.pad(scale, (0, out_pad - cout))
        shift = jnp.pad(shift, (0, out_pad - cout))
        cout = out_pad
    X = x.reshape(n * h * wd, cin_x)
    y = matmul_scale_shift_act(X, W, scale, shift, act=act, out_dtype=out_dtype)
    return y.reshape(n, h, wd, cout)


def bilinear_resize(x, out_h, out_w):
    # matches F.interpolate(mode='bilinear', align_corners=False)
    # TODO(synk): dynamic-gather upsample left in plain JAX (no clean Pallas fit).
    n, h, w, c = x.shape
    if h == out_h and w == out_w:
        return x
    orig_dtype = x.dtype
    xf = x.astype(jnp.float32)
    scale_y = h / out_h
    scale_x = w / out_w
    ys = jnp.clip((jnp.arange(out_h, dtype=jnp.float32) + 0.5) * scale_y - 0.5,
                  0.0, h - 1)
    xs = jnp.clip((jnp.arange(out_w, dtype=jnp.float32) + 0.5) * scale_x - 0.5,
                  0.0, w - 1)
    y0 = jnp.floor(ys).astype(jnp.int32)
    x0 = jnp.floor(xs).astype(jnp.int32)
    y1 = jnp.minimum(y0 + 1, h - 1)
    x1 = jnp.minimum(x0 + 1, w - 1)
    wy = (ys - y0.astype(jnp.float32))[None, :, None, None]
    wx = (xs - x0.astype(jnp.float32))[None, None, :, None]
    top_rows = xf[:, y0]                                 # shared row gathers
    bot_rows = xf[:, y1]
    v00 = top_rows[:, :, x0]
    v01 = top_rows[:, :, x1]
    v10 = bot_rows[:, :, x0]
    v11 = bot_rows[:, :, x1]
    top = v00 * (1.0 - wx) + v01 * wx
    bot = v10 * (1.0 - wx) + v11 * wx
    out = top * (1.0 - wy) + bot * wy
    return out.astype(orig_dtype)


# ------------------------------ module pieces -------------------------------

def arm_gate(x, prm):
    # AdaptiveAvgPool2d(1) -> 1x1 conv -> BN -> sigmoid ; returns (N, C) gate.
    n, h, w, c = x.shape
    pooled = global_avg_pool(x).reshape(n, 1, 1, c)
    att = conv1x1(pooled, prm["w"], prm["b"], act="sigmoid", bn=prm["bn"],
                  out_dtype=jnp.float32)
    return att.reshape(n, c)


def feature_fusion(sx, cx, p, nc_pad):
    x = jnp.concatenate([sx, cx.astype(sx.dtype)], axis=-1)      # cat along channels
    feat = conv_block(x, p["ffm_cb"], stride=1, padding=1, out_pad=nc_pad)
    n, h, w, c = feat.shape
    pooled = global_avg_pool(feat).reshape(n, 1, 1, c)
    t = conv1x1(pooled, p["ffm_c1"]["w"], p["ffm_c1"]["b"], act="relu",
                out_pad=nc_pad, out_dtype=jnp.float32)
    t = conv1x1(t, p["ffm_c2"]["w"], p["ffm_c2"]["b"], act="sigmoid",
                out_pad=nc_pad, out_dtype=jnp.float32)
    return bcast_mul(feat, t.reshape(n, c), add_residual=True)   # feat*gate + feat


def bisenet_forward(x_nchw, p, num_classes):
    x = jnp.transpose(x_nchw, (0, 2, 3, 1)).astype(jnp.bfloat16)   # NCHW -> NHWC

    # spatial path: three stride-2 ConvBlocks -> 256 ch @ /8
    sx = conv_block(x, p["sp1"], stride=2)
    sx = conv_block(sx, p["sp2"], stride=2)
    sx = conv_block(sx, p["sp3"], stride=2)

    # context path
    # TODO(synk): build_contextpath (torchvision resnet18) is not part of the
    # provided module; replaced with strided ConvBlocks producing the same
    # feature shapes (256ch @ /16, 512ch @ /32, tail = global average pool).
    c = conv_block(x, p["cp1"], stride=2)
    c = conv_block(c, p["cp2"], stride=2)
    c = conv_block(c, p["cp3"], stride=2)
    cx1 = conv_block(c, p["cp4"], stride=2)          # (N, H/16, W/16, 256)
    cx2 = conv_block(cx1, p["cp5"], stride=2)        # (N, H/32, W/32, 512)
    tail = global_avg_pool(cx2)                      # (N, 512), pre-ARM features

    # attention refinement; the ARM gate and the tail multiply on cx2 are fused
    # into a single channel gate -> one elementwise pass over cx2 instead of two.
    g1 = arm_gate(cx1, p["arm1"])
    cx1 = bcast_mul(cx1, g1)
    g2 = arm_gate(cx2, p["arm2"]) * tail
    cx2 = bcast_mul(cx2, g2)

    th, tw = sx.shape[1], sx.shape[2]
    cx1 = bilinear_resize(cx1, th, tw)
    cx2 = bilinear_resize(cx2, th, tw)
    cx = jnp.concatenate([cx1, cx2], axis=-1)        # 256 + 512 = 768 ch

    nc_pad = _round_up(num_classes, 128)             # lane-dense class channels
    result = feature_fusion(sx, cx, p, nc_pad)       # (N, H/8, W/8, nc_pad)

    # final 1x1 conv BEFORE the 8x upsample (linear ops commute exactly, bias incl.)
    result = conv1x1(result, p["final"]["w"], p["final"]["b"], act="none",
                     out_pad=nc_pad, out_dtype=jnp.float32)
    result = result[..., :num_classes]
    result = bilinear_resize(result, th * 8, tw * 8)
    return jnp.transpose(result, (0, 3, 1, 2))       # NHWC -> NCHW


# ------------------------------ parameter init ------------------------------

def _conv_w(key, cout, cin, kh, kw):
    fan_in = cin * kh * kw
    return jax.random.normal(key, (cout, cin, kh, kw), jnp.float32) * jnp.sqrt(2.0 / fan_in)


def _bias(key, cout, fan_in):
    bound = 1.0 / jnp.sqrt(float(fan_in))
    return jax.random.uniform(key, (cout,), jnp.float32, -bound, bound)


def _bn(c):
    return dict(gamma=jnp.ones((c,), jnp.float32), beta=jnp.zeros((c,), jnp.float32),
                mean=jnp.zeros((c,), jnp.float32), var=jnp.ones((c,), jnp.float32))


def init_params(key, num_classes):
    ks = iter(jax.random.split(key, 32))
    p = {}
    # spatial path
    p["sp1"] = dict(w=_conv_w(next(ks), 64, 3, 3, 3), bn=_bn(64))
    p["sp2"] = dict(w=_conv_w(next(ks), 128, 64, 3, 3), bn=_bn(128))
    p["sp3"] = dict(w=_conv_w(next(ks), 256, 128, 3, 3), bn=_bn(256))
    # synthetic context path (resnet18 feature shapes)
    p["cp1"] = dict(w=_conv_w(next(ks), 64, 3, 3, 3), bn=_bn(64))
    p["cp2"] = dict(w=_conv_w(next(ks), 128, 64, 3, 3), bn=_bn(128))
    p["cp3"] = dict(w=_conv_w(next(ks), 256, 128, 3, 3), bn=_bn(256))
    p["cp4"] = dict(w=_conv_w(next(ks), 256, 256, 3, 3), bn=_bn(256))
    p["cp5"] = dict(w=_conv_w(next(ks), 512, 256, 3, 3), bn=_bn(512))
    # attention refinement modules (256->256, 512->512)
    p["arm1"] = dict(w=_conv_w(next(ks), 256, 256, 1, 1)[:, :, 0, 0],
                     b=_bias(next(ks), 256, 256), bn=_bn(256))
    p["arm2"] = dict(w=_conv_w(next(ks), 512, 512, 1, 1)[:, :, 0, 0],
                     b=_bias(next(ks), 512, 512), bn=_bn(512))
    # feature fusion module: in_channels = 256 (sx) + 256 (cx1) + 512 (cx2) = 1024
    p["ffm_cb"] = dict(w=_conv_w(next(ks), num_classes, 1024, 3, 3), bn=_bn(num_classes))
    p["ffm_c1"] = dict(w=_conv_w(next(ks), num_classes, num_classes, 1, 1)[:, :, 0, 0],
                       b=_bias(next(ks), num_classes, num_classes))
    p["ffm_c2"] = dict(w=_conv_w(next(ks), num_classes, num_classes, 1, 1)[:, :, 0, 0],
                       b=_bias(next(ks), num_classes, num_classes))
    # final 1x1 conv
    p["final"] = dict(w=_conv_w(next(ks), num_classes, num_classes, 1, 1)[:, :, 0, 0],
                      b=_bias(next(ks), num_classes, num_classes))
    # note: supervision1/supervision2 heads are training-only; eval path skips them.
    return p


# ----------------------------------- main ------------------------------------

if __name__ == "__main__":
    num_classes = 8
    key = jax.random.PRNGKey(0)
    pkey, xkey = jax.random.split(key)
    params = init_params(pkey, num_classes)

    # input matches PyTorch NCHW convention
    x = jax.random.normal(xkey, (2, 3, 64, 64), jnp.float32)

    fwd = jax.jit(functools.partial(bisenet_forward, num_classes=num_classes))
    out = fwd(x, params)
    out = jax.block_until_ready(out)
    assert out.shape == (2, num_classes, 64, 64), out.shape
    assert out.dtype == jnp.float32
    print("KERNEL_OK")
</pallas_src>

<mosaic_0001>
module attributes {stable_mosaic.version = 11 : i64} {
  func.func @_mm_epilogue_kernel(%arg0: i32, %arg1: i32, %arg2: memref<256x27xbf16, #tpu.memory_space<vmem>>, %arg3: memref<27x64xbf16, #tpu.memory_space<vmem>>, %arg4: memref<1x64xf32, #tpu.memory_space<vmem>>, %arg5: memref<1x64xf32, #tpu.memory_space<vmem>>, %arg6: memref<256x64xbf16, #tpu.memory_space<vmem>>, %arg7: memref<256x64xf32, #tpu.memory_space<vmem>>) attributes {dimension_semantics = [#tpu.dimension_semantics<parallel>, #tpu.dimension_semantics<arbitrary>], iteration_bounds = array<i64: 8, 1>, scalar_prefetch = 0 : i64, scratch_operands = 1 : i64, tpu.core_type = #tpu.core_type<tc>, window_params = [{transform_indices = @transform_0, window_bounds = array<i64: 256, 27>}, {transform_indices = @transform_1, window_bounds = array<i64: 27, 64>}, {pipeline_mode = #tpu.pipeline_mode<synchronous>, transform_indices = @transform_2, window_bounds = array<i64: 1, 64>}, {pipeline_mode = #tpu.pipeline_mode<synchronous>, transform_indices = @transform_3, window_bounds = array<i64: 1, 64>}, {transform_indices = @transform_4, window_bounds = array<i64: 256, 64>}]} {
    %c0_i32 = arith.constant 0 : i32
    %0 = arith.cmpi eq, %arg1, %c0_i32 : i32
    %1 = arith.extui %0 : i1 to i32
    %c0_i32_0 = arith.constant 0 : i32
    %2 = arith.cmpi ne, %1, %c0_i32_0 : i32
    scf.if %2 {
      %cst_10 = arith.constant 0.000000e+00 : f32
      %12 = vector.broadcast %cst_10 : f32 to vector<256x64xf32>
      %c0_11 = arith.constant 0 : index
      %c0_12 = arith.constant 0 : index
      %13 = vector.load %arg7[%c0_11, %c0_12] : memref<256x64xf32, #tpu.memory_space<vmem>>, vector<256x64xf32>
      tpu.vector_store %arg7[%c0_11, %c0_12], %12 {strides = array<i32>} : memref<256x64xf32, #tpu.memory_space<vmem>>, vector<256x64xf32>,
    } else {
    }
    %c0 = arith.constant 0 : index
    %c0_1 = arith.constant 0 : index
    %3 = vector.load %arg7[%c0, %c0_1] : memref<256x64xf32, #tpu.memory_space<vmem>>, vector<256x64xf32>
    %c0_2 = arith.constant 0 : index
    %c0_3 = arith.constant 0 : index
    %4 = vector.load %arg2[%c0_2, %c0_3] : memref<256x27xbf16, #tpu.memory_space<vmem>>, vector<256x27xbf16>
    %c0_4 = arith.constant 0 : index
    %c0_5 = arith.constant 0 : index
    %5 = vector.load %arg3[%c0_4, %c0_5] : memref<27x64xbf16, #tpu.memory_space<vmem>>, vector<27x64xbf16>
    %cst = arith.constant dense<0.000000e+00> : vector<256x64xf32>
    %6 = tpu.matmul %4, %5, %cst {dimension_numbers = #tpu.dot_dimension_numbers<[1], [0], [0], [1], [0, 0, 1, 1], [], []>} : vector<256x27xbf16>, vector<27x64xbf16>, vector<256x64xf32> -> vector<256x64xf32>
    %7 = arith.addf %3, %6 : vector<256x64xf32>
    %c0_6 = arith.constant 0 : index
    %c0_7 = arith.constant 0 : index
    %8 = vector.load %arg7[%c0_6, %c0_7] : memref<256x64xf32, #tpu.memory_space<vmem>>, vector<256x64xf32>
    tpu.vector_store %arg7[%c0_6, %c0_7], %7 {strides = array<i32>} : memref<256x64xf32, #tpu.memory_space<vmem>>, vector<256x64xf32>,
    %c0_i32_8 = arith.constant 0 : i32
    %9 = arith.cmpi eq, %arg1, %c0_i32_8 : i32
    %10 = arith.extui %9 : i1 to i32
    %c0_i32_9 = arith.constant 0 : i32
    %11 = arith.cmpi ne, %10, %c0_i32_9 : i32
    scf.if %11 {
      %c0_10 = arith.constant 0 : index
      %c0_11 = arith.constant 0 : index
      %12 = vector.load %arg7[%c0_10, %c0_11] : memref<256x64xf32, #tpu.memory_space<vmem>>, vector<256x64xf32>
      %c0_12 = arith.constant 0 : index
      %c0_13 = arith.constant 0 : index
      %13 = vector.load %arg4[%c0_12, %c0_13] : memref<1x64xf32, #tpu.memory_space<vmem>>, vector<1x64xf32>
      %14 = vector.broadcast %13 : vector<1x64xf32> to vector<256x64xf32>
      %15 = arith.mulf %12, %14 : vector<256x64xf32>
      %c0_14 = arith.constant 0 : index
      %c0_15 = arith.constant 0 : index
      %16 = vector.load %arg5[%c0_14, %c0_15] : memref<1x64xf32, #tpu.memory_space<vmem>>, vector<1x64xf32>
      %17 = vector.broadcast %16 : vector<1x64xf32> to vector<256x64xf32>
      %18 = arith.addf %15, %17 : vector<256x64xf32>
      %cst_16 = arith.constant 0.000000e+00 : f32
      %19 = vector.broadcast %cst_16 : f32 to vector<256x64xf32>
      %20 = arith.maximumf %18, %19 : vector<256x64xf32>
      %21 = arith.truncf %20 : vector<256x64xf32> to vector<256x64xbf16>
      %c0_17 = arith.constant 0 : index
      %c0_18 = arith.constant 0 : index
      %22 = vector.load %arg6[%c0_17, %c0_18] : memref<256x64xbf16, #tpu.memory_space<vmem>>, vector<256x64xbf16>
      tpu.vector_store %arg6[%c0_17, %c0_18], %21 {strides = array<i32>} : memref<256x64xbf16, #tpu.memory_space<vmem>>, vector<256x64xbf16>,
    } else {
    }
    return
  }
  func.func @transform_0(%arg0: i32, %arg1: i32) -> (i32, i32) {
    %c0_i32 = arith.constant 0 : i32
    return %arg0, %arg1 : i32, i32
  }
  func.func @transform_1(%arg0: i32, %arg1: i32) -> (i32, i32) {
    %c0_i32 = arith.constant 0 : i32
    %c0_i32_0 = arith.constant 0 : i32
    return %arg1, %c0_i32 : i32, i32
  }
  func.func @transform_2(%arg0: i32, %arg1: i32) -> (i32, i32) {
    %c0_i32 = arith.constant 0 : i32
    %c0_i32_0 = arith.constant 0 : i32
    %c0_i32_1 = arith.constant 0 : i32
    return %c0_i32, %c0_i32_0 : i32, i32
  }
  func.func @transform_3(%arg0: i32, %arg1: i32) -> (i32, i32) {
    %c0_i32 = arith.constant 0 : i32
    %c0_i32_0 = arith.constant 0 : i32
    %c0_i32_1 = arith.constant 0 : i32
    return %c0_i32, %c0_i32_0 : i32, i32
  }
  func.func @transform_4(%arg0: i32, %arg1: i32) -> (i32, i32) {
    %c0_i32 = arith.constant 0 : i32
    %c0_i32_0 = arith.constant 0 : i32
    return %arg0, %c0_i32 : i32, i32
  }
}

module attributes {stable_mosaic.version = 11 : i64} {
  func.func @_mm_epilogue_kernel(%arg0: i32, %arg1: i32, %arg2: memref<256x576xbf16, #tpu.memory_space<vmem>>, %arg3: memref<576x128xbf16, #tpu.memory_space<vmem>>, %arg4: memref<1x128xf32, #tpu.memory_space<vmem>>, %arg5: memref<1x128xf32, #tpu.memory_space<vmem>>, %arg6: memref<256x128xbf16, #tpu.memory_space<vmem>>, %arg7: memref<256x128xf32, #tpu.memory_space<vmem>>) attributes {dimension_semantics = [#tpu.dimension_semantics<parallel>, #tpu.dimension_semantics<arbitrary>], iteration_bounds = array<i64: 2, 1>, scalar_prefetch = 0 : i64, scratch_operands = 1 : i64, tpu.core_type = #tpu.core_type<tc>, window_params = [{transform_indices = @transform_0, window_bounds = array<i64: 256, 576>}, {transform_indices = @transform_1, window_bounds = array<i64: 576, 128>}, {pipeline_mode = #tpu.pipeline_mode<synchronous>, transform_indices = @transform_2, window_bounds = array<i64: 1, 128>}, {pipeline_mode = #tpu.pipeline_mode<synchronous>, transform_indices = @transform_3, window_bounds = array<i64: 1, 128>}, {transform_indices = @transform_4, window_bounds = array<i64: 256, 128>}]} {
    %c0_i32 = arith.constant 0 : i32
    %0 = arith.cmpi eq, %arg1, %c0_i32 : i32
    %1 = arith.extui %0 : i1 to i32
    %c0_i32_0 = arith.constant 0 : i32
    %2 = arith.cmpi ne, %1, %c0_i32_0 : i32
    scf.if %2 {
      %cst_10 = arith.constant 0.000000e+00 : f32
      %12 = vector.broadcast %cst_10 : f32 to vector<256x128xf32>
      %c0_11 = arith.constant 0 : index
      %c0_12 = arith.constant 0 : index
      %13 = vector.load %arg7[%c0_11, %c0_12] : memref<256x128xf32, #tpu.memory_space<vmem>>, vector<256x128xf32>
      tpu.vector_store %arg7[%c0_11, %c0_12], %12 {strides = array<i32>} : memref<256x128xf32, #tpu.memory_space<vmem>>, vector<256x128xf32>,
    } else {
    }
    %c0 = arith.constant 0 : index
    %c0_1 = arith.constant 0 : index
    %3 = vector.load %arg7[%c0, %c0_1] : memref<256x128xf32, #tpu.memory_space<vmem>>, vector<256x128xf32>
    %c0_2 = arith.constant 0 : index
    %c0_3 = arith.constant 0 : index
    %4 = vector.load %arg2[%c0_2, %c0_3] : memref<256x576xbf16, #tpu.memory_space<vmem>>, vector<256x576xbf16>
    %c0_4 = arith.constant 0 : index
    %c0_5 = arith.constant 0 : index
    %5 = vector.load %arg3[%c0_4, %c0_5] : memref<576x128xbf16, #tpu.memory_space<vmem>>, vector<576x128xbf16>
    %cst = arith.constant dense<0.000000e+00> : vector<256x128xf32>
    %6 = tpu.matmul %4, %5, %cst {dimension_numbers = #tpu.dot_dimension_numbers<[1], [0], [0], [1], [0, 0, 1, 1], [], []>} : vector<256x576xbf16>, vector<576x128xbf16>, vector<256x128xf32> -> vector<256x128xf32>
    %7 = arith.addf %3, %6 : vector<256x128xf32>
    %c0_6 = arith.constant 0 : index
    %c0_7 = arith.constant 0 : index
    %8 = vector.load %arg7[%c0_6, %c0_7] : memref<256x128xf32, #tpu.memory_space<vmem>>, vector<256x128xf32>
    tpu.vector_store %arg7[%c0_6, %c0_7], %7 {strides = array<i32>} : memref<256x128xf32, #tpu.memory_space<vmem>>, vector<256x128xf32>,
    %c0_i32_8 = arith.constant 0 : i32
    %9 = arith.cmpi eq, %arg1, %c0_i32_8 : i32
    %10 = arith.extui %9 : i1 to i32
    %c0_i32_9 = arith.constant 0 : i32
    %11 = arith.cmpi ne, %10, %c0_i32_9 : i32
    scf.if %11 {
      %c0_10 = arith.constant 0 : index
      %c0_11 = arith.constant 0 : index
      %12 = vector.load %arg7[%c0_10, %c0_11] : memref<256x128xf32, #tpu.memory_space<vmem>>, vector<256x128xf32>
      %c0_12 = arith.constant 0 : index
      %c0_13 = arith.constant 0 : index
      %13 = vector.load %arg4[%c0_12, %c0_13] : memref<1x128xf32, #tpu.memory_space<vmem>>, vector<1x128xf32>
      %14 = vector.broadcast %13 : vector<1x128xf32> to vector<256x128xf32>
      %15 = arith.mulf %12, %14 : vector<256x128xf32>
      %c0_14 = arith.constant 0 : index
      %c0_15 = arith.constant 0 : index
      %16 = vector.load %arg5[%c0_14, %c0_15] : memref<1x128xf32, #tpu.memory_space<vmem>>, vector<1x128xf32>
      %17 = vector.broadcast %16 : vector<1x128xf32> to vector<256x128xf32>
      %18 = arith.addf %15, %17 : vector<256x128xf32>
      %cst_16 = arith.constant 0.000000e+00 : f32
      %19 = vector.broadcast %cst_16 : f32 to vector<256x128xf32>
      %20 = arith.maximumf %18, %19 : vector<256x128xf32>
      %21 = arith.truncf %20 : vector<256x128xf32> to vector<256x128xbf16>
      %c0_17 = arith.constant 0 : index
      %c0_18 = arith.constant 0 : index
      %22 = vector.load %arg6[%c0_17, %c0_18] : memref<256x128xbf16, #tpu.memory_space<vmem>>, vector<256x128xbf16>
      tpu.vector_store %arg6[%c0_17, %c0_18], %21 {strides = array<i32>} : memref<256x128xbf16, #tpu.memory_space<vmem>>, vector<256x128xbf16>,
    } else {
    }
    return
  }
  func.func @transform_0(%arg0: i32, %arg1: i32) -> (i32, i32) {
    %c0_i32 = arith.constant 0 : i32
    return %arg0, %arg1 : i32, i32
  }
  func.func @transform_1(%arg0: i32, %arg1: i32) -> (i32, i32) {
    %c0_i32 = arith.constant 0 : i32
    %c0_i32_0 = arith.constant 0 : i32
    return %arg1, %c0_i32 : i32, i32
  }
  func.func @transform_2(%arg0: i32, %arg1: i32) -> (i32, i32) {
    %c0_i32 = arith.constant 0 : i32
    %c0_i32_0 = arith.constant 0 : i32
    %c0_i32_1 = arith.constant 0 : i32
    return %c0_i32, %c0_i32_0 : i32, i32
  }
  func.func @transform_3(%arg0: i32, %arg1: i32) -> (i32, i32) {
    %c0_i32 = arith.constant 0 : i32
    %c0_i32_0 = arith.constant 0 : i32
    %c0_i32_1 = arith.constant 0 : i32
    return %c0_i32, %c0_i32_0 : i32, i32
  }
  func.func @transform_4(%arg0: i32, %arg1: i32) -> (i32, i32) {
    %c0_i32 = arith.constant 0 : i32
    %c0_i32_0 = arith.constant 0 : i32
    return %arg0, %c0_i32 : i32, i32
  }
}

module attributes {stable_mosaic.version = 11 : i64} {
  func.func @_mm_epilogue_kernel(%arg0: i32, %arg1: i32, %arg2: memref<128x1152xbf16, #tpu.memory_space<vmem>>, %arg3: memref<1152x256xbf16, #tpu.memory_space<vmem>>, %arg4: memref<1x256xf32, #tpu.memory_space<vmem>>, %arg5: memref<1x256xf32, #tpu.memory_space<vmem>>, %arg6: memref<128x256xbf16, #tpu.memory_space<vmem>>, %arg7: memref<128x256xf32, #tpu.memory_space<vmem>>) attributes {dimension_semantics = [#tpu.dimension_semantics<parallel>, #tpu.dimension_semantics<arbitrary>], iteration_bounds = array<i64: 1, 1>, scalar_prefetch = 0 : i64, scratch_operands = 1 : i64, tpu.core_type = #tpu.core_type<tc>, window_params = [{transform_indices = @transform_0, window_bounds = array<i64: 128, 1152>}, {transform_indices = @transform_1, window_bounds = array<i64: 1152, 256>}, {pipeline_mode = #tpu.pipeline_mode<synchronous>, transform_indices = @transform_2, window_bounds = array<i64: 1, 256>}, {pipeline_mode = #tpu.pipeline_mode<synchronous>, transform_indices = @transform_3, window_bounds = array<i64: 1, 256>}, {transform_indices = @transform_4, window_bounds = array<i64: 128, 256>}]} {
    %c0_i32 = arith.constant 0 : i32
    %0 = arith.cmpi eq, %arg1, %c0_i32 : i32
    %1 = arith.extui %0 : i1 to i32
    %c0_i32_0 = arith.constant 0 : i32
    %2 = arith.cmpi ne, %1, %c0_i32_0 : i32
    scf.if %2 {
      %cst_10 = arith.constant 0.000000e+00 : f32
      %12 = vector.broadcast %cst_10 : f32 to vector<128x256xf32>
      %c0_11 = arith.constant 0 : index
      %c0_12 = arith.constant 0 : index
      %13 = vector.load %arg7[%c0_11, %c0_12] : memref<128x256xf32, #tpu.memory_space<vmem>>, vector<128x256xf32>
      tpu.vector_store %arg7[%c0_11, %c0_12], %12 {strides = array<i32>} : memref<128x256xf32, #tpu.memory_space<vmem>>, vector<128x256xf32>,
    } else {
    }
    %c0 = arith.constant 0 : index
    %c0_1 = arith.constant 0 : index
    %3 = vector.load %arg7[%c0, %c0_1] : memref<128x256xf32, #tpu.memory_space<vmem>>, vector<128x256xf32>
    %c0_2 = arith.constant 0 : index
    %c0_3 = arith.constant 0 : index
    %4 = vector.load %arg2[%c0_2, %c0_3] : memref<128x1152xbf16, #tpu.memory_space<vmem>>, vector<128x1152xbf16>
    %c0_4 = arith.constant 0 : index
    %c0_5 = arith.constant 0 : index
    %5 = vector.load %arg3[%c0_4, %c0_5] : memref<1152x256xbf16, #tpu.memory_space<vmem>>, vector<1152x256xbf16>
    %cst = arith.constant dense<0.000000e+00> : vector<128x256xf32>
    %6 = tpu.matmul %4, %5, %cst {dimension_numbers = #tpu.dot_dimension_numbers<[1], [0], [0], [1], [0, 0, 1, 1], [], []>} : vector<128x1152xbf16>, vector<1152x256xbf16>, vector<128x256xf32> -> vector<128x256xf32>
    %7 = arith.addf %3, %6 : vector<128x256xf32>
    %c0_6 = arith.constant 0 : index
    %c0_7 = arith.constant 0 : index
    %8 = vector.load %arg7[%c0_6, %c0_7] : memref<128x256xf32, #tpu.memory_space<vmem>>, vector<128x256xf32>
    tpu.vector_store %arg7[%c0_6, %c0_7], %7 {strides = array<i32>} : memref<128x256xf32, #tpu.memory_space<vmem>>, vector<128x256xf32>,
    %c0_i32_8 = arith.constant 0 : i32
    %9 = arith.cmpi eq, %arg1, %c0_i32_8 : i32
    %10 = arith.extui %9 : i1 to i32
    %c0_i32_9 = arith.constant 0 : i32
    %11 = arith.cmpi ne, %10, %c0_i32_9 : i32
    scf.if %11 {
      %c0_10 = arith.constant 0 : index
      %c0_11 = arith.constant 0 : index
      %12 = vector.load %arg7[%c0_10, %c0_11] : memref<128x256xf32, #tpu.memory_space<vmem>>, vector<128x256xf32>
      %c0_12 = arith.constant 0 : index
      %c0_13 = arith.constant 0 : index
      %13 = vector.load %arg4[%c0_12, %c0_13] : memref<1x256xf32, #tpu.memory_space<vmem>>, vector<1x256xf32>
      %14 = vector.broadcast %13 : vector<1x256xf32> to vector<128x256xf32>
      %15 = arith.mulf %12, %14 : vector<128x256xf32>
      %c0_14 = arith.constant 0 : index
      %c0_15 = arith.constant 0 : index
      %16 = vector.load %arg5[%c0_14, %c0_15] : memref<1x256xf32, #tpu.memory_space<vmem>>, vector<1x256xf32>
      %17 = vector.broadcast %16 : vector<1x256xf32> to vector<128x256xf32>
      %18 = arith.addf %15, %17 : vector<128x256xf32>
      %cst_16 = arith.constant 0.000000e+00 : f32
      %19 = vector.broadcast %cst_16 : f32 to vector<128x256xf32>
      %20 = arith.maximumf %18, %19 : vector<128x256xf32>
      %21 = arith.truncf %20 : vector<128x256xf32> to vector<128x256xbf16>
      %c0_17 = arith.constant 0 : index
      %c0_18 = arith.constant 0 : index
      %22 = vector.load %arg6[%c0_17, %c0_18] : memref<128x256xbf16, #tpu.memory_space<vmem>>, vector<128x256xbf16>
      tpu.vector_store %arg6[%c0_17, %c0_18], %21 {strides = array<i32>} : memref<128x256xbf16, #tpu.memory_space<vmem>>, vector<128x256xbf16>,
    } else {
    }
    return
  }
  func.func @transform_0(%arg0: i32, %arg1: i32) -> (i32, i32) {
    %c0_i32 = arith.constant 0 : i32
    return %arg0, %arg1 : i32, i32
  }
  func.func @transform_1(%arg0: i32, %arg1: i32) -> (i32, i32) {
    %c0_i32 = arith.constant 0 : i32
    %c0_i32_0 = arith.constant 0 : i32
    return %arg1, %c0_i32 : i32, i32
  }
  func.func @transform_2(%arg0: i32, %arg1: i32) -> (i32, i32) {
    %c0_i32 = arith.constant 0 : i32
    %c0_i32_0 = arith.constant 0 : i32
    %c0_i32_1 = arith.constant 0 : i32
    return %c0_i32, %c0_i32_0 : i32, i32
  }
  func.func @transform_3(%arg0: i32, %arg1: i32) -> (i32, i32) {
    %c0_i32 = arith.constant 0 : i32
    %c0_i32_0 = arith.constant 0 : i32
    %c0_i32_1 = arith.constant 0 : i32
    return %c0_i32, %c0_i32_0 : i32, i32
  }
  func.func @transform_4(%arg0: i32, %arg1: i32) -> (i32, i32) {
    %c0_i32 = arith.constant 0 : i32
    %c0_i32_0 = arith.constant 0 : i32
    return %arg0, %c0_i32 : i32, i32
  }
}

module attributes {stable_mosaic.version = 11 : i64} {
  func.func @_gap_kernel(%arg0: i32, %arg1: memref<2x16x256xbf16, #tpu.memory_space<vmem>>, %arg2: memref<2x256xf32, #tpu.memory_space<vmem>>, %arg3: memref<2x256xf32, #tpu.memory_space<vmem>>) attributes {dimension_semantics = [#tpu.dimension_semantics<arbitrary>], iteration_bounds = array<i64: 1>, scalar_prefetch = 0 : i64, scratch_operands = 1 : i64, tpu.core_type = #tpu.core_type<tc>, window_params = [{transform_indices = @transform_0, window_bounds = array<i64: 2, 16, 256>}, {pipeline_mode = #tpu.pipeline_mode<synchronous>, transform_indices = @transform_1, window_bounds = array<i64: 2, 256>}]} {
    %c0_i32 = arith.constant 0 : i32
    %0 = arith.cmpi eq, %arg0, %c0_i32 : i32
    %1 = arith.extui %0 : i1 to i32
    %c0_i32_0 = arith.constant 0 : i32
    %2 = arith.cmpi ne, %1, %c0_i32_0 : i32
    scf.if %2 {
      %cst_9 = arith.constant 0.000000e+00 : f32
      %12 = vector.broadcast %cst_9 : f32 to vector<2x256xf32>
      %c0_10 = arith.constant 0 : index
      %c0_11 = arith.constant 0 : index
      %13 = vector.load %arg3[%c0_10, %c0_11] : memref<2x256xf32, #tpu.memory_space<vmem>>, vector<2x256xf32>
      tpu.vector_store %arg3[%c0_10, %c0_11], %12 {strides = array<i32>} : memref<2x256xf32, #tpu.memory_space<vmem>>, vector<2x256xf32>,
    } else {
    }
    %c0 = arith.constant 0 : index
    %c0_1 = arith.constant 0 : index
    %3 = vector.load %arg3[%c0, %c0_1] : memref<2x256xf32, #tpu.memory_space<vmem>>, vector<2x256xf32>
    %c0_2 = arith.constant 0 : index
    %c0_3 = arith.constant 0 : index
    %c0_4 = arith.constant 0 : index
    %4 = vector.load %arg1[%c0_2, %c0_3, %c0_4] : memref<2x16x256xbf16, #tpu.memory_space<vmem>>, vector<2x16x256xbf16>
    %5 = arith.extf %4 : vector<2x16x256xbf16> to vector<2x16x256xf32>
    %cst = arith.constant dense<0.000000e+00> : vector<2x256xf32>
    %6 = vector.multi_reduction <add>, %5, %cst [1] : vector<2x16x256xf32> to vector<2x256xf32>
    %7 = arith.addf %3, %6 : vector<2x256xf32>
    %c0_5 = arith.constant 0 : index
    %c0_6 = arith.constant 0 : index
    %8 = vector.load %arg3[%c0_5, %c0_6] : memref<2x256xf32, #tpu.memory_space<vmem>>, vector<2x256xf32>
    tpu.vector_store %arg3[%c0_5, %c0_6], %7 {strides = array<i32>} : memref<2x256xf32, #tpu.memory_space<vmem>>, vector<2x256xf32>,
    %c0_i32_7 = arith.constant 0 : i32
    %9 = arith.cmpi eq, %arg0, %c0_i32_7 : i32
    %10 = arith.extui %9 : i1 to i32
    %c0_i32_8 = arith.constant 0 : i32
    %11 = arith.cmpi ne, %10, %c0_i32_8 : i32
    scf.if %11 {
      %c0_9 = arith.constant 0 : index
      %c0_10 = arith.constant 0 : index
      %12 = vector.load %arg3[%c0_9, %c0_10] : memref<2x256xf32, #tpu.memory_space<vmem>>, vector<2x256xf32>
      %cst_11 = arith.constant 6.250000e-02 : f32
      %13 = vector.broadcast %cst_11 : f32 to vector<2x256xf32>
      %14 = arith.mulf %12, %13 : vector<2x256xf32>
      %c0_12 = arith.constant 0 : index
      %c0_13 = arith.constant 0 : index
      %15 = vector.load %arg2[%c0_12, %c0_13] : memref<2x256xf32, #tpu.memory_space<vmem>>, vector<2x256xf32>
      tpu.vector_store %arg2[%c0_12, %c0_13], %14 {strides = array<i32>} : memref<2x256xf32, #tpu.memory_space<vmem>>, vector<2x256xf32>,
    } else {
    }
    return
  }
  func.func @transform_0(%arg0: i32) -> (i32, i32, i32) {
    %c0_i32 = arith.constant 0 : i32
    %c0_i32_0 = arith.constant 0 : i32
    %c0_i32_1 = arith.constant 0 : i32
    return %c0_i32, %arg0, %c0_i32_0 : i32, i32, i32
  }
  func.func @transform_1(%arg0: i32) -> (i32, i32) {
    %c0_i32 = arith.constant 0 : i32
    %c0_i32_0 = arith.constant 0 : i32
    %c0_i32_1 = arith.constant 0 : i32
    return %c0_i32, %c0_i32_0 : i32, i32
  }
}

module attributes {stable_mosaic.version = 11 : i64} {
  func.func @_mm_epilogue_kernel(%arg0: i32, %arg1: i32, %arg2: memref<32x256xbf16, #tpu.memory_space<vmem>>, %arg3: memref<256x256xbf16, #tpu.memory_space<vmem>>, %arg4: memref<1x256xf32, #tpu.memory_space<vmem>>, %arg5: memref<1x256xf32, #tpu.memory_space<vmem>>, %arg6: memref<32x256xbf16, #tpu.memory_space<vmem>>, %arg7: memref<32x256xf32, #tpu.memory_space<vmem>>) attributes {dimension_semantics = [#tpu.dimension_semantics<parallel>, #tpu.dimension_semantics<arbitrary>], iteration_bounds = array<i64: 1, 9>, scalar_prefetch = 0 : i64, scratch_operands = 1 : i64, tpu.core_type = #tpu.core_type<tc>, window_params = [{transform_indices = @transform_0, window_bounds = array<i64: 32, 256>}, {transform_indices = @transform_1, window_bounds = array<i64: 256, 256>}, {pipeline_mode = #tpu.pipeline_mode<synchronous>, transform_indices = @transform_2, window_bounds = array<i64: 1, 256>}, {pipeline_mode = #tpu.pipeline_mode<synchronous>, transform_indices = @transform_3, window_bounds = array<i64: 1, 256>}, {transform_indices = @transform_4, window_bounds = array<i64: 32, 256>}]} {
    %c0_i32 = arith.constant 0 : i32
    %0 = arith.cmpi eq, %arg1, %c0_i32 : i32
    %1 = arith.extui %0 : i1 to i32
    %c0_i32_0 = arith.constant 0 : i32
    %2 = arith.cmpi ne, %1, %c0_i32_0 : i32
    scf.if %2 {
      %cst_9 = arith.constant 0.000000e+00 : f32
      %12 = vector.broadcast %cst_9 : f32 to vector<32x256xf32>
      %c0_10 = arith.constant 0 : index
      %c0_11 = arith.constant 0 : index
      %13 = vector.load %arg7[%c0_10, %c0_11] : memref<32x256xf32, #tpu.memory_space<vmem>>, vector<32x256xf32>
      tpu.vector_store %arg7[%c0_10, %c0_11], %12 {strides = array<i32>} : memref<32x256xf32, #tpu.memory_space<vmem>>, vector<32x256xf32>,
    } else {
    }
    %c0 = arith.constant 0 : index
    %c0_1 = arith.constant 0 : index
    %3 = vector.load %arg7[%c0, %c0_1] : memref<32x256xf32, #tpu.memory_space<vmem>>, vector<32x256xf32>
    %c0_2 = arith.constant 0 : index
    %c0_3 = arith.constant 0 : index
    %4 = vector.load %arg2[%c0_2, %c0_3] : memref<32x256xbf16, #tpu.memory_space<vmem>>, vector<32x256xbf16>
    %c0_4 = arith.constant 0 : index
    %c0_5 = arith.constant 0 : index
    %5 = vector.load %arg3[%c0_4, %c0_5] : memref<256x256xbf16, #tpu.memory_space<vmem>>, vector<256x256xbf16>
    %cst = arith.constant dense<0.000000e+00> : vector<32x256xf32>
    %6 = tpu.matmul %4, %5, %cst {dimension_numbers = #tpu.dot_dimension_numbers<[1], [0], [0], [1], [0, 0, 1, 1], [], []>} : vector<32x256xbf16>, vector<256x256xbf16>, vector<32x256xf32> -> vector<32x256xf32>
    %7 = arith.addf %3, %6 : vector<32x256xf32>
    %c0_6 = arith.constant 0 : index
    %c0_7 = arith.constant 0 : index
    %8 = vector.load %arg7[%c0_6, %c0_7] : memref<32x256xf32, #tpu.memory_space<vmem>>, vector<32x256xf32>
    tpu.vector_store %arg7[%c0_6, %c0_7], %7 {strides = array<i32>} : memref<32x256xf32, #tpu.memory_space<vmem>>, vector<32x256xf32>,
    %c8_i32 = arith.constant 8 : i32
    %9 = arith.cmpi eq, %arg1, %c8_i32 : i32
    %10 = arith.extui %9 : i1 to i32
    %c0_i32_8 = arith.constant 0 : i32
    %11 = arith.cmpi ne, %10, %c0_i32_8 : i32
    scf.if %11 {
      %c0_9 = arith.constant 0 : index
      %c0_10 = arith.constant 0 : index
      %12 = vector.load %arg7[%c0_9, %c0_10] : memref<32x256xf32, #tpu.memory_space<vmem>>, vector<32x256xf32>
      %c0_11 = arith.constant 0 : index
      %c0_12 = arith.constant 0 : index
      %13 = vector.load %arg4[%c0_11, %c0_12] : memref<1x256xf32, #tpu.memory_space<vmem>>, vector<1x256xf32>
      %14 = vector.broadcast %13 : vector<1x256xf32> to vector<32x256xf32>
      %15 = arith.mulf %12, %14 : vector<32x256xf32>
      %c0_13 = arith.constant 0 : index
      %c0_14 = arith.constant 0 : index
      %16 = vector.load %arg5[%c0_13, %c0_14] : memref<1x256xf32, #tpu.memory_space<vmem>>, vector<1x256xf32>
      %17 = vector.broadcast %16 : vector<1x256xf32> to vector<32x256xf32>
      %18 = arith.addf %15, %17 : vector<32x256xf32>
      %cst_15 = arith.constant 0.000000e+00 : f32
      %19 = vector.broadcast %cst_15 : f32 to vector<32x256xf32>
      %20 = arith.maximumf %18, %19 : vector<32x256xf32>
      %21 = arith.truncf %20 : vector<32x256xf32> to vector<32x256xbf16>
      %c0_16 = arith.constant 0 : index
      %c0_17 = arith.constant 0 : index
      %22 = vector.load %arg6[%c0_16, %c0_17] : memref<32x256xbf16, #tpu.memory_space<vmem>>, vector<32x256xbf16>
      tpu.vector_store %arg6[%c0_16, %c0_17], %21 {strides = array<i32>} : memref<32x256xbf16, #tpu.memory_space<vmem>>, vector<32x256xbf16>,
    } else {
    }
    return
  }
  func.func @transform_0(%arg0: i32, %arg1: i32) -> (i32, i32) {
    %c0_i32 = arith.constant 0 : i32
    return %arg0, %arg1 : i32, i32
  }
  func.func @transform_1(%arg0: i32, %arg1: i32) -> (i32, i32) {
    %c0_i32 = arith.constant 0 : i32
    %c0_i32_0 = arith.constant 0 : i32
    return %arg1, %c0_i32 : i32, i32
  }
  func.func @transform_2(%arg0: i32, %arg1: i32) -> (i32, i32) {
    %c0_i32 = arith.constant 0 : i32
    %c0_i32_0 = arith.constant 0 : i32
    %c0_i32_1 = arith.constant 0 : i32
    return %c0_i32, %c0_i32_0 : i32, i32
  }
  func.func @transform_3(%arg0: i32, %arg1: i32) -> (i32, i32) {
    %c0_i32 = arith.constant 0 : i32
    %c0_i32_0 = arith.constant 0 : i32
    %c0_i32_1 = arith.constant 0 : i32
    return %c0_i32, %c0_i32_0 : i32, i32
  }
  func.func @transform_4(%arg0: i32, %arg1: i32) -> (i32, i32) {
    %c0_i32 = arith.constant 0 : i32
    %c0_i32_0 = arith.constant 0 : i32
    return %arg0, %c0_i32 : i32, i32
  }
}

module attributes {stable_mosaic.version = 11 : i64} {
  func.func @_mm_epilogue_kernel(%arg0: i32, %arg1: i32, %arg2: memref<16x256xbf16, #tpu.memory_space<vmem>>, %arg3: memref<256x256xbf16, #tpu.memory_space<vmem>>, %arg4: memref<1x256xf32, #tpu.memory_space<vmem>>, %arg5: memref<1x256xf32, #tpu.memory_space<vmem>>, %arg6: memref<16x256xf32, #tpu.memory_space<vmem>>, %arg7: memref<16x256xf32, #tpu.memory_space<vmem>>) attributes {dimension_semantics = [#tpu.dimension_semantics<parallel>, #tpu.dimension_semantics<arbitrary>], iteration_bounds = array<i64: 1, 1>, scalar_prefetch = 0 : i64, scratch_operands = 1 : i64, tpu.core_type = #tpu.core_type<tc>, window_params = [{transform_indices = @transform_0, window_bounds = array<i64: 16, 256>}, {transform_indices = @transform_1, window_bounds = array<i64: 256, 256>}, {pipeline_mode = #tpu.pipeline_mode<synchronous>, transform_indices = @transform_2, window_bounds = array<i64: 1, 256>}, {pipeline_mode = #tpu.pipeline_mode<synchronous>, transform_indices = @transform_3, window_bounds = array<i64: 1, 256>}, {transform_indices = @transform_4, window_bounds = array<i64: 16, 256>}]} {
    %c0_i32 = arith.constant 0 : i32
    %0 = arith.cmpi eq, %arg1, %c0_i32 : i32
    %1 = arith.extui %0 : i1 to i32
    %c0_i32_0 = arith.constant 0 : i32
    %2 = arith.cmpi ne, %1, %c0_i32_0 : i32
    scf.if %2 {
      %cst_10 = arith.constant 0.000000e+00 : f32
      %12 = vector.broadcast %cst_10 : f32 to vector<16x256xf32>
      %c0_11 = arith.constant 0 : index
      %c0_12 = arith.constant 0 : index
      %13 = vector.load %arg7[%c0_11, %c0_12] : memref<16x256xf32, #tpu.memory_space<vmem>>, vector<16x256xf32>
      tpu.vector_store %arg7[%c0_11, %c0_12], %12 {strides = array<i32>} : memref<16x256xf32, #tpu.memory_space<vmem>>, vector<16x256xf32>,
    } else {
    }
    %c0 = arith.constant 0 : index
    %c0_1 = arith.constant 0 : index
    %3 = vector.load %arg7[%c0, %c0_1] : memref<16x256xf32, #tpu.memory_space<vmem>>, vector<16x256xf32>
    %c0_2 = arith.constant 0 : index
    %c0_3 = arith.constant 0 : index
    %4 = vector.load %arg2[%c0_2, %c0_3] : memref<16x256xbf16, #tpu.memory_space<vmem>>, vector<16x256xbf16>
    %c0_4 = arith.constant 0 : index
    %c0_5 = arith.constant 0 : index
    %5 = vector.load %arg3[%c0_4, %c0_5] : memref<256x256xbf16, #tpu.memory_space<vmem>>, vector<256x256xbf16>
    %cst = arith.constant dense<0.000000e+00> : vector<16x256xf32>
    %6 = tpu.matmul %4, %5, %cst {dimension_numbers = #tpu.dot_dimension_numbers<[1], [0], [0], [1], [0, 0, 1, 1], [], []>} : vector<16x256xbf16>, vector<256x256xbf16>, vector<16x256xf32> -> vector<16x256xf32>
    %7 = arith.addf %3, %6 : vector<16x256xf32>
    %c0_6 = arith.constant 0 : index
    %c0_7 = arith.constant 0 : index
    %8 = vector.load %arg7[%c0_6, %c0_7] : memref<16x256xf32, #tpu.memory_space<vmem>>, vector<16x256xf32>
    tpu.vector_store %arg7[%c0_6, %c0_7], %7 {strides = array<i32>} : memref<16x256xf32, #tpu.memory_space<vmem>>, vector<16x256xf32>,
    %c0_i32_8 = arith.constant 0 : i32
    %9 = arith.cmpi eq, %arg1, %c0_i32_8 : i32
    %10 = arith.extui %9 : i1 to i32
    %c0_i32_9 = arith.constant 0 : i32
    %11 = arith.cmpi ne, %10, %c0_i32_9 : i32
    scf.if %11 {
      %c0_10 = arith.constant 0 : index
      %c0_11 = arith.constant 0 : index
      %12 = vector.load %arg7[%c0_10, %c0_11] : memref<16x256xf32, #tpu.memory_space<vmem>>, vector<16x256xf32>
      %c0_12 = arith.constant 0 : index
      %c0_13 = arith.constant 0 : index
      %13 = vector.load %arg4[%c0_12, %c0_13] : memref<1x256xf32, #tpu.memory_space<vmem>>, vector<1x256xf32>
      %14 = vector.broadcast %13 : vector<1x256xf32> to vector<16x256xf32>
      %15 = arith.mulf %12, %14 : vector<16x256xf32>
      %c0_14 = arith.constant 0 : index
      %c0_15 = arith.constant 0 : index
      %16 = vector.load %arg5[%c0_14, %c0_15] : memref<1x256xf32, #tpu.memory_space<vmem>>, vector<1x256xf32>
      %17 = vector.broadcast %16 : vector<1x256xf32> to vector<16x256xf32>
      %18 = arith.addf %15, %17 : vector<16x256xf32>
      %19 = arith.negf %18 : vector<16x256xf32>
      %20 = math.exp %19 : vector<16x256xf32>
      %cst_16 = arith.constant 1.000000e+00 : f32
      %21 = vector.broadcast %cst_16 : f32 to vector<16x256xf32>
      %22 = arith.addf %21, %20 : vector<16x256xf32>
      %23 = arith.divf %21, %22 : vector<16x256xf32>
      %c0_17 = arith.constant 0 : index
      %c0_18 = arith.constant 0 : index
      %24 = vector.load %arg6[%c0_17, %c0_18] : memref<16x256xf32, #tpu.memory_space<vmem>>, vector<16x256xf32>
      tpu.vector_store %arg6[%c0_17, %c0_18], %23 {strides = array<i32>} : memref<16x256xf32, #tpu.memory_space<vmem>>, vector<16x256xf32>,
    } else {
    }
    return
  }
  func.func @transform_0(%arg0: i32, %arg1: i32) -> (i32, i32) {
    %c0_i32 = arith.constant 0 : i32
    return %arg0, %arg1 : i32, i32
  }
  func.func @transform_1(%arg0: i32, %arg1: i32) -> (i32, i32) {
    %c0_i32 = arith.constant 0 : i32
    %c0_i32_0 = arith.constant 0 : i32
    return %arg1, %c0_i32 : i32, i32
  }
  func.func @transform_2(%arg0: i32, %arg1: i32) -> (i32, i32) {
    %c0_i32 = arith.constant 0 : i32
    %c0_i32_0 = arith.constant 0 : i32
    %c0_i32_1 = arith.constant 0 : i32
    return %c0_i32, %c0_i32_0 : i32, i32
  }
  func.func @transform_3(%arg0: i32, %arg1: i32) -> (i32, i32) {
    %c0_i32 = arith.constant 0 : i32
    %c0_i32_0 = arith.constant 0 : i32
    %c0_i32_1 = arith.constant 0 : i32
    return %c0_i32, %c0_i32_0 : i32, i32
  }
  func.func @transform_4(%arg0: i32, %arg1: i32) -> (i32, i32) {
    %c0_i32 = arith.constant 0 : i32
    %c0_i32_0 = arith.constant 0 : i32
    return %arg0, %c0_i32 : i32, i32
  }
}

module attributes {stable_mosaic.version = 11 : i64} {
  func.func @_gate_kernel(%arg0: i32, %arg1: memref<2x16x256xbf16, #tpu.memory_space<vmem>>, %arg2: memref<2x1x256xf32, #tpu.memory_space<vmem>>, %arg3: memref<2x16x256xbf16, #tpu.memory_space<vmem>>) attributes {dimension_semantics = [#tpu.dimension_semantics<parallel>], iteration_bounds = array<i64: 1>, scalar_prefetch = 0 : i64, scratch_operands = 0 : i64, tpu.core_type = #tpu.core_type<tc>, window_params = [{transform_indices = @transform_0, window_bounds = array<i64: 2, 16, 256>}, {pipeline_mode = #tpu.pipeline_mode<synchronous>, transform_indices = @transform_1, window_bounds = array<i64: 2, 1, 256>}, {transform_indices = @transform_2, window_bounds = array<i64: 2, 16, 256>}]} {
    %c0 = arith.constant 0 : index
    %c0_0 = arith.constant 0 : index
    %c0_1 = arith.constant 0 : index
    %0 = vector.load %arg1[%c0, %c0_0, %c0_1] : memref<2x16x256xbf16, #tpu.memory_space<vmem>>, vector<2x16x256xbf16>
    %1 = arith.extf %0 : vector<2x16x256xbf16> to vector<2x16x256xf32>
    %c0_2 = arith.constant 0 : index
    %c0_3 = arith.constant 0 : index
    %c0_4 = arith.constant 0 : index
    %2 = vector.load %arg2[%c0_2, %c0_3, %c0_4] : memref<2x1x256xf32, #tpu.memory_space<vmem>>, vector<2x1x256xf32>
    %3 = vector.broadcast %2 : vector<2x1x256xf32> to vector<2x16x256xf32>
    %4 = arith.mulf %1, %3 : vector<2x16x256xf32>
    %5 = arith.truncf %4 : vector<2x16x256xf32> to vector<2x16x256xbf16>
    %c0_5 = arith.constant 0 : index
    %c0_6 = arith.constant 0 : index
    %c0_7 = arith.constant 0 : index
    %6 = vector.load %arg3[%c0_5, %c0_6, %c0_7] : memref<2x16x256xbf16, #tpu.memory_space<vmem>>, vector<2x16x256xbf16>
    tpu.vector_store %arg3[%c0_5, %c0_6, %c0_7], %5 {strides = array<i32>} : memref<2x16x256xbf16, #tpu.memory_space<vmem>>, vector<2x16x256xbf16>,
    return
  }
  func.func @transform_0(%arg0: i32) -> (i32, i32, i32) {
    %c0_i32 = arith.constant 0 : i32
    %c0_i32_0 = arith.constant 0 : i32
    %c0_i32_1 = arith.constant 0 : i32
    return %c0_i32, %arg0, %c0_i32_0 : i32, i32, i32
  }
  func.func @transform_1(%arg0: i32) -> (i32, i32, i32) {
    %c0_i32 = arith.constant 0 : i32
    %c0_i32_0 = arith.constant 0 : i32
    %c0_i32_1 = arith.constant 0 : i32
    %c0_i32_2 = arith.constant 0 : i32
    return %c0_i32, %c0_i32_0, %c0_i32_1 : i32, i32, i32
  }
  func.func @transform_2(%arg0: i32) -> (i32, i32, i32) {
    %c0_i32 = arith.constant 0 : i32
    %c0_i32_0 = arith.constant 0 : i32
    %c0_i32_1 = arith.constant 0 : i32
    return %c0_i32, %arg0, %c0_i32_0 : i32, i32, i32
  }
}

module attributes {stable_mosaic.version = 11 : i64} {
  func.func @_mm_epilogue_kernel(%arg0: i32, %arg1: i32, %arg2: memref<16x256xbf16, #tpu.memory_space<vmem>>, %arg3: memref<256x512xbf16, #tpu.memory_space<vmem>>, %arg4: memref<1x512xf32, #tpu.memory_space<vmem>>, %arg5: memref<1x512xf32, #tpu.memory_space<vmem>>, %arg6: memref<16x512xbf16, #tpu.memory_space<vmem>>, %arg7: memref<16x512xf32, #tpu.memory_space<vmem>>) attributes {dimension_semantics = [#tpu.dimension_semantics<parallel>, #tpu.dimension_semantics<arbitrary>], iteration_bounds = array<i64: 1, 9>, scalar_prefetch = 0 : i64, scratch_operands = 1 : i64, tpu.core_type = #tpu.core_type<tc>, window_params = [{transform_indices = @transform_0, window_bounds = array<i64: 16, 256>}, {transform_indices = @transform_1, window_bounds = array<i64: 256, 512>}, {pipeline_mode = #tpu.pipeline_mode<synchronous>, transform_indices = @transform_2, window_bounds = array<i64: 1, 512>}, {pipeline_mode = #tpu.pipeline_mode<synchronous>, transform_indices = @transform_3, window_bounds = array<i64: 1, 512>}, {transform_indices = @transform_4, window_bounds = array<i64: 16, 512>}]} {
    %c0_i32 = arith.constant 0 : i32
    %0 = arith.cmpi eq, %arg1, %c0_i32 : i32
    %1 = arith.extui %0 : i1 to i32
    %c0_i32_0 = arith.constant 0 : i32
    %2 = arith.cmpi ne, %1, %c0_i32_0 : i32
    scf.if %2 {
      %cst_9 = arith.constant 0.000000e+00 : f32
      %12 = vector.broadcast %cst_9 : f32 to vector<16x512xf32>
      %c0_10 = arith.constant 0 : index
      %c0_11 = arith.constant 0 : index
      %13 = vector.load %arg7[%c0_10, %c0_11] : memref<16x512xf32, #tpu.memory_space<vmem>>, vector<16x512xf32>
      tpu.vector_store %arg7[%c0_10, %c0_11], %12 {strides = array<i32>} : memref<16x512xf32, #tpu.memory_space<vmem>>, vector<16x512xf32>,
    } else {
    }
    %c0 = arith.constant 0 : index
    %c0_1 = arith.constant 0 : index
    %3 = vector.load %arg7[%c0, %c0_1] : memref<16x512xf32, #tpu.memory_space<vmem>>, vector<16x512xf32>
    %c0_2 = arith.constant 0 : index
    %c0_3 = arith.constant 0 : index
    %4 = vector.load %arg2[%c0_2, %c0_3] : memref<16x256xbf16, #tpu.memory_space<vmem>>, vector<16x256xbf16>
    %c0_4 = arith.constant 0 : index
    %c0_5 = arith.constant 0 : index
    %5 = vector.load %arg3[%c0_4, %c0_5] : memref<256x512xbf16, #tpu.memory_space<vmem>>, vector<256x512xbf16>
    %cst = arith.constant dense<0.000000e+00> : vector<16x512xf32>
    %6 = tpu.matmul %4, %5, %cst {dimension_numbers = #tpu.dot_dimension_numbers<[1], [0], [0], [1], [0, 0, 1, 1], [], []>} : vector<16x256xbf16>, vector<256x512xbf16>, vector<16x512xf32> -> vector<16x512xf32>
    %7 = arith.addf %3, %6 : vector<16x512xf32>
    %c0_6 = arith.constant 0 : index
    %c0_7 = arith.constant 0 : index
    %8 = vector.load %arg7[%c0_6, %c0_7] : memref<16x512xf32, #tpu.memory_space<vmem>>, vector<16x512xf32>
    tpu.vector_store %arg7[%c0_6, %c0_7], %7 {strides = array<i32>} : memref<16x512xf32, #tpu.memory_space<vmem>>, vector<16x512xf32>,
    %c8_i32 = arith.constant 8 : i32
    %9 = arith.cmpi eq, %arg1, %c8_i32 : i32
    %10 = arith.extui %9 : i1 to i32
    %c0_i32_8 = arith.constant 0 : i32
    %11 = arith.cmpi ne, %10, %c0_i32_8 : i32
    scf.if %11 {
      %c0_9 = arith.constant 0 : index
      %c0_10 = arith.constant 0 : index
      %12 = vector.load %arg7[%c0_9, %c0_10] : memref<16x512xf32, #tpu.memory_space<vmem>>, vector<16x512xf32>
      %c0_11 = arith.constant 0 : index
      %c0_12 = arith.constant 0 : index
      %13 = vector.load %arg4[%c0_11, %c0_12] : memref<1x512xf32, #tpu.memory_space<vmem>>, vector<1x512xf32>
      %14 = vector.broadcast %13 : vector<1x512xf32> to vector<16x512xf32>
      %15 = arith.mulf %12, %14 : vector<16x512xf32>
      %c0_13 = arith.constant 0 : index
      %c0_14 = arith.constant 0 : index
      %16 = vector.load %arg5[%c0_13, %c0_14] : memref<1x512xf32, #tpu.memory_space<vmem>>, vector<1x512xf32>
      %17 = vector.broadcast %16 : vector<1x512xf32> to vector<16x512xf32>
      %18 = arith.addf %15, %17 : vector<16x512xf32>
      %cst_15 = arith.constant 0.000000e+00 : f32
      %19 = vector.broadcast %cst_15 : f32 to vector<16x512xf32>
      %20 = arith.maximumf %18, %19 : vector<16x512xf32>
      %21 = arith.truncf %20 : vector<16x512xf32> to vector<16x512xbf16>
      %c0_16 = arith.constant 0 : index
      %c0_17 = arith.constant 0 : index
      %22 = vector.load %arg6[%c0_16, %c0_17] : memref<16x512xbf16, #tpu.memory_space<vmem>>, vector<16x512xbf16>
      tpu.vector_store %arg6[%c0_16, %c0_17], %21 {strides = array<i32>} : memref<16x512xbf16, #tpu.memory_space<vmem>>, vector<16x512xbf16>,
    } else {
    }
    return
  }
  func.func @transform_0(%arg0: i32, %arg1: i32) -> (i32, i32) {
    %c0_i32 = arith.constant 0 : i32
    return %arg0, %arg1 : i32, i32
  }
  func.func @transform_1(%arg0: i32, %arg1: i32) -> (i32, i32) {
    %c0_i32 = arith.constant 0 : i32
    %c0_i32_0 = arith.constant 0 : i32
    return %arg1, %c0_i32 : i32, i32
  }
  func.func @transform_2(%arg0: i32, %arg1: i32) -> (i32, i32) {
    %c0_i32 = arith.constant 0 : i32
    %c0_i32_0 = arith.constant 0 : i32
    %c0_i32_1 = arith.constant 0 : i32
    return %c0_i32, %c0_i32_0 : i32, i32
  }
  func.func @transform_3(%arg0: i32, %arg1: i32) -> (i32, i32) {
    %c0_i32 = arith.constant 0 : i32
    %c0_i32_0 = arith.constant 0 : i32
    %c0_i32_1 = arith.constant 0 : i32
    return %c0_i32, %c0_i32_0 : i32, i32
  }
  func.func @transform_4(%arg0: i32, %arg1: i32) -> (i32, i32) {
    %c0_i32 = arith.constant 0 : i32
    %c0_i32_0 = arith.constant 0 : i32
    return %arg0, %c0_i32 : i32, i32
  }
}

module attributes {stable_mosaic.version = 11 : i64} {
  func.func @_gap_kernel(%arg0: i32, %arg1: memref<2x4x512xbf16, #tpu.memory_space<vmem>>, %arg2: memref<2x512xf32, #tpu.memory_space<vmem>>, %arg3: memref<2x512xf32, #tpu.memory_space<vmem>>) attributes {dimension_semantics = [#tpu.dimension_semantics<arbitrary>], iteration_bounds = array<i64: 1>, scalar_prefetch = 0 : i64, scratch_operands = 1 : i64, tpu.core_type = #tpu.core_type<tc>, window_params = [{transform_indices = @transform_0, window_bounds = array<i64: 2, 4, 512>}, {pipeline_mode = #tpu.pipeline_mode<synchronous>, transform_indices = @transform_1, window_bounds = array<i64: 2, 512>}]} {
    %c0_i32 = arith.constant 0 : i32
    %0 = arith.cmpi eq, %arg0, %c0_i32 : i32
    %1 = arith.extui %0 : i1 to i32
    %c0_i32_0 = arith.constant 0 : i32
    %2 = arith.cmpi ne, %1, %c0_i32_0 : i32
    scf.if %2 {
      %cst_9 = arith.constant 0.000000e+00 : f32
      %12 = vector.broadcast %cst_9 : f32 to vector<2x512xf32>
      %c0_10 = arith.constant 0 : index
      %c0_11 = arith.constant 0 : index
      %13 = vector.load %arg3[%c0_10, %c0_11] : memref<2x512xf32, #tpu.memory_space<vmem>>, vector<2x512xf32>
      tpu.vector_store %arg3[%c0_10, %c0_11], %12 {strides = array<i32>} : memref<2x512xf32, #tpu.memory_space<vmem>>, vector<2x512xf32>,
    } else {
    }
    %c0 = arith.constant 0 : index
    %c0_1 = arith.constant 0 : index
    %3 = vector.load %arg3[%c0, %c0_1] : memref<2x512xf32, #tpu.memory_space<vmem>>, vector<2x512xf32>
    %c0_2 = arith.constant 0 : index
    %c0_3 = arith.constant 0 : index
    %c0_4 = arith.constant 0 : index
    %4 = vector.load %arg1[%c0_2, %c0_3, %c0_4] : memref<2x4x512xbf16, #tpu.memory_space<vmem>>, vector<2x4x512xbf16>
    %5 = arith.extf %4 : vector<2x4x512xbf16> to vector<2x4x512xf32>
    %cst = arith.constant dense<0.000000e+00> : vector<2x512xf32>
    %6 = vector.multi_reduction <add>, %5, %cst [1] : vector<2x4x512xf32> to vector<2x512xf32>
    %7 = arith.addf %3, %6 : vector<2x512xf32>
    %c0_5 = arith.constant 0 : index
    %c0_6 = arith.constant 0 : index
    %8 = vector.load %arg3[%c0_5, %c0_6] : memref<2x512xf32, #tpu.memory_space<vmem>>, vector<2x512xf32>
    tpu.vector_store %arg3[%c0_5, %c0_6], %7 {strides = array<i32>} : memref<2x512xf32, #tpu.memory_space<vmem>>, vector<2x512xf32>,
    %c0_i32_7 = arith.constant 0 : i32
    %9 = arith.cmpi eq, %arg0, %c0_i32_7 : i32
    %10 = arith.extui %9 : i1 to i32
    %c0_i32_8 = arith.constant 0 : i32
    %11 = arith.cmpi ne, %10, %c0_i32_8 : i32
    scf.if %11 {
      %c0_9 = arith.constant 0 : index
      %c0_10 = arith.constant 0 : index
      %12 = vector.load %arg3[%c0_9, %c0_10] : memref<2x512xf32, #tpu.memory_space<vmem>>, vector<2x512xf32>
      %cst_11 = arith.constant 2.500000e-01 : f32
      %13 = vector.broadcast %cst_11 : f32 to vector<2x512xf32>
      %14 = arith.mulf %12, %13 : vector<2x512xf32>
      %c0_12 = arith.constant 0 : index
      %c0_13 = arith.constant 0 : index
      %15 = vector.load %arg2[%c0_12, %c0_13] : memref<2x512xf32, #tpu.memory_space<vmem>>, vector<2x512xf32>
      tpu.vector_store %arg2[%c0_12, %c0_13], %14 {strides = array<i32>} : memref<2x512xf32, #tpu.memory_space<vmem>>, vector<2x512xf32>,
    } else {
    }
    return
  }
  func.func @transform_0(%arg0: i32) -> (i32, i32, i32) {
    %c0_i32 = arith.constant 0 : i32
    %c0_i32_0 = arith.constant 0 : i32
    %c0_i32_1 = arith.constant 0 : i32
    return %c0_i32, %arg0, %c0_i32_0 : i32, i32, i32
  }
  func.func @transform_1(%arg0: i32) -> (i32, i32) {
    %c0_i32 = arith.constant 0 : i32
    %c0_i32_0 = arith.constant 0 : i32
    %c0_i32_1 = arith.constant 0 : i32
    return %c0_i32, %c0_i32_0 : i32, i32
  }
}

module attributes {stable_mosaic.version = 11 : i64} {
  func.func @_mm_epilogue_kernel(%arg0: i32, %arg1: i32, %arg2: memref<16x512xbf16, #tpu.memory_space<vmem>>, %arg3: memref<512x512xbf16, #tpu.memory_space<vmem>>, %arg4: memref<1x512xf32, #tpu.memory_space<vmem>>, %arg5: memref<1x512xf32, #tpu.memory_space<vmem>>, %arg6: memref<16x512xf32, #tpu.memory_space<vmem>>, %arg7: memref<16x512xf32, #tpu.memory_space<vmem>>) attributes {dimension_semantics = [#tpu.dimension_semantics<parallel>, #tpu.dimension_semantics<arbitrary>], iteration_bounds = array<i64: 1, 1>, scalar_prefetch = 0 : i64, scratch_operands = 1 : i64, tpu.core_type = #tpu.core_type<tc>, window_params = [{transform_indices = @transform_0, window_bounds = array<i64: 16, 512>}, {transform_indices = @transform_1, window_bounds = array<i64: 512, 512>}, {pipeline_mode = #tpu.pipeline_mode<synchronous>, transform_indices = @transform_2, window_bounds = array<i64: 1, 512>}, {pipeline_mode = #tpu.pipeline_mode<synchronous>, transform_indices = @transform_3, window_bounds = array<i64: 1, 512>}, {transform_indices = @transform_4, window_bounds = array<i64: 16, 512>}]} {
    %c0_i32 = arith.constant 0 : i32
    %0 = arith.cmpi eq, %arg1, %c0_i32 : i32
    %1 = arith.extui %0 : i1 to i32
    %c0_i32_0 = arith.constant 0 : i32
    %2 = arith.cmpi ne, %1, %c0_i32_0 : i32
    scf.if %2 {
      %cst_10 = arith.constant 0.000000e+00 : f32
      %12 = vector.broadcast %cst_10 : f32 to vector<16x512xf32>
      %c0_11 = arith.constant 0 : index
      %c0_12 = arith.constant 0 : index
      %13 = vector.load %arg7[%c0_11, %c0_12] : memref<16x512xf32, #tpu.memory_space<vmem>>, vector<16x512xf32>
      tpu.vector_store %arg7[%c0_11, %c0_12], %12 {strides = array<i32>} : memref<16x512xf32, #tpu.memory_space<vmem>>, vector<16x512xf32>,
    } else {
    }
    %c0 = arith.constant 0 : index
    %c0_1 = arith.constant 0 : index
    %3 = vector.load %arg7[%c0, %c0_1] : memref<16x512xf32, #tpu.memory_space<vmem>>, vector<16x512xf32>
    %c0_2 = arith.constant 0 : index
    %c0_3 = arith.constant 0 : index
    %4 = vector.load %arg2[%c0_2, %c0_3] : memref<16x512xbf16, #tpu.memory_space<vmem>>, vector<16x512xbf16>
    %c0_4 = arith.constant 0 : index
    %c0_5 = arith.constant 0 : index
    %5 = vector.load %arg3[%c0_4, %c0_5] : memref<512x512xbf16, #tpu.memory_space<vmem>>, vector<512x512xbf16>
    %cst = arith.constant dense<0.000000e+00> : vector<16x512xf32>
    %6 = tpu.matmul %4, %5, %cst {dimension_numbers = #tpu.dot_dimension_numbers<[1], [0], [0], [1], [0, 0, 1, 1], [], []>} : vector<16x512xbf16>, vector<512x512xbf16>, vector<16x512xf32> -> vector<16x512xf32>
    %7 = arith.addf %3, %6 : vector<16x512xf32>
    %c0_6 = arith.constant 0 : index
    %c0_7 = arith.constant 0 : index
    %8 = vector.load %arg7[%c0_6, %c0_7] : memref<16x512xf32, #tpu.memory_space<vmem>>, vector<16x512xf32>
    tpu.vector_store %arg7[%c0_6, %c0_7], %7 {strides = array<i32>} : memref<16x512xf32, #tpu.memory_space<vmem>>, vector<16x512xf32>,
    %c0_i32_8 = arith.constant 0 : i32
    %9 = arith.cmpi eq, %arg1, %c0_i32_8 : i32
    %10 = arith.extui %9 : i1 to i32
    %c0_i32_9 = arith.constant 0 : i32
    %11 = arith.cmpi ne, %10, %c0_i32_9 : i32
    scf.if %11 {
      %c0_10 = arith.constant 0 : index
      %c0_11 = arith.constant 0 : index
      %12 = vector.load %arg7[%c0_10, %c0_11] : memref<16x512xf32, #tpu.memory_space<vmem>>, vector<16x512xf32>
      %c0_12 = arith.constant 0 : index
      %c0_13 = arith.constant 0 : index
      %13 = vector.load %arg4[%c0_12, %c0_13] : memref<1x512xf32, #tpu.memory_space<vmem>>, vector<1x512xf32>
      %14 = vector.broadcast %13 : vector<1x512xf32> to vector<16x512xf32>
      %15 = arith.mulf %12, %14 : vector<16x512xf32>
      %c0_14 = arith.constant 0 : index
      %c0_15 = arith.constant 0 : index
      %16 = vector.load %arg5[%c0_14, %c0_15] : memref<1x512xf32, #tpu.memory_space<vmem>>, vector<1x512xf32>
      %17 = vector.broadcast %16 : vector<1x512xf32> to vector<16x512xf32>
      %18 = arith.addf %15, %17 : vector<16x512xf32>
      %19 = arith.negf %18 : vector<16x512xf32>
      %20 = math.exp %19 : vector<16x512xf32>
      %cst_16 = arith.constant 1.000000e+00 : f32
      %21 = vector.broadcast %cst_16 : f32 to vector<16x512xf32>
      %22 = arith.addf %21, %20 : vector<16x512xf32>
      %23 = arith.divf %21, %22 : vector<16x512xf32>
      %c0_17 = arith.constant 0 : index
      %c0_18 = arith.constant 0 : index
      %24 = vector.load %arg6[%c0_17, %c0_18] : memref<16x512xf32, #tpu.memory_space<vmem>>, vector<16x512xf32>
      tpu.vector_store %arg6[%c0_17, %c0_18], %23 {strides = array<i32>} : memref<16x512xf32, #tpu.memory_space<vmem>>, vector<16x512xf32>,
    } else {
    }
    return
  }
  func.func @transform_0(%arg0: i32, %arg1: i32) -> (i32, i32) {
    %c0_i32 = arith.constant 0 : i32
    return %arg0, %arg1 : i32, i32
  }
  func.func @transform_1(%arg0: i32, %arg1: i32) -> (i32, i32) {
    %c0_i32 = arith.constant 0 : i32
    %c0_i32_0 = arith.constant 0 : i32
    return %arg1, %c0_i32 : i32, i32
  }
  func.func @transform_2(%arg0: i32, %arg1: i32) -> (i32, i32) {
    %c0_i32 = arith.constant 0 : i32
    %c0_i32_0 = arith.constant 0 : i32
    %c0_i32_1 = arith.constant 0 : i32
    return %c0_i32, %c0_i32_0 : i32, i32
  }
  func.func @transform_3(%arg0: i32, %arg1: i32) -> (i32, i32) {
    %c0_i32 = arith.constant 0 : i32
    %c0_i32_0 = arith.constant 0 : i32
    %c0_i32_1 = arith.constant 0 : i32
    return %c0_i32, %c0_i32_0 : i32, i32
  }
  func.func @transform_4(%arg0: i32, %arg1: i32) -> (i32, i32) {
    %c0_i32 = arith.constant 0 : i32
    %c0_i32_0 = arith.constant 0 : i32
    return %arg0, %c0_i32 : i32, i32
  }
}

module attributes {stable_mosaic.version = 11 : i64} {
  func.func @_gate_kernel(%arg0: i32, %arg1: memref<2x4x512xbf16, #tpu.memory_space<vmem>>, %arg2: memref<2x1x512xf32, #tpu.memory_space<vmem>>, %arg3: memref<2x4x512xbf16, #tpu.memory_space<vmem>>) attributes {dimension_semantics = [#tpu.dimension_semantics<parallel>], iteration_bounds = array<i64: 1>, scalar_prefetch = 0 : i64, scratch_operands = 0 : i64, tpu.core_type = #tpu.core_type<tc>, window_params = [{transform_indices = @transform_0, window_bounds = array<i64: 2, 4, 512>}, {pipeline_mode = #tpu.pipeline_mode<synchronous>, transform_indices = @transform_1, window_bounds = array<i64: 2, 1, 512>}, {transform_indices = @transform_2, window_bounds = array<i64: 2, 4, 512>}]} {
    %c0 = arith.constant 0 : index
    %c0_0 = arith.constant 0 : index
    %c0_1 = arith.constant 0 : index
    %0 = vector.load %arg1[%c0, %c0_0, %c0_1] : memref<2x4x512xbf16, #tpu.memory_space<vmem>>, vector<2x4x512xbf16>
    %1 = arith.extf %0 : vector<2x4x512xbf16> to vector<2x4x512xf32>
    %c0_2 = arith.constant 0 : index
    %c0_3 = arith.constant 0 : index
    %c0_4 = arith.constant 0 : index
    %2 = vector.load %arg2[%c0_2, %c0_3, %c0_4] : memref<2x1x512xf32, #tpu.memory_space<vmem>>, vector<2x1x512xf32>
    %3 = vector.broadcast %2 : vector<2x1x512xf32> to vector<2x4x512xf32>
    %4 = arith.mulf %1, %3 : vector<2x4x512xf32>
    %5 = arith.truncf %4 : vector<2x4x512xf32> to vector<2x4x512xbf16>
    %c0_5 = arith.constant 0 : index
    %c0_6 = arith.constant 0 : index
    %c0_7 = arith.constant 0 : index
    %6 = vector.load %arg3[%c0_5, %c0_6, %c0_7] : memref<2x4x512xbf16, #tpu.memory_space<vmem>>, vector<2x4x512xbf16>
    tpu.vector_store %arg3[%c0_5, %c0_6, %c0_7], %5 {strides = array<i32>} : memref<2x4x512xbf16, #tpu.memory_space<vmem>>, vector<2x4x512xbf16>,
    return
  }
  func.func @transform_0(%arg0: i32) -> (i32, i32, i32) {
    %c0_i32 = arith.constant 0 : i32
    %c0_i32_0 = arith.constant 0 : i32
    %c0_i32_1 = arith.constant 0 : i32
    return %c0_i32, %arg0, %c0_i32_0 : i32, i32, i32
  }
  func.func @transform_1(%arg0: i32) -> (i32, i32, i32) {
    %c0_i32 = arith.constant 0 : i32
    %c0_i32_0 = arith.constant 0 : i32
    %c0_i32_1 = arith.constant 0 : i32
    %c0_i32_2 = arith.constant 0 : i32
    return %c0_i32, %c0_i32_0, %c0_i32_1 : i32, i32, i32
  }
  func.func @transform_2(%arg0: i32) -> (i32, i32, i32) {
    %c0_i32 = arith.constant 0 : i32
    %c0_i32_0 = arith.constant 0 : i32
    %c0_i32_1 = arith.constant 0 : i32
    return %c0_i32, %arg0, %c0_i32_0 : i32, i32, i32
  }
}

module attributes {stable_mosaic.version = 11 : i64} {
  func.func @_mm_epilogue_kernel(%arg0: i32, %arg1: i32, %arg2: memref<128x512xbf16, #tpu.memory_space<vmem>>, %arg3: memref<512x128xbf16, #tpu.memory_space<vmem>>, %arg4: memref<1x128xf32, #tpu.memory_space<vmem>>, %arg5: memref<1x128xf32, #tpu.memory_space<vmem>>, %arg6: memref<128x128xbf16, #tpu.memory_space<vmem>>, %arg7: memref<128x128xf32, #tpu.memory_space<vmem>>) attributes {dimension_semantics = [#tpu.dimension_semantics<parallel>, #tpu.dimension_semantics<arbitrary>], iteration_bounds = array<i64: 1, 18>, scalar_prefetch = 0 : i64, scratch_operands = 1 : i64, tpu.core_type = #tpu.core_type<tc>, window_params = [{transform_indices = @transform_0, window_bounds = array<i64: 128, 512>}, {transform_indices = @transform_1, window_bounds = array<i64: 512, 128>}, {pipeline_mode = #tpu.pipeline_mode<synchronous>, transform_indices = @transform_2, window_bounds = array<i64: 1, 128>}, {pipeline_mode = #tpu.pipeline_mode<synchronous>, transform_indices = @transform_3, window_bounds = array<i64: 1, 128>}, {transform_indices = @transform_4, window_bounds = array<i64: 128, 128>}]} {
    %c0_i32 = arith.constant 0 : i32
    %0 = arith.cmpi eq, %arg1, %c0_i32 : i32
    %1 = arith.extui %0 : i1 to i32
    %c0_i32_0 = arith.constant 0 : i32
    %2 = arith.cmpi ne, %1, %c0_i32_0 : i32
    scf.if %2 {
      %cst_9 = arith.constant 0.000000e+00 : f32
      %12 = vector.broadcast %cst_9 : f32 to vector<128x128xf32>
      %c0_10 = arith.constant 0 : index
      %c0_11 = arith.constant 0 : index
      %13 = vector.load %arg7[%c0_10, %c0_11] : memref<128x128xf32, #tpu.memory_space<vmem>>, vector<128x128xf32>
      tpu.vector_store %arg7[%c0_10, %c0_11], %12 {strides = array<i32>} : memref<128x128xf32, #tpu.memory_space<vmem>>, vector<128x128xf32>,
    } else {
    }
    %c0 = arith.constant 0 : index
    %c0_1 = arith.constant 0 : index
    %3 = vector.load %arg7[%c0, %c0_1] : memref<128x128xf32, #tpu.memory_space<vmem>>, vector<128x128xf32>
    %c0_2 = arith.constant 0 : index
    %c0_3 = arith.constant 0 : index
    %4 = vector.load %arg2[%c0_2, %c0_3] : memref<128x512xbf16, #tpu.memory_space<vmem>>, vector<128x512xbf16>
    %c0_4 = arith.constant 0 : index
    %c0_5 = arith.constant 0 : index
    %5 = vector.load %arg3[%c0_4, %c0_5] : memref<512x128xbf16, #tpu.memory_space<vmem>>, vector<512x128xbf16>
    %cst = arith.constant dense<0.000000e+00> : vector<128x128xf32>
    %6 = tpu.matmul %4, %5, %cst {dimension_numbers = #tpu.dot_dimension_numbers<[1], [0], [0], [1], [0, 0, 1, 1], [], []>} : vector<128x512xbf16>, vector<512x128xbf16>, vector<128x128xf32> -> vector<128x128xf32>
    %7 = arith.addf %3, %6 : vector<128x128xf32>
    %c0_6 = arith.constant 0 : index
    %c0_7 = arith.constant 0 : index
    %8 = vector.load %arg7[%c0_6, %c0_7] : memref<128x128xf32, #tpu.memory_space<vmem>>, vector<128x128xf32>
    tpu.vector_store %arg7[%c0_6, %c0_7], %7 {strides = array<i32>} : memref<128x128xf32, #tpu.memory_space<vmem>>, vector<128x128xf32>,
    %c17_i32 = arith.constant 17 : i32
    %9 = arith.cmpi eq, %arg1, %c17_i32 : i32
    %10 = arith.extui %9 : i1 to i32
    %c0_i32_8 = arith.constant 0 : i32
    %11 = arith.cmpi ne, %10, %c0_i32_8 : i32
    scf.if %11 {
      %c0_9 = arith.constant 0 : index
      %c0_10 = arith.constant 0 : index
      %12 = vector.load %arg7[%c0_9, %c0_10] : memref<128x128xf32, #tpu.memory_space<vmem>>, vector<128x128xf32>
      %c0_11 = arith.constant 0 : index
      %c0_12 = arith.constant 0 : index
      %13 = vector.load %arg4[%c0_11, %c0_12] : memref<1x128xf32, #tpu.memory_space<vmem>>, vector<1x128xf32>
      %14 = vector.broadcast %13 : vector<1x128xf32> to vector<128x128xf32>
      %15 = arith.mulf %12, %14 : vector<128x128xf32>
      %c0_13 = arith.constant 0 : index
      %c0_14 = arith.constant 0 : index
      %16 = vector.load %arg5[%c0_13, %c0_14] : memref<1x128xf32, #tpu.memory_space<vmem>>, vector<1x128xf32>
      %17 = vector.broadcast %16 : vector<1x128xf32> to vector<128x128xf32>
      %18 = arith.addf %15, %17 : vector<128x128xf32>
      %cst_15 = arith.constant 0.000000e+00 : f32
      %19 = vector.broadcast %cst_15 : f32 to vector<128x128xf32>
      %20 = arith.maximumf %18, %19 : vector<128x128xf32>
      %21 = arith.truncf %20 : vector<128x128xf32> to vector<128x128xbf16>
      %c0_16 = arith.constant 0 : index
      %c0_17 = arith.constant 0 : index
      %22 = vector.load %arg6[%c0_16, %c0_17] : memref<128x128xbf16, #tpu.memory_space<vmem>>, vector<128x128xbf16>
      tpu.vector_store %arg6[%c0_16, %c0_17], %21 {strides = array<i32>} : memref<128x128xbf16, #tpu.memory_space<vmem>>, vector<128x128xbf16>,
    } else {
    }
    return
  }
  func.func @transform_0(%arg0: i32, %arg1: i32) -> (i32, i32) {
    %c0_i32 = arith.constant 0 : i32
    return %arg0, %arg1 : i32, i32
  }
  func.func @transform_1(%arg0: i32, %arg1: i32) -> (i32, i32) {
    %c0_i32 = arith.constant 0 : i32
    %c0_i32_0 = arith.constant 0 : i32
    return %arg1, %c0_i32 : i32, i32
  }
  func.func @transform_2(%arg0: i32, %arg1: i32) -> (i32, i32) {
    %c0_i32 = arith.constant 0 : i32
    %c0_i32_0 = arith.constant 0 : i32
    %c0_i32_1 = arith.constant 0 : i32
    return %c0_i32, %c0_i32_0 : i32, i32
  }
  func.func @transform_3(%arg0: i32, %arg1: i32) -> (i32, i32) {
    %c0_i32 = arith.constant 0 : i32
    %c0_i32_0 = arith.constant 0 : i32
    %c0_i32_1 = arith.constant 0 : i32
    return %c0_i32, %c0_i32_0 : i32, i32
  }
  func.func @transform_4(%arg0: i32, %arg1: i32) -> (i32, i32) {
    %c0_i32 = arith.constant 0 : i32
    %c0_i32_0 = arith.constant 0 : i32
    return %arg0, %c0_i32 : i32, i32
  }
}

module attributes {stable_mosaic.version = 11 : i64} {
  func.func @_gap_kernel(%arg0: i32, %arg1: memref<2x64x128xbf16, #tpu.memory_space<vmem>>, %arg2: memref<2x128xf32, #tpu.memory_space<vmem>>, %arg3: memref<2x128xf32, #tpu.memory_space<vmem>>) attributes {dimension_semantics = [#tpu.dimension_semantics<arbitrary>], iteration_bounds = array<i64: 1>, scalar_prefetch = 0 : i64, scratch_operands = 1 : i64, tpu.core_type = #tpu.core_type<tc>, window_params = [{transform_indices = @transform_0, window_bounds = array<i64: 2, 64, 128>}, {pipeline_mode = #tpu.pipeline_mode<synchronous>, transform_indices = @transform_1, window_bounds = array<i64: 2, 128>}]} {
    %c0_i32 = arith.constant 0 : i32
    %0 = arith.cmpi eq, %arg0, %c0_i32 : i32
    %1 = arith.extui %0 : i1 to i32
    %c0_i32_0 = arith.constant 0 : i32
    %2 = arith.cmpi ne, %1, %c0_i32_0 : i32
    scf.if %2 {
      %cst_9 = arith.constant 0.000000e+00 : f32
      %12 = vector.broadcast %cst_9 : f32 to vector<2x128xf32>
      %c0_10 = arith.constant 0 : index
      %c0_11 = arith.constant 0 : index
      %13 = vector.load %arg3[%c0_10, %c0_11] : memref<2x128xf32, #tpu.memory_space<vmem>>, vector<2x128xf32>
      tpu.vector_store %arg3[%c0_10, %c0_11], %12 {strides = array<i32>} : memref<2x128xf32, #tpu.memory_space<vmem>>, vector<2x128xf32>,
    } else {
    }
    %c0 = arith.constant 0 : index
    %c0_1 = arith.constant 0 : index
    %3 = vector.load %arg3[%c0, %c0_1] : memref<2x128xf32, #tpu.memory_space<vmem>>, vector<2x128xf32>
    %c0_2 = arith.constant 0 : index
    %c0_3 = arith.constant 0 : index
    %c0_4 = arith.constant 0 : index
    %4 = vector.load %arg1[%c0_2, %c0_3, %c0_4] : memref<2x64x128xbf16, #tpu.memory_space<vmem>>, vector<2x64x128xbf16>
    %5 = arith.extf %4 : vector<2x64x128xbf16> to vector<2x64x128xf32>
    %cst = arith.constant dense<0.000000e+00> : vector<2x128xf32>
    %6 = vector.multi_reduction <add>, %5, %cst [1] : vector<2x64x128xf32> to vector<2x128xf32>
    %7 = arith.addf %3, %6 : vector<2x128xf32>
    %c0_5 = arith.constant 0 : index
    %c0_6 = arith.constant 0 : index
    %8 = vector.load %arg3[%c0_5, %c0_6] : memref<2x128xf32, #tpu.memory_space<vmem>>, vector<2x128xf32>
    tpu.vector_store %arg3[%c0_5, %c0_6], %7 {strides = array<i32>} : memref<2x128xf32, #tpu.memory_space<vmem>>, vector<2x128xf32>,
    %c0_i32_7 = arith.constant 0 : i32
    %9 = arith.cmpi eq, %arg0, %c0_i32_7 : i32
    %10 = arith.extui %9 : i1 to i32
    %c0_i32_8 = arith.constant 0 : i32
    %11 = arith.cmpi ne, %10, %c0_i32_8 : i32
    scf.if %11 {
      %c0_9 = arith.constant 0 : index
      %c0_10 = arith.constant 0 : index
      %12 = vector.load %arg3[%c0_9, %c0_10] : memref<2x128xf32, #tpu.memory_space<vmem>>, vector<2x128xf32>
      %cst_11 = arith.constant 1.562500e-02 : f32
      %13 = vector.broadcast %cst_11 : f32 to vector<2x128xf32>
      %14 = arith.mulf %12, %13 : vector<2x128xf32>
      %c0_12 = arith.constant 0 : index
      %c0_13 = arith.constant 0 : index
      %15 = vector.load %arg2[%c0_12, %c0_13] : memref<2x128xf32, #tpu.memory_space<vmem>>, vector<2x128xf32>
      tpu.vector_store %arg2[%c0_12, %c0_13], %14 {strides = array<i32>} : memref<2x128xf32, #tpu.memory_space<vmem>>, vector<2x128xf32>,
    } else {
    }
    return
  }
  func.func @transform_0(%arg0: i32) -> (i32, i32, i32) {
    %c0_i32 = arith.constant 0 : i32
    %c0_i32_0 = arith.constant 0 : i32
    %c0_i32_1 = arith.constant 0 : i32
    return %c0_i32, %arg0, %c0_i32_0 : i32, i32, i32
  }
  func.func @transform_1(%arg0: i32) -> (i32, i32) {
    %c0_i32 = arith.constant 0 : i32
    %c0_i32_0 = arith.constant 0 : i32
    %c0_i32_1 = arith.constant 0 : i32
    return %c0_i32, %c0_i32_0 : i32, i32
  }
}

module attributes {stable_mosaic.version = 11 : i64} {
  func.func @_mm_epilogue_kernel(%arg0: i32, %arg1: i32, %arg2: memref<16x128xbf16, #tpu.memory_space<vmem>>, %arg3: memref<128x128xbf16, #tpu.memory_space<vmem>>, %arg4: memref<1x128xf32, #tpu.memory_space<vmem>>, %arg5: memref<1x128xf32, #tpu.memory_space<vmem>>, %arg6: memref<16x128xf32, #tpu.memory_space<vmem>>, %arg7: memref<16x128xf32, #tpu.memory_space<vmem>>) attributes {dimension_semantics = [#tpu.dimension_semantics<parallel>, #tpu.dimension_semantics<arbitrary>], iteration_bounds = array<i64: 1, 1>, scalar_prefetch = 0 : i64, scratch_operands = 1 : i64, tpu.core_type = #tpu.core_type<tc>, window_params = [{transform_indices = @transform_0, window_bounds = array<i64: 16, 128>}, {transform_indices = @transform_1, window_bounds = array<i64: 128, 128>}, {pipeline_mode = #tpu.pipeline_mode<synchronous>, transform_indices = @transform_2, window_bounds = array<i64: 1, 128>}, {pipeline_mode = #tpu.pipeline_mode<synchronous>, transform_indices = @transform_3, window_bounds = array<i64: 1, 128>}, {transform_indices = @transform_4, window_bounds = array<i64: 16, 128>}]} {
    %c0_i32 = arith.constant 0 : i32
    %0 = arith.cmpi eq, %arg1, %c0_i32 : i32
    %1 = arith.extui %0 : i1 to i32
    %c0_i32_0 = arith.constant 0 : i32
    %2 = arith.cmpi ne, %1, %c0_i32_0 : i32
    scf.if %2 {
      %cst_10 = arith.constant 0.000000e+00 : f32
      %12 = vector.broadcast %cst_10 : f32 to vector<16x128xf32>
      %c0_11 = arith.constant 0 : index
      %c0_12 = arith.constant 0 : index
      %13 = vector.load %arg7[%c0_11, %c0_12] : memref<16x128xf32, #tpu.memory_space<vmem>>, vector<16x128xf32>
      tpu.vector_store %arg7[%c0_11, %c0_12], %12 {strides = array<i32>} : memref<16x128xf32, #tpu.memory_space<vmem>>, vector<16x128xf32>,
    } else {
    }
    %c0 = arith.constant 0 : index
    %c0_1 = arith.constant 0 : index
    %3 = vector.load %arg7[%c0, %c0_1] : memref<16x128xf32, #tpu.memory_space<vmem>>, vector<16x128xf32>
    %c0_2 = arith.constant 0 : index
    %c0_3 = arith.constant 0 : index
    %4 = vector.load %arg2[%c0_2, %c0_3] : memref<16x128xbf16, #tpu.memory_space<vmem>>, vector<16x128xbf16>
    %c0_4 = arith.constant 0 : index
    %c0_5 = arith.constant 0 : index
    %5 = vector.load %arg3[%c0_4, %c0_5] : memref<128x128xbf16, #tpu.memory_space<vmem>>, vector<128x128xbf16>
    %cst = arith.constant dense<0.000000e+00> : vector<16x128xf32>
    %6 = tpu.matmul %4, %5, %cst {dimension_numbers = #tpu.dot_dimension_numbers<[1], [0], [0], [1], [0, 0, 1, 1], [], []>} : vector<16x128xbf16>, vector<128x128xbf16>, vector<16x128xf32> -> vector<16x128xf32>
    %7 = arith.addf %3, %6 : vector<16x128xf32>
    %c0_6 = arith.constant 0 : index
    %c0_7 = arith.constant 0 : index
    %8 = vector.load %arg7[%c0_6, %c0_7] : memref<16x128xf32, #tpu.memory_space<vmem>>, vector<16x128xf32>
    tpu.vector_store %arg7[%c0_6, %c0_7], %7 {strides = array<i32>} : memref<16x128xf32, #tpu.memory_space<vmem>>, vector<16x128xf32>,
    %c0_i32_8 = arith.constant 0 : i32
    %9 = arith.cmpi eq, %arg1, %c0_i32_8 : i32
    %10 = arith.extui %9 : i1 to i32
    %c0_i32_9 = arith.constant 0 : i32
    %11 = arith.cmpi ne, %10, %c0_i32_9 : i32
    scf.if %11 {
      %c0_10 = arith.constant 0 : index
      %c0_11 = arith.constant 0 : index
      %12 = vector.load %arg7[%c0_10, %c0_11] : memref<16x128xf32, #tpu.memory_space<vmem>>, vector<16x128xf32>
      %c0_12 = arith.constant 0 : index
      %c0_13 = arith.constant 0 : index
      %13 = vector.load %arg4[%c0_12, %c0_13] : memref<1x128xf32, #tpu.memory_space<vmem>>, vector<1x128xf32>
      %14 = vector.broadcast %13 : vector<1x128xf32> to vector<16x128xf32>
      %15 = arith.mulf %12, %14 : vector<16x128xf32>
      %c0_14 = arith.constant 0 : index
      %c0_15 = arith.constant 0 : index
      %16 = vector.load %arg5[%c0_14, %c0_15] : memref<1x128xf32, #tpu.memory_space<vmem>>, vector<1x128xf32>
      %17 = vector.broadcast %16 : vector<1x128xf32> to vector<16x128xf32>
      %18 = arith.addf %15, %17 : vector<16x128xf32>
      %cst_16 = arith.constant 0.000000e+00 : f32
      %19 = vector.broadcast %cst_16 : f32 to vector<16x128xf32>
      %20 = arith.maximumf %18, %19 : vector<16x128xf32>
      %c0_17 = arith.constant 0 : index
      %c0_18 = arith.constant 0 : index
      %21 = vector.load %arg6[%c0_17, %c0_18] : memref<16x128xf32, #tpu.memory_space<vmem>>, vector<16x128xf32>
      tpu.vector_store %arg6[%c0_17, %c0_18], %20 {strides = array<i32>} : memref<16x128xf32, #tpu.memory_space<vmem>>, vector<16x128xf32>,
    } else {
    }
    return
  }
  func.func @transform_0(%arg0: i32, %arg1: i32) -> (i32, i32) {
    %c0_i32 = arith.constant 0 : i32
    return %arg0, %arg1 : i32, i32
  }
  func.func @transform_1(%arg0: i32, %arg1: i32) -> (i32, i32) {
    %c0_i32 = arith.constant 0 : i32
    %c0_i32_0 = arith.constant 0 : i32
    return %arg1, %c0_i32 : i32, i32
  }
  func.func @transform_2(%arg0: i32, %arg1: i32) -> (i32, i32) {
    %c0_i32 = arith.constant 0 : i32
    %c0_i32_0 = arith.constant 0 : i32
    %c0_i32_1 = arith.constant 0 : i32
    return %c0_i32, %c0_i32_0 : i32, i32
  }
  func.func @transform_3(%arg0: i32, %arg1: i32) -> (i32, i32) {
    %c0_i32 = arith.constant 0 : i32
    %c0_i32_0 = arith.constant 0 : i32
    %c0_i32_1 = arith.constant 0 : i32
    return %c0_i32, %c0_i32_0 : i32, i32
  }
  func.func @transform_4(%arg0: i32, %arg1: i32) -> (i32, i32) {
    %c0_i32 = arith.constant 0 : i32
    %c0_i32_0 = arith.constant 0 : i32
    return %arg0, %c0_i32 : i32, i32
  }
}

module attributes {stable_mosaic.version = 11 : i64} {
  func.func @_mm_epilogue_kernel(%arg0: i32, %arg1: i32, %arg2: memref<16x128xbf16, #tpu.memory_space<vmem>>, %arg3: memref<128x128xbf16, #tpu.memory_space<vmem>>, %arg4: memref<1x128xf32, #tpu.memory_space<vmem>>, %arg5: memref<1x128xf32, #tpu.memory_space<vmem>>, %arg6: memref<16x128xf32, #tpu.memory_space<vmem>>, %arg7: memref<16x128xf32, #tpu.memory_space<vmem>>) attributes {dimension_semantics = [#tpu.dimension_semantics<parallel>, #tpu.dimension_semantics<arbitrary>], iteration_bounds = array<i64: 1, 1>, scalar_prefetch = 0 : i64, scratch_operands = 1 : i64, tpu.core_type = #tpu.core_type<tc>, window_params = [{transform_indices = @transform_0, window_bounds = array<i64: 16, 128>}, {transform_indices = @transform_1, window_bounds = array<i64: 128, 128>}, {pipeline_mode = #tpu.pipeline_mode<synchronous>, transform_indices = @transform_2, window_bounds = array<i64: 1, 128>}, {pipeline_mode = #tpu.pipeline_mode<synchronous>, transform_indices = @transform_3, window_bounds = array<i64: 1, 128>}, {transform_indices = @transform_4, window_bounds = array<i64: 16, 128>}]} {
    %c0_i32 = arith.constant 0 : i32
    %0 = arith.cmpi eq, %arg1, %c0_i32 : i32
    %1 = arith.extui %0 : i1 to i32
    %c0_i32_0 = arith.constant 0 : i32
    %2 = arith.cmpi ne, %1, %c0_i32_0 : i32
    scf.if %2 {
      %cst_10 = arith.constant 0.000000e+00 : f32
      %12 = vector.broadcast %cst_10 : f32 to vector<16x128xf32>
      %c0_11 = arith.constant 0 : index
      %c0_12 = arith.constant 0 : index
      %13 = vector.load %arg7[%c0_11, %c0_12] : memref<16x128xf32, #tpu.memory_space<vmem>>, vector<16x128xf32>
      tpu.vector_store %arg7[%c0_11, %c0_12], %12 {strides = array<i32>} : memref<16x128xf32, #tpu.memory_space<vmem>>, vector<16x128xf32>,
    } else {
    }
    %c0 = arith.constant 0 : index
    %c0_1 = arith.constant 0 : index
    %3 = vector.load %arg7[%c0, %c0_1] : memref<16x128xf32, #tpu.memory_space<vmem>>, vector<16x128xf32>
    %c0_2 = arith.constant 0 : index
    %c0_3 = arith.constant 0 : index
    %4 = vector.load %arg2[%c0_2, %c0_3] : memref<16x128xbf16, #tpu.memory_space<vmem>>, vector<16x128xbf16>
    %c0_4 = arith.constant 0 : index
    %c0_5 = arith.constant 0 : index
    %5 = vector.load %arg3[%c0_4, %c0_5] : memref<128x128xbf16, #tpu.memory_space<vmem>>, vector<128x128xbf16>
    %cst = arith.constant dense<0.000000e+00> : vector<16x128xf32>
    %6 = tpu.matmul %4, %5, %cst {dimension_numbers = #tpu.dot_dimension_numbers<[1], [0], [0], [1], [0, 0, 1, 1], [], []>} : vector<16x128xbf16>, vector<128x128xbf16>, vector<16x128xf32> -> vector<16x128xf32>
    %7 = arith.addf %3, %6 : vector<16x128xf32>
    %c0_6 = arith.constant 0 : index
    %c0_7 = arith.constant 0 : index
    %8 = vector.load %arg7[%c0_6, %c0_7] : memref<16x128xf32, #tpu.memory_space<vmem>>, vector<16x128xf32>
    tpu.vector_store %arg7[%c0_6, %c0_7], %7 {strides = array<i32>} : memref<16x128xf32, #tpu.memory_space<vmem>>, vector<16x128xf32>,
    %c0_i32_8 = arith.constant 0 : i32
    %9 = arith.cmpi eq, %arg1, %c0_i32_8 : i32
    %10 = arith.extui %9 : i1 to i32
    %c0_i32_9 = arith.constant 0 : i32
    %11 = arith.cmpi ne, %10, %c0_i32_9 : i32
    scf.if %11 {
      %c0_10 = arith.constant 0 : index
      %c0_11 = arith.constant 0 : index
      %12 = vector.load %arg7[%c0_10, %c0_11] : memref<16x128xf32, #tpu.memory_space<vmem>>, vector<16x128xf32>
      %c0_12 = arith.constant 0 : index
      %c0_13 = arith.constant 0 : index
      %13 = vector.load %arg4[%c0_12, %c0_13] : memref<1x128xf32, #tpu.memory_space<vmem>>, vector<1x128xf32>
      %14 = vector.broadcast %13 : vector<1x128xf32> to vector<16x128xf32>
      %15 = arith.mulf %12, %14 : vector<16x128xf32>
      %c0_14 = arith.constant 0 : index
      %c0_15 = arith.constant 0 : index
      %16 = vector.load %arg5[%c0_14, %c0_15] : memref<1x128xf32, #tpu.memory_space<vmem>>, vector<1x128xf32>
      %17 = vector.broadcast %16 : vector<1x128xf32> to vector<16x128xf32>
      %18 = arith.addf %15, %17 : vector<16x128xf32>
      %19 = arith.negf %18 : vector<16x128xf32>
      %20 = math.exp %19 : vector<16x128xf32>
      %cst_16 = arith.constant 1.000000e+00 : f32
      %21 = vector.broadcast %cst_16 : f32 to vector<16x128xf32>
      %22 = arith.addf %21, %20 : vector<16x128xf32>
      %23 = arith.divf %21, %22 : vector<16x128xf32>
      %c0_17 = arith.constant 0 : index
      %c0_18 = arith.constant 0 : index
      %24 = vector.load %arg6[%c0_17, %c0_18] : memref<16x128xf32, #tpu.memory_space<vmem>>, vector<16x128xf32>
      tpu.vector_store %arg6[%c0_17, %c0_18], %23 {strides = array<i32>} : memref<16x128xf32, #tpu.memory_space<vmem>>, vector<16x128xf32>,
    } else {
    }
    return
  }
  func.func @transform_0(%arg0: i32, %arg1: i32) -> (i32, i32) {
    %c0_i32 = arith.constant 0 : i32
    return %arg0, %arg1 : i32, i32
  }
  func.func @transform_1(%arg0: i32, %arg1: i32) -> (i32, i32) {
    %c0_i32 = arith.constant 0 : i32
    %c0_i32_0 = arith.constant 0 : i32
    return %arg1, %c0_i32 : i32, i32
  }
  func.func @transform_2(%arg0: i32, %arg1: i32) -> (i32, i32) {
    %c0_i32 = arith.constant 0 : i32
    %c0_i32_0 = arith.constant 0 : i32
    %c0_i32_1 = arith.constant 0 : i32
    return %c0_i32, %c0_i32_0 : i32, i32
  }
  func.func @transform_3(%arg0: i32, %arg1: i32) -> (i32, i32) {
    %c0_i32 = arith.constant 0 : i32
    %c0_i32_0 = arith.constant 0 : i32
    %c0_i32_1 = arith.constant 0 : i32
    return %c0_i32, %c0_i32_0 : i32, i32
  }
  func.func @transform_4(%arg0: i32, %arg1: i32) -> (i32, i32) {
    %c0_i32 = arith.constant 0 : i32
    %c0_i32_0 = arith.constant 0 : i32
    return %arg0, %c0_i32 : i32, i32
  }
}

module attributes {stable_mosaic.version = 11 : i64} {
  func.func @_gate_kernel(%arg0: i32, %arg1: memref<2x64x128xbf16, #tpu.memory_space<vmem>>, %arg2: memref<2x1x128xf32, #tpu.memory_space<vmem>>, %arg3: memref<2x64x128xbf16, #tpu.memory_space<vmem>>) attributes {dimension_semantics = [#tpu.dimension_semantics<parallel>], iteration_bounds = array<i64: 1>, scalar_prefetch = 0 : i64, scratch_operands = 0 : i64, tpu.core_type = #tpu.core_type<tc>, window_params = [{transform_indices = @transform_0, window_bounds = array<i64: 2, 64, 128>}, {pipeline_mode = #tpu.pipeline_mode<synchronous>, transform_indices = @transform_1, window_bounds = array<i64: 2, 1, 128>}, {transform_indices = @transform_2, window_bounds = array<i64: 2, 64, 128>}]} {
    %c0 = arith.constant 0 : index
    %c0_0 = arith.constant 0 : index
    %c0_1 = arith.constant 0 : index
    %0 = vector.load %arg1[%c0, %c0_0, %c0_1] : memref<2x64x128xbf16, #tpu.memory_space<vmem>>, vector<2x64x128xbf16>
    %1 = arith.extf %0 : vector<2x64x128xbf16> to vector<2x64x128xf32>
    %c0_2 = arith.constant 0 : index
    %c0_3 = arith.constant 0 : index
    %c0_4 = arith.constant 0 : index
    %2 = vector.load %arg2[%c0_2, %c0_3, %c0_4] : memref<2x1x128xf32, #tpu.memory_space<vmem>>, vector<2x1x128xf32>
    %cst = arith.constant 1.000000e+00 : f32
    %3 = vector.broadcast %cst : f32 to vector<2x1x128xf32>
    %4 = arith.addf %2, %3 : vector<2x1x128xf32>
    %5 = vector.broadcast %4 : vector<2x1x128xf32> to vector<2x64x128xf32>
    %6 = arith.mulf %1, %5 : vector<2x64x128xf32>
    %7 = arith.truncf %6 : vector<2x64x128xf32> to vector<2x64x128xbf16>
    %c0_5 = arith.constant 0 : index
    %c0_6 = arith.constant 0 : index
    %c0_7 = arith.constant 0 : index
    %8 = vector.load %arg3[%c0_5, %c0_6, %c0_7] : memref<2x64x128xbf16, #tpu.memory_space<vmem>>, vector<2x64x128xbf16>
    tpu.vector_store %arg3[%c0_5, %c0_6, %c0_7], %7 {strides = array<i32>} : memref<2x64x128xbf16, #tpu.memory_space<vmem>>, vector<2x64x128xbf16>,
    return
  }
  func.func @transform_0(%arg0: i32) -> (i32, i32, i32) {
    %c0_i32 = arith.constant 0 : i32
    %c0_i32_0 = arith.constant 0 : i32
    %c0_i32_1 = arith.constant 0 : i32
    return %c0_i32, %arg0, %c0_i32_0 : i32, i32, i32
  }
  func.func @transform_1(%arg0: i32) -> (i32, i32, i32) {
    %c0_i32 = arith.constant 0 : i32
    %c0_i32_0 = arith.constant 0 : i32
    %c0_i32_1 = arith.constant 0 : i32
    %c0_i32_2 = arith.constant 0 : i32
    return %c0_i32, %c0_i32_0, %c0_i32_1 : i32, i32, i32
  }
  func.func @transform_2(%arg0: i32) -> (i32, i32, i32) {
    %c0_i32 = arith.constant 0 : i32
    %c0_i32_0 = arith.constant 0 : i32
    %c0_i32_1 = arith.constant 0 : i32
    return %c0_i32, %arg0, %c0_i32_0 : i32, i32, i32
  }
}

module attributes {stable_mosaic.version = 11 : i64} {
  func.func @_mm_epilogue_kernel(%arg0: i32, %arg1: i32, %arg2: memref<128x128xbf16, #tpu.memory_space<vmem>>, %arg3: memref<128x128xbf16, #tpu.memory_space<vmem>>, %arg4: memref<1x128xf32, #tpu.memory_space<vmem>>, %arg5: memref<1x128xf32, #tpu.memory_space<vmem>>, %arg6: memref<128x128xf32, #tpu.memory_space<vmem>>, %arg7: memref<128x128xf32, #tpu.memory_space<vmem>>) attributes {dimension_semantics = [#tpu.dimension_semantics<parallel>, #tpu.dimension_semantics<arbitrary>], iteration_bounds = array<i64: 1, 1>, scalar_prefetch = 0 : i64, scratch_operands = 1 : i64, tpu.core_type = #tpu.core_type<tc>, window_params = [{transform_indices = @transform_0, window_bounds = array<i64: 128, 128>}, {transform_indices = @transform_1, window_bounds = array<i64: 128, 128>}, {pipeline_mode = #tpu.pipeline_mode<synchronous>, transform_indices = @transform_2, window_bounds = array<i64: 1, 128>}, {pipeline_mode = #tpu.pipeline_mode<synchronous>, transform_indices = @transform_3, window_bounds = array<i64: 1, 128>}, {transform_indices = @transform_4, window_bounds = array<i64: 128, 128>}]} {
    %c0_i32 = arith.constant 0 : i32
    %0 = arith.cmpi eq, %arg1, %c0_i32 : i32
    %1 = arith.extui %0 : i1 to i32
    %c0_i32_0 = arith.constant 0 : i32
    %2 = arith.cmpi ne, %1, %c0_i32_0 : i32
    scf.if %2 {
      %cst_10 = arith.constant 0.000000e+00 : f32
      %12 = vector.broadcast %cst_10 : f32 to vector<128x128xf32>
      %c0_11 = arith.constant 0 : index
      %c0_12 = arith.constant 0 : index
      %13 = vector.load %arg7[%c0_11, %c0_12] : memref<128x128xf32, #tpu.memory_space<vmem>>, vector<128x128xf32>
      tpu.vector_store %arg7[%c0_11, %c0_12], %12 {strides = array<i32>} : memref<128x128xf32, #tpu.memory_space<vmem>>, vector<128x128xf32>,
    } else {
    }
    %c0 = arith.constant 0 : index
    %c0_1 = arith.constant 0 : index
    %3 = vector.load %arg7[%c0, %c0_1] : memref<128x128xf32, #tpu.memory_space<vmem>>, vector<128x128xf32>
    %c0_2 = arith.constant 0 : index
    %c0_3 = arith.constant 0 : index
    %4 = vector.load %arg2[%c0_2, %c0_3] : memref<128x128xbf16, #tpu.memory_space<vmem>>, vector<128x128xbf16>
    %c0_4 = arith.constant 0 : index
    %c0_5 = arith.constant 0 : index
    %5 = vector.load %arg3[%c0_4, %c0_5] : memref<128x128xbf16, #tpu.memory_space<vmem>>, vector<128x128xbf16>
    %cst = arith.constant dense<0.000000e+00> : vector<128x128xf32>
    %6 = tpu.matmul %4, %5, %cst {dimension_numbers = #tpu.dot_dimension_numbers<[1], [0], [0], [1], [0, 0, 1, 1], [], []>} : vector<128x128xbf16>, vector<128x128xbf16>, vector<128x128xf32> -> vector<128x128xf32>
    %7 = arith.addf %3, %6 : vector<128x128xf32>
    %c0_6 = arith.constant 0 : index
    %c0_7 = arith.constant 0 : index
    %8 = vector.load %arg7[%c0_6, %c0_7] : memref<128x128xf32, #tpu.memory_space<vmem>>, vector<128x128xf32>
    tpu.vector_store %arg7[%c0_6, %c0_7], %7 {strides = array<i32>} : memref<128x128xf32, #tpu.memory_space<vmem>>, vector<128x128xf32>,
    %c0_i32_8 = arith.constant 0 : i32
    %9 = arith.cmpi eq, %arg1, %c0_i32_8 : i32
    %10 = arith.extui %9 : i1 to i32
    %c0_i32_9 = arith.constant 0 : i32
    %11 = arith.cmpi ne, %10, %c0_i32_9 : i32
    scf.if %11 {
      %c0_10 = arith.constant 0 : index
      %c0_11 = arith.constant 0 : index
      %12 = vector.load %arg7[%c0_10, %c0_11] : memref<128x128xf32, #tpu.memory_space<vmem>>, vector<128x128xf32>
      %c0_12 = arith.constant 0 : index
      %c0_13 = arith.constant 0 : index
      %13 = vector.load %arg4[%c0_12, %c0_13] : memref<1x128xf32, #tpu.memory_space<vmem>>, vector<1x128xf32>
      %14 = vector.broadcast %13 : vector<1x128xf32> to vector<128x128xf32>
      %15 = arith.mulf %12, %14 : vector<128x128xf32>
      %c0_14 = arith.constant 0 : index
      %c0_15 = arith.constant 0 : index
      %16 = vector.load %arg5[%c0_14, %c0_15] : memref<1x128xf32, #tpu.memory_space<vmem>>, vector<1x128xf32>
      %17 = vector.broadcast %16 : vector<1x128xf32> to vector<128x128xf32>
      %18 = arith.addf %15, %17 : vector<128x128xf32>
      %c0_16 = arith.constant 0 : index
      %c0_17 = arith.constant 0 : index
      %19 = vector.load %arg6[%c0_16, %c0_17] : memref<128x128xf32, #tpu.memory_space<vmem>>, vector<128x128xf32>
      tpu.vector_store %arg6[%c0_16, %c0_17], %18 {strides = array<i32>} : memref<128x128xf32, #tpu.memory_space<vmem>>, vector<128x128xf32>,
    } else {
    }
    return
  }
  func.func @transform_0(%arg0: i32, %arg1: i32) -> (i32, i32) {
    %c0_i32 = arith.constant 0 : i32
    return %arg0, %arg1 : i32, i32
  }
  func.func @transform_1(%arg0: i32, %arg1: i32) -> (i32, i32) {
    %c0_i32 = arith.constant 0 : i32
    %c0_i32_0 = arith.constant 0 : i32
    return %arg1, %c0_i32 : i32, i32
  }
  func.func @transform_2(%arg0: i32, %arg1: i32) -> (i32, i32) {
    %c0_i32 = arith.constant 0 : i32
    %c0_i32_0 = arith.constant 0 : i32
    %c0_i32_1 = arith.constant 0 : i32
    return %c0_i32, %c0_i32_0 : i32, i32
  }
  func.func @transform_3(%arg0: i32, %arg1: i32) -> (i32, i32) {
    %c0_i32 = arith.constant 0 : i32
    %c0_i32_0 = arith.constant 0 : i32
    %c0_i32_1 = arith.constant 0 : i32
    return %c0_i32, %c0_i32_0 : i32, i32
  }
  func.func @transform_4(%arg0: i32, %arg1: i32) -> (i32, i32) {
    %c0_i32 = arith.constant 0 : i32
    %c0_i32_0 = arith.constant 0 : i32
    return %arg0, %c0_i32 : i32, i32
  }
}

</mosaic_0001>

<bundles_post_ra>
// kernel: bisenet_forward.21
= control target key start
LH: loop header
LB: loop body
LE: loop exit
PB: predicated region body
PF: predicated region fallthrough
CT: control target
= control target key end

     0   :  { %s1379_s15 = smov 0   ;;  %s1381_s16 = smov 0   ;;  %s1700_s0 = inlined_call_operand.vmem [shape: bf16[2048,27], index: 0, kind: input, shape index: {}]   ;;  %s1701_s1 = inlined_call_operand.vmem [shape: bf16[27,64], index: 1, kind: input, shape index: {}]   ;;  %s1702_s2 = inlined_call_operand.vmem [shape: f32[1,64], index: 2, kind: input, shape index: {}]   ;;  %s1703_s3 = inlined_call_operand.vmem [shape: f32[1,64], index: 3, kind: input, shape index: {}]   ;;  %s1704_s4 = inlined_call_operand.vmem [shape: bf16[2048,64], index: 4, kind: output, shape index: {}]  }
   0x1   :  { %s1383_s17 = smov 0  }
   0x2 LB: > { %s26_s18 = sadd.s32 1, %s1346_s16  ;;  %p1119_p0 = scmp.ge.s32.totalorder %s1350_s17, 1  ;;  %s1350_s17 = sphi %s1383_s17, %s14_s17   ;;  %s1346_s16 = sphi %s1381_s16, %s1707_s16   ;;  %s1342_s15 = sphi %s1379_s15, %s1706_s15  }
   0x3   : > { %p28_p1 = scmp.ge.s32.totalorder %s26_s18, 8  ;;  %p191_p2 = scmp.lt.s32.totalorder %s1350_s17, 9 }
   0x5   : > { %s1709_s18 = smov (%p28_p1, %s26_s18), 0  ;;  %p192_p3 = pnand %p1119_p0, %p191_p2 }
   0x6   : > { %v1310_v0 = vld [vmem:[%s1701_s1] sm:$0xff] (!%p192_p3)   ;;  %vm492_vm0 = vcmask (!%p192_p3), 1044480   ;;  %v1311_v1 = vld [vmem:[%s1701_s1 + $0x8] sm:$0x3f] (!%p192_p3)   ;;  %vm493_vm1 = vcmask (!%p192_p3), 1045504   ;;  %s1120_s23 = sshll.u32 (!%p192_p3), %s1342_s15, 5 }
   0x7   : > { %195 = sbr.rel (%p192_p3) target bundleno = 291 (0x123), region = 36  ;;  %1244 = vmatprep.subr.bf16.mxu0 (!%p192_p3), %v1310_v0  ;;  %1280 = vmatprep.subr.bf16.mxu1 (!%p192_p3), %v1310_v0  ;;  %vm251_vm2 = vcmask (!%p192_p3), 523264   ;;  %v1352_v2 = vmov (!%p192_p3), 65535   ;;  %p1408_p4 = scmp.lt.s32.totalorder (!%p192_p3), %s1120_s23, 255  ;;  %v1353_v5 = vmov (!%p192_p3), 0.0   ;;  %vm443_vm3 = vcmask (!%p192_p3), 220160  }
   0x8   : > { %1245 = vmatpush3.bf16.msra.mxu0 (!%p192_p3), %v1310_v0  ;;  %1282 = vmatpush3.bf16.msra.mxu1 (!%p192_p3), %v1310_v0  ;;  %v494_v3 = vsel (!%p192_p3), %vm492_vm0, 4294967295, %v1352_v2  ;;  %254 = vst.msk [vmem:[#allocation2 + $0x10] sm:$0xff] (!%p192_p3), %vm251_vm2, %v1353_v5  ;;  %252 = vst.msk [vmem:[#allocation2] sm:$0xff] (!%p192_p3), %vm251_vm2, %v1353_v5  ;;  %v1501_v50 = vld [vmem:[%s1702_s2] ss:$0 sm:$0xff] (!%p192_p3)  ;;  %vm998_vm4 = vcmask (!%p192_p3), 519168  }
   0x9   : > { %v495_v4 = vsel (!%p192_p3), %vm493_vm1, %v494_v3, 0  ;;  %253 = vst.msk [vmem:[#allocation2 + $0x8] sm:$0xff] (!%p192_p3), %vm251_vm2, %v1353_v5  ;;  %255 = vst.msk [vmem:[#allocation2 + $0x18] sm:$0xff] (!%p192_p3), %vm251_vm2, %v1353_v5  ;;  %v1506_v60 = vld [vmem:[%s1703_s3] ss:$0 sm:$0xff] (!%p192_p3) }
   0xa   : > { %256 = vst.msk [vmem:[#allocation2 + $0x20] sm:$0xff] (!%p192_p3), %vm251_vm2, %v1353_v5  ;;  %257 = vst.msk [vmem:[#allocation2 + $0x28] sm:$0xff] (!%p192_p3), %vm251_vm2, %v1353_v5  ;;  %v497_v6 = vand.u32 (!%p192_p3), %v1311_v1, %v495_v4 }
   0xb   : > { %258 = vst.msk [vmem:[#allocation2 + $0x30] sm:$0xff] (!%p192_p3), %vm251_vm2, %v1353_v5  ;;  %259 = vst.msk [vmem:[#allocation2 + $0x38] sm:$0xff] (!%p192_p3), %vm251_vm2, %v1353_v5 }
   0xc   : > { %260 = vst.msk [vmem:[#allocation2 + $0x40] sm:$0xff] (!%p192_p3), %vm251_vm2, %v1353_v5  ;;  %261 = vst.msk [vmem:[#allocation2 + $0x48] sm:$0xff] (!%p192_p3), %vm251_vm2, %v1353_v5  ;;  %1246 = vmatprep.subr.bf16.mxu0 (!%p192_p3), %v497_v6  ;;  %1281 = vmatprep.subr.bf16.mxu1 (!%p192_p3), %v497_v6 }
   0xd   : > { %262 = vst.msk [vmem:[#allocation2 + $0x50] sm:$0xff] (!%p192_p3), %vm251_vm2, %v1353_v5  ;;  %263 = vst.msk [vmem:[#allocation2 + $0x58] sm:$0xff] (!%p192_p3), %vm251_vm2, %v1353_v5  ;;  %1247 = vmatpush3.bf16.msra.mxu0 (!%p192_p3), %v497_v6  ;;  %1283 = vmatpush3.bf16.msra.mxu1 (!%p192_p3), %v497_v6 }
   0xe   : > { %264 = vst.msk [vmem:[#allocation2 + $0x60] sm:$0xff] %vm251_vm2, %v1353_v5  ;;  %265 = vst.msk [vmem:[#allocation2 + $0x68] sm:$0xff] %vm251_vm2, %v1353_v5  ;;  %s1711_s23 = smov (!%p1408_p4, %s1120_s23), 255 }
   0xf   : > { %266 = vst.msk [vmem:[#allocation2 + $0x70] sm:$0xff] %vm251_vm2, %v1353_v5  ;;  %267 = vst.msk [vmem:[#allocation2 + $0x78] sm:$0xff] %vm251_vm2, %v1353_v5  ;;  %s1121_s25 = sshll.u32 %s1711_s23, 2  ;;  %v286_v23 = vld [vmem:[#allocation2 + $0x10] sm:$0xff]  ;;  %v284_v25 = vld [vmem:[#allocation2] sm:$0xff] }
  0x10   : > { %268 = vst.msk [vmem:[#allocation2 + $0x80] sm:$0xff] %vm251_vm2, %v1353_v5  ;;  %269 = vst.msk [vmem:[#allocation2 + $0x88] sm:$0xff] %vm251_vm2, %v1353_v5  ;;  %s1456_s28 = scalar_lea.vmem %s1700_s0, %s1121_s25  ;;  %v287_v28 = vld [vmem:[#allocation2 + $0x18] sm:$0xff]  ;;  %v285_v33 = vld [vmem:[#allocation2 + $0x8] sm:$0xff]  ;;  %s1534_s9 = scalar_lea.vmem %s1704_s4, %s1121_s25 }
  0x11   : > { %270 = vst.msk [vmem:[#allocation2 + $0x90] sm:$0xff] %vm251_vm2, %v1353_v5  ;;  %271 = vst.msk [vmem:[#allocation2 + $0x98] sm:$0xff] %vm251_vm2, %v1353_v5  ;;  %v1312_v7 = vld [vmem:[%s1456_s28] sm:$0xff]   ;;  %v1314_v9 = vld [vmem:[%s1456_s28 + $0x8] sm:$0xff]  }
  0x12   : > { %272 = vst.msk [vmem:[#allocation2 + $0xa0] sm:$0xff] %vm251_vm2, %v1353_v5  ;;  %273 = vst.msk [vmem:[#allocation2 + $0xa8] sm:$0xff] %vm251_vm2, %v1353_v5  ;;  %v1313_v8 = vld [vmem:[%s1456_s28 + $0x40] sm:$0xff]   ;;  %1248 = vmatprep.mubr.msk.bf16.mxu0 %vm443_vm3, %v1312_v7  ;;  %v1315_v10 = vld [vmem:[%s1456_s28 + $0x48] sm:$0xff]  }
  0x13   : > { %274 = vst.msk [vmem:[#allocation2 + $0xb0] sm:$0xff] %vm251_vm2, %v1353_v5  ;;  %275 = vst.msk [vmem:[#allocation2 + $0xb8] sm:$0xff] %vm251_vm2, %v1353_v5  ;;  %1264 = vmatprep.mubr.msk.bf16.mxu1 %vm443_vm3, %v1313_v8  ;;  %1249 = vmatmul.mubr.msk.bf16.vlgmr.msra.gmra.mrb[0].mxu0 %vm443_vm3, %v1314_v9  ;;  %v1316_v11 = vld [vmem:[%s1456_s28 + $0x10] sm:$0xff]   ;;  %v1318_v13 = vld [vmem:[%s1456_s28 + $0x18] sm:$0xff]  }
  0x14   : > { %276 = vst.msk [vmem:[#allocation2 + $0xc0] sm:$0xff] %vm251_vm2, %v1353_v5  ;;  %277 = vst.msk [vmem:[#allocation2 + $0xc8] sm:$0xff] %vm251_vm2, %v1353_v5  ;;  %1265 = vmatmul.mubr.msk.bf16.vlgmr.msra.gmra.mrb[0].mxu1 %vm443_vm3, %v1315_v10  ;;  %v1317_v12 = vld [vmem:[%s1456_s28 + $0x50] sm:$0xff]   ;;  %1252 = vmatprep.mubr.msk.bf16.mxu0 %vm443_vm3, %v1316_v11  ;;  %v1319_v14 = vld [vmem:[%s1456_s28 + $0x58] sm:$0xff]  }
  0x15   : > { %278 = vst.msk [vmem:[#allocation2 + $0xd0] sm:$0xff] %vm251_vm2, %v1353_v5  ;;  %279 = vst.msk [vmem:[#allocation2 + $0xd8] sm:$0xff] %vm251_vm2, %v1353_v5  ;;  %1268 = vmatprep.mubr.msk.bf16.mxu1 %vm443_vm3, %v1317_v12  ;;  %v1320_v15 = vld [vmem:[%s1456_s28 + $0x20] sm:$0xff]   ;;  %v1322_v17 = vld [vmem:[%s1456_s28 + $0x28] sm:$0xff]  }
  0x16   : > { %280 = vst.msk [vmem:[#allocation2 + $0xe0] sm:$0xff] %vm251_vm2, %v1353_v5  ;;  %281 = vst.msk [vmem:[#allocation2 + $0xe8] sm:$0xff] %vm251_vm2, %v1353_v5  ;;  %v1321_v16 = vld [vmem:[%s1456_s28 + $0x60] sm:$0xff]   ;;  %v1323_v18 = vld [vmem:[%s1456_s28 + $0x68] sm:$0xff]  }
  0x17   : > { %282 = vst.msk [vmem:[#allocation2 + $0xf0] sm:$0xff] %vm251_vm2, %v1353_v5  ;;  %283 = vst.msk [vmem:[#allocation2 + $0xf8] sm:$0xff] %vm251_vm2, %v1353_v5  ;;  %v1324_v19 = vld [vmem:[%s1456_s28 + $0x30] sm:$0xff]   ;;  %v1326_v21 = vld [vmem:[%s1456_s28 + $0x38] sm:$0xff]  }
  0x18   : > { %v1325_v20 = vld [vmem:[%s1456_s28 + $0x70] sm:$0xff]   ;;  %v1327_v22 = vld [vmem:[%s1456_s28 + $0x78] sm:$0xff]   ;;  %v300_v27 = vld [vmem:[#allocation2 + $0x80] sm:$0xff] }
  0x19   : > { %v302_v24 = vld [vmem:[#allocation2 + $0x90] sm:$0xff]  ;;  %v303_v32 = vld [vmem:[#allocation2 + $0x98] sm:$0xff]  ;;  %v301_v38 = vld [vmem:[#allocation2 + $0x88] sm:$0xff] }
  0x1a   : > { %v290_v47 = vld [vmem:[#allocation2 + $0x30] sm:$0xff]  ;;  %v288_v49 = vld [vmem:[#allocation2 + $0x20] sm:$0xff]  ;;  %v291_v53 = vld [vmem:[#allocation2 + $0x38] sm:$0xff] }
  0x1b   : > { %1253 = vmatmul.mubr.msk.bf16.gmra.mrb[4].mxu0 %vm443_vm3, %v1318_v13  ;;  %v306_v48 = vld [vmem:[#allocation2 + $0xb0] sm:$0xff]  ;;  %v304_v52 = vld [vmem:[#allocation2 + $0xa0] sm:$0xff]  ;;  %v307_v57 = vld [vmem:[#allocation2 + $0xb8] sm:$0xff] }
  0x1c   : > { %1269 = vmatmul.mubr.msk.bf16.gmra.mrb[4].mxu1 %vm443_vm3, %v1319_v14  ;;  %1256 = vmatprep.mubr.msk.bf16.mxu0 %vm443_vm3, %v1320_v15  ;;  %v289_v58 = vld [vmem:[#allocation2 + $0x28] sm:$0xff] }
  0x1d   : > { %1272 = vmatprep.mubr.msk.bf16.mxu1 %vm443_vm3, %v1321_v16  ;;  %v305_v1 = vld [vmem:[#allocation2 + $0xa8] sm:$0xff] }
  0x23   : > { %1257 = vmatmul.mubr.msk.bf16.gmra.mrb[8].mxu0 %vm443_vm3, %v1322_v17 }
  0x24   : > { %1273 = vmatmul.mubr.msk.bf16.gmra.mrb[8].mxu1 %vm443_vm3, %v1323_v18  ;;  %1260 = vmatprep.mubr.msk.bf16.mxu0 %vm443_vm3, %v1324_v19 }
  0x25   : > { %1276 = vmatprep.mubr.msk.bf16.mxu1 %vm443_vm3, %v1325_v20 }
  0x2b   : > { %1261 = vmatmul.mubr.msk.bf16.gmra.mrb[12].mxu0 %vm443_vm3, %v1326_v21 }
  0x2c   : > { %1277 = vmatmul.mubr.msk.bf16.gmra.mrb[12].mxu1 %vm443_vm3, %v1327_v22 }
  0xe6   : > { %v1250_v26 = vpop.f32.mrb[0].mxu0 }
  0xe7   : > { %v662_v29 = vadd.f32 %v1250_v26, %v286_v23  ;;  %v1266_v30 = vpop.f32.mrb[0].mxu1  ;;  %v533_v31 = vpop.f32.mrb[1].mxu0 }
  0xe8   : > { %v678_v34 = vadd.f32 %v1266_v30, %v302_v24  ;;  %v660_v35 = vadd.f32 %v533_v31, %v284_v25  ;;  %v597_v36 = vpop.f32.mrb[1].mxu1  ;;  %v1251_v37 = vpop.f32.mrb[2].mxu0 }
  0xe9   : > { %695 = vst.msk [vmem:[#allocation2 + $0x10] sm:$0xff] %vm251_vm2, %v662_v29  ;;  %v676_v39 = vadd.f32 %v597_v36, %v300_v27  ;;  %v663_v40 = vadd.f32 %v1251_v37, %v287_v28  ;;  %v1267_v41 = vpop.f32.mrb[2].mxu1  ;;  %v536_v42 = vpop.f32.mrb[3].mxu0 }
  0xea   : > { %711 = vst.msk [vmem:[#allocation2 + $0x90] sm:$0xff] %vm251_vm2, %v678_v34  ;;  %693 = vst.msk [vmem:[#allocation2] sm:$0xff] %vm251_vm2, %v660_v35  ;;  %v679_v43 = vadd.f32 %v1267_v41, %v303_v32  ;;  %v661_v44 = vadd.f32 %v536_v42, %v285_v33  ;;  %v600_v45 = vpop.f32.mrb[3].mxu1 }
  0xeb   : > { %709 = vst.msk [vmem:[#allocation2 + $0x80] sm:$0xff] %vm251_vm2, %v676_v39  ;;  %696 = vst.msk [vmem:[#allocation2 + $0x18] sm:$0xff] %vm251_vm2, %v663_v40  ;;  %v677_v46 = vadd.f32 %v600_v45, %v301_v38 }
  0xec   : > { %712 = vst.msk [vmem:[#allocation2 + $0x98] sm:$0xff] %vm251_vm2, %v679_v43  ;;  %694 = vst.msk [vmem:[#allocation2 + $0x8] sm:$0xff] %vm251_vm2, %v661_v44 }
  0xed   : > { %710 = vst.msk [vmem:[#allocation2 + $0x88] sm:$0xff] %vm251_vm2, %v677_v46 }
  0xee   : > { %v1254_v51 = vpop.f32.mrb[4].mxu0 }
  0xef   : > { %v666_v54 = vadd.f32 %v1254_v51, %v290_v47  ;;  %v1270_v55 = vpop.f32.mrb[4].mxu1  ;;  %v549_v56 = vpop.f32.mrb[5].mxu0 }
  0xf0   : > { %v730_v59 = vld [vmem:[#allocation2 + $0x10] sm:$0xff]  ;;  %v682_v61 = vadd.f32 %v1270_v55, %v306_v48  ;;  %v664_v62 = vadd.f32 %v549_v56, %v288_v49  ;;  %v613_v63 = vpop.f32.mrb[5].mxu1  ;;  %v1255_v0 = vpop.f32.mrb[6].mxu0 }
  0xf1   : > { %v769_v2 = vmul.f32 %v1501_v50, %v730_v59  ;;  %v746_v3 = vld [vmem:[#allocation2 + $0x90] sm:$0xff]  ;;  %v728_v4 = vld [vmem:[#allocation2] sm:$0xff]  ;;  %699 = vst.msk [vmem:[#allocation2 + $0x30] sm:$0xff] %vm251_vm2, %v666_v54  ;;  %v680_v5 = vadd.f32 %v613_v63, %v304_v52  ;;  %v667_v6 = vadd.f32 %v1255_v0, %v291_v53  ;;  %v1271_v7 = vpop.f32.mrb[6].mxu1  ;;  %v552_v8 = vpop.f32.mrb[7].mxu0 }
  0xf2   : > { %v785_v9 = vmul.f32 %v1501_v50, %v746_v3  ;;  %v767_v10 = vmul.f32 %v1501_v50, %v728_v4  ;;  %v744_v11 = vld [vmem:[#allocation2 + $0x80] sm:$0xff]  ;;  %v731_v12 = vld [vmem:[#allocation2 + $0x18] sm:$0xff]  ;;  %715 = vst.msk [vmem:[#allocation2 + $0xb0] sm:$0xff] %vm251_vm2, %v682_v61  ;;  %697 = vst.msk [vmem:[#allocation2 + $0x20] sm:$0xff] %vm251_vm2, %v664_v62  ;;  %v683_v13 = vadd.f32 %v1271_v7, %v307_v57  ;;  %v616_v15 = vpop.f32.mrb[7].mxu1 }
  0xf3   : > { %v665_v14 = vadd.f32 %v552_v8, %v289_v58  ;;  %v808_v16 = vadd.f32 %v1506_v60, %v769_v2  ;;  %v783_v17 = vmul.f32 %v1501_v50, %v744_v11  ;;  %v770_v18 = vmul.f32 %v1501_v50, %v731_v12  ;;  %v747_v19 = vld [vmem:[#allocation2 + $0x98] sm:$0xff]  ;;  %v729_v20 = vld [vmem:[#allocation2 + $0x8] sm:$0xff]  ;;  %713 = vst.msk [vmem:[#allocation2 + $0xa0] sm:$0xff] %vm251_vm2, %v680_v5 }
  0xf4   : > { %700 = vst.msk [vmem:[#allocation2 + $0x38] sm:$0xff] %vm251_vm2, %v667_v6  ;;  %v681_v21 = vadd.f32 %v616_v15, %v305_v1  ;;  %v824_v22 = vadd.f32 %v1506_v60, %v785_v9  ;;  %v806_v23 = vadd.f32 %v1506_v60, %v767_v10  ;;  %v786_v24 = vmul.f32 %v1501_v50, %v747_v19  ;;  %v745_v26 = vld [vmem:[#allocation2 + $0x88] sm:$0xff] }
  0xf5   : > { %v768_v25 = vmul.f32 %v1501_v50, %v729_v20  ;;  %716 = vst.msk [vmem:[#allocation2 + $0xb8] sm:$0xff] %vm251_vm2, %v683_v13  ;;  %698 = vst.msk [vmem:[#allocation2 + $0x28] sm:$0xff] %vm251_vm2, %v665_v14  ;;  %v840_v27 = vmax.f32 %v808_v16, 0.0  ;;  %v822_v28 = vadd.f32 %v1506_v60, %v783_v17  ;;  %v809_v29 = vadd.f32 %v1506_v60, %v770_v18  ;;  %v294_v17 = vld [vmem:[#allocation2 + $0x50] sm:$0xff] }
  0xf6   : > { %v784_v30 = vmul.f32 %v1501_v50, %v745_v26  ;;  %714 = vst.msk [vmem:[#allocation2 + $0xa8] sm:$0xff] %vm251_vm2, %v681_v21  ;;  %v856_v31 = vmax.f32 %v824_v22, 0.0  ;;  %v838_v32 = vmax.f32 %v806_v23, 0.0  ;;  %v825_v33 = vadd.f32 %v1506_v60, %v786_v24  ;;  %v1538_v35 = vpop.f32.mrb[8].mxu0  ;;  %v310_v22 = vld [vmem:[#allocation2 + $0xd0] sm:$0xff]  ;;  %v292_v23 = vld [vmem:[#allocation2 + $0x40] sm:$0xff] }
  0xf7   : > { %v807_v34 = vadd.f32 %v1506_v60, %v768_v25  ;;  %v1196_v36 = vpack.c.bf16 %v840_v27, %v840_v27  ;;  %v854_v37 = vmax.f32 %v822_v28, 0.0  ;;  %v841_v38 = vmax.f32 %v809_v29, 0.0  ;;  %v1541_v40 = vpop.f32.mrb[8].mxu1  ;;  %v1543_v41 = vpop.f32.mrb[9].mxu0  ;;  %v308_v24 = vld [vmem:[#allocation2 + $0xc0] sm:$0xff] }
  0xf8   : > { %v823_v39 = vadd.f32 %v1506_v60, %v784_v30  ;;  %v1212_v42 = vpack.c.bf16 %v856_v31, %v856_v31  ;;  %v1194_v43 = vpack.c.bf16 %v838_v32, %v838_v32  ;;  %v857_v44 = vmax.f32 %v825_v33, 0.0  ;;  %v734_v46 = vld [vmem:[#allocation2 + $0x30] sm:$0xff]  ;;  %v1545_v47 = vpop.f32.mrb[9].mxu1  ;;  %v1547_v48 = vpop.f32.mrb[10].mxu0  ;;  %v295_v30 = vld [vmem:[#allocation2 + $0x58] sm:$0xff] }
  0xf9   : > { %v839_v45 = vmax.f32 %v807_v34, 0.0  ;;  %1001 = vst.msk [vmem:[%s1534_s9 + $0x8] sm:$0xf] %vm998_vm4, %v1196_v36  ;;  %v1210_v49 = vpack.c.bf16 %v854_v37, %v854_v37  ;;  %v1197_v51 = vpack.c.bf16 %v841_v38, %v841_v38  ;;  %v773_v53 = vmul.f32 %v1501_v50, %v734_v46  ;;  %v750_v54 = vld [vmem:[#allocation2 + $0xb0] sm:$0xff]  ;;  %v732_v55 = vld [vmem:[#allocation2 + $0x20] sm:$0xff]  ;;  %v1552_v56 = vpop.f32.mrb[10].mxu1 }
  0xfa   : > { %v855_v52 = vmax.f32 %v823_v39, 0.0  ;;  %v1554_v57 = vpop.f32.mrb[11].mxu0  ;;  %1017 = vst.msk [vmem:[%s1534_s9 + $0x48] sm:$0xf] %vm998_vm4, %v1212_v42  ;;  %999 = vst.msk [vmem:[%s1534_s9] sm:$0xf] %vm998_vm4, %v1194_v43  ;;  %v1213_v58 = vpack.c.bf16 %v857_v44, %v857_v44  ;;  %v789_v61 = vmul.f32 %v1501_v50, %v750_v54  ;;  %v771_v62 = vmul.f32 %v1501_v50, %v732_v55 }
  0xfb   : > { %v1195_v59 = vpack.c.bf16 %v839_v45, %v839_v45  ;;  %v748_v63 = vld [vmem:[#allocation2 + $0xa0] sm:$0xff]  ;;  %v735_v0 = vld [vmem:[#allocation2 + $0x38] sm:$0xff]  ;;  %v1562_v1 = vpop.f32.mrb[11].mxu1  ;;  %1015 = vst.msk [vmem:[%s1534_s9 + $0x40] sm:$0xf] %vm998_vm4, %v1210_v49  ;;  %v812_v3 = vadd.f32 %v1506_v60, %v773_v53  ;;  %v293_v39 = vld [vmem:[#allocation2 + $0x48] sm:$0xff] }
  0xfc   : > { %1002 = vst.msk [vmem:[%s1534_s9 + $0xc] sm:$0xf] %vm998_vm4, %v1197_v51  ;;  %v1211_v2 = vpack.c.bf16 %v855_v52, %v855_v52  ;;  %v787_v4 = vmul.f32 %v1501_v50, %v748_v63  ;;  %v774_v5 = vmul.f32 %v1501_v50, %v735_v0  ;;  %v751_v6 = vld [vmem:[#allocation2 + $0xb8] sm:$0xff]  ;;  %v733_v7 = vld [vmem:[#allocation2 + $0x28] sm:$0xff]  ;;  %1018 = vst.msk [vmem:[%s1534_s9 + $0x4c] sm:$0xf] %vm998_vm4, %v1213_v58 }
  0xfd   : > { %1000 = vst.msk [vmem:[%s1534_s9 + $0x4] sm:$0xf] %vm998_vm4, %v1195_v59  ;;  %v828_v8 = vadd.f32 %v1506_v60, %v789_v61  ;;  %v810_v9 = vadd.f32 %v1506_v60, %v771_v62  ;;  %v790_v10 = vmul.f32 %v1501_v50, %v751_v6  ;;  %v772_v11 = vmul.f32 %v1501_v50, %v733_v7  ;;  %v749_v12 = vld [vmem:[#allocation2 + $0xa8] sm:$0xff]  ;;  %v311_v31 = vld [vmem:[#allocation2 + $0xd8] sm:$0xff]  ;;  %v298_v52 = vld [vmem:[#allocation2 + $0x70] sm:$0xff] }
  0xfe   : > { %1016 = vst.msk [vmem:[%s1534_s9 + $0x44] sm:$0xf] %vm998_vm4, %v1211_v2  ;;  %v844_v13 = vmax.f32 %v812_v3, 0.0  ;;  %v826_v14 = vadd.f32 %v1506_v60, %v787_v4  ;;  %v813_v15 = vadd.f32 %v1506_v60, %v774_v5  ;;  %v788_v16 = vmul.f32 %v1501_v50, %v749_v12  ;;  %v1262_v25 = vpop.f32.mrb[12].mxu0  ;;  %v309_v42 = vld [vmem:[#allocation2 + $0xc8] sm:$0xff]  ;;  %v314_v53 = vld [vmem:[#allocation2 + $0xf0] sm:$0xff] }
  0xff   : > { %v860_v18 = vmax.f32 %v828_v8, 0.0  ;;  %v842_v19 = vmax.f32 %v810_v9, 0.0  ;;  %v829_v20 = vadd.f32 %v1506_v60, %v790_v10  ;;  %v811_v21 = vadd.f32 %v1506_v60, %v772_v11  ;;  %v1278_v32 = vpop.f32.mrb[12].mxu1  ;;  %v581_v33 = vpop.f32.mrb[13].mxu0  ;;  %v296_v54 = vld [vmem:[#allocation2 + $0x60] sm:$0xff]  ;;  %v299_v0 = vld [vmem:[#allocation2 + $0x78] sm:$0xff] }
 0x100   : > { %v1200_v26 = vpack.c.bf16 %v844_v13, %v844_v13  ;;  %v858_v27 = vmax.f32 %v826_v14, 0.0  ;;  %v845_v28 = vmax.f32 %v813_v15, 0.0  ;;  %v827_v29 = vadd.f32 %v1506_v60, %v788_v16  ;;  %v645_v43 = vpop.f32.mrb[13].mxu1  ;;  %v1263_v44 = vpop.f32.mrb[14].mxu0  ;;  %v315_v2 = vld [vmem:[#allocation2 + $0xf8] sm:$0xff]  ;;  %v297_v7 = vld [vmem:[#allocation2 + $0x68] sm:$0xff] }
 0x101   : > { %v1216_v34 = vpack.c.bf16 %v860_v18, %v860_v18  ;;  %v1198_v36 = vpack.c.bf16 %v842_v19, %v842_v19  ;;  %v861_v37 = vmax.f32 %v829_v20, 0.0  ;;  %v843_v38 = vmax.f32 %v811_v21, 0.0  ;;  %v1279_v55 = vpop.f32.mrb[14].mxu1  ;;  %v584_v58 = vpop.f32.mrb[15].mxu0 }
 0x102   : > { %1005 = vst.msk [vmem:[%s1534_s9 + $0x18] sm:$0xf] %vm998_vm4, %v1200_v26  ;;  %v1214_v45 = vpack.c.bf16 %v858_v27, %v858_v27  ;;  %v1201_v46 = vpack.c.bf16 %v845_v28, %v845_v28  ;;  %v859_v49 = vmax.f32 %v827_v29, 0.0  ;;  %v670_v51 = vadd.f32 %v1538_v35, %v294_v17  ;;  %v312_v35 = vld [vmem:[#allocation2 + $0xe0] sm:$0xff]  ;;  %v648_v3 = vpop.f32.mrb[15].mxu1 }
 0x103   : > { %1021 = vst.msk [vmem:[%s1534_s9 + $0x58] sm:$0xf] %vm998_vm4, %v1216_v34  ;;  %1003 = vst.msk [vmem:[%s1534_s9 + $0x10] sm:$0xf] %vm998_vm4, %v1198_v36  ;;  %v1217_v59 = vpack.c.bf16 %v861_v37, %v861_v37  ;;  %v1199_v61 = vpack.c.bf16 %v843_v38, %v843_v38  ;;  %v686_v62 = vadd.f32 %v1541_v40, %v310_v22 }
 0x104   : > { %v668_v63 = vadd.f32 %v1543_v41, %v292_v23  ;;  %1019 = vst.msk [vmem:[%s1534_s9 + $0x50] sm:$0xf] %vm998_vm4, %v1214_v45  ;;  %1006 = vst.msk [vmem:[%s1534_s9 + $0x1c] sm:$0xf] %vm998_vm4, %v1201_v46  ;;  %v1215_v4 = vpack.c.bf16 %v859_v49, %v859_v49  ;;  %v684_v5 = vadd.f32 %v1545_v47, %v308_v24  ;;  %v313_v41 = vld [vmem:[#allocation2 + $0xe8] sm:$0xff] }
 0x105   : > { %703 = vst.msk [vmem:[#allocation2 + $0x50] sm:$0xff] %vm251_vm2, %v670_v51  ;;  %v671_v6 = vadd.f32 %v1547_v48, %v295_v30  ;;  %v687_v40 = vadd.f32 %v1552_v56, %v311_v31  ;;  %719 = vst.msk [vmem:[#allocation2 + $0xd0] sm:$0xff] %vm251_vm2, %v686_v62  ;;  %v669_v8 = vadd.f32 %v1554_v57, %v293_v39 }
 0x106   : > { %1022 = vst.msk [vmem:[%s1534_s9 + $0x5c] sm:$0xf] %vm998_vm4, %v1217_v59  ;;  %1004 = vst.msk [vmem:[%s1534_s9 + $0x14] sm:$0xf] %vm998_vm4, %v1199_v61  ;;  %v685_v9 = vadd.f32 %v1562_v1, %v309_v42  ;;  %v674_v10 = vadd.f32 %v1262_v25, %v298_v52  ;;  %v690_v47 = vadd.f32 %v1278_v32, %v314_v53 }
 0x107   : > { %701 = vst.msk [vmem:[#allocation2 + $0x40] sm:$0xff] %vm251_vm2, %v668_v63  ;;  %717 = vst.msk [vmem:[#allocation2 + $0xc0] sm:$0xff] %vm251_vm2, %v684_v5  ;;  %v672_v48 = vadd.f32 %v581_v33, %v296_v54  ;;  %v688_v56 = vadd.f32 %v645_v43, %v312_v35  ;;  %v675_v11 = vadd.f32 %v1263_v44, %v299_v0 }
 0x108   : > { %1020 = vst.msk [vmem:[%s1534_s9 + $0x54] sm:$0xf] %vm998_vm4, %v1215_v4  ;;  %v691_v12 = vadd.f32 %v1279_v55, %v315_v2  ;;  %v673_v57 = vadd.f32 %v584_v58, %v297_v7  ;;  %v689_v1 = vadd.f32 %v648_v3, %v313_v41 }
 0x109   : > { %704 = vst.msk [vmem:[#allocation2 + $0x58] sm:$0xff] %vm251_vm2, %v671_v6  ;;  %720 = vst.msk [vmem:[#allocation2 + $0xd8] sm:$0xff] %vm251_vm2, %v687_v40 }
 0x10a   : > { %702 = vst.msk [vmem:[#allocation2 + $0x48] sm:$0xff] %vm251_vm2, %v669_v8  ;;  %718 = vst.msk [vmem:[#allocation2 + $0xc8] sm:$0xff] %vm251_vm2, %v685_v9 }
 0x10b   : > { %707 = vst.msk [vmem:[#allocation2 + $0x70] sm:$0xff] %vm251_vm2, %v674_v10  ;;  %723 = vst.msk [vmem:[#allocation2 + $0xf0] sm:$0xff] %vm251_vm2, %v690_v47 }
 0x10c   : > { %705 = vst.msk [vmem:[#allocation2 + $0x60] sm:$0xff] %vm251_vm2, %v672_v48  ;;  %721 = vst.msk [vmem:[#allocation2 + $0xe0] sm:$0xff] %vm251_vm2, %v688_v56  ;;  %v738_v13 = vld [vmem:[#allocation2 + $0x50] sm:$0xff] }
 0x10d   : > { %708 = vst.msk [vmem:[#allocation2 + $0x78] sm:$0xff] %vm251_vm2, %v675_v11  ;;  %724 = vst.msk [vmem:[#allocation2 + $0xf8] sm:$0xff] %vm251_vm2, %v691_v12  ;;  %v777_v14 = vmul.f32 %v1501_v50, %v738_v13  ;;  %v754_v15 = vld [vmem:[#allocation2 + $0xd0] sm:$0xff] }
 0x10e   : > { %706 = vst.msk [vmem:[#allocation2 + $0x68] sm:$0xff] %vm251_vm2, %v673_v57  ;;  %722 = vst.msk [vmem:[#allocation2 + $0xe8] sm:$0xff] %vm251_vm2, %v689_v1  ;;  %v736_v16 = vld [vmem:[#allocation2 + $0x40] sm:$0xff]  ;;  %v793_v17 = vmul.f32 %v1501_v50, %v754_v15 }
 0x10f   : > { %v775_v18 = vmul.f32 %v1501_v50, %v736_v16  ;;  %v752_v19 = vld [vmem:[#allocation2 + $0xc0] sm:$0xff]  ;;  %v816_v22 = vadd.f32 %v1506_v60, %v777_v14 }
 0x110   : > { %v739_v20 = vld [vmem:[#allocation2 + $0x58] sm:$0xff]  ;;  %v791_v23 = vmul.f32 %v1501_v50, %v752_v19  ;;  %v832_v28 = vadd.f32 %v1506_v60, %v793_v17 }
 0x111   : > { %v755_v21 = vld [vmem:[#allocation2 + $0xd8] sm:$0xff]  ;;  %v778_v24 = vmul.f32 %v1501_v50, %v739_v20  ;;  %v737_v26 = vld [vmem:[#allocation2 + $0x48] sm:$0xff]  ;;  %v814_v29 = vadd.f32 %v1506_v60, %v775_v18  ;;  %v848_v32 = vmax.f32 %v816_v22, 0.0 }
 0x112   : > { %v794_v25 = vmul.f32 %v1501_v50, %v755_v21  ;;  %v753_v27 = vld [vmem:[#allocation2 + $0xc8] sm:$0xff]  ;;  %v776_v30 = vmul.f32 %v1501_v50, %v737_v26  ;;  %v830_v33 = vadd.f32 %v1506_v60, %v791_v23  ;;  %v864_v37 = vmax.f32 %v832_v28, 0.0  ;;  %v742_v43 = vld [vmem:[#allocation2 + $0x70] sm:$0xff] }
 0x113   : > { %v792_v31 = vmul.f32 %v1501_v50, %v753_v27  ;;  %v817_v34 = vadd.f32 %v1506_v60, %v778_v24  ;;  %v846_v38 = vmax.f32 %v814_v29, 0.0  ;;  %v1204_v44 = vpack.c.bf16 %v848_v32, %v848_v32  ;;  %v758_v51 = vld [vmem:[#allocation2 + $0xf0] sm:$0xff]  ;;  %v740_v52 = vld [vmem:[#allocation2 + $0x60] sm:$0xff] }
 0x114   : > { %v833_v36 = vadd.f32 %v1506_v60, %v794_v25  ;;  %v815_v39 = vadd.f32 %v1506_v60, %v776_v30  ;;  %v862_v45 = vmax.f32 %v830_v33, 0.0  ;;  %v1220_v53 = vpack.c.bf16 %v864_v37, %v864_v37  ;;  %v756_v59 = vld [vmem:[#allocation2 + $0xe0] sm:$0xff]  ;;  %v743_v61 = vld [vmem:[#allocation2 + $0x78] sm:$0xff] }
 0x115   : > { %v831_v42 = vadd.f32 %v1506_v60, %v792_v31  ;;  %v849_v46 = vmax.f32 %v817_v34, 0.0  ;;  %v1202_v54 = vpack.c.bf16 %v846_v38, %v846_v38  ;;  %v759_v62 = vld [vmem:[#allocation2 + $0xf8] sm:$0xff]  ;;  %1009 = vst.msk [vmem:[%s1534_s9 + $0x28] sm:$0xf] %vm998_vm4, %v1204_v44  ;;  %v781_v2 = vmul.f32 %v1501_v50, %v742_v43  ;;  %v741_v3 = vld [vmem:[#allocation2 + $0x68] sm:$0xff] }
 0x116   : > { %v865_v49 = vmax.f32 %v833_v36, 0.0  ;;  %v847_v55 = vmax.f32 %v815_v39, 0.0  ;;  %v1218_v63 = vpack.c.bf16 %v862_v45, %v862_v45  ;;  %v757_v4 = vld [vmem:[#allocation2 + $0xe8] sm:$0xff]  ;;  %1025 = vst.msk [vmem:[%s1534_s9 + $0x68] sm:$0xf] %vm998_vm4, %v1220_v53  ;;  %v797_v40 = vmul.f32 %v1501_v50, %v758_v51 }
 0x117   : > { %v863_v58 = vmax.f32 %v831_v42, 0.0  ;;  %v1205_v35 = vpack.c.bf16 %v849_v46, %v849_v46  ;;  %1007 = vst.msk [vmem:[%s1534_s9 + $0x20] sm:$0xf] %vm998_vm4, %v1202_v54  ;;  %v779_v7 = vmul.f32 %v1501_v50, %v740_v52  ;;  %v820_v41 = vadd.f32 %v1506_v60, %v781_v2 }
 0x118   : > { %v1221_v0 = vpack.c.bf16 %v865_v49, %v865_v49  ;;  %v1203_v5 = vpack.c.bf16 %v847_v55, %v847_v55  ;;  %1023 = vst.msk [vmem:[%s1534_s9 + $0x60] sm:$0xf] %vm998_vm4, %v1218_v63  ;;  %v795_v8 = vmul.f32 %v1501_v50, %v756_v59  ;;  %v782_v9 = vmul.f32 %v1501_v50, %v743_v61 }
 0x119   : > { %v1219_v6 = vpack.c.bf16 %v863_v58, %v863_v58  ;;  %1010 = vst.msk [vmem:[%s1534_s9 + $0x2c] sm:$0xf] %vm998_vm4, %v1205_v35  ;;  %v798_v10 = vmul.f32 %v1501_v50, %v759_v62  ;;  %v836_v47 = vadd.f32 %v1506_v60, %v797_v40  ;;  %v818_v48 = vadd.f32 %v1506_v60, %v779_v7 }
 0x11a   : > { %1026 = vst.msk [vmem:[%s1534_s9 + $0x6c] sm:$0xf] %vm998_vm4, %v1221_v0  ;;  %1008 = vst.msk [vmem:[%s1534_s9 + $0x24] sm:$0xf] %vm998_vm4, %v1203_v5  ;;  %v780_v56 = vmul.f32 %v1501_v50, %v741_v3  ;;  %v796_v11 = vmul.f32 %v1501_v50, %v757_v4  ;;  %v852_v12 = vmax.f32 %v820_v41, 0.0  ;;  %v834_v57 = vadd.f32 %v1506_v60, %v795_v8 }
 0x11b   : > { %1024 = vst.msk [vmem:[%s1534_s9 + $0x64] sm:$0xf] %vm998_vm4, %v1219_v6  ;;  %v821_v1 = vadd.f32 %v1506_v60, %v782_v9  ;;  %v837_v13 = vadd.f32 %v1506_v60, %v798_v10  ;;  %v868_v14 = vmax.f32 %v836_v47, 0.0  ;;  %v850_v15 = vmax.f32 %v818_v48, 0.0 }
 0x11c   : > { %v819_v16 = vadd.f32 %v1506_v60, %v780_v56  ;;  %v835_v17 = vadd.f32 %v1506_v60, %v796_v11  ;;  %v1208_v18 = vpack.c.bf16 %v852_v12, %v852_v12  ;;  %v866_v19 = vmax.f32 %v834_v57, 0.0 }
 0x11d   : > { %v853_v50 = vmax.f32 %v821_v1, 0.0  ;;  %v869_v20 = vmax.f32 %v837_v13, 0.0  ;;  %v1224_v21 = vpack.c.bf16 %v868_v14, %v868_v14  ;;  %v1206_v22 = vpack.c.bf16 %v850_v15, %v850_v15 }
 0x11e   : > { %v851_v23 = vmax.f32 %v819_v16, 0.0  ;;  %v867_v24 = vmax.f32 %v835_v17, 0.0  ;;  %1013 = vst.msk [vmem:[%s1534_s9 + $0x38] sm:$0xf] %vm998_vm4, %v1208_v18  ;;  %v1222_v25 = vpack.c.bf16 %v866_v19, %v866_v19 }
 0x11f   : > { %v1209_v26 = vpack.c.bf16 %v853_v50, %v853_v50  ;;  %v1225_v27 = vpack.c.bf16 %v869_v20, %v869_v20  ;;  %1029 = vst.msk [vmem:[%s1534_s9 + $0x78] sm:$0xf] %vm998_vm4, %v1224_v21  ;;  %1011 = vst.msk [vmem:[%s1534_s9 + $0x30] sm:$0xf] %vm998_vm4, %v1206_v22 }
 0x120   : > { %v1207_v60 = vpack.c.bf16 %v851_v23, %v851_v23  ;;  %v1223_v28 = vpack.c.bf16 %v867_v24, %v867_v24  ;;  %1027 = vst.msk [vmem:[%s1534_s9 + $0x70] sm:$0xf] %vm998_vm4, %v1222_v25 }
 0x121   : > { %1014 = vst.msk [vmem:[%s1534_s9 + $0x3c] sm:$0xf] %vm998_vm4, %v1209_v26  ;;  %1030 = vst.msk [vmem:[%s1534_s9 + $0x7c] sm:$0xf] %vm998_vm4, %v1225_v27 }
 0x122   : > { %1012 = vst.msk [vmem:[%s1534_s9 + $0x34] sm:$0xf] %vm998_vm4, %v1207_v60  ;;  %1028 = vst.msk [vmem:[%s1534_s9 + $0x74] sm:$0xf] %vm998_vm4, %v1223_v28 }
 0x123 PF: > { %s14_s17 = sadd.s32 1, %s1350_s17   ;;  %s1706_s15 = smov %s1346_s16 }
 0x124   : > { %p11_p5 = scmp.ge.s32.totalorder %s14_s17, 10   ;;  %s1707_s16 = smov %s1709_s18 }
 0x126   :  { %13 = sbr.rel (!%p11_p5) target bundleno = 2 (0x2), region = 77 }

// kernel: bisenet_forward.22
= control target key start
LH: loop header
LB: loop body
LE: loop exit
PB: predicated region body
PF: predicated region fallthrough
CT: control target
= control target key end

     0   :  { %s2921_s15 = smov 0   ;;  %s2923_s16 = smov 0   ;;  %s3370_s0 = inlined_call_operand.vmem [shape: bf16[512,576], index: 0, kind: input, shape index: {}]   ;;  %s3371_s1 = inlined_call_operand.vmem [shape: bf16[576,128], index: 1, kind: input, shape index: {}]   ;;  %s3372_s2 = inlined_call_operand.vmem [shape: f32[1,128], index: 2, kind: input, shape index: {}]   ;;  %s3373_s3 = inlined_call_operand.vmem [shape: f32[1,128], index: 3, kind: input, shape index: {}]   ;;  %s3374_s4 = inlined_call_operand.vmem [shape: bf16[512,128], index: 4, kind: output, shape index: {}]  }
   0x1   :  { %s2925_s17 = smov 0  }
   0x2 LB: > { %s26_s18 = sadd.s32 1, %s2890_s16  ;;  %p2099_p0 = scmp.ge.s32.totalorder %s2894_s17, 1  ;;  %s2894_s17 = sphi %s2925_s17, %s14_s17   ;;  %s2890_s16 = sphi %s2923_s16, %s3376_s16   ;;  %s2886_s15 = sphi %s2921_s15, %s3375_s15  }
   0x3   : > { %p28_p1 = scmp.ge.s32.totalorder %s26_s18, 2  ;;  %p194_p2 = scmp.lt.s32.totalorder %s2894_s17, 3 }
   0x5   : > { %s3378_s18 = smov (%p28_p1, %s26_s18), 0  ;;  %p195_p3 = pnand %p2099_p0, %p194_p2 }
   0x6   : > { %v2724_v0 = vld [vmem:[%s3371_s1 + $0x40] sm:$0xff] (!%p195_p3)   ;;  %s2100_s21 = sshll.u32 (!%p195_p3), %s2886_s15, 5  ;;  %v2726_v2 = vld [vmem:[%s3371_s1 + $0x48] sm:$0xff] (!%p195_p3)   ;;  %v2728_v4 = vld [vmem:[%s3371_s1 + $0x50] sm:$0xff] (!%p195_p3)   ;;  %vm1107_vm0 = vcmask (!%p195_p3), 523264  }
   0x7   : > { %198 = sbr.rel (%p195_p3) target bundleno = 421 (0x1a5), region = 36  ;;  %v2725_v1 = vld [vmem:[%s3371_s1] sm:$0xff] (!%p195_p3)   ;;  %2399 = vmatprep.subr.bf16.mxu0 (!%p195_p3), %v2724_v0  ;;  %2683 = vmatprep.subr.bf16.mxu1 (!%p195_p3), %v2724_v0  ;;  %p232_p4 = scmp.lt.s32.totalorder (!%p195_p3), %s2100_s21, 63  ;;  %v2727_v3 = vld [vmem:[%s3371_s1 + $0x8] sm:$0xff] (!%p195_p3)   ;;  %v2729_v5 = vld [vmem:[%s3371_s1 + $0x10] sm:$0xff] (!%p195_p3)  }
   0x8   : > { %2400 = vmatpush3.bf16.msra.mxu0 (!%p195_p3), %v2725_v1  ;;  %2691 = vmatpush3.bf16.msra.mxu1 (!%p195_p3), %v2725_v1  ;;  %v2730_v6 = vld [vmem:[%s3371_s1 + $0x58] sm:$0xff] (!%p195_p3)   ;;  %v2732_v8 = vld [vmem:[%s3371_s1 + $0x60] sm:$0xff] (!%p195_p3)   ;;  %v2734_v10 = vld [vmem:[%s3371_s1 + $0x68] sm:$0xff] (!%p195_p3)  }
   0x9   : > { %2401 = vmatprep.subr.bf16.mxu0 (!%p195_p3), %v2726_v2  ;;  %2684 = vmatprep.subr.bf16.mxu1 (!%p195_p3), %v2726_v2  ;;  %v2731_v7 = vld [vmem:[%s3371_s1 + $0x18] sm:$0xff] (!%p195_p3)   ;;  %v2733_v9 = vld [vmem:[%s3371_s1 + $0x20] sm:$0xff] (!%p195_p3)   ;;  %v2735_v13 = vld [vmem:[%s3371_s1 + $0x28] sm:$0xff] (!%p195_p3)  }
   0xa   : > { %v2736_v14 = vld [vmem:[%s3371_s1 + $0x70] sm:$0xff] (!%p195_p3)   ;;  %v2738_v16 = vld [vmem:[%s3371_s1 + $0x78] sm:$0xff] (!%p195_p3)   ;;  %v2746_v18 = vld [vmem:[%s3371_s1 + $0xc0] sm:$0xff] (!%p195_p3)  }
   0xb   : > { %v2737_v15 = vld [vmem:[%s3371_s1 + $0x30] sm:$0xff] (!%p195_p3)   ;;  %v2739_v17 = vld [vmem:[%s3371_s1 + $0x38] sm:$0xff] (!%p195_p3)   ;;  %v2749_v19 = vld [vmem:[%s3371_s1 + $0x100] sm:$0xff] (!%p195_p3)  }
   0xc   : > { %2402 = vmatpush3.bf16.msra.mxu0 (!%p195_p3), %v2727_v3  ;;  %2692 = vmatpush3.bf16.msra.mxu1 (!%p195_p3), %v2727_v3  ;;  %v2747_v22 = vld [vmem:[%s3371_s1 + $0x80] sm:$0xff] (!%p195_p3)   ;;  %v2748_v23 = vld [vmem:[%s3371_s1 + $0xc8] sm:$0xff] (!%p195_p3)   ;;  %v2757_v28 = vld [vmem:[%s3371_s1 + $0xd0] sm:$0xff] (!%p195_p3)  }
   0xd   : > { %2403 = vmatprep.subr.bf16.mxu0 (!%p195_p3), %v2728_v4  ;;  %2685 = vmatprep.subr.bf16.mxu1 (!%p195_p3), %v2728_v4  ;;  %v2750_v26 = vld [vmem:[%s3371_s1 + $0x88] sm:$0xff] (!%p195_p3)   ;;  %v2758_v30 = vld [vmem:[%s3371_s1 + $0x90] sm:$0xff] (!%p195_p3)   ;;  %v2759_v31 = vld [vmem:[%s3371_s1 + $0xd8] sm:$0xff] (!%p195_p3)  }
   0xe   : > { %s3380_s21 = smov (!%p232_p4, %s2100_s21), 63  ;;  %v2760_v34 = vld [vmem:[%s3371_s1 + $0x98] sm:$0xff]   ;;  %v2780_v35 = vld [vmem:[%s3371_s1 + $0x108] sm:$0xff]   ;;  %v2767_v37 = vld [vmem:[%s3371_s1 + $0xe0] sm:$0xff]  }
   0xf   : > { %s2699_s8 = smul.u32 20, %s3380_s21  ;;  %v2768_v39 = vld [vmem:[%s3371_s1 + $0xa0] sm:$0xff]   ;;  %v2769_v40 = vld [vmem:[%s3371_s1 + $0xe8] sm:$0xff]   ;;  %v2777_v46 = vld [vmem:[%s3371_s1 + $0xf0] sm:$0xff]   ;;  %s2103_s9 = sshll.u32 %s3380_s21, 2 }
  0x10   : > { %2404 = vmatpush3.bf16.msra.mxu0 %v2729_v5  ;;  %2693 = vmatpush3.bf16.msra.mxu1 %v2729_v5  ;;  %v2770_v43 = vld [vmem:[%s3371_s1 + $0xa8] sm:$0xff]   ;;  %v2800_v47 = vld [vmem:[%s3371_s1 + $0x110] sm:$0xff]   ;;  %v2779_v49 = vld [vmem:[%s3371_s1 + $0xf8] sm:$0xff]   ;;  %s3248_s12 = scalar_lea.vmem %s3374_s4, %s2103_s9 }
  0x11   : > { %2405 = vmatprep.subr.bf16.mxu0 %v2730_v6  ;;  %2686 = vmatprep.subr.bf16.mxu1 %v2730_v6  ;;  %s2972_s15 = scalar_lea.vmem %s3370_s0, %s2699_s8  ;;  %v2778_v48 = vld [vmem:[%s3371_s1 + $0xb0] sm:$0xff]   ;;  %v2781_v52 = vld [vmem:[%s3371_s1 + $0xb8] sm:$0xff]  }
  0x12   : > { %v2742_v11 = vld [vmem:[%s2972_s15 + $0x4] ss:$20 sps:$4 sm:$0xff]   ;;  %v2740_v20 = vld [vmem:[%s2972_s15] ss:$20 sps:$4 sm:$0xff]   ;;  %v2755_v27 = vld [vmem:[%s2972_s15 + $0x28] ss:$20 sps:$4 sm:$0xff]  }
  0x13   : > { %v2745_v12 = vld [vmem:[%s2972_s15 + $0x1e4] ss:$20 sps:$4 sm:$0xff]   ;;  %1188 = vmatprep.mubr.bf16.mxu0 %v2742_v11  ;;  %v2743_v21 = vld [vmem:[%s2972_s15 + $0x1e0] ss:$20 sps:$4 sm:$0xff]   ;;  %v2756_v29 = vld [vmem:[%s2972_s15 + $0x208] ss:$20 sps:$4 sm:$0xff]  }
  0x14   : > { %2406 = vmatpush3.bf16.msra.mxu0 %v2731_v7  ;;  %2694 = vmatpush3.bf16.msra.mxu1 %v2731_v7  ;;  %v2751_v24 = vld [vmem:[%s2972_s15 + $0x2c] ss:$20 sps:$4 sm:$0xff]   ;;  %v2761_v32 = vld [vmem:[%s2972_s15 + $0x54] ss:$20 sps:$4 sm:$0xff]   ;;  %v2765_v36 = vld [vmem:[%s2972_s15 + $0x50] ss:$20 sps:$4 sm:$0xff]  }
  0x15   : > { %2407 = vmatprep.subr.bf16.mxu0 %v2732_v8  ;;  %2687 = vmatprep.subr.bf16.mxu1 %v2732_v8  ;;  %v2753_v25 = vld [vmem:[%s2972_s15 + $0x20c] ss:$20 sps:$4 sm:$0xff]   ;;  %v2763_v33 = vld [vmem:[%s2972_s15 + $0x234] ss:$20 sps:$4 sm:$0xff]   ;;  %v2766_v38 = vld [vmem:[%s2972_s15 + $0x230] ss:$20 sps:$4 sm:$0xff]  }
  0x16   : > { %1284 = vmatprep.mubr.bf16.mxu1 %v2745_v12  ;;  %v2771_v41 = vld [vmem:[%s2972_s15 + $0x7c] ss:$20 sps:$4 sm:$0xff]   ;;  %v2775_v44 = vld [vmem:[%s2972_s15 + $0x78] ss:$20 sps:$4 sm:$0xff]   ;;  %v2787_v54 = vld [vmem:[%s2972_s15 + $0xa0] ss:$20 sps:$4 sm:$0xff]  }
  0x17   : > { %v2773_v42 = vld [vmem:[%s2972_s15 + $0x25c] ss:$20 sps:$4 sm:$0xff]   ;;  %v2776_v45 = vld [vmem:[%s2972_s15 + $0x258] ss:$20 sps:$4 sm:$0xff]   ;;  %v2790_v57 = vld [vmem:[%s2972_s15 + $0x34] ss:$20 sps:$4 sm:$0xff]  }
  0x18   : > { %2408 = vmatpush3.bf16.msra.mxu0 %v2733_v9  ;;  %2695 = vmatpush3.bf16.msra.mxu1 %v2733_v9  ;;  %v2782_v50 = vld [vmem:[%s2972_s15 + $0xa4] ss:$20 sps:$4 sm:$0xff]   ;;  %v2786_v51 = vld [vmem:[%s2972_s15 + $0xc] ss:$20 sps:$4 sm:$0xff]   ;;  %v2784_v53 = vld [vmem:[%s2972_s15 + $0x8] ss:$20 sps:$4 sm:$0xff]  }
  0x19   : > { %2409 = vmatprep.subr.bf16.mxu0 %v2734_v10  ;;  %2688 = vmatprep.subr.bf16.mxu1 %v2734_v10  ;;  %v2788_v55 = vld [vmem:[%s2972_s15 + $0xcc] ss:$20 sps:$4 sm:$0xff]   ;;  %v2819_v56 = vld [vmem:[%s3371_s1 + $0x118] sm:$0xff]   ;;  %v2793_v59 = vld [vmem:[%s2972_s15 + $0x30] ss:$20 sps:$4 sm:$0xff]  }
  0x1a   : > { %v2792_v58 = vld [vmem:[%s2972_s15 + $0xc8] ss:$20 sps:$4 sm:$0xff]   ;;  %v2798_v62 = vld [vmem:[%s2972_s15 + $0xf0] ss:$20 sps:$4 sm:$0xff]   ;;  %v2799_v63 = vld [vmem:[%s2972_s15 + $0x58] ss:$20 sps:$4 sm:$0xff]  }
  0x1b   : > { %v2794_v60 = vld [vmem:[%s2972_s15 + $0xf4] ss:$20 sps:$4 sm:$0xff]   ;;  %v2796_v61 = vld [vmem:[%s2972_s15 + $0x5c] ss:$20 sps:$4 sm:$0xff]   ;;  %v2803_v1 = vld [vmem:[%s2972_s15 + $0x84] ss:$20 sps:$4 sm:$0xff]  }
  0x1c   : > { %2410 = vmatpush3.bf16.msra.mxu0 %v2735_v13  ;;  %2696 = vmatpush3.bf16.msra.mxu1 %v2735_v13  ;;  %v2801_v0 = vld [vmem:[%s2972_s15 + $0x11c] ss:$20 sps:$4 sm:$0xff]   ;;  %v2805_v2 = vld [vmem:[%s2972_s15 + $0x118] ss:$20 sps:$4 sm:$0xff]   ;;  %v2806_v3 = vld [vmem:[%s2972_s15 + $0x80] ss:$20 sps:$4 sm:$0xff]  }
  0x1d   : > { %2411 = vmatprep.subr.bf16.mxu0 %v2736_v14  ;;  %2689 = vmatprep.subr.bf16.mxu1 %v2736_v14  ;;  %v2807_v4 = vld [vmem:[%s2972_s15 + $0x144] ss:$20 sps:$4 sm:$0xff]   ;;  %v2809_v5 = vld [vmem:[%s2972_s15 + $0xac] ss:$20 sps:$4 sm:$0xff]   ;;  %v2812_v7 = vld [vmem:[%s2972_s15 + $0xa8] ss:$20 sps:$4 sm:$0xff]  }
  0x1e   : > { %v2811_v6 = vld [vmem:[%s2972_s15 + $0x140] ss:$20 sps:$4 sm:$0xff]   ;;  %v2817_v10 = vld [vmem:[%s2972_s15 + $0x168] ss:$20 sps:$4 sm:$0xff]   ;;  %v2818_v11 = vld [vmem:[%s2972_s15 + $0xd0] ss:$20 sps:$4 sm:$0xff]  }
  0x1f   : > { %v2813_v8 = vld [vmem:[%s2972_s15 + $0x16c] ss:$20 sps:$4 sm:$0xff]   ;;  %v2815_v9 = vld [vmem:[%s2972_s15 + $0xd4] ss:$20 sps:$4 sm:$0xff]   ;;  %v2822_v13 = vld [vmem:[%s2972_s15 + $0xfc] ss:$20 sps:$4 sm:$0xff]  }
  0x20   : > { %2412 = vmatpush3.bf16.msra.mxu0 %v2737_v15  ;;  %2697 = vmatpush3.bf16.msra.mxu1 %v2737_v15  ;;  %v2820_v12 = vld [vmem:[%s2972_s15 + $0x194] ss:$20 sps:$4 sm:$0xff]   ;;  %v2824_v14 = vld [vmem:[%s2972_s15 + $0x190] ss:$20 sps:$4 sm:$0xff]   ;;  %v2825_v15 = vld [vmem:[%s2972_s15 + $0xf8] ss:$20 sps:$4 sm:$0xff]  }
  0x21   : > { %2413 = vmatprep.subr.bf16.mxu0 %v2738_v16  ;;  %2690 = vmatprep.subr.bf16.mxu1 %v2738_v16  ;;  %v2826_v16 = vld [vmem:[%s2972_s15 + $0x1bc] ss:$20 sps:$4 sm:$0xff]  }
  0x24   : > { %2414 = vmatpush3.bf16.msra.mxu0 %v2739_v17  ;;  %2698 = vmatpush3.bf16.msra.mxu1 %v2739_v17  ;;  %v2828_v17 = vld [vmem:[%s2972_s15 + $0x124] ss:$20 sps:$4 sm:$0xff]  }
  0x25   : > { %2511 = vmatprep.subr.bf16.mxu1 %v2746_v18  ;;  %2643 = vmatprep.subr.bf16.mxu0 %v2749_v19  ;;  %v2830_v18 = vld [vmem:[%s2972_s15 + $0x1b8] ss:$20 sps:$4 sm:$0xff]  }
  0x27   : > { %1189 = vmatmul.mubr.bf16.vlgmr.msra.gmra.mrb[0].mxu0 %v2740_v20  ;;  %1285 = vmatmul.mubr.bf16.vlgmr.msra.gmra.mrb[0].mxu1 %v2743_v21  ;;  %v2832_v20 = vld [vmem:[%s2972_s15 + $0x14c] ss:$20 sps:$4 sm:$0xff]   ;;  %v2834_v21 = vld [vmem:[%s2972_s15 + $0x10] ss:$20 sps:$4 sm:$0xff]  }
  0x28   : > { %2512 = vmatpush3.bf16.msra.mxu1 %v2747_v22  ;;  %2644 = vmatpush3.bf16.msra.mxu0 %v2749_v19  ;;  %v2831_v19 = vld [vmem:[%s2972_s15 + $0x120] ss:$20 sps:$4 sm:$0xff]   ;;  %v2835_v22 = vld [vmem:[%s2972_s15 + $0x148] ss:$20 sps:$4 sm:$0xff]  }
  0x29   : > { %2513 = vmatprep.subr.bf16.mxu1 %v2748_v23  ;;  %1196 = vmatprep.mubr.bf16.mxu0 %v2751_v24  ;;  %v2836_v23 = vld [vmem:[%s2972_s15 + $0x38] ss:$20 sps:$4 sm:$0xff]   ;;  %v2837_v24 = vld [vmem:[%s2972_s15 + $0x174] ss:$20 sps:$4 sm:$0xff]  }
  0x2a   : > { %1292 = vmatprep.mubr.bf16.mxu1 %v2753_v25  ;;  %2645 = vmatprep.subr.bf16.mxu0 %v2780_v35  ;;  %v2839_v25 = vld [vmem:[%s2972_s15 + $0x60] ss:$20 sps:$4 sm:$0xff]  }
  0x2c   : > { %2514 = vmatpush3.bf16.msra.mxu1 %v2750_v26  ;;  %2646 = vmatpush3.bf16.msra.mxu0 %v2780_v35  ;;  %v2840_v26 = vld [vmem:[%s2972_s15 + $0x170] ss:$20 sps:$4 sm:$0xff]   ;;  %v2851_v35 = vld [vmem:[%s2972_s15 + $0x128] ss:$20 sps:$4 sm:$0xff]  }
  0x2d   : > { %2515 = vmatprep.subr.bf16.mxu1 %v2757_v28  ;;  %2647 = vmatprep.subr.bf16.mxu0 %v2800_v47  ;;  %v2842_v28 = vld [vmem:[%s2972_s15 + $0x19c] ss:$20 sps:$4 sm:$0xff]  }
  0x2f   : > { %1197 = vmatmul.mubr.bf16.gmra.mrb[4].mxu0 %v2755_v27  ;;  %1293 = vmatmul.mubr.bf16.gmra.mrb[4].mxu1 %v2756_v29  ;;  %v2841_v27 = vld [vmem:[%s2972_s15 + $0x88] ss:$20 sps:$4 sm:$0xff]   ;;  %v2844_v29 = vld [vmem:[%s2972_s15 + $0xb0] ss:$20 sps:$4 sm:$0xff]  }
  0x30   : > { %2516 = vmatpush3.bf16.msra.mxu1 %v2758_v30  ;;  %1204 = vmatprep.mubr.bf16.mxu0 %v2761_v32  ;;  %v2845_v30 = vld [vmem:[%s2972_s15 + $0x198] ss:$20 sps:$4 sm:$0xff]  }
  0x31   : > { %2517 = vmatprep.subr.bf16.mxu1 %v2759_v31  ;;  %1300 = vmatprep.mubr.bf16.mxu1 %v2763_v33  ;;  %v2846_v31 = vld [vmem:[%s2972_s15 + $0xd8] ss:$20 sps:$4 sm:$0xff]   ;;  %v2849_v33 = vld [vmem:[%s2972_s15 + $0x100] ss:$20 sps:$4 sm:$0xff]  }
  0x32   : > { %2648 = vmatpush3.bf16.msra.mxu0 %v2800_v47  ;;  %v2847_v32 = vld [vmem:[%s2972_s15 + $0x1c4] ss:$20 sps:$4 sm:$0xff]  }
  0x33   : > { %2649 = vmatprep.subr.bf16.mxu0 %v2819_v56  ;;  %v2866_v47 = vld [vmem:[%s2972_s15 + $0x218] ss:$20 sps:$4 sm:$0xff]  }
  0x34   : > { %2518 = vmatpush3.bf16.msra.mxu1 %v2760_v34  ;;  %v2850_v34 = vld [vmem:[%s2972_s15 + $0x1c0] ss:$20 sps:$4 sm:$0xff]  }
  0x35   : > { %2519 = vmatprep.subr.bf16.mxu1 %v2767_v37  ;;  %v2854_v37 = vld [vmem:[%s2972_s15 + $0x150] ss:$20 sps:$4 sm:$0xff]  }
  0x36   : > { %2650 = vmatpush3.bf16.msra.mxu0 %v2819_v56 }
  0x37   : > { %1205 = vmatmul.mubr.bf16.gmra.mrb[8].mxu0 %v2765_v36  ;;  %1301 = vmatmul.mubr.bf16.gmra.mrb[8].mxu1 %v2766_v38  ;;  %v2852_v36 = vld [vmem:[%s2972_s15 + $0x1ec] ss:$20 sps:$4 sm:$0xff]   ;;  %v2855_v38 = vld [vmem:[%s2972_s15 + $0x1e8] ss:$20 sps:$4 sm:$0xff]  }
  0x38   : > { %2520 = vmatpush3.bf16.msra.mxu1 %v2768_v39  ;;  %1212 = vmatprep.mubr.bf16.mxu0 %v2771_v41  ;;  %v2856_v39 = vld [vmem:[%s2972_s15 + $0x178] ss:$20 sps:$4 sm:$0xff]   ;;  %v2859_v41 = vld [vmem:[%s2972_s15 + $0x1a0] ss:$20 sps:$4 sm:$0xff]  }
  0x39   : > { %2521 = vmatprep.subr.bf16.mxu1 %v2769_v40  ;;  %1308 = vmatprep.mubr.bf16.mxu1 %v2773_v42  ;;  %v2857_v40 = vld [vmem:[%s2972_s15 + $0x214] ss:$20 sps:$4 sm:$0xff]   ;;  %v2860_v42 = vld [vmem:[%s2972_s15 + $0x210] ss:$20 sps:$4 sm:$0xff]  }
  0x3c   : > { %2522 = vmatpush3.bf16.msra.mxu1 %v2770_v43  ;;  %v2861_v43 = vld [vmem:[%s2972_s15 + $0x1c8] ss:$20 sps:$4 sm:$0xff]  }
  0x3d   : > { %2523 = vmatprep.subr.bf16.mxu1 %v2777_v46  ;;  %v2865_v46 = vld [vmem:[%s2972_s15 + $0x238] ss:$20 sps:$4 sm:$0xff]  }
  0x3f   : > { %1213 = vmatmul.mubr.bf16.gmra.mrb[12].mxu0 %v2775_v44  ;;  %1309 = vmatmul.mubr.bf16.gmra.mrb[12].mxu1 %v2776_v45  ;;  %v2862_v44 = vld [vmem:[%s2972_s15 + $0x23c] ss:$20 sps:$4 sm:$0xff]  }
  0x40   : > { %2524 = vmatpush3.bf16.msra.mxu1 %v2778_v48  ;;  %1220 = vmatprep.mubr.bf16.mxu0 %v2782_v50  ;;  %v2864_v45 = vld [vmem:[%s2972_s15 + $0x1f0] ss:$20 sps:$4 sm:$0xff]   ;;  %v2870_v50 = vld [vmem:[%s2972_s15 + $0x260] ss:$20 sps:$4 sm:$0xff]  }
  0x41   : > { %2525 = vmatprep.subr.bf16.mxu1 %v2779_v49  ;;  %1349 = vmatprep.mubr.bf16.mxu1 %v2786_v51  ;;  %v2867_v48 = vld [vmem:[%s2972_s15 + $0x264] ss:$20 sps:$4 sm:$0xff]   ;;  %v2869_v49 = vld [vmem:[%s2972_s15 + $0x240] ss:$20 sps:$4 sm:$0xff]   ;;  %v2871_v51 = vld [vmem:[%s2972_s15 + $0x268] ss:$20 sps:$4 sm:$0xff]  }
  0x44   : > { %2526 = vmatpush3.bf16.msra.mxu1 %v2781_v52 }
  0x47   : > { %1221 = vmatmul.mubr.bf16.gmra.mrb[16].mxu0 %v2787_v54  ;;  %1350 = vmatmul.mubr.bf16.vlgmr.msra.gmra.mrb[16].mxu1 %v2784_v53 }
  0x48   : > { %1228 = vmatprep.mubr.bf16.mxu0 %v2788_v55  ;;  %1357 = vmatprep.mubr.bf16.mxu1 %v2790_v57 }
  0x4f   : > { %1229 = vmatmul.mubr.bf16.gmra.mrb[20].mxu0 %v2792_v58  ;;  %1358 = vmatmul.mubr.bf16.gmra.mrb[20].mxu1 %v2793_v59 }
  0x50   : > { %1236 = vmatprep.mubr.bf16.mxu0 %v2794_v60  ;;  %1365 = vmatprep.mubr.bf16.mxu1 %v2796_v61 }
  0x57   : > { %1237 = vmatmul.mubr.bf16.gmra.mrb[24].mxu0 %v2798_v62  ;;  %1366 = vmatmul.mubr.bf16.gmra.mrb[24].mxu1 %v2799_v63 }
  0x58   : > { %1244 = vmatprep.mubr.bf16.mxu0 %v2801_v0  ;;  %1373 = vmatprep.mubr.bf16.mxu1 %v2803_v1 }
  0x5f   : > { %1245 = vmatmul.mubr.bf16.gmra.mrb[28].mxu0 %v2805_v2  ;;  %1374 = vmatmul.mubr.bf16.gmra.mrb[28].mxu1 %v2806_v3 }
  0x60   : > { %1252 = vmatprep.mubr.bf16.mxu0 %v2807_v4  ;;  %1381 = vmatprep.mubr.bf16.mxu1 %v2809_v5 }
  0x67   : > { %1253 = vmatmul.mubr.bf16.gmra.mrb[32].mxu0 %v2811_v6  ;;  %1382 = vmatmul.mubr.bf16.gmra.mrb[32].mxu1 %v2812_v7 }
  0x68   : > { %1260 = vmatprep.mubr.bf16.mxu0 %v2813_v8  ;;  %1389 = vmatprep.mubr.bf16.mxu1 %v2815_v9 }
  0x6f   : > { %1261 = vmatmul.mubr.bf16.gmra.mrb[36].mxu0 %v2817_v10  ;;  %1390 = vmatmul.mubr.bf16.gmra.mrb[36].mxu1 %v2818_v11 }
  0x70   : > { %1268 = vmatprep.mubr.bf16.mxu0 %v2820_v12  ;;  %1397 = vmatprep.mubr.bf16.mxu1 %v2822_v13 }
  0x77   : > { %1269 = vmatmul.mubr.bf16.gmra.mrb[40].mxu0 %v2824_v14  ;;  %1398 = vmatmul.mubr.bf16.gmra.mrb[40].mxu1 %v2825_v15 }
  0x78   : > { %1276 = vmatprep.mubr.bf16.mxu0 %v2826_v16  ;;  %1405 = vmatprep.mubr.bf16.mxu1 %v2828_v17 }
  0x7f   : > { %1277 = vmatmul.mubr.bf16.gmra.mrb[44].mxu0 %v2830_v18  ;;  %1406 = vmatmul.mubr.bf16.gmra.mrb[44].mxu1 %v2831_v19 }
  0x80   : > { %1413 = vmatprep.mubr.bf16.mxu1 %v2832_v20  ;;  %2651 = vmatprep.mubr.msk.bf16.mxu0 %vm1107_vm0, %v2834_v21 }
  0x87   : > { %1414 = vmatmul.mubr.bf16.gmra.mrb[48].mxu1 %v2835_v22  ;;  %2652 = vmatmul.mubr.msk.bf16.vlgmr.msra.gmra.mrb[48].mxu0 %vm1107_vm0, %v2836_v23 }
  0x88   : > { %1421 = vmatprep.mubr.bf16.mxu1 %v2837_v24  ;;  %2655 = vmatprep.mubr.msk.bf16.mxu0 %vm1107_vm0, %v2839_v25 }
  0x8f   : > { %1422 = vmatmul.mubr.bf16.gmra.mrb[52].mxu1 %v2840_v26  ;;  %2656 = vmatmul.mubr.msk.bf16.gmra.mrb[52].mxu0 %vm1107_vm0, %v2841_v27 }
  0x90   : > { %1429 = vmatprep.mubr.bf16.mxu1 %v2842_v28  ;;  %2659 = vmatprep.mubr.msk.bf16.mxu0 %vm1107_vm0, %v2844_v29 }
  0x97   : > { %1430 = vmatmul.mubr.bf16.gmra.mrb[56].mxu1 %v2845_v30  ;;  %2660 = vmatmul.mubr.msk.bf16.gmra.mrb[56].mxu0 %vm1107_vm0, %v2846_v31 }
  0x98   : > { %1437 = vmatprep.mubr.bf16.mxu1 %v2847_v32  ;;  %2663 = vmatprep.mubr.msk.bf16.mxu0 %vm1107_vm0, %v2849_v33 }
  0x9f   : > { %1438 = vmatmul.mubr.bf16.gmra.mrb[60].mxu1 %v2850_v34  ;;  %2664 = vmatmul.mubr.msk.bf16.gmra.mrb[60].mxu0 %vm1107_vm0, %v2851_v35 }
  0xa0   : > { %1445 = vmatprep.mubr.bf16.mxu1 %v2852_v36  ;;  %2667 = vmatprep.mubr.msk.bf16.mxu0 %vm1107_vm0, %v2854_v37 }
  0xa7   : > { %1446 = vmatmul.mubr.bf16.gmra.mrb[64].mxu1 %v2855_v38  ;;  %2668 = vmatmul.mubr.msk.bf16.gmra.mrb[64].mxu0 %vm1107_vm0, %v2856_v39 }
  0xa8   : > { %1453 = vmatprep.mubr.bf16.mxu1 %v2857_v40  ;;  %2671 = vmatprep.mubr.msk.bf16.mxu0 %vm1107_vm0, %v2859_v41 }
  0xaf   : > { %1454 = vmatmul.mubr.bf16.gmra.mrb[68].mxu1 %v2860_v42  ;;  %2672 = vmatmul.mubr.msk.bf16.gmra.mrb[68].mxu0 %vm1107_vm0, %v2861_v43 }
  0xb0   : > { %1461 = vmatprep.mubr.bf16.mxu1 %v2862_v44  ;;  %2675 = vmatprep.mubr.msk.bf16.mxu0 %vm1107_vm0, %v2864_v45 }
  0xb7   : > { %1462 = vmatmul.mubr.bf16.gmra.mrb[72].mxu1 %v2865_v46  ;;  %2676 = vmatmul.mubr.msk.bf16.gmra.mrb[72].mxu0 %vm1107_vm0, %v2866_v47 }
  0xb8   : > { %1469 = vmatprep.mubr.bf16.mxu1 %v2867_v48  ;;  %2679 = vmatprep.mubr.msk.bf16.mxu0 %vm1107_vm0, %v2869_v49 }
  0xbf   : > { %1470 = vmatmul.mubr.bf16.gmra.mrb[76].mxu1 %v2870_v50  ;;  %2680 = vmatmul.mubr.msk.bf16.gmra.mrb[76].mxu0 %vm1107_vm0, %v2871_v51 }
  0xfa   : > { %v2487_v52 = vpop.f32.mrb[0].mxu1  ;;  %v2415_v53 = vpop.f32.mrb[0].mxu0 }
  0xfb   : > { %v2488_v54 = vpop.f32.mrb[1].mxu1  ;;  %v2416_v55 = vpop.f32.mrb[1].mxu0 }
  0xfc   : > { %v3151_v56 = vadd.f32 %v2488_v54, %v2487_v52  ;;  %v2490_v57 = vpop.f32.mrb[2].mxu1  ;;  %v2417_v58 = vadd.f32 %v2416_v55, %v2415_v53  ;;  %v2418_v59 = vpop.f32.mrb[2].mxu0 }
  0xfd   : > { %v2491_v60 = vpop.f32.mrb[3].mxu1  ;;  %v2419_v61 = vpop.f32.mrb[3].mxu0 }
  0xfe   : > { %v3153_v62 = vadd.f32 %v2491_v60, %v2490_v57  ;;  %v2420_v63 = vadd.f32 %v2419_v61, %v2418_v59 }
 0x102   : > { %v2493_v0 = vpop.f32.mrb[4].mxu1  ;;  %v2421_v1 = vpop.f32.mrb[4].mxu0 }
 0x103   : > { %v2494_v2 = vpop.f32.mrb[5].mxu1  ;;  %v2422_v3 = vpop.f32.mrb[5].mxu0 }
 0x104   : > { %v3155_v4 = vadd.f32 %v2494_v2, %v2493_v0  ;;  %v2496_v5 = vpop.f32.mrb[6].mxu1  ;;  %v2423_v6 = vadd.f32 %v2422_v3, %v2421_v1  ;;  %v2424_v7 = vpop.f32.mrb[6].mxu0 }
 0x105   : > { %v2497_v8 = vpop.f32.mrb[7].mxu1  ;;  %v2425_v9 = vpop.f32.mrb[7].mxu0 }
 0x106   : > { %v3157_v10 = vadd.f32 %v2497_v8, %v2496_v5  ;;  %v2426_v11 = vadd.f32 %v2425_v9, %v2424_v7 }
 0x10a   : > { %v2499_v12 = vpop.f32.mrb[8].mxu1  ;;  %v2427_v13 = vpop.f32.mrb[8].mxu0 }
 0x10b   : > { %v2500_v14 = vpop.f32.mrb[9].mxu1  ;;  %v2428_v15 = vpop.f32.mrb[9].mxu0 }
 0x10c   : > { %v3159_v16 = vadd.f32 %v2500_v14, %v2499_v12  ;;  %v2502_v17 = vpop.f32.mrb[10].mxu1  ;;  %v2429_v18 = vadd.f32 %v2428_v15, %v2427_v13  ;;  %v2430_v19 = vpop.f32.mrb[10].mxu0 }
 0x10d   : > { %v2503_v20 = vpop.f32.mrb[11].mxu1  ;;  %v2431_v21 = vpop.f32.mrb[11].mxu0 }
 0x10e   : > { %v3161_v22 = vadd.f32 %v2503_v20, %v2502_v17  ;;  %v2432_v23 = vadd.f32 %v2431_v21, %v2430_v19 }
 0x112   : > { %v2505_v24 = vpop.f32.mrb[12].mxu1  ;;  %v2433_v25 = vpop.f32.mrb[12].mxu0 }
 0x113   : > { %v2506_v26 = vpop.f32.mrb[13].mxu1  ;;  %v2434_v27 = vpop.f32.mrb[13].mxu0 }
 0x114   : > { %v3163_v28 = vadd.f32 %v2506_v26, %v2505_v24  ;;  %v2508_v29 = vpop.f32.mrb[14].mxu1  ;;  %v2435_v30 = vadd.f32 %v2434_v27, %v2433_v25  ;;  %v2436_v31 = vpop.f32.mrb[14].mxu0 }
 0x115   : > { %v2509_v32 = vpop.f32.mrb[15].mxu1  ;;  %v2437_v33 = vpop.f32.mrb[15].mxu0 }
 0x116   : > { %v3165_v34 = vadd.f32 %v2509_v32, %v2508_v29  ;;  %v2438_v35 = vadd.f32 %v2437_v33, %v2436_v31 }
 0x11a   : > { %v2527_v36 = vpop.f32.mrb[16].mxu1  ;;  %v2439_v37 = vpop.f32.mrb[16].mxu0 }
 0x11b   : > { %v2528_v38 = vpop.f32.mrb[17].mxu1  ;;  %v2440_v39 = vpop.f32.mrb[17].mxu0 }
 0x11c   : > { %v2529_v40 = vadd.f32 %v2528_v38, %v2527_v36  ;;  %v2530_v41 = vpop.f32.mrb[18].mxu1  ;;  %v2441_v42 = vadd.f32 %v2440_v39, %v2439_v37  ;;  %v2442_v43 = vpop.f32.mrb[18].mxu0 }
 0x11d   : > { %v2531_v44 = vpop.f32.mrb[19].mxu1  ;;  %v2443_v45 = vpop.f32.mrb[19].mxu0 }
 0x11e   : > { %v2532_v46 = vadd.f32 %v2531_v44, %v2530_v41  ;;  %v2444_v47 = vadd.f32 %v2443_v45, %v2442_v43  ;;  %v3167_v48 = vadd.f32 %v2529_v40, %v2417_v58 }
 0x120   : > { %v3169_v49 = vadd.f32 %v2532_v46, %v2420_v63 }
 0x122   : > { %v2533_v50 = vpop.f32.mrb[20].mxu1  ;;  %v2445_v51 = vpop.f32.mrb[20].mxu0 }
 0x123   : > { %v2534_v52 = vpop.f32.mrb[21].mxu1  ;;  %v2446_v53 = vpop.f32.mrb[21].mxu0 }
 0x124   : > { %v2535_v54 = vadd.f32 %v2534_v52, %v2533_v50  ;;  %v2536_v55 = vpop.f32.mrb[22].mxu1  ;;  %v2447_v57 = vadd.f32 %v2446_v53, %v2445_v51  ;;  %v2448_v59 = vpop.f32.mrb[22].mxu0 }
 0x125   : > { %v2537_v60 = vpop.f32.mrb[23].mxu1  ;;  %v2449_v61 = vpop.f32.mrb[23].mxu0 }
 0x126   : > { %v2538_v0 = vadd.f32 %v2537_v60, %v2536_v55  ;;  %v2450_v1 = vadd.f32 %v2449_v61, %v2448_v59  ;;  %v3171_v2 = vadd.f32 %v2535_v54, %v2423_v6 }
 0x128   : > { %v3173_v3 = vadd.f32 %v2538_v0, %v2426_v11 }
 0x12a   : > { %v2539_v58 = vpop.f32.mrb[24].mxu1  ;;  %v2451_v5 = vpop.f32.mrb[24].mxu0 }
 0x12b   : > { %v2540_v63 = vpop.f32.mrb[25].mxu1  ;;  %v2452_v7 = vpop.f32.mrb[25].mxu0 }
 0x12c   : > { %v2541_v8 = vadd.f32 %v2540_v63, %v2539_v58  ;;  %v2542_v9 = vpop.f32.mrb[26].mxu1  ;;  %v2453_v12 = vadd.f32 %v2452_v7, %v2451_v5  ;;  %v2454_v13 = vpop.f32.mrb[26].mxu0 }
 0x12d   : > { %v2543_v14 = vpop.f32.mrb[27].mxu1  ;;  %v2455_v15 = vpop.f32.mrb[27].mxu0 }
 0x12e   : > { %v2544_v17 = vadd.f32 %v2543_v14, %v2542_v9  ;;  %v2456_v19 = vadd.f32 %v2455_v15, %v2454_v13  ;;  %v3175_v20 = vadd.f32 %v2541_v8, %v2429_v18 }
 0x130   : > { %v3177_v21 = vadd.f32 %v2544_v17, %v2432_v23 }
 0x132   : > { %v2545_v6 = vpop.f32.mrb[28].mxu1  ;;  %v2457_v24 = vpop.f32.mrb[28].mxu0 }
 0x133   : > { %v2546_v11 = vpop.f32.mrb[29].mxu1  ;;  %v2458_v25 = vpop.f32.mrb[29].mxu0 }
 0x134   : > { %v2547_v26 = vadd.f32 %v2546_v11, %v2545_v6  ;;  %v2548_v27 = vpop.f32.mrb[30].mxu1  ;;  %v2459_v29 = vadd.f32 %v2458_v25, %v2457_v24  ;;  %v2460_v31 = vpop.f32.mrb[30].mxu0 }
 0x135   : > { %v2549_v32 = vpop.f32.mrb[31].mxu1  ;;  %v2461_v33 = vpop.f32.mrb[31].mxu0 }
 0x136   : > { %v2550_v36 = vadd.f32 %v2549_v32, %v2548_v27  ;;  %v2462_v37 = vadd.f32 %v2461_v33, %v2460_v31  ;;  %v3179_v38 = vadd.f32 %v2547_v26, %v2435_v30 }
 0x138   : > { %v3181_v39 = vadd.f32 %v2550_v36, %v2438_v35 }
 0x13a   : > { %v2551_v18 = vpop.f32.mrb[32].mxu1  ;;  %v2463_v40 = vpop.f32.mrb[32].mxu0 }
 0x13b   : > { %v2552_v23 = vpop.f32.mrb[33].mxu1  ;;  %v2464_v41 = vpop.f32.mrb[33].mxu0 }
 0x13c   : > { %v2553_v43 = vadd.f32 %v2552_v23, %v2551_v18  ;;  %v2554_v44 = vpop.f32.mrb[34].mxu1  ;;  %v3183_v45 = vadd.f32 %v2464_v41, %v2463_v40  ;;  %v2466_v46 = vpop.f32.mrb[34].mxu0 }
 0x13d   : > { %v2555_v50 = vpop.f32.mrb[35].mxu1  ;;  %v2467_v51 = vpop.f32.mrb[35].mxu0 }
 0x13e   : > { %v2556_v52 = vadd.f32 %v2555_v50, %v2554_v44  ;;  %v3185_v53 = vadd.f32 %v2467_v51, %v2466_v46  ;;  %v3187_v54 = vadd.f32 %v2553_v43, %v2441_v42 }
 0x140   : > { %v3189_v30 = vadd.f32 %v2556_v52, %v2444_v47 }
 0x142   : > { %v2557_v35 = vpop.f32.mrb[36].mxu1  ;;  %v2469_v55 = vpop.f32.mrb[36].mxu0 }
 0x143   : > { %v2558_v59 = vpop.f32.mrb[37].mxu1  ;;  %v2470_v60 = vpop.f32.mrb[37].mxu0 }
 0x144   : > { %v2559_v61 = vadd.f32 %v2558_v59, %v2557_v35  ;;  %v2560_v0 = vpop.f32.mrb[38].mxu1  ;;  %v3191_v58 = vadd.f32 %v2470_v60, %v2469_v55  ;;  %v2472_v5 = vpop.f32.mrb[38].mxu0  ;;  %v3218_v59 = vld [vmem:[%s3372_s2] ss:$0 sm:$0xff] }
 0x145   : > { %v2561_v63 = vpop.f32.mrb[39].mxu1  ;;  %v2473_v7 = vpop.f32.mrb[39].mxu0 }
 0x146   : > { %v2562_v8 = vadd.f32 %v2561_v63, %v2560_v0  ;;  %v3193_v9 = vadd.f32 %v2473_v7, %v2472_v5  ;;  %v3195_v13 = vadd.f32 %v2559_v61, %v2447_v57  ;;  %v3224_v5 = vld [vmem:[%s3373_s3] ss:$0 sm:$0xff] }
 0x148   : > { %v3197_v42 = vadd.f32 %v2562_v8, %v2450_v1 }
 0x14a   : > { %v2563_v47 = vpop.f32.mrb[40].mxu1  ;;  %v2475_v14 = vpop.f32.mrb[40].mxu0 }
 0x14b   : > { %v2564_v15 = vpop.f32.mrb[41].mxu1  ;;  %v2476_v17 = vpop.f32.mrb[41].mxu0 }
 0x14c   : > { %v2565_v6 = vadd.f32 %v2564_v15, %v2563_v47  ;;  %v2566_v24 = vpop.f32.mrb[42].mxu1  ;;  %v3199_v11 = vadd.f32 %v2476_v17, %v2475_v14  ;;  %v2478_v25 = vpop.f32.mrb[42].mxu0 }
 0x14d   : > { %v2567_v26 = vpop.f32.mrb[43].mxu1  ;;  %v2479_v27 = vpop.f32.mrb[43].mxu0 }
 0x14e   : > { %v2568_v31 = vadd.f32 %v2567_v26, %v2566_v24  ;;  %v3201_v32 = vadd.f32 %v2479_v27, %v2478_v25  ;;  %v3203_v33 = vadd.f32 %v2565_v6, %v2453_v12 }
 0x150   : > { %v3205_v57 = vadd.f32 %v2568_v31, %v2456_v19 }
 0x152   : > { %v2569_v1 = vpop.f32.mrb[44].mxu1  ;;  %v2481_v36 = vpop.f32.mrb[44].mxu0 }
 0x153   : > { %v2570_v18 = vpop.f32.mrb[45].mxu1  ;;  %v2482_v40 = vpop.f32.mrb[45].mxu0 }
 0x154   : > { %v2571_v23 = vadd.f32 %v2570_v18, %v2569_v1  ;;  %v2572_v41 = vpop.f32.mrb[46].mxu1  ;;  %v3207_v43 = vadd.f32 %v2482_v40, %v2481_v36  ;;  %v2484_v44 = vpop.f32.mrb[46].mxu0 }
 0x155   : > { %v2573_v46 = vpop.f32.mrb[47].mxu1  ;;  %v2485_v50 = vpop.f32.mrb[47].mxu0 }
 0x156   : > { %v2574_v51 = vadd.f32 %v2573_v46, %v2572_v41  ;;  %v3209_v52 = vadd.f32 %v2485_v50, %v2484_v44  ;;  %v3211_v35 = vadd.f32 %v2571_v23, %v2459_v29 }
 0x158   : > { %v3213_v12 = vadd.f32 %v2574_v51, %v2462_v37 }
 0x15a   : > { %v2575_v19 = vpop.f32.mrb[48].mxu1  ;;  %v2653_v55 = vpop.f32.mrb[48].mxu0 }
 0x15b   : > { %v1521_v60 = vadd.f32 %v2653_v55, %v3171_v2  ;;  %v2576_v61 = vpop.f32.mrb[49].mxu1  ;;  %v1512_v0 = vpop.f32.mrb[49].mxu0 }
 0x15c   : > { %v2577_v29 = vadd.f32 %v2576_v61, %v2575_v19  ;;  %v1513_v37 = vadd.f32 %v1512_v0, %v3167_v48  ;;  %v2578_v63 = vpop.f32.mrb[50].mxu1  ;;  %v2654_v7 = vpop.f32.mrb[50].mxu0 }
 0x15d   : > { %v1747_v8 = vmul.f32 %v3218_v59, %v1521_v60  ;;  %v1524_v47 = vadd.f32 %v2654_v7, %v3173_v3  ;;  %v2579_v14 = vpop.f32.mrb[51].mxu1  ;;  %v1515_v15 = vpop.f32.mrb[51].mxu0 }
 0x15e   : > { %v1745_v2 = vmul.f32 %v3218_v59, %v1513_v37  ;;  %v2580_v17 = vadd.f32 %v2579_v14, %v2578_v63  ;;  %v1516_v6 = vadd.f32 %v1515_v15, %v3169_v49  ;;  %v3232_v24 = vadd.f32 %v2577_v29, %v3183_v45 }
 0x15f   : > { %v1786_v25 = vadd.f32 %v3224_v5, %v1747_v8  ;;  %v1748_v48 = vmul.f32 %v3218_v59, %v1524_v47 }
 0x160   : > { %v1784_v26 = vadd.f32 %v3224_v5, %v1745_v2  ;;  %v1746_v27 = vmul.f32 %v3218_v59, %v1516_v6  ;;  %v3239_v3 = vadd.f32 %v2580_v17, %v3185_v53 }
 0x161   : > { %v1787_v31 = vadd.f32 %v3224_v5, %v1748_v48  ;;  %v1818_v45 = vmax.f32 %v1786_v25, 0.0 }
 0x162   : > { %v1785_v1 = vadd.f32 %v3224_v5, %v1746_v27  ;;  %v2581_v49 = vpop.f32.mrb[52].mxu1  ;;  %v2657_v36 = vpop.f32.mrb[52].mxu0  ;;  %v1816_v44 = vmax.f32 %v1784_v26, 0.0 }
 0x163   : > { %v1819_v18 = vmax.f32 %v1787_v31, 0.0  ;;  %v1537_v40 = vadd.f32 %v2657_v36, %v3179_v38  ;;  %v2582_v23 = vpop.f32.mrb[53].mxu1  ;;  %v1528_v41 = vpop.f32.mrb[53].mxu0 }
 0x164   : > { %v1817_v53 = vmax.f32 %v1785_v1, 0.0  ;;  %v2583_v46 = vadd.f32 %v2582_v23, %v2581_v49  ;;  %v1529_v50 = vadd.f32 %v1528_v41, %v3175_v20  ;;  %v2584_v51 = vpop.f32.mrb[54].mxu1  ;;  %v2658_v19 = vpop.f32.mrb[54].mxu0 }
 0x165   : > { %v2312_v55 = vpack.c.bf16 %v1819_v18, %v1818_v45  ;;  %v1751_v60 = vmul.f32 %v3218_v59, %v1537_v40  ;;  %v1540_v38 = vadd.f32 %v2658_v19, %v3181_v39  ;;  %v2585_v61 = vpop.f32.mrb[55].mxu1  ;;  %v1531_v0 = vpop.f32.mrb[55].mxu0 }
 0x166   : > { %v2307_v29 = vpack.c.bf16 %v1817_v53, %v1816_v44  ;;  %v1749_v37 = vmul.f32 %v3218_v59, %v1529_v50  ;;  %v2586_v63 = vadd.f32 %v2585_v61, %v2584_v51  ;;  %v1532_v7 = vadd.f32 %v1531_v0, %v3177_v21 }
 0x167   : > { %2384 = vst [vmem:[%s3248_s12 + $0x8] sm:$0xff] %v2312_v55   ;;  %v1790_v8 = vadd.f32 %v3224_v5, %v1751_v60  ;;  %v1752_v20 = vmul.f32 %v3218_v59, %v1540_v38  ;;  %v3259_v47 = vadd.f32 %v2583_v46, %v3191_v58 }
 0x168   : > { %2308 = vst [vmem:[%s3248_s12] sm:$0xff] %v2307_v29   ;;  %v1788_v14 = vadd.f32 %v3224_v5, %v1749_v37  ;;  %v1750_v39 = vmul.f32 %v3218_v59, %v1532_v7  ;;  %v3265_v15 = vadd.f32 %v2586_v63, %v3193_v9 }
 0x169   : > { %v1791_v2 = vadd.f32 %v3224_v5, %v1752_v20  ;;  %v1822_v25 = vmax.f32 %v1790_v8, 0.0 }
 0x16a   : > { %v1789_v21 = vadd.f32 %v3224_v5, %v1750_v39  ;;  %v2587_v17 = vpop.f32.mrb[56].mxu1  ;;  %v2661_v6 = vpop.f32.mrb[56].mxu0  ;;  %v1820_v31 = vmax.f32 %v1788_v14, 0.0 }
 0x16b   : > { %v1823_v48 = vmax.f32 %v1791_v2, 0.0  ;;  %v1553_v26 = vadd.f32 %v2661_v6, %v3195_v13  ;;  %v2588_v58 = vpop.f32.mrb[57].mxu1  ;;  %v1544_v27 = vpop.f32.mrb[57].mxu0 }
 0x16c   : > { %v1821_v1 = vmax.f32 %v1789_v21, 0.0  ;;  %v2589_v49 = vadd.f32 %v2588_v58, %v2587_v17  ;;  %v1545_v36 = vadd.f32 %v1544_v27, %v3187_v54  ;;  %v2590_v9 = vpop.f32.mrb[58].mxu1  ;;  %v2662_v45 = vpop.f32.mrb[58].mxu0 }
 0x16d   : > { %v2322_v18 = vpack.c.bf16 %v1823_v48, %v1822_v25  ;;  %v1755_v40 = vmul.f32 %v3218_v59, %v1553_v26  ;;  %v1556_v23 = vadd.f32 %v2662_v45, %v3197_v42  ;;  %v2591_v41 = vpop.f32.mrb[59].mxu1  ;;  %v1547_v44 = vpop.f32.mrb[59].mxu0 }
 0x16e   : > { %v2317_v53 = vpack.c.bf16 %v1821_v1, %v1820_v31  ;;  %v1753_v13 = vmul.f32 %v3218_v59, %v1545_v36  ;;  %v2592_v46 = vadd.f32 %v2591_v41, %v2590_v9  ;;  %v1548_v50 = vadd.f32 %v1547_v44, %v3189_v30 }
 0x16f   : > { %2386 = vst [vmem:[%s3248_s12 + $0x18] sm:$0xff] %v2322_v18   ;;  %v1794_v51 = vadd.f32 %v3224_v5, %v1755_v40  ;;  %v1756_v54 = vmul.f32 %v3218_v59, %v1556_v23  ;;  %v3279_v19 = vadd.f32 %v2589_v49, %v3199_v11 }
 0x170   : > { %2385 = vst [vmem:[%s3248_s12 + $0x10] sm:$0xff] %v2317_v53   ;;  %v1792_v55 = vadd.f32 %v3224_v5, %v1753_v13  ;;  %v1754_v42 = vmul.f32 %v3218_v59, %v1548_v50  ;;  %v3285_v60 = vadd.f32 %v2592_v46, %v3201_v32 }
 0x171   : > { %v1795_v38 = vadd.f32 %v3224_v5, %v1756_v54  ;;  %v1826_v29 = vmax.f32 %v1794_v51, 0.0 }
 0x172   : > { %v1793_v30 = vadd.f32 %v3224_v5, %v1754_v42  ;;  %v2593_v61 = vpop.f32.mrb[60].mxu1  ;;  %v2665_v0 = vpop.f32.mrb[60].mxu0  ;;  %v1824_v8 = vmax.f32 %v1792_v55, 0.0 }
 0x173   : > { %v1827_v37 = vmax.f32 %v1795_v38, 0.0  ;;  %v1569_v63 = vadd.f32 %v2665_v0, %v3211_v35  ;;  %v2594_v11 = vpop.f32.mrb[61].mxu1  ;;  %v1560_v7 = vpop.f32.mrb[61].mxu0 }
 0x174   : > { %v1825_v20 = vmax.f32 %v1793_v30, 0.0  ;;  %v2595_v14 = vadd.f32 %v2594_v11, %v2593_v61  ;;  %v1561_v39 = vadd.f32 %v1560_v7, %v3203_v33  ;;  %v2596_v32 = vpop.f32.mrb[62].mxu1  ;;  %v2666_v2 = vpop.f32.mrb[62].mxu0 }
 0x175   : > { %v2332_v21 = vpack.c.bf16 %v1827_v37, %v1826_v29  ;;  %v1759_v17 = vmul.f32 %v3218_v59, %v1569_v63  ;;  %v1572_v6 = vadd.f32 %v2666_v2, %v3213_v12  ;;  %v2597_v25 = vpop.f32.mrb[63].mxu1  ;;  %v1563_v48 = vpop.f32.mrb[63].mxu0 }
 0x176   : > { %v2327_v26 = vpack.c.bf16 %v1825_v20, %v1824_v8  ;;  %v1757_v35 = vmul.f32 %v3218_v59, %v1561_v39  ;;  %v2598_v58 = vadd.f32 %v2597_v25, %v2596_v32  ;;  %v1564_v27 = vadd.f32 %v1563_v48, %v3205_v57 }
 0x177   : > { %2388 = vst [vmem:[%s3248_s12 + $0x28] sm:$0xff] %v2332_v21   ;;  %v1798_v31 = vadd.f32 %v3224_v5, %v1759_v17  ;;  %v1760_v33 = vmul.f32 %v3218_v59, %v1572_v6  ;;  %v1440_v1 = vadd.f32 %v2595_v14, %v3207_v43 }
 0x178   : > { %2387 = vst [vmem:[%s3248_s12 + $0x20] sm:$0xff] %v2327_v26   ;;  %v1796_v49 = vadd.f32 %v3224_v5, %v1757_v35  ;;  %v1758_v12 = vmul.f32 %v3218_v59, %v1564_v27  ;;  %v1443_v36 = vadd.f32 %v2598_v58, %v3209_v52 }
 0x179   : > { %v1799_v9 = vadd.f32 %v3224_v5, %v1760_v33  ;;  %v1830_v40 = vmax.f32 %v1798_v31, 0.0 }
 0x17a   : > { %v1797_v45 = vadd.f32 %v3224_v5, %v1758_v12  ;;  %v2599_v18 = vpop.f32.mrb[64].mxu1  ;;  %v2669_v57 = vpop.f32.mrb[64].mxu0  ;;  %v1828_v43 = vmax.f32 %v1796_v49, 0.0 }
 0x17b   : > { %v1831_v23 = vmax.f32 %v1799_v9, 0.0  ;;  %v1585_v41 = vadd.f32 %v2669_v57, %v3259_v47  ;;  %v2600_v44 = vpop.f32.mrb[65].mxu1  ;;  %v1576_v53 = vpop.f32.mrb[65].mxu0 }
 0x17c   : > { %v1829_v13 = vmax.f32 %v1797_v45, 0.0  ;;  %v2601_v46 = vadd.f32 %v2600_v44, %v2599_v18  ;;  %v1577_v50 = vadd.f32 %v1576_v53, %v3232_v24  ;;  %v2602_v52 = vpop.f32.mrb[66].mxu1  ;;  %v2670_v51 = vpop.f32.mrb[66].mxu0 }
 0x17d   : > { %v2342_v54 = vpack.c.bf16 %v1831_v23, %v1830_v40  ;;  %v1763_v55 = vmul.f32 %v3218_v59, %v1585_v41  ;;  %v1588_v42 = vadd.f32 %v2670_v51, %v3265_v15  ;;  %v2603_v38 = vpop.f32.mrb[67].mxu1  ;;  %v1579_v30 = vpop.f32.mrb[67].mxu0 }
 0x17e   : > { %v2337_v61 = vpack.c.bf16 %v1829_v13, %v1828_v43  ;;  %v1761_v47 = vmul.f32 %v3218_v59, %v1577_v50  ;;  %v2604_v0 = vadd.f32 %v2603_v38, %v2602_v52  ;;  %v1580_v29 = vadd.f32 %v1579_v30, %v3239_v3 }
 0x17f   : > { %2390 = vst [vmem:[%s3248_s12 + $0x38] sm:$0xff] %v2342_v54   ;;  %v1802_v37 = vadd.f32 %v3224_v5, %v1763_v55  ;;  %v1764_v24 = vmul.f32 %v3218_v59, %v1588_v42  ;;  %v1448_v63 = vadd.f32 %v2601_v46, %v3151_v56 }
 0x180   : > { %2389 = vst [vmem:[%s3248_s12 + $0x30] sm:$0xff] %v2337_v61   ;;  %v1800_v11 = vadd.f32 %v3224_v5, %v1761_v47  ;;  %v1762_v15 = vmul.f32 %v3218_v59, %v1580_v29  ;;  %v1451_v7 = vadd.f32 %v2604_v0, %v3153_v62 }
 0x181   : > { %v1803_v8 = vadd.f32 %v3224_v5, %v1764_v24  ;;  %v1834_v39 = vmax.f32 %v1802_v37, 0.0 }
 0x182   : > { %v1801_v20 = vadd.f32 %v3224_v5, %v1762_v15  ;;  %v2605_v14 = vpop.f32.mrb[68].mxu1  ;;  %v2673_v3 = vpop.f32.mrb[68].mxu0  ;;  %v1832_v56 = vmax.f32 %v1800_v11, 0.0 }
 0x183   : > { %v1835_v32 = vmax.f32 %v1803_v8, 0.0  ;;  %v1601_v2 = vadd.f32 %v2673_v3, %v1440_v1  ;;  %v2606_v21 = vpop.f32.mrb[69].mxu1  ;;  %v1592_v17 = vpop.f32.mrb[69].mxu0 }
 0x184   : > { %v1833_v6 = vmax.f32 %v1801_v20, 0.0  ;;  %v2607_v25 = vadd.f32 %v2606_v21, %v2605_v14  ;;  %v1593_v48 = vadd.f32 %v1592_v17, %v3279_v19  ;;  %v2608_v26 = vpop.f32.mrb[70].mxu1  ;;  %v2674_v62 = vpop.f32.mrb[70].mxu0 }
 0x185   : > { %v2352_v35 = vpack.c.bf16 %v1835_v32, %v1834_v39  ;;  %v1767_v58 = vmul.f32 %v3218_v59, %v1601_v2  ;;  %v1604_v27 = vadd.f32 %v2674_v62, %v1443_v36  ;;  %v2609_v31 = vpop.f32.mrb[71].mxu1  ;;  %v1595_v33 = vpop.f32.mrb[71].mxu0 }
 0x186   : > { %v2347_v49 = vpack.c.bf16 %v1833_v6, %v1832_v56  ;;  %v1765_v1 = vmul.f32 %v3218_v59, %v1593_v48  ;;  %v2610_v12 = vadd.f32 %v2609_v31, %v2608_v26  ;;  %v1596_v9 = vadd.f32 %v1595_v33, %v3285_v60 }
 0x187   : > { %2392 = vst [vmem:[%s3248_s12 + $0x48] sm:$0xff] %v2352_v35   ;;  %v1806_v45 = vadd.f32 %v3224_v5, %v1767_v58  ;;  %v1768_v19 = vmul.f32 %v3218_v59, %v1604_v27  ;;  %v1456_v18 = vadd.f32 %v2607_v25, %v3155_v4 }
 0x188   : > { %2391 = vst [vmem:[%s3248_s12 + $0x40] sm:$0xff] %v2347_v49   ;;  %v1804_v57 = vadd.f32 %v3224_v5, %v1765_v1  ;;  %v1766_v36 = vmul.f32 %v3218_v59, %v1596_v9  ;;  %v1459_v40 = vadd.f32 %v2610_v12, %v3157_v10 }
 0x189   : > { %v1807_v23 = vadd.f32 %v3224_v5, %v1768_v19  ;;  %v1838_v53 = vmax.f32 %v1806_v45, 0.0 }
 0x18a   : > { %v1805_v41 = vadd.f32 %v3224_v5, %v1766_v36  ;;  %v2611_v44 = vpop.f32.mrb[72].mxu1  ;;  %v2677_v60 = vpop.f32.mrb[72].mxu0  ;;  %v1836_v4 = vmax.f32 %v1804_v57, 0.0 }
 0x18b   : > { %v1839_v43 = vmax.f32 %v1807_v23, 0.0  ;;  %v1617_v13 = vadd.f32 %v2677_v60, %v1456_v18  ;;  %v2612_v46 = vpop.f32.mrb[73].mxu1  ;;  %v1608_v50 = vpop.f32.mrb[73].mxu0 }
 0x18c   : > { %v1837_v52 = vmax.f32 %v1805_v41, 0.0  ;;  %v2613_v51 = vadd.f32 %v2612_v46, %v2611_v44  ;;  %v1609_v54 = vadd.f32 %v1608_v50, %v1448_v63  ;;  %v2614_v55 = vpop.f32.mrb[74].mxu1  ;;  %v2678_v42 = vpop.f32.mrb[74].mxu0 }
 0x18d   : > { %v2362_v10 = vpack.c.bf16 %v1839_v43, %v1838_v53  ;;  %v1771_v38 = vmul.f32 %v3218_v59, %v1617_v13  ;;  %v1620_v30 = vadd.f32 %v2678_v42, %v1459_v40  ;;  %v2615_v61 = vpop.f32.mrb[75].mxu1  ;;  %v1611_v47 = vpop.f32.mrb[75].mxu0 }
 0x18e   : > { %v2357_v0 = vpack.c.bf16 %v1837_v52, %v1836_v4  ;;  %v1769_v29 = vmul.f32 %v3218_v59, %v1609_v54  ;;  %v2616_v37 = vadd.f32 %v2615_v61, %v2614_v55  ;;  %v1612_v24 = vadd.f32 %v1611_v47, %v1451_v7 }
 0x18f   : > { %2394 = vst [vmem:[%s3248_s12 + $0x58] sm:$0xff] %v2362_v10   ;;  %v1810_v11 = vadd.f32 %v3224_v5, %v1771_v38  ;;  %v1772_v15 = vmul.f32 %v3218_v59, %v1620_v30  ;;  %v1464_v63 = vadd.f32 %v2613_v51, %v3159_v16 }
 0x190   : > { %2393 = vst [vmem:[%s3248_s12 + $0x50] sm:$0xff] %v2357_v0   ;;  %v1808_v8 = vadd.f32 %v3224_v5, %v1769_v29  ;;  %v1770_v20 = vmul.f32 %v3218_v59, %v1612_v24  ;;  %v1467_v14 = vadd.f32 %v2616_v37, %v3161_v22 }
 0x191   : > { %v1811_v3 = vadd.f32 %v3224_v5, %v1772_v15  ;;  %v1842_v2 = vmax.f32 %v1810_v11, 0.0 }
 0x192   : > { %v1809_v39 = vadd.f32 %v3224_v5, %v1770_v20  ;;  %v2617_v32 = vpop.f32.mrb[76].mxu1  ;;  %v2681_v7 = vpop.f32.mrb[76].mxu0  ;;  %v1840_v16 = vmax.f32 %v1808_v8, 0.0 }
 0x193   : > { %v1843_v21 = vmax.f32 %v1811_v3, 0.0  ;;  %v2618_v17 = vpop.f32.mrb[77].mxu1  ;;  %v1624_v56 = vpop.f32.mrb[77].mxu0 }
 0x194   : > { %v1841_v6 = vmax.f32 %v1809_v39, 0.0  ;;  %v2619_v25 = vadd.f32 %v2618_v17, %v2617_v32  ;;  %v1625_v48 = vadd.f32 %v1624_v56, %v1464_v63  ;;  %v2620_v26 = vpop.f32.mrb[78].mxu1  ;;  %v2682_v62 = vpop.f32.mrb[78].mxu0 }
 0x195   : > { %v2372_v35 = vpack.c.bf16 %v1843_v21, %v1842_v2  ;;  %v2621_v22 = vpop.f32.mrb[79].mxu1  ;;  %v1627_v58 = vpop.f32.mrb[79].mxu0 }
 0x196   : > { %v2367_v27 = vpack.c.bf16 %v1841_v6, %v1840_v16  ;;  %v1472_v31 = vadd.f32 %v2619_v25, %v3163_v28  ;;  %v1773_v33 = vmul.f32 %v3218_v59, %v1625_v48  ;;  %v2622_v49 = vadd.f32 %v2621_v22, %v2620_v26 }
 0x197   : > { %2396 = vst [vmem:[%s3248_s12 + $0x68] sm:$0xff] %v2372_v35   ;;  %v1628_v1 = vadd.f32 %v1627_v58, %v1467_v14 }
 0x198   : > { %2395 = vst [vmem:[%s3248_s12 + $0x60] sm:$0xff] %v2367_v27   ;;  %v1633_v12 = vadd.f32 %v2681_v7, %v1472_v31  ;;  %v1475_v9 = vadd.f32 %v2622_v49, %v3165_v34  ;;  %v1812_v45 = vadd.f32 %v3224_v5, %v1773_v33 }
 0x199   : > { %v1774_v19 = vmul.f32 %v3218_v59, %v1628_v1 }
 0x19a   : > { %v1775_v18 = vmul.f32 %v3218_v59, %v1633_v12  ;;  %v1636_v57 = vadd.f32 %v2682_v62, %v1475_v9  ;;  %v1844_v23 = vmax.f32 %v1812_v45, 0.0 }
 0x19b   : > { %v1813_v28 = vadd.f32 %v3224_v5, %v1774_v19 }
 0x19c   : > { %v1814_v36 = vadd.f32 %v3224_v5, %v1775_v18  ;;  %v1776_v40 = vmul.f32 %v3218_v59, %v1636_v57 }
 0x19d   : > { %v1845_v41 = vmax.f32 %v1813_v28, 0.0 }
 0x19e   : > { %v1815_v44 = vadd.f32 %v3224_v5, %v1776_v40  ;;  %v1846_v34 = vmax.f32 %v1814_v36, 0.0 }
 0x19f   : > { %v2377_v60 = vpack.c.bf16 %v1845_v41, %v1844_v23 }
 0x1a0   : > { %v1847_v53 = vmax.f32 %v1815_v44, 0.0 }
 0x1a1   : > { %2397 = vst [vmem:[%s3248_s12 + $0x70] sm:$0xff] %v2377_v60  }
 0x1a2   : > { %v2382_v43 = vpack.c.bf16 %v1847_v53, %v1846_v34 }
 0x1a4   : > { %2398 = vst [vmem:[%s3248_s12 + $0x78] sm:$0xff] %v2382_v43  }
 0x1a5 PF: > { %s14_s17 = sadd.s32 1, %s2894_s17   ;;  %s3375_s15 = smov %s2890_s16 }
 0x1a6   : > { %p11_p5 = scmp.ge.s32.totalorder %s14_s17, 4   ;;  %s3376_s16 = smov %s3378_s18 }
 0x1a8   :  { %13 = sbr.rel (!%p11_p5) target bundleno = 2 (0x2), region = 77 }

// kernel: bisenet_forward.23
= control target key start
LH: loop header
LB: loop body
LE: loop exit
PB: predicated region body
PF: predicated region fallthrough
CT: control target
= control target key end

     0   :  { %s4077_s1 = inlined_call_operand.vmem [shape: bf16[1152,256], index: 1, kind: input, shape index: {}]   ;;  %s4078_s0 = inlined_call_operand.vmem [shape: bf16[128,1152], index: 0, kind: input, shape index: {}]   ;;  %s4079_s2 = inlined_call_operand.vmem [shape: f32[1,256], index: 2, kind: input, shape index: {}]   ;;  %s4080_s3 = inlined_call_operand.vmem [shape: f32[1,256], index: 3, kind: input, shape index: {}]   ;;  %s4081_s4 = inlined_call_operand.vmem [shape: bf16[128,256], index: 4, kind: output, shape index: {}]  }
   0x1   :  { %v2707_v0 = vld [vmem:[%s4077_s1 + $0x4] ss:$8 sps:$4 sm:$0xff]   ;;  %v2711_v2 = vld [vmem:[%s4077_s1] ss:$8 sps:$4 sm:$0xff]   ;;  %v2713_v4 = vld [vmem:[%s4077_s1 + $0x14] ss:$8 sps:$4 sm:$0xff]  }
   0x2   :  { %v2709_v1 = vld [vmem:[%s4077_s1 + $0x204] ss:$8 sps:$4 sm:$0xff]   ;;  %1398 = vmatprep.subr.bf16.mxu1 %v2707_v0  ;;  %v2712_v3 = vld [vmem:[%s4077_s1 + $0x200] ss:$8 sps:$4 sm:$0xff]   ;;  %v2715_v5 = vld [vmem:[%s4077_s1 + $0x214] ss:$8 sps:$4 sm:$0xff]  }
   0x3   :  { %1624 = vmatprep.subr.bf16.mxu0 %v2709_v1  ;;  %1399 = vmatpush1.bf16.msra.mxu1 %v2711_v2  ;;  %v2717_v6 = vld [vmem:[%s4077_s1 + $0x10] ss:$8 sps:$4 sm:$0xff]   ;;  %v2719_v8 = vld [vmem:[%s4077_s1 + $0x24] ss:$8 sps:$4 sm:$0xff]   ;;  %v2723_v10 = vld [vmem:[%s4077_s1 + $0x20] ss:$8 sps:$4 sm:$0xff]  }
   0x4   :  { %1625 = vmatpush1.bf16.msra.mxu0 %v2712_v3  ;;  %1400 = vmatprep.subr.bf16.mxu1 %v2713_v4  ;;  %v2718_v7 = vld [vmem:[%s4077_s1 + $0x210] ss:$8 sps:$4 sm:$0xff]   ;;  %v2721_v9 = vld [vmem:[%s4077_s1 + $0x224] ss:$8 sps:$4 sm:$0xff]   ;;  %v2724_v11 = vld [vmem:[%s4077_s1 + $0x220] ss:$8 sps:$4 sm:$0xff]  }
   0x5   :  { %1626 = vmatprep.subr.bf16.mxu0 %v2715_v5  ;;  %v2725_v12 = vld [vmem:[%s4077_s1 + $0x34] ss:$8 sps:$4 sm:$0xff]   ;;  %v2729_v14 = vld [vmem:[%s4077_s1 + $0x30] ss:$8 sps:$4 sm:$0xff]   ;;  %v2731_v16 = vld [vmem:[%s4077_s1 + $0x44] ss:$8 sps:$4 sm:$0xff]  }
   0x6   :  { %v2727_v13 = vld [vmem:[%s4077_s1 + $0x234] ss:$8 sps:$4 sm:$0xff]   ;;  %v2730_v15 = vld [vmem:[%s4077_s1 + $0x230] ss:$8 sps:$4 sm:$0xff]   ;;  %v2733_v17 = vld [vmem:[%s4077_s1 + $0x244] ss:$8 sps:$4 sm:$0xff]  }
   0x7   :  { %1401 = vmatpush1.bf16.msra.mxu1 %v2717_v6  ;;  %v2735_v18 = vld [vmem:[%s4077_s1 + $0x40] ss:$8 sps:$4 sm:$0xff]   ;;  %v2737_v20 = vld [vmem:[%s4077_s1 + $0x54] ss:$8 sps:$4 sm:$0xff]   ;;  %v2741_v22 = vld [vmem:[%s4077_s1 + $0x50] ss:$8 sps:$4 sm:$0xff]  }
   0x8   :  { %1627 = vmatpush1.bf16.msra.mxu0 %v2718_v7  ;;  %1402 = vmatprep.subr.bf16.mxu1 %v2719_v8  ;;  %v2736_v19 = vld [vmem:[%s4077_s1 + $0x240] ss:$8 sps:$4 sm:$0xff]   ;;  %v2739_v21 = vld [vmem:[%s4077_s1 + $0x254] ss:$8 sps:$4 sm:$0xff]   ;;  %v2742_v23 = vld [vmem:[%s4077_s1 + $0x250] ss:$8 sps:$4 sm:$0xff]  }
   0x9   :  { %1628 = vmatprep.subr.bf16.mxu0 %v2721_v9  ;;  %v2743_v24 = vld [vmem:[%s4077_s1 + $0x64] ss:$8 sps:$4 sm:$0xff]   ;;  %v2747_v26 = vld [vmem:[%s4077_s1 + $0x60] ss:$8 sps:$4 sm:$0xff]   ;;  %v2749_v28 = vld [vmem:[%s4077_s1 + $0x74] ss:$8 sps:$4 sm:$0xff]  }
   0xa   :  { %v2745_v25 = vld [vmem:[%s4077_s1 + $0x264] ss:$8 sps:$4 sm:$0xff]   ;;  %v2748_v27 = vld [vmem:[%s4077_s1 + $0x260] ss:$8 sps:$4 sm:$0xff]   ;;  %v2751_v29 = vld [vmem:[%s4077_s1 + $0x274] ss:$8 sps:$4 sm:$0xff]  }
   0xb   :  { %1403 = vmatpush1.bf16.msra.mxu1 %v2723_v10  ;;  %v2753_v30 = vld [vmem:[%s4077_s1 + $0x70] ss:$8 sps:$4 sm:$0xff]   ;;  %v2755_v32 = vld [vmem:[%s4077_s1 + $0x84] ss:$8 sps:$4 sm:$0xff]   ;;  %v2759_v34 = vld [vmem:[%s4077_s1 + $0x80] ss:$8 sps:$4 sm:$0xff]  }
   0xc   :  { %1629 = vmatpush1.bf16.msra.mxu0 %v2724_v11  ;;  %1404 = vmatprep.subr.bf16.mxu1 %v2725_v12  ;;  %v2754_v31 = vld [vmem:[%s4077_s1 + $0x270] ss:$8 sps:$4 sm:$0xff]   ;;  %v2757_v33 = vld [vmem:[%s4077_s1 + $0x284] ss:$8 sps:$4 sm:$0xff]   ;;  %v2760_v35 = vld [vmem:[%s4077_s1 + $0x280] ss:$8 sps:$4 sm:$0xff]  }
   0xd   :  { %1630 = vmatprep.subr.bf16.mxu0 %v2727_v13  ;;  %v2761_v36 = vld [vmem:[%s4077_s1 + $0x94] ss:$8 sps:$4 sm:$0xff]   ;;  %v2765_v38 = vld [vmem:[%s4077_s1 + $0x90] ss:$8 sps:$4 sm:$0xff]   ;;  %v2767_v40 = vld [vmem:[%s4077_s1 + $0xa4] ss:$8 sps:$4 sm:$0xff]  }
   0xe   :  { %v2763_v37 = vld [vmem:[%s4077_s1 + $0x294] ss:$8 sps:$4 sm:$0xff]   ;;  %v2766_v39 = vld [vmem:[%s4077_s1 + $0x290] ss:$8 sps:$4 sm:$0xff]   ;;  %v2769_v41 = vld [vmem:[%s4077_s1 + $0x2a4] ss:$8 sps:$4 sm:$0xff]  }
   0xf   :  { %1405 = vmatpush1.bf16.msra.mxu1 %v2729_v14  ;;  %v2771_v42 = vld [vmem:[%s4077_s1 + $0xa0] ss:$8 sps:$4 sm:$0xff]   ;;  %v2773_v44 = vld [vmem:[%s4077_s1 + $0xb4] ss:$8 sps:$4 sm:$0xff]   ;;  %v2777_v46 = vld [vmem:[%s4077_s1 + $0xb0] ss:$8 sps:$4 sm:$0xff]  }
  0x10   :  { %1631 = vmatpush1.bf16.msra.mxu0 %v2730_v15  ;;  %1406 = vmatprep.subr.bf16.mxu1 %v2731_v16  ;;  %v2772_v43 = vld [vmem:[%s4077_s1 + $0x2a0] ss:$8 sps:$4 sm:$0xff]   ;;  %v2775_v45 = vld [vmem:[%s4077_s1 + $0x2b4] ss:$8 sps:$4 sm:$0xff]   ;;  %v2778_v47 = vld [vmem:[%s4077_s1 + $0x2b0] ss:$8 sps:$4 sm:$0xff]  }
  0x11   :  { %1632 = vmatprep.subr.bf16.mxu0 %v2733_v17  ;;  %v2779_v48 = vld [vmem:[%s4077_s1 + $0xc4] ss:$8 sps:$4 sm:$0xff]   ;;  %v2808_v51 = vld [vmem:[%s4078_s0 + $0x14] ss:$36 sps:$4 sm:$0xff]   ;;  %v2783_v52 = vld [vmem:[%s4077_s1 + $0xc0] ss:$8 sps:$4 sm:$0xff]  }
  0x12   :  { %v2805_v49 = vld [vmem:[%s4078_s0 + $0x4] ss:$36 sps:$4 sm:$0xff]   ;;  %1656 = vmatprep.mubr.bf16.mxu0 %v2808_v51  ;;  %v2785_v54 = vld [vmem:[%s4077_s1 + $0xd4] ss:$8 sps:$4 sm:$0xff]   ;;  %v2789_v56 = vld [vmem:[%s4077_s1 + $0xd0] ss:$8 sps:$4 sm:$0xff]  }
  0x13   :  { %1407 = vmatpush1.bf16.msra.mxu1 %v2735_v18  ;;  %v2781_v50 = vld [vmem:[%s4077_s1 + $0x2c4] ss:$8 sps:$4 sm:$0xff]   ;;  %1430 = vmatprep.mubr.bf16.mxu1 %v2805_v49  ;;  %v2784_v53 = vld [vmem:[%s4077_s1 + $0x2c0] ss:$8 sps:$4 sm:$0xff]   ;;  %v2787_v55 = vld [vmem:[%s4077_s1 + $0x2d4] ss:$8 sps:$4 sm:$0xff]  }
  0x14   :  { %1633 = vmatpush1.bf16.msra.mxu0 %v2736_v19  ;;  %1408 = vmatprep.subr.bf16.mxu1 %v2737_v20  ;;  %v2790_v57 = vld [vmem:[%s4077_s1 + $0x2d0] ss:$8 sps:$4 sm:$0xff]   ;;  %v2791_v58 = vld [vmem:[%s4077_s1 + $0xe4] ss:$8 sps:$4 sm:$0xff]   ;;  %v2795_v60 = vld [vmem:[%s4077_s1 + $0xe0] ss:$8 sps:$4 sm:$0xff]  }
  0x15   :  { %1634 = vmatprep.subr.bf16.mxu0 %v2739_v21  ;;  %v2793_v59 = vld [vmem:[%s4077_s1 + $0x2e4] ss:$8 sps:$4 sm:$0xff]   ;;  %v2796_v61 = vld [vmem:[%s4077_s1 + $0x2e0] ss:$8 sps:$4 sm:$0xff]   ;;  %v2797_v62 = vld [vmem:[%s4077_s1 + $0xf4] ss:$8 sps:$4 sm:$0xff]  }
  0x16   :  { %v2799_v63 = vld [vmem:[%s4077_s1 + $0x2f4] ss:$8 sps:$4 sm:$0xff]   ;;  %v2801_v0 = vld [vmem:[%s4077_s1 + $0xf0] ss:$8 sps:$4 sm:$0xff]   ;;  %v2811_v2 = vld [vmem:[%s4077_s1 + $0x104] ss:$8 sps:$4 sm:$0xff]  }
  0x17   :  { %1409 = vmatpush1.bf16.msra.mxu1 %v2741_v22  ;;  %v2802_v1 = vld [vmem:[%s4077_s1 + $0x2f0] ss:$8 sps:$4 sm:$0xff]   ;;  %v3257_v3 = vld [vmem:[%s4077_s1 + $0x304] ss:$8 sps:$4 sm:$0xff]   ;;  %v2809_v6 = vld [vmem:[%s4077_s1 + $0x100] ss:$8 sps:$4 sm:$0xff]  }
  0x18   :  { %1635 = vmatpush1.bf16.msra.mxu0 %v2742_v23  ;;  %1410 = vmatprep.subr.bf16.mxu1 %v2743_v24  ;;  %v2803_v4 = vld [vmem:[%s4078_s0] ss:$36 sps:$4 sm:$0xff]   ;;  %v2806_v5 = vld [vmem:[%s4078_s0 + $0x10] ss:$36 sps:$4 sm:$0xff]   ;;  %v2825_v16 = vld [vmem:[%s4078_s0 + $0x48] ss:$36 sps:$4 sm:$0xff]  }
  0x19   :  { %1636 = vmatprep.subr.bf16.mxu0 %v2745_v25  ;;  %v3271_v7 = vld [vmem:[%s4077_s1 + $0x300] ss:$8 sps:$4 sm:$0xff]   ;;  %v2817_v8 = vld [vmem:[%s4077_s1 + $0x114] ss:$8 sps:$4 sm:$0xff]   ;;  %v2821_v10 = vld [vmem:[%s4078_s0 + $0x4c] ss:$36 sps:$4 sm:$0xff]  }
  0x1a   :  { %v3280_v9 = vld [vmem:[%s4077_s1 + $0x314] ss:$8 sps:$4 sm:$0xff]   ;;  %v2815_v12 = vld [vmem:[%s4077_s1 + $0x110] ss:$8 sps:$4 sm:$0xff]   ;;  %v2828_v14 = vld [vmem:[%s4077_s1 + $0x124] ss:$8 sps:$4 sm:$0xff]  }
  0x1b   :  { %1411 = vmatpush1.bf16.msra.mxu1 %v2747_v26  ;;  %v2823_v11 = vld [vmem:[%s4078_s0 + $0x5c] ss:$36 sps:$4 sm:$0xff]   ;;  %v3295_v13 = vld [vmem:[%s4077_s1 + $0x310] ss:$8 sps:$4 sm:$0xff]   ;;  %v3304_v15 = vld [vmem:[%s4077_s1 + $0x324] ss:$8 sps:$4 sm:$0xff]  }
  0x1c   :  { %1637 = vmatpush1.bf16.msra.mxu0 %v2748_v27  ;;  %1412 = vmatprep.subr.bf16.mxu1 %v2749_v28  ;;  %v2826_v17 = vld [vmem:[%s4077_s1 + $0x120] ss:$8 sps:$4 sm:$0xff]   ;;  %v2829_v18 = vld [vmem:[%s4078_s0 + $0x58] ss:$36 sps:$4 sm:$0xff]   ;;  %v2846_v26 = vld [vmem:[%s4077_s1 + $0x144] ss:$8 sps:$4 sm:$0xff]  }
  0x1d   :  { %1638 = vmatprep.subr.bf16.mxu0 %v2751_v29  ;;  %v3318_v19 = vld [vmem:[%s4077_s1 + $0x320] ss:$8 sps:$4 sm:$0xff]   ;;  %v2835_v20 = vld [vmem:[%s4077_s1 + $0x134] ss:$8 sps:$4 sm:$0xff]   ;;  %v2833_v24 = vld [vmem:[%s4077_s1 + $0x130] ss:$8 sps:$4 sm:$0xff]  }
  0x1e   :  { %v3328_v21 = vld [vmem:[%s4077_s1 + $0x334] ss:$8 sps:$4 sm:$0xff]   ;;  %v2841_v23 = vld [vmem:[%s4078_s0 + $0xa4] ss:$36 sps:$4 sm:$0xff]   ;;  %v3343_v25 = vld [vmem:[%s4077_s1 + $0x330] ss:$8 sps:$4 sm:$0xff]  }
  0x1f   :  { %1413 = vmatpush1.bf16.msra.mxu1 %v2753_v30  ;;  %v2839_v22 = vld [vmem:[%s4078_s0 + $0x94] ss:$36 sps:$4 sm:$0xff]   ;;  %v3352_v27 = vld [vmem:[%s4077_s1 + $0x344] ss:$8 sps:$4 sm:$0xff]   ;;  %v2844_v29 = vld [vmem:[%s4077_s1 + $0x140] ss:$8 sps:$4 sm:$0xff]  }
  0x20   :  { %1639 = vmatpush1.bf16.msra.mxu0 %v2754_v31  ;;  %1414 = vmatprep.subr.bf16.mxu1 %v2755_v32  ;;  %v2843_v28 = vld [vmem:[%s4078_s0 + $0x90] ss:$36 sps:$4 sm:$0xff]   ;;  %v2847_v30 = vld [vmem:[%s4078_s0 + $0xa0] ss:$36 sps:$4 sm:$0xff]  }
  0x21   :  { %1640 = vmatprep.subr.bf16.mxu0 %v2757_v33  ;;  %v3366_v31 = vld [vmem:[%s4077_s1 + $0x340] ss:$8 sps:$4 sm:$0xff]   ;;  %v2853_v32 = vld [vmem:[%s4077_s1 + $0x154] ss:$8 sps:$4 sm:$0xff]   ;;  %v3439_v49 = vld [vmem:[%s4077_s1 + $0x370] ss:$8 sps:$4 sm:$0xff]  }
  0x22   :  { %v3376_v33 = vld [vmem:[%s4077_s1 + $0x354] ss:$8 sps:$4 sm:$0xff]   ;;  %v3448_v51 = vld [vmem:[%s4077_s1 + $0x384] ss:$8 sps:$4 sm:$0xff]  }
  0x23   :  { %1415 = vmatpush1.bf16.msra.mxu1 %v2759_v34  ;;  %v2857_v34 = vld [vmem:[%s4078_s0 + $0xdc] ss:$36 sps:$4 sm:$0xff]  }
  0x24   :  { %1641 = vmatpush1.bf16.msra.mxu0 %v2760_v35  ;;  %1416 = vmatprep.subr.bf16.mxu1 %v2761_v36  ;;  %v2859_v35 = vld [vmem:[%s4078_s0 + $0xec] ss:$36 sps:$4 sm:$0xff]  }
  0x25   :  { %1642 = vmatprep.subr.bf16.mxu0 %v2763_v37  ;;  %v2851_v36 = vld [vmem:[%s4077_s1 + $0x150] ss:$8 sps:$4 sm:$0xff]  }
  0x26   :  { %v3391_v37 = vld [vmem:[%s4077_s1 + $0x350] ss:$8 sps:$4 sm:$0xff]  }
  0x27   :  { %1417 = vmatpush1.bf16.msra.mxu1 %v2765_v38  ;;  %v2864_v38 = vld [vmem:[%s4077_s1 + $0x164] ss:$8 sps:$4 sm:$0xff]  }
  0x28   :  { %1643 = vmatpush1.bf16.msra.mxu0 %v2766_v39  ;;  %1418 = vmatprep.subr.bf16.mxu1 %v2767_v40  ;;  %v3400_v39 = vld [vmem:[%s4077_s1 + $0x364] ss:$8 sps:$4 sm:$0xff]   ;;  %v2861_v40 = vld [vmem:[%s4078_s0 + $0xd8] ss:$36 sps:$4 sm:$0xff]  }
  0x29   :  { %1644 = vmatprep.subr.bf16.mxu0 %v2769_v41  ;;  %v2862_v41 = vld [vmem:[%s4077_s1 + $0x160] ss:$8 sps:$4 sm:$0xff]  }
  0x2b   :  { %1419 = vmatpush1.bf16.msra.mxu1 %v2771_v42  ;;  %v2865_v42 = vld [vmem:[%s4078_s0 + $0xe8] ss:$36 sps:$4 sm:$0xff]  }
  0x2c   :  { %1645 = vmatpush1.bf16.msra.mxu0 %v2772_v43  ;;  %1420 = vmatprep.subr.bf16.mxu1 %v2773_v44  ;;  %v3414_v43 = vld [vmem:[%s4077_s1 + $0x360] ss:$8 sps:$4 sm:$0xff]   ;;  %v2871_v44 = vld [vmem:[%s4077_s1 + $0x174] ss:$8 sps:$4 sm:$0xff]  }
  0x2d   :  { %1646 = vmatprep.subr.bf16.mxu0 %v2775_v45  ;;  %v3424_v45 = vld [vmem:[%s4077_s1 + $0x374] ss:$8 sps:$4 sm:$0xff]  }
  0x2f   :  { %1421 = vmatpush1.bf16.msra.mxu1 %v2777_v46  ;;  %v2875_v46 = vld [vmem:[%s4078_s0 + $0x124] ss:$36 sps:$4 sm:$0xff]  }
  0x30   :  { %1647 = vmatpush1.bf16.msra.mxu0 %v2778_v47  ;;  %1422 = vmatprep.subr.bf16.mxu1 %v2779_v48  ;;  %v2877_v47 = vld [vmem:[%s4078_s0 + $0x134] ss:$36 sps:$4 sm:$0xff]  }
  0x31   :  { %1648 = vmatprep.subr.bf16.mxu0 %v2781_v50  ;;  %v2869_v48 = vld [vmem:[%s4077_s1 + $0x170] ss:$8 sps:$4 sm:$0xff]   ;;  %v2882_v50 = vld [vmem:[%s4077_s1 + $0x184] ss:$8 sps:$4 sm:$0xff]  }
  0x33   :  { %1423 = vmatpush1.bf16.msra.mxu1 %v2783_v52  ;;  %v2879_v52 = vld [vmem:[%s4078_s0 + $0x120] ss:$36 sps:$4 sm:$0xff]  }
  0x34   :  { %1649 = vmatpush1.bf16.msra.mxu0 %v2784_v53  ;;  %1424 = vmatprep.subr.bf16.mxu1 %v2785_v54  ;;  %v2880_v53 = vld [vmem:[%s4077_s1 + $0x180] ss:$8 sps:$4 sm:$0xff]   ;;  %v2883_v54 = vld [vmem:[%s4078_s0 + $0x130] ss:$36 sps:$4 sm:$0xff]  }
  0x35   :  { %1650 = vmatprep.subr.bf16.mxu0 %v2787_v55  ;;  %v3462_v55 = vld [vmem:[%s4077_s1 + $0x380] ss:$8 sps:$4 sm:$0xff]  }
  0x37   :  { %1425 = vmatpush1.bf16.msra.mxu1 %v2789_v56  ;;  %v2889_v56 = vld [vmem:[%s4077_s1 + $0x194] ss:$8 sps:$4 sm:$0xff]  }
  0x38   :  { %1651 = vmatpush1.bf16.msra.mxu0 %v2790_v57  ;;  %1426 = vmatprep.subr.bf16.mxu1 %v2791_v58  ;;  %v3472_v57 = vld [vmem:[%s4077_s1 + $0x394] ss:$8 sps:$4 sm:$0xff]   ;;  %v2893_v58 = vld [vmem:[%s4078_s0 + $0x16c] ss:$36 sps:$4 sm:$0xff]  }
  0x39   :  { %1652 = vmatprep.subr.bf16.mxu0 %v2793_v59  ;;  %v2895_v59 = vld [vmem:[%s4078_s0 + $0x17c] ss:$36 sps:$4 sm:$0xff]  }
  0x3b   :  { %1427 = vmatpush1.bf16.msra.mxu1 %v2795_v60  ;;  %v2887_v60 = vld [vmem:[%s4077_s1 + $0x190] ss:$8 sps:$4 sm:$0xff]  }
  0x3c   :  { %1653 = vmatpush1.bf16.msra.mxu0 %v2796_v61  ;;  %1428 = vmatprep.subr.bf16.mxu1 %v2797_v62  ;;  %v3487_v61 = vld [vmem:[%s4077_s1 + $0x390] ss:$8 sps:$4 sm:$0xff]   ;;  %v2900_v62 = vld [vmem:[%s4077_s1 + $0x1a4] ss:$8 sps:$4 sm:$0xff]  }
  0x3d   :  { %1654 = vmatprep.subr.bf16.mxu0 %v2799_v63  ;;  %v3496_v63 = vld [vmem:[%s4077_s1 + $0x3a4] ss:$8 sps:$4 sm:$0xff]  }
  0x3f   :  { %1429 = vmatpush1.bf16.msra.mxu1 %v2801_v0  ;;  %v2897_v0 = vld [vmem:[%s4078_s0 + $0x168] ss:$36 sps:$4 sm:$0xff]  }
  0x40   :  { %1655 = vmatpush1.bf16.msra.mxu0 %v2802_v1  ;;  %1511 = vmatprep.subr.bf16.mxu1 %v2811_v2  ;;  %v2898_v1 = vld [vmem:[%s4077_s1 + $0x1a0] ss:$8 sps:$4 sm:$0xff]   ;;  %v2901_v2 = vld [vmem:[%s4078_s0 + $0x178] ss:$36 sps:$4 sm:$0xff]  }
  0x41   :  { %1737 = vmatprep.subr.bf16.mxu0 %v3257_v3 }
  0x42   :  { %1431 = vmatmul.mubr.bf16.vlgmr.msra.gmra.mrb[0].mxu1 %v2803_v4  ;;  %v3510_v4 = vld [vmem:[%s4077_s1 + $0x3a0] ss:$8 sps:$4 sm:$0xff]  }
  0x43   :  { %1657 = vmatmul.mubr.bf16.vlgmr.msra.gmra.mrb[0].mxu0 %v2806_v5  ;;  %1512 = vmatpush1.bf16.msra.mxu1 %v2809_v6  ;;  %v2907_v5 = vld [vmem:[%s4077_s1 + $0x1b4] ss:$8 sps:$4 sm:$0xff]  }
  0x44   :  { %1738 = vmatpush1.bf16.msra.mxu0 %v3271_v7  ;;  %1513 = vmatprep.subr.bf16.mxu1 %v2817_v8  ;;  %v3520_v6 = vld [vmem:[%s4077_s1 + $0x3b4] ss:$8 sps:$4 sm:$0xff]  }
  0x45   :  { %1739 = vmatprep.subr.bf16.mxu0 %v3280_v9  ;;  %1440 = vmatprep.mubr.bf16.mxu1 %v2821_v10  ;;  %v2911_v8 = vld [vmem:[%s4078_s0 + $0x1b4] ss:$36 sps:$4 sm:$0xff]   ;;  %v2913_v10 = vld [vmem:[%s4078_s0 + $0x1c4] ss:$36 sps:$4 sm:$0xff]  }
  0x46   :  { %1666 = vmatprep.mubr.bf16.mxu0 %v2823_v11  ;;  %v2905_v11 = vld [vmem:[%s4077_s1 + $0x1b0] ss:$8 sps:$4 sm:$0xff]  }
  0x47   :  { %1514 = vmatpush1.bf16.msra.mxu1 %v2815_v12  ;;  %v3534_v12 = vld [vmem:[%s4077_s1 + $0x3b0] ss:$8 sps:$4 sm:$0xff]  }
  0x48   :  { %1740 = vmatpush1.bf16.msra.mxu0 %v3295_v13  ;;  %1515 = vmatprep.subr.bf16.mxu1 %v2828_v14  ;;  %v2918_v14 = vld [vmem:[%s4077_s1 + $0x1c4] ss:$8 sps:$4 sm:$0xff]  }
  0x49   :  { %1741 = vmatprep.subr.bf16.mxu0 %v3304_v15 }
  0x4a   :  { %1441 = vmatmul.mubr.bf16.gmra.mrb[4].mxu1 %v2825_v16  ;;  %v3544_v16 = vld [vmem:[%s4077_s1 + $0x3c4] ss:$8 sps:$4 sm:$0xff]  }
  0x4b   :  { %1667 = vmatmul.mubr.bf16.gmra.mrb[4].mxu0 %v2829_v18  ;;  %1516 = vmatpush1.bf16.msra.mxu1 %v2826_v17  ;;  %v2915_v17 = vld [vmem:[%s4078_s0 + $0x1b0] ss:$36 sps:$4 sm:$0xff]   ;;  %v2916_v18 = vld [vmem:[%s4077_s1 + $0x1c0] ss:$8 sps:$4 sm:$0xff]  }
  0x4c   :  { %1742 = vmatpush1.bf16.msra.mxu0 %v3318_v19  ;;  %1517 = vmatprep.subr.bf16.mxu1 %v2835_v20  ;;  %v2919_v20 = vld [vmem:[%s4078_s0 + $0x1c0] ss:$36 sps:$4 sm:$0xff]  }
  0x4d   :  { %1743 = vmatprep.subr.bf16.mxu0 %v3328_v21  ;;  %1450 = vmatprep.mubr.bf16.mxu1 %v2839_v22  ;;  %v3558_v22 = vld [vmem:[%s4077_s1 + $0x3c0] ss:$8 sps:$4 sm:$0xff]  }
  0x4e   :  { %1676 = vmatprep.mubr.bf16.mxu0 %v2841_v23  ;;  %v2925_v23 = vld [vmem:[%s4077_s1 + $0x1d4] ss:$8 sps:$4 sm:$0xff]  }
  0x4f   :  { %1518 = vmatpush1.bf16.msra.mxu1 %v2833_v24  ;;  %v3568_v24 = vld [vmem:[%s4077_s1 + $0x3d4] ss:$8 sps:$4 sm:$0xff]  }
  0x50   :  { %1744 = vmatpush1.bf16.msra.mxu0 %v3343_v25  ;;  %1519 = vmatprep.subr.bf16.mxu1 %v2846_v26  ;;  %v2929_v26 = vld [vmem:[%s4078_s0 + $0x1fc] ss:$36 sps:$4 sm:$0xff]  }
  0x51   :  { %1745 = vmatprep.subr.bf16.mxu0 %v3352_v27 }
  0x52   :  { %1451 = vmatmul.mubr.bf16.gmra.mrb[8].mxu1 %v2843_v28  ;;  %v2931_v28 = vld [vmem:[%s4078_s0 + $0x20c] ss:$36 sps:$4 sm:$0xff]  }
  0x53   :  { %1677 = vmatmul.mubr.bf16.gmra.mrb[8].mxu0 %v2847_v30  ;;  %1520 = vmatpush1.bf16.msra.mxu1 %v2844_v29  ;;  %v2923_v29 = vld [vmem:[%s4077_s1 + $0x1d0] ss:$8 sps:$4 sm:$0xff]  }
  0x54   :  { %1746 = vmatpush1.bf16.msra.mxu0 %v3366_v31  ;;  %1521 = vmatprep.subr.bf16.mxu1 %v2853_v32  ;;  %v3582_v30 = vld [vmem:[%s4077_s1 + $0x3d0] ss:$8 sps:$4 sm:$0xff]   ;;  %v2936_v32 = vld [vmem:[%s4077_s1 + $0x1e4] ss:$8 sps:$4 sm:$0xff]  }
  0x55   :  { %1747 = vmatprep.subr.bf16.mxu0 %v3376_v33  ;;  %1460 = vmatprep.mubr.bf16.mxu1 %v2857_v34  ;;  %v3592_v34 = vld [vmem:[%s4077_s1 + $0x3e4] ss:$8 sps:$4 sm:$0xff]  }
  0x56   :  { %1686 = vmatprep.mubr.bf16.mxu0 %v2859_v35  ;;  %v2933_v35 = vld [vmem:[%s4078_s0 + $0x1f8] ss:$36 sps:$4 sm:$0xff]  }
  0x57   :  { %1522 = vmatpush1.bf16.msra.mxu1 %v2851_v36  ;;  %v2934_v36 = vld [vmem:[%s4077_s1 + $0x1e0] ss:$8 sps:$4 sm:$0xff]  }
  0x58   :  { %1748 = vmatpush1.bf16.msra.mxu0 %v3391_v37  ;;  %1523 = vmatprep.subr.bf16.mxu1 %v2864_v38  ;;  %v2937_v38 = vld [vmem:[%s4078_s0 + $0x208] ss:$36 sps:$4 sm:$0xff]  }
  0x59   :  { %1749 = vmatprep.subr.bf16.mxu0 %v3400_v39 }
  0x5a   :  { %1461 = vmatmul.mubr.bf16.gmra.mrb[12].mxu1 %v2861_v40  ;;  %v3606_v40 = vld [vmem:[%s4077_s1 + $0x3e0] ss:$8 sps:$4 sm:$0xff]  }
  0x5b   :  { %1687 = vmatmul.mubr.bf16.gmra.mrb[12].mxu0 %v2865_v42  ;;  %1524 = vmatpush1.bf16.msra.mxu1 %v2862_v41  ;;  %v2943_v41 = vld [vmem:[%s4077_s1 + $0x1f4] ss:$8 sps:$4 sm:$0xff]  }
  0x5c   :  { %1750 = vmatpush1.bf16.msra.mxu0 %v3414_v43  ;;  %1525 = vmatprep.subr.bf16.mxu1 %v2871_v44  ;;  %v3616_v42 = vld [vmem:[%s4077_s1 + $0x3f4] ss:$8 sps:$4 sm:$0xff]   ;;  %v2949_v44 = vld [vmem:[%s4078_s0 + $0xc] ss:$36 sps:$4 sm:$0xff]  }
  0x5d   :  { %1751 = vmatprep.subr.bf16.mxu0 %v3424_v45  ;;  %1470 = vmatprep.mubr.bf16.mxu1 %v2875_v46  ;;  %v2952_v46 = vld [vmem:[%s4078_s0 + $0x1c] ss:$36 sps:$4 sm:$0xff]  }
  0x5e   :  { %1696 = vmatprep.mubr.bf16.mxu0 %v2877_v47  ;;  %v2941_v47 = vld [vmem:[%s4077_s1 + $0x1f0] ss:$8 sps:$4 sm:$0xff]  }
  0x5f   :  { %1526 = vmatpush1.bf16.msra.mxu1 %v2869_v48  ;;  %v3631_v48 = vld [vmem:[%s4077_s1 + $0x3f0] ss:$8 sps:$4 sm:$0xff]  }
  0x60   :  { %1752 = vmatpush1.bf16.msra.mxu0 %v3439_v49  ;;  %1527 = vmatprep.subr.bf16.mxu1 %v2882_v50  ;;  %v2955_v50 = vld [vmem:[%s4077_s1 + $0x404] ss:$8 sps:$4 sm:$0xff]  }
  0x61   :  { %1753 = vmatprep.subr.bf16.mxu0 %v3448_v51 }
  0x62   :  { %1471 = vmatmul.mubr.bf16.gmra.mrb[16].mxu1 %v2879_v52  ;;  %v2947_v52 = vld [vmem:[%s4078_s0 + $0x8] ss:$36 sps:$4 sm:$0xff]  }
  0x63   :  { %1697 = vmatmul.mubr.bf16.gmra.mrb[16].mxu0 %v2883_v54  ;;  %1528 = vmatpush1.bf16.msra.mxu1 %v2880_v53  ;;  %v2950_v53 = vld [vmem:[%s4078_s0 + $0x18] ss:$36 sps:$4 sm:$0xff]   ;;  %v2953_v54 = vld [vmem:[%s4077_s1 + $0x400] ss:$8 sps:$4 sm:$0xff]  }
  0x64   :  { %1754 = vmatpush1.bf16.msra.mxu0 %v3462_v55  ;;  %1529 = vmatprep.subr.bf16.mxu1 %v2889_v56  ;;  %v2958_v56 = vld [vmem:[%s4077_s1 + $0x414] ss:$8 sps:$4 sm:$0xff]  }
  0x65   :  { %1755 = vmatprep.subr.bf16.mxu0 %v3472_v57  ;;  %1480 = vmatprep.mubr.bf16.mxu1 %v2893_v58  ;;  %v2959_v58 = vld [vmem:[%s4078_s0 + $0x54] ss:$36 sps:$4 sm:$0xff]  }
  0x66   :  { %1706 = vmatprep.mubr.bf16.mxu0 %v2895_v59  ;;  %v2961_v59 = vld [vmem:[%s4078_s0 + $0x64] ss:$36 sps:$4 sm:$0xff]  }
  0x67   :  { %1530 = vmatpush1.bf16.msra.mxu1 %v2887_v60  ;;  %v2956_v60 = vld [vmem:[%s4077_s1 + $0x410] ss:$8 sps:$4 sm:$0xff]  }
  0x68   :  { %1756 = vmatpush1.bf16.msra.mxu0 %v3487_v61  ;;  %1531 = vmatprep.subr.bf16.mxu1 %v2900_v62  ;;  %v2963_v62 = vld [vmem:[%s4078_s0 + $0x50] ss:$36 sps:$4 sm:$0xff]  }
  0x69   :  { %1757 = vmatprep.subr.bf16.mxu0 %v3496_v63 }
  0x6a   :  { %1481 = vmatmul.mubr.bf16.gmra.mrb[20].mxu1 %v2897_v0  ;;  %v2970_v0 = vld [vmem:[%s4077_s1 + $0x434] ss:$8 sps:$4 sm:$0xff]  }
  0x6b   :  { %1707 = vmatmul.mubr.bf16.gmra.mrb[20].mxu0 %v2901_v2  ;;  %1532 = vmatpush1.bf16.msra.mxu1 %v2898_v1  ;;  %v2971_v1 = vld [vmem:[%s4078_s0 + $0x9c] ss:$36 sps:$4 sm:$0xff]   ;;  %v2979_v2 = vld [vmem:[%s4077_s1 + $0x444] ss:$8 sps:$4 sm:$0xff]  }
  0x6c   :  { %1758 = vmatpush1.bf16.msra.mxu0 %v3510_v4  ;;  %1533 = vmatprep.subr.bf16.mxu1 %v2907_v5  ;;  %v2975_v5 = vld [vmem:[%s4078_s0 + $0x98] ss:$36 sps:$4 sm:$0xff]  }
  0x6d   :  { %1759 = vmatprep.subr.bf16.mxu0 %v3520_v6  ;;  %1490 = vmatprep.mubr.bf16.mxu1 %v2911_v8  ;;  %v2982_v8 = vld [vmem:[%s4077_s1 + $0x454] ss:$8 sps:$4 sm:$0xff]  }
  0x6e   :  { %1716 = vmatprep.mubr.bf16.mxu0 %v2913_v10  ;;  %v2983_v10 = vld [vmem:[%s4078_s0 + $0xe4] ss:$36 sps:$4 sm:$0xff]  }
  0x6f   :  { %1534 = vmatpush1.bf16.msra.mxu1 %v2905_v11  ;;  %v2991_v11 = vld [vmem:[%s4077_s1 + $0x464] ss:$8 sps:$4 sm:$0xff]  }
  0x70   :  { %1760 = vmatpush1.bf16.msra.mxu0 %v3534_v12  ;;  %1535 = vmatprep.subr.bf16.mxu1 %v2918_v14  ;;  %v2987_v14 = vld [vmem:[%s4078_s0 + $0xe0] ss:$36 sps:$4 sm:$0xff]  }
  0x71   :  { %1761 = vmatprep.subr.bf16.mxu0 %v3544_v16 }
  0x72   :  { %1491 = vmatmul.mubr.bf16.gmra.mrb[24].mxu1 %v2915_v17  ;;  %v2994_v17 = vld [vmem:[%s4077_s1 + $0x474] ss:$8 sps:$4 sm:$0xff]  }
  0x73   :  { %1717 = vmatmul.mubr.bf16.gmra.mrb[24].mxu0 %v2919_v20  ;;  %1536 = vmatpush1.bf16.msra.mxu1 %v2916_v18  ;;  %v2995_v18 = vld [vmem:[%s4078_s0 + $0x12c] ss:$36 sps:$4 sm:$0xff]  }
  0x74   :  { %1762 = vmatpush1.bf16.msra.mxu0 %v3558_v22  ;;  %1537 = vmatprep.subr.bf16.mxu1 %v2925_v23  ;;  %v2997_v20 = vld [vmem:[%s4078_s0 + $0x128] ss:$36 sps:$4 sm:$0xff]  }
  0x75   :  { %1763 = vmatprep.subr.bf16.mxu0 %v3568_v24  ;;  %1500 = vmatprep.mubr.bf16.mxu1 %v2929_v26  ;;  %v3002_v23 = vld [vmem:[%s4078_s0 + $0x68] ss:$36 sps:$4 sm:$0xff]  }
  0x76   :  { %1726 = vmatprep.mubr.bf16.mxu0 %v2931_v28  ;;  %v3018_v26 = vld [vmem:[%s4078_s0 + $0x188] ss:$36 sps:$4 sm:$0xff]  }
  0x77   :  { %1538 = vmatpush1.bf16.msra.mxu1 %v2923_v29  ;;  %v3019_v28 = vld [vmem:[%s4078_s0 + $0x1cc] ss:$36 sps:$4 sm:$0xff]  }
  0x78   :  { %1764 = vmatpush1.bf16.msra.mxu0 %v3582_v30  ;;  %1539 = vmatprep.subr.bf16.mxu1 %v2936_v32  ;;  %v3021_v29 = vld [vmem:[%s4078_s0 + $0x1c8] ss:$36 sps:$4 sm:$0xff]   ;;  %v3023_v32 = vld [vmem:[%s4078_s0 + $0x214] ss:$36 sps:$4 sm:$0xff]  }
  0x79   :  { %1765 = vmatprep.subr.bf16.mxu0 %v3592_v34 }
  0x7a   :  { %1501 = vmatmul.mubr.bf16.gmra.mrb[28].mxu1 %v2933_v35  ;;  %v3026_v35 = vld [vmem:[%s4078_s0 + $0x218] ss:$36 sps:$4 sm:$0xff]  }
  0x7b   :  { %1727 = vmatmul.mubr.bf16.gmra.mrb[28].mxu0 %v2937_v38  ;;  %1540 = vmatpush1.bf16.msra.mxu1 %v2934_v36 }
  0x7c   :  { %1766 = vmatpush1.bf16.msra.mxu0 %v3606_v40  ;;  %1541 = vmatprep.subr.bf16.mxu1 %v2943_v41 }
  0x7d   :  { %1767 = vmatprep.subr.bf16.mxu0 %v3616_v42  ;;  %1543 = vmatprep.mubr.bf16.mxu1 %v2949_v44 }
  0x7e   :  { %1769 = vmatprep.mubr.bf16.mxu0 %v2952_v46 }
  0x7f   :  { %1542 = vmatpush1.bf16.msra.mxu1 %v2941_v47 }
  0x80   :  { %1768 = vmatpush1.bf16.msra.mxu0 %v3631_v48  ;;  %2546 = vmatprep.subr.bf16.mxu1 %v3257_v3  ;;  %v2967_v3 = vld [vmem:[%s4077_s1 + $0x424] ss:$8 sps:$4 sm:$0xff]  }
  0x81   :  { %1850 = vmatprep.subr.bf16.mxu0 %v2955_v50 }
  0x82   :  { %1544 = vmatmul.mubr.bf16.vlgmr.msra.gmra.mrb[0].mxu1 %v2947_v52 }
  0x83   :  { %1770 = vmatmul.mubr.bf16.vlgmr.msra.gmra.mrb[0].mxu0 %v2950_v53  ;;  %2562 = vmatpush1.bf16.msra.mxu1 %v3271_v7  ;;  %v2964_v7 = vld [vmem:[%s4078_s0 + $0x60] ss:$36 sps:$4 sm:$0xff]  }
  0x84   :  { %1851 = vmatpush1.bf16.msra.mxu0 %v2953_v54  ;;  %2547 = vmatprep.subr.bf16.mxu1 %v3280_v9  ;;  %v2965_v9 = vld [vmem:[%s4077_s1 + $0x420] ss:$8 sps:$4 sm:$0xff]  }
  0x85   :  { %1852 = vmatprep.subr.bf16.mxu0 %v2958_v56  ;;  %1553 = vmatprep.mubr.bf16.mxu1 %v2959_v58 }
  0x86   :  { %1779 = vmatprep.mubr.bf16.mxu0 %v2961_v59 }
  0x87   :  { %2563 = vmatpush1.bf16.msra.mxu1 %v3295_v13  ;;  %v2973_v13 = vld [vmem:[%s4078_s0 + $0xac] ss:$36 sps:$4 sm:$0xff]  }
  0x88   :  { %1853 = vmatpush1.bf16.msra.mxu0 %v2956_v60  ;;  %2548 = vmatprep.subr.bf16.mxu1 %v3304_v15  ;;  %v2968_v15 = vld [vmem:[%s4077_s1 + $0x430] ss:$8 sps:$4 sm:$0xff]  }
  0x89   :  { %1854 = vmatprep.subr.bf16.mxu0 %v2967_v3 }
  0x8a   :  { %1554 = vmatmul.mubr.bf16.gmra.mrb[4].mxu1 %v2963_v62 }
  0x8b   :  { %1780 = vmatmul.mubr.bf16.gmra.mrb[4].mxu0 %v2964_v7  ;;  %2564 = vmatpush1.bf16.msra.mxu1 %v3318_v19  ;;  %v2976_v19 = vld [vmem:[%s4078_s0 + $0xa8] ss:$36 sps:$4 sm:$0xff]  }
  0x8c   :  { %1855 = vmatpush1.bf16.msra.mxu0 %v2965_v9  ;;  %2549 = vmatprep.subr.bf16.mxu1 %v3328_v21  ;;  %v2977_v21 = vld [vmem:[%s4077_s1 + $0x440] ss:$8 sps:$4 sm:$0xff]  }
  0x8d   :  { %1856 = vmatprep.subr.bf16.mxu0 %v2970_v0  ;;  %1563 = vmatprep.mubr.bf16.mxu1 %v2971_v1 }
  0x8e   :  { %1789 = vmatprep.mubr.bf16.mxu0 %v2973_v13 }
  0x8f   :  { %2565 = vmatpush1.bf16.msra.mxu1 %v3343_v25  ;;  %v2985_v25 = vld [vmem:[%s4078_s0 + $0xf4] ss:$36 sps:$4 sm:$0xff]  }
  0x90   :  { %1857 = vmatpush1.bf16.msra.mxu0 %v2968_v15  ;;  %2550 = vmatprep.subr.bf16.mxu1 %v3352_v27  ;;  %v2980_v27 = vld [vmem:[%s4077_s1 + $0x450] ss:$8 sps:$4 sm:$0xff]  }
  0x91   :  { %1858 = vmatprep.subr.bf16.mxu0 %v2979_v2 }
  0x92   :  { %1564 = vmatmul.mubr.bf16.gmra.mrb[8].mxu1 %v2975_v5 }
  0x93   :  { %1790 = vmatmul.mubr.bf16.gmra.mrb[8].mxu0 %v2976_v19  ;;  %2566 = vmatpush1.bf16.msra.mxu1 %v3366_v31  ;;  %v2988_v31 = vld [vmem:[%s4078_s0 + $0xf0] ss:$36 sps:$4 sm:$0xff]  }
  0x94   :  { %1859 = vmatpush1.bf16.msra.mxu0 %v2977_v21  ;;  %2551 = vmatprep.subr.bf16.mxu1 %v3376_v33  ;;  %v2989_v33 = vld [vmem:[%s4077_s1 + $0x460] ss:$8 sps:$4 sm:$0xff]   ;;  %v2064_v21 = vlaneseq }
  0x95   :  { %1860 = vmatprep.subr.bf16.mxu0 %v2982_v8  ;;  %1573 = vmatprep.mubr.bf16.mxu1 %v2983_v10 }
  0x96   :  { %1799 = vmatprep.mubr.bf16.mxu0 %v2985_v25  ;;  %v2065_v8 = vshrl.u32 %v2064_v21, 7 }
  0x97   :  { %2567 = vmatpush1.bf16.msra.mxu1 %v3391_v37  ;;  %v2992_v37 = vld [vmem:[%s4077_s1 + $0x470] ss:$8 sps:$4 sm:$0xff]  }
  0x98   :  { %1861 = vmatpush1.bf16.msra.mxu0 %v2980_v27  ;;  %2552 = vmatprep.subr.bf16.mxu1 %v3400_v39  ;;  %v3027_v39 = vmov 0  }
  0x99   :  { %1862 = vmatprep.subr.bf16.mxu0 %v2991_v11 }
  0x9a   :  { %1574 = vmatmul.mubr.bf16.gmra.mrb[12].mxu1 %v2987_v14  ;;  %v2066_v14 = vsub.s32 0, %v2065_v8 }
  0x9b   :  { %1800 = vmatmul.mubr.bf16.gmra.mrb[12].mxu0 %v2988_v31  ;;  %2568 = vmatpush1.bf16.msra.mxu1 %v3414_v43  ;;  %v2998_v43 = vld [vmem:[%s4078_s0 + $0x20] ss:$36 sps:$4 sm:$0xff]  }
  0x9c   :  { %1863 = vmatpush1.bf16.msra.mxu0 %v2989_v33  ;;  %2553 = vmatprep.subr.bf16.mxu1 %v3424_v45  ;;  %v2999_v45 = vld [vmem:[%s4078_s0 + $0x174] ss:$36 sps:$4 sm:$0xff]   ;;  %v2062_v31 = vld [vmem:[%s4079_s2] sm:$0x3]  ;;  %v2070_v33 = vsub.s32 1, %v2065_v8 }
  0x9d   :  { %1864 = vmatprep.subr.bf16.mxu0 %v2994_v17  ;;  %1583 = vmatprep.mubr.bf16.mxu1 %v2995_v18  ;;  %v2106_v17 = vld [vmem:[%s4080_s3] sm:$0x3]  ;;  %v3887_v18 = vrot.slane %v2062_v31, %v2066_v14 }
  0x9e   :  { %1882 = vmatprep.mubr.bf16.mxu0 %v3027_v39 }
  0x9f   :  { %2569 = vmatpush1.bf16.msra.mxu1 %v3439_v49  ;;  %v3001_v49 = vld [vmem:[%s4078_s0 + $0x170] ss:$36 sps:$4 sm:$0xff]  }
  0xa0   :  { %1865 = vmatpush1.bf16.msra.mxu0 %v2992_v37  ;;  %2554 = vmatprep.subr.bf16.mxu1 %v3448_v51  ;;  %v3003_v51 = vld [vmem:[%s4078_s0 + $0x1bc] ss:$36 sps:$4 sm:$0xff]  }
  0xa2   :  { %1584 = vmatmul.mubr.bf16.gmra.mrb[16].mxu1 %v2997_v20  ;;  %v3889_v20 = vrot.slane %v2062_v31, %v2070_v33 }
  0xa3   :  { %1883 = vmatmul.mubr.bf16.vlgmr.msra.gmra.mrb[0].mxu0 %v2998_v43  ;;  %2570 = vmatpush1.bf16.msra.mxu1 %v3462_v55  ;;  %v3005_v55 = vld [vmem:[%s4078_s0 + $0x1b8] ss:$36 sps:$4 sm:$0xff]  }
  0xa4   :  { %1593 = vmatprep.mubr.bf16.mxu1 %v2999_v45  ;;  %2555 = vmatprep.subr.bf16.mxu1 %v3472_v57  ;;  %v3006_v57 = vld [vmem:[%s4078_s0 + $0xb0] ss:$36 sps:$4 sm:$0xff]  }
  0xa5   :  { %1892 = vmatprep.mubr.bf16.mxu0 %v3027_v39 }
  0xa7   :  { %2571 = vmatpush1.bf16.msra.mxu1 %v3487_v61  ;;  %v3007_v61 = vld [vmem:[%s4078_s0 + $0x204] ss:$36 sps:$4 sm:$0xff]  }
  0xa8   :  { %2556 = vmatprep.subr.bf16.mxu1 %v3496_v63  ;;  %v3009_v63 = vld [vmem:[%s4078_s0 + $0x200] ss:$36 sps:$4 sm:$0xff]  }
  0xaa   :  { %1594 = vmatmul.mubr.bf16.gmra.mrb[20].mxu1 %v3001_v49  ;;  %v3893_v49 = vrot.slane %v2106_v17, %v2066_v14 }
  0xab   :  { %1893 = vmatmul.mubr.bf16.gmra.mrb[4].mxu0 %v3002_v23  ;;  %2572 = vmatpush1.bf16.msra.mxu1 %v3510_v4  ;;  %v3010_v4 = vld [vmem:[%s4078_s0 + $0xf8] ss:$36 sps:$4 sm:$0xff]  }
  0xac   :  { %1603 = vmatprep.mubr.bf16.mxu1 %v3003_v51  ;;  %2557 = vmatprep.subr.bf16.mxu1 %v3520_v6  ;;  %v3013_v6 = vld [vmem:[%s4078_s0 + $0x13c] ss:$36 sps:$4 sm:$0xff]  }
  0xad   :  { %1902 = vmatprep.mubr.bf16.mxu0 %v3027_v39 }
  0xaf   :  { %2573 = vmatpush1.bf16.msra.mxu1 %v3534_v12  ;;  %v3011_v12 = vld [vmem:[%s4078_s0 + $0x138] ss:$36 sps:$4 sm:$0xff]  }
  0xb0   :  { %2558 = vmatprep.subr.bf16.mxu1 %v3544_v16  ;;  %v3014_v16 = vld [vmem:[%s4078_s0 + $0x140] ss:$36 sps:$4 sm:$0xff]  }
  0xb2   :  { %1604 = vmatmul.mubr.bf16.gmra.mrb[24].mxu1 %v3005_v55 }
  0xb3   :  { %1903 = vmatmul.mubr.bf16.gmra.mrb[8].mxu0 %v3006_v57  ;;  %2574 = vmatpush1.bf16.msra.mxu1 %v3558_v22  ;;  %v3015_v22 = vld [vmem:[%s4078_s0 + $0x184] ss:$36 sps:$4 sm:$0xff]  }
  0xb4   :  { %1613 = vmatprep.mubr.bf16.mxu1 %v3007_v61  ;;  %2559 = vmatprep.subr.bf16.mxu1 %v3568_v24  ;;  %v3017_v24 = vld [vmem:[%s4078_s0 + $0x180] ss:$36 sps:$4 sm:$0xff]   ;;  %v3897_v61 = vrot.slane %v2106_v17, %v2070_v33 }
  0xb5   :  { %1912 = vmatprep.mubr.bf16.mxu0 %v3027_v39 }
  0xb7   :  { %2575 = vmatpush1.bf16.msra.mxu1 %v3582_v30  ;;  %v3022_v30 = vld [vmem:[%s4078_s0 + $0x1d0] ss:$36 sps:$4 sm:$0xff]  }
  0xb8   :  { %2560 = vmatprep.subr.bf16.mxu1 %v3592_v34  ;;  %v3025_v34 = vld [vmem:[%s4078_s0 + $0x210] ss:$36 sps:$4 sm:$0xff]  }
  0xba   :  { %1614 = vmatmul.mubr.bf16.gmra.mrb[28].mxu1 %v3009_v63 }
  0xbb   :  { %1913 = vmatmul.mubr.bf16.gmra.mrb[12].mxu0 %v3010_v4  ;;  %2576 = vmatpush1.bf16.msra.mxu1 %v3606_v40 }
  0xbc   :  { %1809 = vmatprep.mubr.bf16.mxu1 %v3013_v6  ;;  %2561 = vmatprep.subr.bf16.mxu1 %v3616_v42 }
  0xbd   :  { %1922 = vmatprep.mubr.bf16.mxu0 %v3027_v39 }
  0xbf   :  { %2577 = vmatpush1.bf16.msra.mxu1 %v3631_v48 }
  0xc2   :  { %1810 = vmatmul.mubr.bf16.vlgmr.msra.gmra.mrb[32].mxu1 %v3011_v12 }
  0xc3   :  { %1923 = vmatmul.mubr.bf16.gmra.mrb[32].mxu0 %v3014_v16  ;;  %1819 = vmatprep.mubr.bf16.mxu1 %v3015_v22 }
  0xc4   :  { %1932 = vmatprep.mubr.bf16.mxu0 %v3027_v39 }
  0xca   :  { %1820 = vmatmul.mubr.bf16.gmra.mrb[36].mxu1 %v3017_v24 }
  0xcb   :  { %1933 = vmatmul.mubr.bf16.gmra.mrb[36].mxu0 %v3018_v26  ;;  %1829 = vmatprep.mubr.bf16.mxu1 %v3019_v28 }
  0xcc   :  { %1942 = vmatprep.mubr.bf16.mxu0 %v3027_v39 }
  0xd2   :  { %1830 = vmatmul.mubr.bf16.gmra.mrb[40].mxu1 %v3021_v29 }
  0xd3   :  { %1943 = vmatmul.mubr.bf16.gmra.mrb[40].mxu0 %v3022_v30  ;;  %1839 = vmatprep.mubr.bf16.mxu1 %v3023_v32 }
  0xd4   :  { %1952 = vmatprep.mubr.bf16.mxu0 %v3027_v39 }
  0xda   :  { %1840 = vmatmul.mubr.bf16.gmra.mrb[44].mxu1 %v3025_v34 }
  0xdb   :  { %1953 = vmatmul.mubr.bf16.gmra.mrb[44].mxu0 %v3026_v35 }
 0x136   :  { %v1698_v36 = vpop.f32.mrb[16].mxu0 }
 0x137   :  { %v1700_v38 = vpop.f32.mrb[17].mxu0 }
 0x138   :  { %v1702_v40 = vpop.f32.mrb[18].mxu0 }
 0x139   :  { %v1704_v41 = vpop.f32.mrb[19].mxu0 }
 0x13e   :  { %v3837_v42 = vpop.f32.mrb[20].mxu0 }
 0x13f   :  { %v3839_v44 = vpop.f32.mrb[21].mxu0 }
 0x140   :  { %v3841_v46 = vpop.f32.mrb[22].mxu0 }
 0x141   :  { %v3843_v47 = vpop.f32.mrb[23].mxu0 }
 0x146   :  { %v3845_v48 = vpop.f32.mrb[24].mxu0 }
 0x147   :  { %v3847_v50 = vpop.f32.mrb[25].mxu0 }
 0x148   :  { %v3849_v52 = vpop.f32.mrb[26].mxu0 }
 0x149   :  { %v3851_v53 = vpop.f32.mrb[27].mxu0 }
 0x14e   :  { %v3853_v54 = vpop.f32.mrb[28].mxu0 }
 0x14f   :  { %v3855_v56 = vpop.f32.mrb[29].mxu0 }
 0x150   :  { %v3857_v58 = vpop.f32.mrb[30].mxu0 }
 0x151   :  { %v3859_v59 = vpop.f32.mrb[31].mxu0 }
 0x155   :  { %v1545_v60 = vpop.f32.mrb[0].mxu1 }
 0x156   :  { %v1547_v3 = vpop.f32.mrb[1].mxu1 }
 0x157   :  { %v1549_v62 = vpop.f32.mrb[2].mxu1 }
 0x158   :  { %v1551_v7 = vpop.f32.mrb[3].mxu1 }
 0x15d   :  { %v1555_v9 = vpop.f32.mrb[4].mxu1 }
 0x15e   :  { %v1557_v0 = vpop.f32.mrb[5].mxu1 }
 0x15f   :  { %v3861_v1 = vpop.f32.mrb[6].mxu1 }
 0x160   :  { %v3863_v13 = vpop.f32.mrb[7].mxu1 }
 0x165   :  { %v3865_v15 = vpop.f32.mrb[8].mxu1 }
 0x166   :  { %v3867_v2 = vpop.f32.mrb[9].mxu1 }
 0x167   :  { %v3869_v5 = vpop.f32.mrb[10].mxu1 }
 0x168   :  { %v3871_v19 = vpop.f32.mrb[11].mxu1 }
 0x16d   :  { %v3873_v10 = vpop.f32.mrb[12].mxu1 }
 0x16e   :  { %v3875_v25 = vpop.f32.mrb[13].mxu1 }
 0x16f   :  { %v3877_v27 = vpop.f32.mrb[14].mxu1 }
 0x170   :  { %v3879_v11 = vpop.f32.mrb[15].mxu1 }
 0x175   :  { %v1585_v37 = vpop.f32.mrb[16].mxu1 }
 0x176   :  { %v1884_v39 = vpop.f32.mrb[0].mxu0  ;;  %v3891_v43 = vadd.f32 %v1698_v36, %v1585_v37  ;;  %v1587_v23 = vpop.f32.mrb[17].mxu1 }
 0x177   :  { %v2578_v45 = vadd.f32 %v1884_v39, %v1545_v60  ;;  %v1886_v51 = vpop.f32.mrb[1].mxu0  ;;  %v3895_v55 = vadd.f32 %v1700_v38, %v1587_v23  ;;  %v1589_v63 = vpop.f32.mrb[18].mxu1 }
 0x178   :  { %v2579_v57 = vadd.f32 %v1886_v51, %v1547_v3  ;;  %v1888_v4 = vpop.f32.mrb[2].mxu0  ;;  %v3900_v12 = vadd.f32 %v1702_v40, %v1589_v63  ;;  %v1591_v22 = vpop.f32.mrb[19].mxu1 }
 0x179   :  { %v2074_v6 = vmul.f32 %v2578_v45, %v3887_v18  ;;  %v2580_v16 = vadd.f32 %v1888_v4, %v1549_v62  ;;  %v1890_v24 = vpop.f32.mrb[3].mxu0  ;;  %v3903_v28 = vadd.f32 %v1704_v41, %v1591_v22 }
 0x17a   :  { %v2075_v26 = vmul.f32 %v2579_v57, %v3889_v20  ;;  %v2581_v29 = vadd.f32 %v1890_v24, %v1551_v7 }
 0x17b   :  { %v2118_v30 = vadd.f32 %v3893_v49, %v2074_v6  ;;  %v2076_v32 = vmul.f32 %v2580_v16, %v3887_v18 }
 0x17c   :  { %v2119_v34 = vadd.f32 %v3897_v61, %v2075_v26  ;;  %v2077_v35 = vmul.f32 %v2581_v29, %v3889_v20 }
 0x17d   :  { %v2150_v36 = vmax.f32 %v2118_v30, 0.0  ;;  %v2120_v38 = vadd.f32 %v3893_v49, %v2076_v32  ;;  %v1595_v3 = vpop.f32.mrb[20].mxu1 }
 0x17e   :  { %v2151_v40 = vmax.f32 %v2119_v34, 0.0  ;;  %v2121_v60 = vadd.f32 %v3897_v61, %v2077_v35  ;;  %v1894_v62 = vpop.f32.mrb[4].mxu0  ;;  %v3912_v41 = vadd.f32 %v3837_v42, %v1595_v3  ;;  %v1597_v8 = vpop.f32.mrb[21].mxu1 }
 0x17f   :  { %v2152_v21 = vmax.f32 %v2120_v38, 0.0  ;;  %v2582_v7 = vadd.f32 %v1894_v62, %v1555_v9  ;;  %v1896_v14 = vpop.f32.mrb[5].mxu0  ;;  %v3915_v17 = vadd.f32 %v3839_v44, %v1597_v8  ;;  %v1599_v39 = vpop.f32.mrb[22].mxu1 }
 0x180   :  { %v2530_v31 = vpack.c.bf16 %v2151_v40, %v2150_v36  ;;  %v2153_v33 = vmax.f32 %v2121_v60, 0.0  ;;  %v2583_v37 = vadd.f32 %v1896_v14, %v1557_v0  ;;  %v1898_v45 = vpop.f32.mrb[6].mxu0  ;;  %v3919_v51 = vadd.f32 %v3841_v46, %v1599_v39  ;;  %v1601_v42 = vpop.f32.mrb[23].mxu1 }
 0x181   :  { %v2078_v23 = vmul.f32 %v2582_v7, %v3887_v18  ;;  %v2584_v57 = vadd.f32 %v1898_v45, %v3861_v1  ;;  %v1900_v63 = vpop.f32.mrb[7].mxu0  ;;  %v3927_v0 = vadd.f32 %v3843_v47, %v1601_v42 }
 0x182   :  { %2278 = vst [vmem:[%s4081_s4] sm:$0xff] %v2530_v31  ;;  %v2531_v9 = vpack.c.bf16 %v2153_v33, %v2152_v21  ;;  %v2079_v44 = vmul.f32 %v2583_v37, %v3889_v20  ;;  %v2585_v4 = vadd.f32 %v1900_v63, %v3863_v13 }
 0x183   :  { %v2122_v6 = vadd.f32 %v3893_v49, %v2078_v23  ;;  %v2080_v46 = vmul.f32 %v2584_v57, %v3887_v18 }
 0x184   :  { %2279 = vst [vmem:[%s4081_s4 + $0x8] sm:$0xff] %v2531_v9  ;;  %v2123_v1 = vadd.f32 %v3897_v61, %v2079_v44  ;;  %v2081_v16 = vmul.f32 %v2585_v4, %v3889_v20 }
 0x185   :  { %v2154_v22 = vmax.f32 %v2122_v6, 0.0  ;;  %v2124_v24 = vadd.f32 %v3893_v49, %v2080_v46  ;;  %v1605_v29 = vpop.f32.mrb[24].mxu1 }
 0x186   :  { %v2155_v26 = vmax.f32 %v2123_v1, 0.0  ;;  %v2125_v47 = vadd.f32 %v3897_v61, %v2081_v16  ;;  %v1904_v13 = vpop.f32.mrb[8].mxu0  ;;  %v3940_v32 = vadd.f32 %v3845_v48, %v1605_v29  ;;  %v1607_v35 = vpop.f32.mrb[25].mxu1 }
 0x187   :  { %v2156_v30 = vmax.f32 %v2124_v24, 0.0  ;;  %v2586_v34 = vadd.f32 %v1904_v13, %v3865_v15  ;;  %v1906_v36 = vpop.f32.mrb[9].mxu0  ;;  %v3944_v60 = vadd.f32 %v3847_v50, %v1607_v35  ;;  %v1609_v62 = vpop.f32.mrb[26].mxu1 }
 0x188   :  { %v2532_v38 = vpack.c.bf16 %v2155_v26, %v2154_v22  ;;  %v2157_v40 = vmax.f32 %v2125_v47, 0.0  ;;  %v2587_v3 = vadd.f32 %v1906_v36, %v3867_v2  ;;  %v1908_v21 = vpop.f32.mrb[10].mxu0  ;;  %v3949_v8 = vadd.f32 %v3849_v52, %v1609_v62  ;;  %v1611_v14 = vpop.f32.mrb[27].mxu1 }
 0x189   :  { %v2082_v7 = vmul.f32 %v2586_v34, %v3887_v18  ;;  %v2588_v48 = vadd.f32 %v1908_v21, %v3869_v5  ;;  %v1910_v15 = vpop.f32.mrb[11].mxu0  ;;  %v3957_v2 = vadd.f32 %v3851_v53, %v1611_v14 }
 0x18a   :  { %2280 = vst [vmem:[%s4081_s4 + $0x10] sm:$0xff] %v2532_v38  ;;  %v2533_v31 = vpack.c.bf16 %v2157_v40, %v2156_v30  ;;  %v2083_v50 = vmul.f32 %v2587_v3, %v3889_v20  ;;  %v2589_v33 = vadd.f32 %v1910_v15, %v3871_v19 }
 0x18b   :  { %v2126_v37 = vadd.f32 %v3893_v49, %v2082_v7  ;;  %v2084_v52 = vmul.f32 %v2588_v48, %v3887_v18 }
 0x18c   :  { %2281 = vst [vmem:[%s4081_s4 + $0x18] sm:$0xff] %v2533_v31  ;;  %v2127_v5 = vadd.f32 %v3897_v61, %v2083_v50  ;;  %v2085_v39 = vmul.f32 %v2589_v33, %v3889_v20 }
 0x18d   :  { %v2158_v45 = vmax.f32 %v2126_v37, 0.0  ;;  %v2128_v23 = vadd.f32 %v3893_v49, %v2084_v52  ;;  %v1615_v42 = vpop.f32.mrb[28].mxu1 }
 0x18e   :  { %v2159_v57 = vmax.f32 %v2127_v5, 0.0  ;;  %v2129_v53 = vadd.f32 %v3897_v61, %v2085_v39  ;;  %v1914_v19 = vpop.f32.mrb[12].mxu0  ;;  %v3970_v9 = vadd.f32 %v3853_v54, %v1615_v42  ;;  %v1617_v4 = vpop.f32.mrb[29].mxu1 }
 0x18f   :  { %v2160_v63 = vmax.f32 %v2128_v23, 0.0  ;;  %v2590_v44 = vadd.f32 %v1914_v19, %v3873_v10  ;;  %v1916_v6 = vpop.f32.mrb[13].mxu0  ;;  %v3974_v16 = vadd.f32 %v3855_v56, %v1617_v4  ;;  %v1619_v24 = vpop.f32.mrb[30].mxu1 }
 0x190   :  { %v2534_v46 = vpack.c.bf16 %v2159_v57, %v2158_v45  ;;  %v2161_v1 = vmax.f32 %v2129_v53, 0.0  ;;  %v2591_v22 = vadd.f32 %v1916_v6, %v3875_v25  ;;  %v1918_v26 = vpop.f32.mrb[14].mxu0  ;;  %v3979_v29 = vadd.f32 %v3857_v58, %v1619_v24  ;;  %v1621_v13 = vpop.f32.mrb[31].mxu1 }
 0x191   :  { %v2086_v47 = vmul.f32 %v2590_v44, %v3887_v18  ;;  %v2592_v54 = vadd.f32 %v1918_v26, %v3877_v27  ;;  %v1920_v10 = vpop.f32.mrb[15].mxu0  ;;  %v3987_v25 = vadd.f32 %v3859_v59, %v1621_v13 }
 0x192   :  { %2282 = vst [vmem:[%s4081_s4 + $0x20] sm:$0xff] %v2534_v46  ;;  %v2535_v30 = vpack.c.bf16 %v2161_v1, %v2160_v63  ;;  %v2087_v56 = vmul.f32 %v2591_v22, %v3889_v20  ;;  %v2593_v34 = vadd.f32 %v1920_v10, %v3879_v11 }
 0x193   :  { %v2130_v35 = vadd.f32 %v3893_v49, %v2086_v47  ;;  %v2088_v58 = vmul.f32 %v2592_v54, %v3887_v18 }
 0x194   :  { %2283 = vst [vmem:[%s4081_s4 + $0x28] sm:$0xff] %v2535_v30  ;;  %v2131_v27 = vadd.f32 %v3897_v61, %v2087_v56  ;;  %v2089_v36 = vmul.f32 %v2593_v34, %v3889_v20 }
 0x195   :  { %v2162_v38 = vmax.f32 %v2130_v35, 0.0  ;;  %v2132_v40 = vadd.f32 %v3893_v49, %v2088_v58  ;;  %v1811_v62 = vpop.f32.mrb[32].mxu1 }
 0x196   :  { %v2163_v3 = vmax.f32 %v2131_v27, 0.0  ;;  %v2133_v59 = vadd.f32 %v3897_v61, %v2089_v36  ;;  %v1924_v11 = vpop.f32.mrb[32].mxu0  ;;  %v2595_v7 = vadd.f32 %v3891_v43, %v1811_v62  ;;  %v1813_v48 = vpop.f32.mrb[33].mxu1 }
 0x197   :  { %v2164_v21 = vmax.f32 %v2132_v40, 0.0  ;;  %v1926_v14 = vpop.f32.mrb[33].mxu0  ;;  %v2598_v50 = vadd.f32 %v3895_v55, %v1813_v48  ;;  %v1815_v33 = vpop.f32.mrb[34].mxu1 }
 0x198   :  { %v2536_v15 = vpack.c.bf16 %v2163_v3, %v2162_v38  ;;  %v2165_v31 = vmax.f32 %v2133_v59, 0.0  ;;  %v1928_v37 = vpop.f32.mrb[34].mxu0  ;;  %v2596_v52 = vadd.f32 %v2595_v7, %v1924_v11  ;;  %v2601_v5 = vadd.f32 %v3900_v12, %v1815_v33  ;;  %v1817_v39 = vpop.f32.mrb[35].mxu1 }
 0x199   :  { %v1930_v45 = vpop.f32.mrb[35].mxu0  ;;  %v2599_v57 = vadd.f32 %v2598_v50, %v1926_v14  ;;  %v2604_v43 = vadd.f32 %v3903_v28, %v1817_v39 }
 0x19a   :  { %2284 = vst [vmem:[%s4081_s4 + $0x30] sm:$0xff] %v2536_v15  ;;  %v2537_v23 = vpack.c.bf16 %v2165_v31, %v2164_v21  ;;  %v2090_v53 = vmul.f32 %v2596_v52, %v3887_v18  ;;  %v2602_v42 = vadd.f32 %v2601_v5, %v1928_v37 }
 0x19b   :  { %v2091_v55 = vmul.f32 %v2599_v57, %v3889_v20  ;;  %v2605_v12 = vadd.f32 %v2604_v43, %v1930_v45 }
 0x19c   :  { %2285 = vst [vmem:[%s4081_s4 + $0x38] sm:$0xff] %v2537_v23  ;;  %v2134_v19 = vadd.f32 %v3893_v49, %v2090_v53  ;;  %v2092_v63 = vmul.f32 %v2602_v42, %v3887_v18 }
 0x19d   :  { %v2135_v44 = vadd.f32 %v3897_v61, %v2091_v55  ;;  %v2093_v4 = vmul.f32 %v2605_v12, %v3889_v20  ;;  %v1821_v6 = vpop.f32.mrb[36].mxu1 }
 0x19e   :  { %v1934_v28 = vpop.f32.mrb[36].mxu0  ;;  %v2166_v46 = vmax.f32 %v2134_v19, 0.0  ;;  %v2136_v1 = vadd.f32 %v3893_v49, %v2092_v63  ;;  %v2607_v22 = vadd.f32 %v3912_v41, %v1821_v6  ;;  %v1823_v24 = vpop.f32.mrb[37].mxu1 }
 0x19f   :  { %v1936_v26 = vpop.f32.mrb[37].mxu0  ;;  %v2167_v47 = vmax.f32 %v2135_v44, 0.0  ;;  %v2137_v54 = vadd.f32 %v3897_v61, %v2093_v4  ;;  %v2610_v13 = vadd.f32 %v3915_v17, %v1823_v24  ;;  %v1825_v10 = vpop.f32.mrb[38].mxu1 }
 0x1a0   :  { %v1938_v30 = vpop.f32.mrb[38].mxu0  ;;  %v2168_v56 = vmax.f32 %v2136_v1, 0.0  ;;  %v2608_v34 = vadd.f32 %v2607_v22, %v1934_v28  ;;  %v2613_v35 = vadd.f32 %v3919_v51, %v1825_v10  ;;  %v1827_v58 = vpop.f32.mrb[39].mxu1 }
 0x1a1   :  { %v1940_v27 = vpop.f32.mrb[39].mxu0  ;;  %v2538_v36 = vpack.c.bf16 %v2167_v47, %v2166_v46  ;;  %v2169_v38 = vmax.f32 %v2137_v54, 0.0  ;;  %v2611_v40 = vadd.f32 %v2610_v13, %v1936_v26  ;;  %v2616_v41 = vadd.f32 %v3927_v0, %v1827_v58 }
 0x1a2   :  { %v2094_v3 = vmul.f32 %v2608_v34, %v3887_v18  ;;  %v2614_v59 = vadd.f32 %v2613_v35, %v1938_v30 }
 0x1a3   :  { %2286 = vst [vmem:[%s4081_s4 + $0x40] sm:$0xff] %v2538_v36  ;;  %v2539_v17 = vpack.c.bf16 %v2169_v38, %v2168_v56  ;;  %v2095_v62 = vmul.f32 %v2611_v40, %v3889_v20  ;;  %v2617_v11 = vadd.f32 %v2616_v41, %v1940_v27 }
 0x1a4   :  { %v2138_v51 = vadd.f32 %v3893_v49, %v2094_v3  ;;  %v2096_v21 = vmul.f32 %v2614_v59, %v3887_v18 }
 0x1a5   :  { %2287 = vst [vmem:[%s4081_s4 + $0x48] sm:$0xff] %v2539_v17  ;;  %v2139_v0 = vadd.f32 %v3897_v61, %v2095_v62  ;;  %v2097_v7 = vmul.f32 %v2617_v11, %v3889_v20  ;;  %v1831_v48 = vpop.f32.mrb[40].mxu1 }
 0x1a6   :  { %v1944_v14 = vpop.f32.mrb[40].mxu0  ;;  %v2170_v15 = vmax.f32 %v2138_v51, 0.0  ;;  %v2140_v31 = vadd.f32 %v3893_v49, %v2096_v21  ;;  %v2619_v50 = vadd.f32 %v3940_v32, %v1831_v48  ;;  %v1833_v33 = vpop.f32.mrb[41].mxu1 }
 0x1a7   :  { %v1946_v37 = vpop.f32.mrb[41].mxu0  ;;  %v2171_v52 = vmax.f32 %v2139_v0, 0.0  ;;  %v2141_v5 = vadd.f32 %v3897_v61, %v2097_v7  ;;  %v2622_v39 = vadd.f32 %v3944_v60, %v1833_v33  ;;  %v1835_v45 = vpop.f32.mrb[42].mxu1 }
 0x1a8   :  { %v1948_v23 = vpop.f32.mrb[42].mxu0  ;;  %v2172_v57 = vmax.f32 %v2140_v31, 0.0  ;;  %v2620_v43 = vadd.f32 %v2619_v50, %v1944_v14  ;;  %v2625_v53 = vadd.f32 %v3949_v8, %v1835_v45  ;;  %v1837_v42 = vpop.f32.mrb[43].mxu1 }
 0x1a9   :  { %v1950_v55 = vpop.f32.mrb[43].mxu0  ;;  %v2540_v12 = vpack.c.bf16 %v2171_v52, %v2170_v15  ;;  %v2173_v19 = vmax.f32 %v2141_v5, 0.0  ;;  %v2623_v63 = vadd.f32 %v2622_v39, %v1946_v37  ;;  %v2628_v32 = vadd.f32 %v3957_v2, %v1837_v42 }
 0x1aa   :  { %v2098_v44 = vmul.f32 %v2620_v43, %v3887_v18  ;;  %v2626_v4 = vadd.f32 %v2625_v53, %v1948_v23 }
 0x1ab   :  { %2288 = vst [vmem:[%s4081_s4 + $0x50] sm:$0xff] %v2540_v12  ;;  %v2541_v60 = vpack.c.bf16 %v2173_v19, %v2172_v57  ;;  %v2099_v6 = vmul.f32 %v2623_v63, %v3889_v20  ;;  %v2629_v28 = vadd.f32 %v2628_v32, %v1950_v55 }
 0x1ac   :  { %v2142_v8 = vadd.f32 %v3893_v49, %v2098_v44  ;;  %v2100_v46 = vmul.f32 %v2626_v4, %v3887_v18 }
 0x1ad   :  { %2289 = vst [vmem:[%s4081_s4 + $0x58] sm:$0xff] %v2541_v60  ;;  %v2143_v2 = vadd.f32 %v3897_v61, %v2099_v6  ;;  %v2101_v1 = vmul.f32 %v2629_v28, %v3889_v20  ;;  %v1841_v22 = vpop.f32.mrb[44].mxu1 }
 0x1ae   :  { %v1954_v24 = vpop.f32.mrb[44].mxu0  ;;  %v2174_v26 = vmax.f32 %v2142_v8, 0.0  ;;  %v2144_v47 = vadd.f32 %v3893_v49, %v2100_v46  ;;  %v2631_v54 = vadd.f32 %v3970_v9, %v1841_v22  ;;  %v1843_v13 = vpop.f32.mrb[45].mxu1 }
 0x1af   :  { %v1956_v10 = vpop.f32.mrb[45].mxu0  ;;  %v2175_v30 = vmax.f32 %v2143_v2, 0.0  ;;  %v2145_v56 = vadd.f32 %v3897_v61, %v2101_v1  ;;  %v2634_v34 = vadd.f32 %v3974_v16, %v1843_v13  ;;  %v1845_v35 = vpop.f32.mrb[46].mxu1 }
 0x1b0   :  { %v1958_v58 = vpop.f32.mrb[46].mxu0  ;;  %v2176_v27 = vmax.f32 %v2144_v47, 0.0  ;;  %v2632_v36 = vadd.f32 %v2631_v54, %v1954_v24  ;;  %v2637_v38 = vadd.f32 %v3979_v29, %v1845_v35  ;;  %v1847_v40 = vpop.f32.mrb[47].mxu1 }
 0x1b1   :  { %v1960_v41 = vpop.f32.mrb[47].mxu0  ;;  %v2542_v3 = vpack.c.bf16 %v2175_v30, %v2174_v26  ;;  %v2177_v59 = vmax.f32 %v2145_v56, 0.0  ;;  %v2635_v17 = vadd.f32 %v2634_v34, %v1956_v10  ;;  %v2640_v9 = vadd.f32 %v3987_v25, %v1847_v40 }
 0x1b2   :  { %v2102_v62 = vmul.f32 %v2632_v36, %v3887_v18  ;;  %v2638_v11 = vadd.f32 %v2637_v38, %v1958_v58 }
 0x1b3   :  { %2290 = vst [vmem:[%s4081_s4 + $0x60] sm:$0xff] %v2542_v3  ;;  %v2543_v16 = vpack.c.bf16 %v2177_v59, %v2176_v27  ;;  %v2103_v51 = vmul.f32 %v2635_v17, %v3889_v20  ;;  %v2641_v21 = vadd.f32 %v2640_v9, %v1960_v41 }
 0x1b4   :  { %v2146_v29 = vadd.f32 %v3893_v49, %v2102_v62  ;;  %v2104_v0 = vmul.f32 %v2638_v11, %v3887_v18 }
 0x1b5   :  { %2291 = vst [vmem:[%s4081_s4 + $0x68] sm:$0xff] %v2543_v16  ;;  %v2147_v25 = vadd.f32 %v3897_v61, %v2103_v51  ;;  %v2105_v7 = vmul.f32 %v2641_v21, %v3889_v20 }
 0x1b6   :  { %v2178_v48 = vmax.f32 %v2146_v29, 0.0  ;;  %v2148_v14 = vadd.f32 %v3893_v49, %v2104_v0 }
 0x1b7   :  { %v2179_v15 = vmax.f32 %v2147_v25, 0.0  ;;  %v2149_v31 = vadd.f32 %v3897_v61, %v2105_v7 }
 0x1b8   :  { %v2180_v50 = vmax.f32 %v2148_v14, 0.0 }
 0x1b9   :  { %v2544_v33 = vpack.c.bf16 %v2179_v15, %v2178_v48  ;;  %v2181_v37 = vmax.f32 %v2149_v31, 0.0 }
 0x1bb   :  { %2292 = vst [vmem:[%s4081_s4 + $0x70] sm:$0xff] %v2544_v33  ;;  %v2545_v18 = vpack.c.bf16 %v2181_v37, %v2180_v50 }
 0x1bd   :  { %2293 = vst [vmem:[%s4081_s4 + $0x78] sm:$0xff] %v2545_v18 }

// kernel: bisenet_forward.29
= control target key start
LH: loop header
LB: loop body
LE: loop exit
PB: predicated region body
PF: predicated region fallthrough
CT: control target
= control target key end

     0   :  { %v102_v0 = vmov 0.0   ;;  %v103_v25 = vmov 1983009808   ;;  %v62_v27 = vlaneseq  ;;  %vm79_vm0 = vcmask 1041409   ;;  %s129_s0 = inlined_call_operand.vmem [shape: bf16[2,16,256], index: 0, kind: input, shape index: {}]   ;;  %s130_s1 = inlined_call_operand.vmem [shape: f32[2,256], index: 1, kind: output, shape index: {}]  }
   0x1   :  { %12 = vst [vmem:[#allocation2] sm:$0xf] %v102_v0  ;;  %v14_v1 = vld [vmem:[%s129_s0] sm:$0xff]  ;;  %v15_v2 = vld [vmem:[%s129_s0 + $0x8] sm:$0xff]  ;;  %v16_v3 = vld [vmem:[%s129_s0 + $0x10] sm:$0xff]  ;;  %v60_v26 = vunpack.c.l.s4 %v103_v25  ;;  %vm81_vm1 = vcmask 1043459  }
   0x2   :  { %v17_v4 = vld [vmem:[%s129_s0 + $0x18] sm:$0xff]  ;;  %v18_v5 = vunpack.c.l.bf16 %v14_v1  ;;  %v19_v6 = vunpack.c.h.bf16 %v14_v1  ;;  %v20_v7 = vunpack.c.l.bf16 %v15_v2  ;;  %v21_v8 = vunpack.c.h.bf16 %v15_v2 }
   0x3   :  { %v22_v9 = vunpack.c.l.bf16 %v16_v3  ;;  %v23_v10 = vunpack.c.h.bf16 %v16_v3  ;;  %v24_v11 = vunpack.c.l.bf16 %v17_v4  ;;  %v25_v12 = vunpack.c.h.bf16 %v17_v4 }
   0x4   :  { %v26_v13 = vadd.f32 %v20_v7, %v18_v5  ;;  %v33_v14 = vadd.f32 %v21_v8, %v19_v6  ;;  %v61_v36 = vunpack.c.0.s8 %v60_v26  ;;  %v63_v37 = vshrl.u32 %v62_v27, 7 }
   0x5   :  { %v40_v15 = vadd.f32 %v24_v11, %v22_v9  ;;  %v47_v16 = vadd.f32 %v25_v12, %v23_v10  ;;  %vm83_vm2 = vcmask 1045509   ;;  %vm85_vm3 = vcmask 1047559  }
   0x6   :  { %v27_v17 = vrot.slane %v26_v13, 4  ;;  %v34_v18 = vrot.slane %v33_v14, 4  ;;  %v64_v46 = vsub.s32 %v61_v36, %v63_v37 }
   0x7   :  { %v41_v19 = vrot.slane %v40_v15, 4  ;;  %v48_v20 = vrot.slane %v47_v16, 4 }
   0x8   :  { %v28_v21 = vadd.f32 %v27_v17, %v26_v13  ;;  %v35_v22 = vadd.f32 %v34_v18, %v33_v14  ;;  %v13_v53 = vld [vmem:[#allocation2] sm:$0xf] }
   0x9   :  { %v42_v23 = vadd.f32 %v41_v19, %v40_v15  ;;  %v49_v24 = vadd.f32 %v48_v20, %v47_v16 }
   0xa   :  { %v29_v28 = vrot.slane %v28_v21, 2  ;;  %v36_v29 = vrot.slane %v35_v22, 2 }
   0xb   :  { %v43_v30 = vrot.slane %v42_v23, 2  ;;  %v50_v31 = vrot.slane %v49_v24, 2 }
   0xc   :  { %v30_v32 = vadd.f32 %v29_v28, %v28_v21  ;;  %v37_v33 = vadd.f32 %v36_v29, %v35_v22 }
   0xd   :  { %v44_v34 = vadd.f32 %v43_v30, %v42_v23  ;;  %v51_v35 = vadd.f32 %v50_v31, %v49_v24 }
   0xe   :  { %v31_v38 = vrot.slane %v30_v32, 1  ;;  %v38_v39 = vrot.slane %v37_v33, 1 }
   0xf   :  { %v45_v40 = vrot.slane %v44_v34, 1  ;;  %v52_v41 = vrot.slane %v51_v35, 1 }
  0x10   :  { %v32_v42 = vadd.f32 %v31_v38, %v30_v32  ;;  %v39_v43 = vadd.f32 %v38_v39, %v37_v33 }
  0x11   :  { %v46_v44 = vadd.f32 %v45_v40, %v44_v34  ;;  %v53_v45 = vadd.f32 %v52_v41, %v51_v35 }
  0x12   :  { %v58_v47 = vcombine.low %v32_v42, %v39_v43 }
  0x13   :  { %v66_v48 = vcombine.low %v46_v44, %v53_v45 }
  0x14   :  { %v65_v49 = vrot.slane %v58_v47, %v64_v46 }
  0x15   :  { %v73_v50 = vrot.slane %v66_v48, %v64_v46 }
  0x17   :  { %v78_v51 = vrot.slane %v73_v50, 7 }
  0x19   :  { %v80_v52 = vsel %vm79_vm0, %v78_v51, %v65_v49 }
  0x1a   :  { %v82_v54 = vsel %vm81_vm1, %v78_v51, %v80_v52 }
  0x1b   :  { %v84_v55 = vsel %vm83_vm2, %v78_v51, %v82_v54 }
  0x1c   :  { %v86_v56 = vsel %vm85_vm3, %v78_v51, %v84_v55 }
  0x1d   :  { %v88_v57 = vadd.f32 %v86_v56, %v13_v53 }
  0x1f   :  { %89 = vst [vmem:[#allocation2] sm:$0xf] %v88_v57 }
  0x26   :  { %v93_v58 = vld [vmem:[#allocation2] sm:$0xf] }
  0x27   :  { %v94_v59 = vmul.f32 0.0625, %v93_v58 }
  0x29   :  { %95 = vst [vmem:[%s130_s1] sm:$0xf] %v94_v59 }

// kernel: bisenet_forward.30
= control target key start
LH: loop header
LB: loop body
LE: loop exit
PB: predicated region body
PF: predicated region fallthrough
CT: control target
= control target key end

     0   :  { %v293_v34 = vlaneseq  ;;  %s605_s1 = inlined_call_operand.vmem [shape: bf16[256,256], index: 1, kind: input, shape index: {}]   ;;  %s606_s0 = inlined_call_operand.vmem [shape: bf16[16,256], index: 0, kind: input, shape index: {}]   ;;  %s607_s2 = inlined_call_operand.vmem [shape: f32[1,256], index: 2, kind: input, shape index: {}]   ;;  %s608_s3 = inlined_call_operand.vmem [shape: f32[1,256], index: 3, kind: input, shape index: {}]   ;;  %s609_s4 = inlined_call_operand.vmem [shape: f32[16,256], index: 4, kind: output, shape index: {}]  }
   0x1   :  { %v393_v0 = vld [vmem:[%s605_s1 + $0x4] ss:$8 sps:$4 sm:$0xff]   ;;  %v395_v1 = vld [vmem:[%s605_s1] ss:$8 sps:$4 sm:$0xff]   ;;  %v396_v2 = vld [vmem:[%s605_s1 + $0x14] ss:$8 sps:$4 sm:$0xff]  }
   0x2   :  { %233 = vmatprep.subr.bf16.mxu0 %v393_v0  ;;  %v398_v3 = vld [vmem:[%s605_s1 + $0x10] ss:$8 sps:$4 sm:$0xff]   ;;  %v399_v4 = vld [vmem:[%s605_s1 + $0x24] ss:$8 sps:$4 sm:$0xff]   ;;  %v401_v5 = vld [vmem:[%s605_s1 + $0x20] ss:$8 sps:$4 sm:$0xff]  }
   0x3   :  { %234 = vmatpush1.bf16.msra.mxu0 %v395_v1  ;;  %v402_v6 = vld [vmem:[%s605_s1 + $0x34] ss:$8 sps:$4 sm:$0xff]   ;;  %v404_v7 = vld [vmem:[%s605_s1 + $0x30] ss:$8 sps:$4 sm:$0xff]   ;;  %v405_v8 = vld [vmem:[%s605_s1 + $0x44] ss:$8 sps:$4 sm:$0xff]  }
   0x4   :  { %235 = vmatprep.subr.bf16.mxu0 %v396_v2  ;;  %v407_v9 = vld [vmem:[%s605_s1 + $0x40] ss:$8 sps:$4 sm:$0xff]   ;;  %v408_v10 = vld [vmem:[%s605_s1 + $0x54] ss:$8 sps:$4 sm:$0xff]   ;;  %v410_v11 = vld [vmem:[%s605_s1 + $0x50] ss:$8 sps:$4 sm:$0xff]  }
   0x5   :  { %v411_v12 = vld [vmem:[%s605_s1 + $0x64] ss:$8 sps:$4 sm:$0xff]   ;;  %v413_v14 = vld [vmem:[%s605_s1 + $0x60] ss:$8 sps:$4 sm:$0xff]   ;;  %v414_v15 = vld [vmem:[%s605_s1 + $0x74] ss:$8 sps:$4 sm:$0xff]  }
   0x6   :  { %v443_v13 = vld [vmem:[%s606_s0 + $0x4] ss:$8 sps:$4 sm:$0xff]   ;;  %v416_v16 = vld [vmem:[%s605_s1 + $0x70] ss:$8 sps:$4 sm:$0xff]   ;;  %v419_v18 = vld [vmem:[%s605_s1 + $0x80] ss:$8 sps:$4 sm:$0xff]  }
   0x7   :  { %236 = vmatpush1.bf16.msra.mxu0 %v398_v3  ;;  %265 = vmatprep.mubr.bf16.mxu0 %v443_v13  ;;  %v417_v17 = vld [vmem:[%s605_s1 + $0x84] ss:$8 sps:$4 sm:$0xff]   ;;  %v420_v19 = vld [vmem:[%s605_s1 + $0x94] ss:$8 sps:$4 sm:$0xff]   ;;  %v422_v20 = vld [vmem:[%s605_s1 + $0x90] ss:$8 sps:$4 sm:$0xff]  }
   0x8   :  { %237 = vmatprep.subr.bf16.mxu0 %v399_v4  ;;  %v423_v21 = vld [vmem:[%s605_s1 + $0xa4] ss:$8 sps:$4 sm:$0xff]   ;;  %v425_v22 = vld [vmem:[%s605_s1 + $0xa0] ss:$8 sps:$4 sm:$0xff]   ;;  %v426_v23 = vld [vmem:[%s605_s1 + $0xb4] ss:$8 sps:$4 sm:$0xff]  }
   0x9   :  { %v428_v24 = vld [vmem:[%s605_s1 + $0xb0] ss:$8 sps:$4 sm:$0xff]   ;;  %v429_v25 = vld [vmem:[%s605_s1 + $0xc4] ss:$8 sps:$4 sm:$0xff]   ;;  %v431_v26 = vld [vmem:[%s605_s1 + $0xc0] ss:$8 sps:$4 sm:$0xff]  }
   0xa   :  { %v432_v27 = vld [vmem:[%s605_s1 + $0xd4] ss:$8 sps:$4 sm:$0xff]   ;;  %v434_v28 = vld [vmem:[%s605_s1 + $0xd0] ss:$8 sps:$4 sm:$0xff]   ;;  %v435_v29 = vld [vmem:[%s605_s1 + $0xe4] ss:$8 sps:$4 sm:$0xff]  }
   0xb   :  { %238 = vmatpush1.bf16.msra.mxu0 %v401_v5  ;;  %v437_v30 = vld [vmem:[%s605_s1 + $0xe0] ss:$8 sps:$4 sm:$0xff]   ;;  %v438_v31 = vld [vmem:[%s605_s1 + $0xf4] ss:$8 sps:$4 sm:$0xff]   ;;  %v440_v32 = vld [vmem:[%s605_s1 + $0xf0] ss:$8 sps:$4 sm:$0xff]  }
   0xc   :  { %239 = vmatprep.subr.bf16.mxu0 %v402_v6  ;;  %v441_v33 = vld [vmem:[%s606_s0] ss:$8 sps:$4 sm:$0xff]   ;;  %v294_v35 = vshrl.u32 %v293_v34, 7 }
   0xd   :  { %v291_v37 = vld [vmem:[%s607_s2] sm:$0x3] }
   0xe   :  { %v295_v36 = vsub.s32 0, %v294_v35  ;;  %v299_v38 = vsub.s32 1, %v294_v35  ;;  %v307_v39 = vld [vmem:[%s608_s3] sm:$0x3] }
   0xf   :  { %240 = vmatpush1.bf16.msra.mxu0 %v404_v7 }
  0x10   :  { %241 = vmatprep.subr.bf16.mxu0 %v405_v8  ;;  %v296_v40 = vrot.slane %v291_v37, %v295_v36  ;;  %v300_v41 = vrot.slane %v291_v37, %v299_v38  ;;  %v312_v42 = vrot.slane %v307_v39, %v295_v36  ;;  %v316_v44 = vrot.slane %v307_v39, %v299_v38 }
  0x13   :  { %242 = vmatpush1.bf16.msra.mxu0 %v407_v9 }
  0x14   :  { %243 = vmatprep.subr.bf16.mxu0 %v408_v10 }
  0x17   :  { %244 = vmatpush1.bf16.msra.mxu0 %v410_v11 }
  0x18   :  { %245 = vmatprep.subr.bf16.mxu0 %v411_v12 }
  0x1b   :  { %246 = vmatpush1.bf16.msra.mxu0 %v413_v14 }
  0x1c   :  { %247 = vmatprep.subr.bf16.mxu0 %v414_v15 }
  0x1f   :  { %248 = vmatpush1.bf16.msra.mxu0 %v416_v16 }
  0x20   :  { %249 = vmatprep.subr.bf16.mxu0 %v417_v17 }
  0x23   :  { %250 = vmatpush1.bf16.msra.mxu0 %v419_v18 }
  0x24   :  { %251 = vmatprep.subr.bf16.mxu0 %v420_v19 }
  0x27   :  { %252 = vmatpush1.bf16.msra.mxu0 %v422_v20 }
  0x28   :  { %253 = vmatprep.subr.bf16.mxu0 %v423_v21 }
  0x2b   :  { %254 = vmatpush1.bf16.msra.mxu0 %v425_v22 }
  0x2c   :  { %255 = vmatprep.subr.bf16.mxu0 %v426_v23 }
  0x2f   :  { %256 = vmatpush1.bf16.msra.mxu0 %v428_v24 }
  0x30   :  { %257 = vmatprep.subr.bf16.mxu0 %v429_v25 }
  0x33   :  { %258 = vmatpush1.bf16.msra.mxu0 %v431_v26 }
  0x34   :  { %259 = vmatprep.subr.bf16.mxu0 %v432_v27 }
  0x37   :  { %260 = vmatpush1.bf16.msra.mxu0 %v434_v28 }
  0x38   :  { %261 = vmatprep.subr.bf16.mxu0 %v435_v29 }
  0x3b   :  { %262 = vmatpush1.bf16.msra.mxu0 %v437_v30 }
  0x3c   :  { %263 = vmatprep.subr.bf16.mxu0 %v438_v31 }
  0x3f   :  { %264 = vmatpush1.bf16.msra.mxu0 %v440_v32 }
  0x42   :  { %266 = vmatmul.mubr.bf16.vlgmr.msra.gmra.mrb[0].mxu0 %v441_v33 }
 0x115   :  { %v267_v43 = vpop.f32.mrb[0].mxu0 }
 0x116   :  { %v303_v45 = vmul.f32 %v296_v40, %v267_v43  ;;  %v269_v46 = vpop.f32.mrb[1].mxu0 }
 0x117   :  { %v304_v47 = vmul.f32 %v300_v41, %v269_v46  ;;  %v271_v48 = vpop.f32.mrb[2].mxu0 }
 0x118   :  { %v319_v49 = vadd.f32 %v312_v42, %v303_v45  ;;  %v305_v50 = vmul.f32 %v296_v40, %v271_v48  ;;  %v273_v51 = vpop.f32.mrb[3].mxu0 }
 0x119   :  { %v320_v52 = vadd.f32 %v316_v44, %v304_v47  ;;  %v306_v53 = vmul.f32 %v300_v41, %v273_v51 }
 0x11a   :  { %v389_v54 = vmul.f32 -1.442695, %v319_v49  ;;  %v321_v55 = vadd.f32 %v312_v42, %v305_v50 }
 0x11b   :  { %v390_v56 = vmul.f32 -1.442695, %v320_v52  ;;  %v322_v57 = vadd.f32 %v316_v44, %v306_v53 }
 0x11c   :  { %444 = vpow2.f32 %v389_v54  ;;  %v391_v58 = vmul.f32 -1.442695, %v321_v55 }
 0x11d   :  { %446 = vpow2.f32 %v390_v56  ;;  %v392_v59 = vmul.f32 -1.442695, %v322_v57 }
 0x11e   :  { %448 = vpow2.f32 %v391_v58 }
 0x11f   :  { %450 = vpow2.f32 %v392_v59 }
 0x126   :  { %v445_v60 = vpop.eup %444 }
 0x127   :  { %v447_v61 = vpop.eup %446  ;;  %v335_v62 = vadd.f32 1.0, %v445_v60 }
 0x128   :  { %v449_v63 = vpop.eup %448  ;;  %v336_v0 = vadd.f32 1.0, %v447_v61 }
 0x129   :  { %v451_v1 = vpop.eup %450  ;;  %452 = vrcp.f32 %v335_v62  ;;  %v337_v2 = vadd.f32 1.0, %v449_v63 }
 0x12a   :  { %454 = vrcp.f32 %v336_v0  ;;  %v338_v3 = vadd.f32 1.0, %v451_v1 }
 0x12b   :  { %456 = vrcp.f32 %v337_v2 }
 0x12c   :  { %458 = vrcp.f32 %v338_v3 }
 0x133   :  { %v453_v4 = vpop.eup %452 }
 0x134   :  { %v455_v5 = vpop.eup %454  ;;  %347 = vst [vmem:[%s609_s4] sm:$0xff] %v453_v4 }
 0x135   :  { %v457_v6 = vpop.eup %456  ;;  %348 = vst [vmem:[%s609_s4 + $0x8] sm:$0xff] %v455_v5 }
 0x136   :  { %v459_v7 = vpop.eup %458  ;;  %349 = vst [vmem:[%s609_s4 + $0x10] sm:$0xff] %v457_v6 }
 0x137   :  { %350 = vst [vmem:[%s609_s4 + $0x18] sm:$0xff] %v459_v7 }

// kernel: bisenet_forward.27
= control target key start
LH: loop header
LB: loop body
LE: loop exit
PB: predicated region body
PF: predicated region fallthrough
CT: control target
= control target key end

     0   :  { %s1026_s15 = smov 0   ;;  %s1028_s16 = smov 0   ;;  %s1151_s0 = inlined_call_operand.vmem [shape: bf16[32,2304], index: 0, kind: input, shape index: {}]   ;;  %s1152_s1 = inlined_call_operand.vmem [shape: bf16[2304,256], index: 1, kind: input, shape index: {}]   ;;  %s1153_s2 = inlined_call_operand.vmem [shape: f32[1,256], index: 2, kind: input, shape index: {}]   ;;  %s1154_s3 = inlined_call_operand.vmem [shape: f32[1,256], index: 3, kind: input, shape index: {}]   ;;  %s1155_s4 = inlined_call_operand.vmem [shape: bf16[32,256], index: 4, kind: output, shape index: {}]  }
   0x1   :  { %s1030_s17 = smov 0   ;;  %s1032_s18 = smov 0  }
   0x2   :  { %s1034_s19 = smov 0  }
   0x3 LB: > { %s23_s20 = sadd.s32 1, %s994_s18  ;;  %p42_p1 = scmp.ne.s32.totalorder %s986_s16, %s982_s15  ;;  %s998_s19 = sphi %s1034_s19, %s14_s19   ;;  %s994_s18 = sphi %s1032_s18, %s1159_s18   ;;  %s990_s17 = sphi %s1030_s17, %s1158_s17   ;;  %s986_s16 = sphi %s1028_s16, %s1157_s16   ;;  %s982_s15 = sphi %s1026_s15, %s1156_s15  }
   0x4   : > { %p24_p0 = scmp.ge.s32.totalorder %s23_s20, 9  ;;  %p43_p2 = scmp.eq.s32.totalorder %s998_s19, 0 }
   0x5   : > { %s35_s22 = sadd.s32 1, %s986_s16  ;;  %p772_p5 = scmp.ge.s32.totalorder %s998_s19, 9 }
   0x6   : > { %s1161_s20 = smov (%p24_p0, %s23_s20), 0  ;;  %p44_p3 = por %p43_p2, %p42_p1 }
   0x7   : > { %s31_s21 = ssub.s32 %s994_s18, %s1161_s20  ;;  %168 = sbr.rel (%p772_p5) target bundleno = 21 (0x15), region = 24 }
   0x8   : > { %p33_p4 = scmp.eq.s32.totalorder %s31_s21, 0 }
   0xa   : > { %s1061_s23 = scalar_select %p33_p4, %s986_s16, %s35_s22  }
   0xe   : > { %171 = sbr.rel (!%p44_p3) target bundleno = 21 (0x15), region = 28  ;;  %s173_s24 = sand.u32 (%p44_p3), 1, %s986_s16  }
   0xf   : > { %s827_s25 = sshll.u32 (%p44_p3), %s994_s18, 3  ;;  %s773_s26 = sshll.u32 (%p44_p3), %s173_s24, 5 }
  0x10   : > { %s181_s29 = scalar_lea.vmem (%p44_p3), %s1151_s0, %s827_s25  ;;  %s175_s30 = scalar_lea.vmem (%p44_p3), [#allocation3], %s773_s26 }
  0x11   : > { %v215_v0 = vld [vmem:[%s181_s29] sm:$0xff] (%p44_p3)  ;;  %v217_v1 = vld [vmem:[%s181_s29 + $0x48] sm:$0xff] (%p44_p3)  ;;  %v219_v2 = vld [vmem:[%s181_s29 + $0x90] sm:$0xff] (%p44_p3) }
  0x12   : > { %216 = vst [vmem:[%s175_s30] sm:$0xff] (%p44_p3), %v215_v0  ;;  %218 = vst [vmem:[%s175_s30 + $0x8] sm:$0xff] (%p44_p3), %v217_v1  ;;  %v221_v3 = vld [vmem:[%s181_s29 + $0xd8] sm:$0xff] (%p44_p3) }
  0x13   : > { %220 = vst [vmem:[%s175_s30 + $0x10] sm:$0xff] (%p44_p3), %v219_v2  ;;  %222 = vst [vmem:[%s175_s30 + $0x18] sm:$0xff] (%p44_p3), %v221_v3 }
  0x15 PF: > { %p776_p6 = scmp.ge.s32.totalorder %s998_s19, 1  ;;  %p237_p7 = scmp.lt.s32.totalorder %s998_s19, 10 }
  0x17   : > { %p238_p8 = pnand %p776_p6, %p237_p7 }
  0x18   : > { %s244_s5 = sand.u32 (!%p238_p8), 1, %s982_s15   ;;  %s778_s6 = sshll.u32 (!%p238_p8), %s990_s17, 5 }
  0x19   : > { %241 = sbr.rel (%p238_p8) target bundleno = 339 (0x153), region = 70  ;;  %s777_s7 = sshll.u32 (!%p238_p8), %s244_s5, 5 }
  0x1a   : > { %p279_p9 = scmp.lt.s32.totalorder (!%p238_p8), %s778_s6, 287  ;;  %s1078_s12 = scalar_lea.vmem (!%p238_p8), [#allocation3], %s777_s7 }
  0x1b   : > { %p781_p10 = scmp.ne.s32.totalorder (!%p238_p8), %s990_s17, 0 }
  0x20   : > { %s1163_s6 = smov (!%p279_p9, %s778_s6), 287  ;;  %295 = sbr.rel (%p781_p10) target bundleno = 39 (0x27), region = 78 }
  0x21   : > { %s828_s8 = sshll.u32 %s1163_s6, 3  ;;  %v1000_v4 = vmov (!%p781_p10), 0.0  }
  0x22   : > { %s1076_s11 = scalar_lea.vmem %s1152_s1, %s828_s8  ;;  %296 = vst [vmem:[#allocation2] sm:$0xff] (!%p781_p10), %v1000_v4  ;;  %297 = vst [vmem:[#allocation2 + $0x8] sm:$0xff] (!%p781_p10), %v1000_v4 }
  0x23   : > { %298 = vst [vmem:[#allocation2 + $0x10] sm:$0xff] (!%p781_p10), %v1000_v4  ;;  %299 = vst [vmem:[#allocation2 + $0x18] sm:$0xff] (!%p781_p10), %v1000_v4 }
  0x24   : > { %300 = vst [vmem:[#allocation2 + $0x20] sm:$0xff] (!%p781_p10), %v1000_v4  ;;  %301 = vst [vmem:[#allocation2 + $0x28] sm:$0xff] (!%p781_p10), %v1000_v4 }
  0x25   : > { %302 = vst [vmem:[#allocation2 + $0x30] sm:$0xff] (!%p781_p10), %v1000_v4  ;;  %303 = vst [vmem:[#allocation2 + $0x38] sm:$0xff] (!%p781_p10), %v1000_v4 }
  0x27 PF: > { %v906_v5 = vld [vmem:[%s1076_s11 + $0x4] ss:$8 sps:$4 sm:$0xff]   ;;  %v908_v6 = vld [vmem:[%s1076_s11] ss:$8 sps:$4 sm:$0xff]   ;;  %v909_v7 = vld [vmem:[%s1076_s11 + $0x14] ss:$8 sps:$4 sm:$0xff]  }
  0x28   : > { %528 = vmatprep.subr.bf16.mxu0 %v906_v5  ;;  %833 = vmatprep.subr.bf16.mxu1 %v906_v5  ;;  %v911_v8 = vld [vmem:[%s1076_s11 + $0x10] ss:$8 sps:$4 sm:$0xff]   ;;  %v912_v9 = vld [vmem:[%s1076_s11 + $0x24] ss:$8 sps:$4 sm:$0xff]   ;;  %v914_v10 = vld [vmem:[%s1076_s11 + $0x20] ss:$8 sps:$4 sm:$0xff]  }
  0x29   : > { %529 = vmatpush1.bf16.msra.mxu0 %v908_v6  ;;  %849 = vmatpush1.bf16.msra.mxu1 %v908_v6  ;;  %v915_v11 = vld [vmem:[%s1076_s11 + $0x34] ss:$8 sps:$4 sm:$0xff]   ;;  %v917_v12 = vld [vmem:[%s1076_s11 + $0x30] ss:$8 sps:$4 sm:$0xff]   ;;  %v918_v13 = vld [vmem:[%s1076_s11 + $0x44] ss:$8 sps:$4 sm:$0xff]  }
  0x2a   : > { %530 = vmatprep.subr.bf16.mxu0 %v909_v7  ;;  %834 = vmatprep.subr.bf16.mxu1 %v909_v7  ;;  %v920_v14 = vld [vmem:[%s1076_s11 + $0x40] ss:$8 sps:$4 sm:$0xff]   ;;  %v921_v15 = vld [vmem:[%s1076_s11 + $0x54] ss:$8 sps:$4 sm:$0xff]   ;;  %v923_v16 = vld [vmem:[%s1076_s11 + $0x50] ss:$8 sps:$4 sm:$0xff]  }
  0x2b   : > { %v924_v17 = vld [vmem:[%s1076_s11 + $0x64] ss:$8 sps:$4 sm:$0xff]   ;;  %v926_v19 = vld [vmem:[%s1076_s11 + $0x60] ss:$8 sps:$4 sm:$0xff]   ;;  %v959_v20 = vld [vmem:[%s1078_s12 + $0x14] ss:$8 sps:$4 sm:$0xff]  }
  0x2c   : > { %v956_v18 = vld [vmem:[%s1078_s12 + $0x4] ss:$8 sps:$4 sm:$0xff]   ;;  %v927_v21 = vld [vmem:[%s1076_s11 + $0x74] ss:$8 sps:$4 sm:$0xff]   ;;  %570 = vmatprep.mubr.bf16.mxu1 %v959_v20  ;;  %v929_v22 = vld [vmem:[%s1076_s11 + $0x70] ss:$8 sps:$4 sm:$0xff]  }
  0x2d   : > { %531 = vmatpush1.bf16.msra.mxu0 %v911_v8  ;;  %850 = vmatpush1.bf16.msra.mxu1 %v911_v8  ;;  %v930_v23 = vld [vmem:[%s1076_s11 + $0x84] ss:$8 sps:$4 sm:$0xff]   ;;  %v932_v24 = vld [vmem:[%s1076_s11 + $0x80] ss:$8 sps:$4 sm:$0xff]   ;;  %v933_v25 = vld [vmem:[%s1076_s11 + $0x94] ss:$8 sps:$4 sm:$0xff]  }
  0x2e   : > { %532 = vmatprep.subr.bf16.mxu0 %v912_v9  ;;  %835 = vmatprep.subr.bf16.mxu1 %v912_v9  ;;  %v935_v26 = vld [vmem:[%s1076_s11 + $0x90] ss:$8 sps:$4 sm:$0xff]   ;;  %v936_v27 = vld [vmem:[%s1076_s11 + $0xa4] ss:$8 sps:$4 sm:$0xff]   ;;  %v938_v28 = vld [vmem:[%s1076_s11 + $0xa0] ss:$8 sps:$4 sm:$0xff]  }
  0x2f   : > { %560 = vmatprep.mubr.bf16.mxu0 %v956_v18  ;;  %v939_v29 = vld [vmem:[%s1076_s11 + $0xb4] ss:$8 sps:$4 sm:$0xff]   ;;  %v941_v30 = vld [vmem:[%s1076_s11 + $0xb0] ss:$8 sps:$4 sm:$0xff]   ;;  %v942_v31 = vld [vmem:[%s1076_s11 + $0xc4] ss:$8 sps:$4 sm:$0xff]  }
  0x30   : > { %v944_v32 = vld [vmem:[%s1076_s11 + $0xc0] ss:$8 sps:$4 sm:$0xff]   ;;  %v945_v33 = vld [vmem:[%s1076_s11 + $0xd4] ss:$8 sps:$4 sm:$0xff]   ;;  %v947_v34 = vld [vmem:[%s1076_s11 + $0xd0] ss:$8 sps:$4 sm:$0xff]  }
  0x31   : > { %533 = vmatpush1.bf16.msra.mxu0 %v914_v10  ;;  %851 = vmatpush1.bf16.msra.mxu1 %v914_v10  ;;  %v948_v35 = vld [vmem:[%s1076_s11 + $0xe4] ss:$8 sps:$4 sm:$0xff]   ;;  %v950_v36 = vld [vmem:[%s1076_s11 + $0xe0] ss:$8 sps:$4 sm:$0xff]   ;;  %v951_v37 = vld [vmem:[%s1076_s11 + $0xf4] ss:$8 sps:$4 sm:$0xff]  }
  0x32   : > { %534 = vmatprep.subr.bf16.mxu0 %v915_v11  ;;  %836 = vmatprep.subr.bf16.mxu1 %v915_v11  ;;  %v953_v38 = vld [vmem:[%s1076_s11 + $0xf0] ss:$8 sps:$4 sm:$0xff]   ;;  %v954_v39 = vld [vmem:[%s1078_s12] ss:$8 sps:$4 sm:$0xff]   ;;  %p818_p11 = scmp.ne.s32.totalorder %s990_s17, 8 }
  0x33   : > { %v957_v40 = vld [vmem:[%s1078_s12 + $0x10] ss:$8 sps:$4 sm:$0xff]   ;;  %v304_v41 = vld [vmem:[#allocation2] sm:$0xff]  ;;  %v305_v43 = vld [vmem:[#allocation2 + $0x8] sm:$0xff]  ;;  %v611_v1 = vlaneseq (!%p818_p11) }
  0x34   : > { %v308_v42 = vld [vmem:[#allocation2 + $0x20] sm:$0xff]  ;;  %v309_v44 = vld [vmem:[#allocation2 + $0x28] sm:$0xff]  ;;  %v306_v47 = vld [vmem:[#allocation2 + $0x10] sm:$0xff] }
  0x35   : > { %535 = vmatpush1.bf16.msra.mxu0 %v917_v12  ;;  %852 = vmatpush1.bf16.msra.mxu1 %v917_v12  ;;  %v310_v48 = vld [vmem:[#allocation2 + $0x30] sm:$0xff]  ;;  %v307_v53 = vld [vmem:[#allocation2 + $0x18] sm:$0xff]  ;;  %v612_v2 = vshrl.u32 (!%p818_p11), %v611_v1, 7  ;;  %v609_v3 = vld [vmem:[%s1153_s2] sm:$0x3] (!%p818_p11) }
  0x36   : > { %536 = vmatprep.subr.bf16.mxu0 %v918_v13  ;;  %837 = vmatprep.subr.bf16.mxu1 %v918_v13  ;;  %v311_v54 = vld [vmem:[#allocation2 + $0x38] sm:$0xff]  ;;  %v629_v4 = vld [vmem:[%s1154_s3] sm:$0x3] (!%p818_p11) }
  0x37   : > { %v613_v7 = vsub.s32 (!%p818_p11), 0, %v612_v2  ;;  %v617_v8 = vsub.s32 (!%p818_p11), 1, %v612_v2 }
  0x39   : > { %537 = vmatpush1.bf16.msra.mxu0 %v920_v14  ;;  %853 = vmatpush1.bf16.msra.mxu1 %v920_v14  ;;  %v614_v12 = vrot.slane (!%p818_p11), %v609_v3, %v613_v7  ;;  %v618_v13 = vrot.slane (!%p818_p11), %v609_v3, %v617_v8  ;;  %v634_v14 = vrot.slane (!%p818_p11), %v629_v4, %v613_v7 }
  0x3a   : > { %538 = vmatprep.subr.bf16.mxu0 %v921_v15  ;;  %838 = vmatprep.subr.bf16.mxu1 %v921_v15  ;;  %v638_v15 = vrot.slane (!%p818_p11), %v629_v4, %v617_v8 }
  0x3d   : > { %539 = vmatpush1.bf16.msra.mxu0 %v923_v16  ;;  %854 = vmatpush1.bf16.msra.mxu1 %v923_v16 }
  0x3e   : > { %540 = vmatprep.subr.bf16.mxu0 %v924_v17  ;;  %839 = vmatprep.subr.bf16.mxu1 %v924_v17 }
  0x41   : > { %541 = vmatpush1.bf16.msra.mxu0 %v926_v19  ;;  %855 = vmatpush1.bf16.msra.mxu1 %v926_v19 }
  0x42   : > { %542 = vmatprep.subr.bf16.mxu0 %v927_v21  ;;  %840 = vmatprep.subr.bf16.mxu1 %v927_v21 }
  0x45   : > { %543 = vmatpush1.bf16.msra.mxu0 %v929_v22  ;;  %856 = vmatpush1.bf16.msra.mxu1 %v929_v22 }
  0x46   : > { %544 = vmatprep.subr.bf16.mxu0 %v930_v23  ;;  %841 = vmatprep.subr.bf16.mxu1 %v930_v23 }
  0x49   : > { %545 = vmatpush1.bf16.msra.mxu0 %v932_v24  ;;  %857 = vmatpush1.bf16.msra.mxu1 %v932_v24 }
  0x4a   : > { %546 = vmatprep.subr.bf16.mxu0 %v933_v25  ;;  %842 = vmatprep.subr.bf16.mxu1 %v933_v25 }
  0x4d   : > { %547 = vmatpush1.bf16.msra.mxu0 %v935_v26  ;;  %858 = vmatpush1.bf16.msra.mxu1 %v935_v26 }
  0x4e   : > { %548 = vmatprep.subr.bf16.mxu0 %v936_v27  ;;  %843 = vmatprep.subr.bf16.mxu1 %v936_v27 }
  0x51   : > { %549 = vmatpush1.bf16.msra.mxu0 %v938_v28  ;;  %859 = vmatpush1.bf16.msra.mxu1 %v938_v28 }
  0x52   : > { %550 = vmatprep.subr.bf16.mxu0 %v939_v29  ;;  %844 = vmatprep.subr.bf16.mxu1 %v939_v29 }
  0x55   : > { %551 = vmatpush1.bf16.msra.mxu0 %v941_v30  ;;  %860 = vmatpush1.bf16.msra.mxu1 %v941_v30 }
  0x56   : > { %552 = vmatprep.subr.bf16.mxu0 %v942_v31  ;;  %845 = vmatprep.subr.bf16.mxu1 %v942_v31 }
  0x59   : > { %553 = vmatpush1.bf16.msra.mxu0 %v944_v32  ;;  %861 = vmatpush1.bf16.msra.mxu1 %v944_v32 }
  0x5a   : > { %554 = vmatprep.subr.bf16.mxu0 %v945_v33  ;;  %846 = vmatprep.subr.bf16.mxu1 %v945_v33 }
  0x5d   : > { %555 = vmatpush1.bf16.msra.mxu0 %v947_v34  ;;  %862 = vmatpush1.bf16.msra.mxu1 %v947_v34 }
  0x5e   : > { %556 = vmatprep.subr.bf16.mxu0 %v948_v35  ;;  %847 = vmatprep.subr.bf16.mxu1 %v948_v35 }
  0x61   : > { %557 = vmatpush1.bf16.msra.mxu0 %v950_v36  ;;  %863 = vmatpush1.bf16.msra.mxu1 %v950_v36 }
  0x62   : > { %558 = vmatprep.subr.bf16.mxu0 %v951_v37  ;;  %848 = vmatprep.subr.bf16.mxu1 %v951_v37 }
  0x65   : > { %559 = vmatpush1.bf16.msra.mxu0 %v953_v38  ;;  %864 = vmatpush1.bf16.msra.mxu1 %v953_v38 }
  0x68   : > { %561 = vmatmul.mubr.bf16.vlgmr.msra.gmra.mrb[0].mxu0 %v954_v39  ;;  %571 = vmatmul.mubr.bf16.vlgmr.msra.gmra.mrb[0].mxu1 %v957_v40 }
 0x13b   : > { %v562_v45 = vpop.f32.mrb[0].mxu0  ;;  %v572_v46 = vpop.f32.mrb[0].mxu1  ;;  %600 = sbr.rel (%p818_p11) target bundleno = 339 (0x153), region = 82 }
 0x13c   : > { %v581_v49 = vadd.f32 %v562_v45, %v304_v41  ;;  %v585_v50 = vadd.f32 %v572_v46, %v308_v42  ;;  %v564_v51 = vpop.f32.mrb[1].mxu0  ;;  %v574_v52 = vpop.f32.mrb[1].mxu1 }
 0x13d   : > { %v582_v55 = vadd.f32 %v564_v51, %v305_v43  ;;  %v586_v56 = vadd.f32 %v574_v52, %v309_v44  ;;  %v566_v57 = vpop.f32.mrb[2].mxu0  ;;  %v576_v58 = vpop.f32.mrb[2].mxu1 }
 0x13e   : > { %589 = vst [vmem:[#allocation2] sm:$0xff] %v581_v49  ;;  %593 = vst [vmem:[#allocation2 + $0x20] sm:$0xff] %v585_v50  ;;  %v583_v59 = vadd.f32 %v566_v57, %v306_v47  ;;  %v587_v60 = vadd.f32 %v576_v58, %v310_v48  ;;  %v568_v61 = vpop.f32.mrb[3].mxu0  ;;  %v578_v62 = vpop.f32.mrb[3].mxu1 }
 0x13f   : > { %590 = vst [vmem:[#allocation2 + $0x8] sm:$0xff] %v582_v55  ;;  %594 = vst [vmem:[#allocation2 + $0x28] sm:$0xff] %v586_v56  ;;  %v584_v63 = vadd.f32 %v568_v61, %v307_v53  ;;  %v588_v0 = vadd.f32 %v578_v62, %v311_v54 }
 0x140   : > { %591 = vst [vmem:[#allocation2 + $0x10] sm:$0xff] %v583_v59  ;;  %595 = vst [vmem:[#allocation2 + $0x30] sm:$0xff] %v587_v60 }
 0x141   : > { %592 = vst [vmem:[#allocation2 + $0x18] sm:$0xff] %v584_v63  ;;  %596 = vst [vmem:[#allocation2 + $0x38] sm:$0xff] %v588_v0 }
 0x145   : > { %v601_v5 = vld [vmem:[#allocation2] sm:$0xff] }
 0x146   : > { %v602_v6 = vld [vmem:[#allocation2 + $0x8] sm:$0xff]  ;;  %v605_v11 = vld [vmem:[#allocation2 + $0x20] sm:$0xff]  ;;  %v621_v19 = vmul.f32 %v614_v12, %v601_v5 }
 0x147   : > { %v603_v9 = vld [vmem:[#allocation2 + $0x10] sm:$0xff]  ;;  %v606_v16 = vld [vmem:[#allocation2 + $0x28] sm:$0xff]  ;;  %v622_v20 = vmul.f32 %v618_v13, %v602_v6  ;;  %v625_v23 = vmul.f32 %v614_v12, %v605_v11 }
 0x148   : > { %v604_v10 = vld [vmem:[#allocation2 + $0x18] sm:$0xff]  ;;  %v607_v17 = vld [vmem:[#allocation2 + $0x30] sm:$0xff]  ;;  %v623_v21 = vmul.f32 %v614_v12, %v603_v9  ;;  %v626_v24 = vmul.f32 %v618_v13, %v606_v16  ;;  %v641_v27 = vadd.f32 %v634_v14, %v621_v19 }
 0x149   : > { %v608_v18 = vld [vmem:[#allocation2 + $0x38] sm:$0xff]  ;;  %v624_v22 = vmul.f32 %v618_v13, %v604_v10  ;;  %v627_v25 = vmul.f32 %v614_v12, %v607_v17  ;;  %v642_v28 = vadd.f32 %v638_v15, %v622_v20  ;;  %v645_v31 = vadd.f32 %v634_v14, %v625_v23 }
 0x14a   : > { %v628_v26 = vmul.f32 %v618_v13, %v608_v18  ;;  %v643_v29 = vadd.f32 %v634_v14, %v623_v21  ;;  %v646_v32 = vadd.f32 %v638_v15, %v626_v24  ;;  %v649_v35 = vmax.f32 %v641_v27, 0.0 }
 0x14b   : > { %v644_v30 = vadd.f32 %v638_v15, %v624_v22  ;;  %v647_v33 = vadd.f32 %v634_v14, %v627_v25  ;;  %v650_v36 = vmax.f32 %v642_v28, 0.0  ;;  %v653_v39 = vmax.f32 %v645_v31, 0.0 }
 0x14c   : > { %v648_v34 = vadd.f32 %v638_v15, %v628_v26  ;;  %v651_v37 = vmax.f32 %v643_v29, 0.0  ;;  %v654_v40 = vmax.f32 %v646_v32, 0.0 }
 0x14d   : > { %v652_v38 = vmax.f32 %v644_v30, 0.0  ;;  %v655_v41 = vmax.f32 %v647_v33, 0.0  ;;  %v829_v43 = vpack.c.bf16 %v650_v36, %v649_v35 }
 0x14e   : > { %v656_v42 = vmax.f32 %v648_v34, 0.0  ;;  %v831_v45 = vpack.c.bf16 %v654_v40, %v653_v39 }
 0x14f   : > { %v830_v44 = vpack.c.bf16 %v652_v38, %v651_v37  ;;  %681 = vst [vmem:[%s1155_s4] sm:$0xff] %v829_v43 }
 0x150   : > { %v832_v46 = vpack.c.bf16 %v656_v42, %v655_v41  ;;  %683 = vst [vmem:[%s1155_s4 + $0x10] sm:$0xff] %v831_v45 }
 0x151   : > { %682 = vst [vmem:[%s1155_s4 + $0x8] sm:$0xff] %v830_v44 }
 0x152   : > { %684 = vst [vmem:[%s1155_s4 + $0x18] sm:$0xff] %v832_v46 }
 0x153 PF: > { %s14_s19 = sadd.s32 1, %s998_s19   ;;  %s1156_s15 = smov %s986_s16 }
 0x154   : > { %p11_p12 = scmp.ge.s32.totalorder %s14_s19, 11   ;;  %s1157_s16 = smov %s1061_s23 }
 0x155   : > { %s1158_s17 = smov %s994_s18  ;;  %s1159_s18 = smov %s1161_s20 }
 0x156   :  { %13 = sbr.rel (!%p11_p12) target bundleno = 3 (0x3), region = 120 }

// kernel: bisenet_forward.31
= control target key start
LH: loop header
LB: loop body
LE: loop exit
PB: predicated region body
PF: predicated region fallthrough
CT: control target
= control target key end

     0   :  { %v27_v0 = vlaneseq  ;;  %s140_s0 = inlined_call_operand.vmem [shape: bf16[2,16,256], index: 0, kind: input, shape index: {}]   ;;  %s141_s1 = inlined_call_operand.vmem [shape: f32[2,1,256], index: 1, kind: input, shape index: {}]   ;;  %s142_s2 = inlined_call_operand.vmem [shape: bf16[2,16,256], index: 2, kind: output, shape index: {}]  }
   0x1   :  { %v11_v1 = vld [vmem:[%s140_s0] sm:$0xff]  ;;  %v12_v2 = vld [vmem:[%s140_s0 + $0x8] sm:$0xff]  ;;  %v13_v4 = vld [vmem:[%s140_s0 + $0x10] sm:$0xff] }
   0x2   :  { %v28_v3 = vshrl.u32 %v27_v0, 7  ;;  %v14_v5 = vld [vmem:[%s140_s0 + $0x18] sm:$0xff]  ;;  %v15_v6 = vunpack.c.l.bf16 %v11_v1  ;;  %v16_v7 = vunpack.c.h.bf16 %v11_v1  ;;  %v23_v8 = vld [vmem:[%s141_s1] sm:$0x3]  ;;  %v24_v9 = vld [vmem:[%s141_s1 + $0x2] sm:$0x3]  ;;  %v17_v12 = vunpack.c.l.bf16 %v12_v2 }
   0x3   :  { %v18_v13 = vunpack.c.h.bf16 %v12_v2  ;;  %v19_v14 = vunpack.c.l.bf16 %v13_v4  ;;  %v20_v15 = vunpack.c.h.bf16 %v13_v4  ;;  %v21_v16 = vunpack.c.l.bf16 %v14_v5 }
   0x4   :  { %v29_v10 = vsub.s32 0, %v28_v3  ;;  %v33_v11 = vsub.s32 1, %v28_v3  ;;  %v22_v17 = vunpack.c.h.bf16 %v14_v5 }
   0x6   :  { %v30_v18 = vrot.slane %v23_v8, %v29_v10  ;;  %v34_v19 = vrot.slane %v23_v8, %v33_v11  ;;  %v38_v20 = vrot.slane %v24_v9, %v29_v10  ;;  %v42_v21 = vrot.slane %v24_v9, %v33_v11 }
   0x8   :  { %v47_v22 = vmul.f32 %v30_v18, %v15_v6  ;;  %v48_v23 = vmul.f32 %v34_v19, %v16_v7  ;;  %v49_v24 = vmul.f32 %v30_v18, %v17_v12  ;;  %v50_v25 = vmul.f32 %v34_v19, %v18_v13 }
   0x9   :  { %v51_v26 = vmul.f32 %v38_v20, %v19_v14  ;;  %v52_v27 = vmul.f32 %v42_v21, %v20_v15  ;;  %v53_v28 = vmul.f32 %v38_v20, %v21_v16  ;;  %v54_v29 = vmul.f32 %v42_v21, %v22_v17 }
   0xa   :  { %v91_v30 = vpack.c.bf16 %v48_v23, %v47_v22  ;;  %v92_v31 = vpack.c.bf16 %v50_v25, %v49_v24 }
   0xb   :  { %v93_v32 = vpack.c.bf16 %v52_v27, %v51_v26  ;;  %v94_v33 = vpack.c.bf16 %v54_v29, %v53_v28 }
   0xc   :  { %79 = vst [vmem:[%s142_s2] sm:$0xff] %v91_v30  ;;  %80 = vst [vmem:[%s142_s2 + $0x8] sm:$0xff] %v92_v31 }
   0xd   :  { %81 = vst [vmem:[%s142_s2 + $0x10] sm:$0xff] %v93_v32  ;;  %82 = vst [vmem:[%s142_s2 + $0x18] sm:$0xff] %v94_v33 }

// kernel: bisenet_forward.28
= control target key start
LH: loop header
LB: loop body
LE: loop exit
PB: predicated region body
PF: predicated region fallthrough
CT: control target
= control target key end

     0   :  { %s1294_s15 = smov 0   ;;  %s1296_s16 = smov 0   ;;  %s1452_s0 = inlined_call_operand.vmem [shape: bf16[16,2304], index: 0, kind: input, shape index: {}]   ;;  %s1453_s1 = inlined_call_operand.vmem [shape: bf16[2304,512], index: 1, kind: input, shape index: {}]   ;;  %s1454_s2 = inlined_call_operand.vmem [shape: f32[1,512], index: 2, kind: input, shape index: {}]   ;;  %s1455_s3 = inlined_call_operand.vmem [shape: f32[1,512], index: 3, kind: input, shape index: {}]   ;;  %s1456_s4 = inlined_call_operand.vmem [shape: bf16[16,512], index: 4, kind: output, shape index: {}]  }
   0x1   :  { %s1298_s17 = smov 0   ;;  %s1300_s18 = smov 0  }
   0x2   :  { %s1302_s19 = smov 0  }
   0x3 LB: > { %s23_s20 = sadd.s32 1, %s1262_s18  ;;  %p42_p1 = scmp.ne.s32.totalorder %s1254_s16, %s1250_s15  ;;  %s1266_s19 = sphi %s1302_s19, %s14_s19   ;;  %s1262_s18 = sphi %s1300_s18, %s1460_s18   ;;  %s1258_s17 = sphi %s1298_s17, %s1459_s17   ;;  %s1254_s16 = sphi %s1296_s16, %s1458_s16   ;;  %s1250_s15 = sphi %s1294_s15, %s1457_s15  }
   0x4   : > { %p24_p0 = scmp.ge.s32.totalorder %s23_s20, 9  ;;  %p43_p2 = scmp.eq.s32.totalorder %s1266_s19, 0 }
   0x5   : > { %s35_s22 = sadd.s32 1, %s1254_s16  ;;  %p997_p5 = scmp.ge.s32.totalorder %s1266_s19, 9 }
   0x6   : > { %s1462_s20 = smov (%p24_p0, %s23_s20), 0  ;;  %p44_p3 = por %p43_p2, %p42_p1 }
   0x7   : > { %s31_s21 = ssub.s32 %s1262_s18, %s1462_s20  ;;  %168 = sbr.rel (%p997_p5) target bundleno = 21 (0x15), region = 24 }
   0x8   : > { %p33_p4 = scmp.eq.s32.totalorder %s31_s21, 0 }
   0xa   : > { %s1329_s23 = scalar_select %p33_p4, %s1254_s16, %s35_s22  }
   0xe   : > { %171 = sbr.rel (!%p44_p3) target bundleno = 21 (0x15), region = 28  ;;  %s173_s24 = sand.u32 (%p44_p3), 1, %s1254_s16  }
   0xf   : > { %s1082_s25 = sshll.u32 (%p44_p3), %s1262_s18, 3  ;;  %s998_s26 = sshll.u32 (%p44_p3), %s173_s24, 4 }
  0x10   : > { %s181_s29 = scalar_lea.vmem (%p44_p3), %s1452_s0, %s1082_s25  ;;  %s175_s30 = scalar_lea.vmem (%p44_p3), [#allocation3], %s998_s26 }
  0x11   : > { %v211_v0 = vld [vmem:[%s181_s29] sm:$0xff] (%p44_p3)  ;;  %v213_v1 = vld [vmem:[%s181_s29 + $0x48] sm:$0xff] (%p44_p3) }
  0x12   : > { %212 = vst [vmem:[%s175_s30] sm:$0xff] (%p44_p3), %v211_v0  ;;  %214 = vst [vmem:[%s175_s30 + $0x8] sm:$0xff] (%p44_p3), %v213_v1 }
  0x15 PF: > { %p1001_p6 = scmp.ge.s32.totalorder %s1266_s19, 1  ;;  %p229_p7 = scmp.lt.s32.totalorder %s1266_s19, 10 }
  0x17   : > { %p230_p8 = pnand %p1001_p6, %p229_p7 }
  0x18   : > { %s236_s5 = sand.u32 (!%p230_p8), 1, %s1250_s15   ;;  %s1003_s6 = sshll.u32 (!%p230_p8), %s1258_s17, 5 }
  0x19   : > { %233 = sbr.rel (%p230_p8) target bundleno = 338 (0x152), region = 70  ;;  %s1341_s7 = sshll.u32 (!%p230_p8), %s236_s5, 4 }
  0x1a   : > { %p271_p9 = scmp.lt.s32.totalorder (!%p230_p8), %s1003_s6, 287  ;;  %s238_s12 = scalar_lea.vmem (!%p230_p8), [#allocation3], %s1341_s7 }
  0x1b   : > { %p1006_p10 = scmp.ne.s32.totalorder (!%p230_p8), %s1258_s17, 0 }
  0x20   : > { %s1464_s6 = smov (!%p271_p9, %s1003_s6), 287  ;;  %287 = sbr.rel (%p1006_p10) target bundleno = 39 (0x27), region = 78 }
  0x21   : > { %s1083_s8 = sshll.u32 %s1464_s6, 4  ;;  %v1268_v2 = vmov (!%p1006_p10), 0.0  }
  0x22   : > { %s1346_s11 = scalar_lea.vmem %s1453_s1, %s1083_s8  ;;  %288 = vst [vmem:[#allocation2] sm:$0xff] (!%p1006_p10), %v1268_v2  ;;  %289 = vst [vmem:[#allocation2 + $0x8] sm:$0xff] (!%p1006_p10), %v1268_v2 }
  0x23   : > { %290 = vst [vmem:[#allocation2 + $0x10] sm:$0xff] (!%p1006_p10), %v1268_v2  ;;  %291 = vst [vmem:[#allocation2 + $0x18] sm:$0xff] (!%p1006_p10), %v1268_v2 }
  0x24   : > { %292 = vst [vmem:[#allocation2 + $0x20] sm:$0xff] (!%p1006_p10), %v1268_v2  ;;  %293 = vst [vmem:[#allocation2 + $0x28] sm:$0xff] (!%p1006_p10), %v1268_v2 }
  0x25   : > { %294 = vst [vmem:[#allocation2 + $0x30] sm:$0xff] (!%p1006_p10), %v1268_v2  ;;  %295 = vst [vmem:[#allocation2 + $0x38] sm:$0xff] (!%p1006_p10), %v1268_v2 }
  0x27 PF: > { %v1129_v3 = vld [vmem:[%s1346_s11 + $0x4] ss:$16 sps:$4 sm:$0xff]   ;;  %v1131_v4 = vld [vmem:[%s1346_s11 + $0xc] ss:$16 sps:$4 sm:$0xff]   ;;  %v1133_v5 = vld [vmem:[%s1346_s11] ss:$16 sps:$4 sm:$0xff]  }
  0x28   : > { %700 = vmatprep.subr.bf16.mxu0 %v1129_v3  ;;  %v1134_v6 = vld [vmem:[%s1346_s11 + $0x8] ss:$16 sps:$4 sm:$0xff]   ;;  %743 = vmatprep.subr.bf16.mxu1 %v1131_v4  ;;  %v1135_v7 = vld [vmem:[%s1346_s11 + $0x24] ss:$16 sps:$4 sm:$0xff]   ;;  %v1137_v8 = vld [vmem:[%s1346_s11 + $0x2c] ss:$16 sps:$4 sm:$0xff]  }
  0x29   : > { %701 = vmatpush1.bf16.msra.mxu0 %v1133_v5  ;;  %744 = vmatpush1.bf16.msra.mxu1 %v1134_v6  ;;  %v1139_v9 = vld [vmem:[%s1346_s11 + $0x20] ss:$16 sps:$4 sm:$0xff]   ;;  %v1140_v10 = vld [vmem:[%s1346_s11 + $0x28] ss:$16 sps:$4 sm:$0xff]   ;;  %v1141_v11 = vld [vmem:[%s1346_s11 + $0x44] ss:$16 sps:$4 sm:$0xff]  }
  0x2a   : > { %702 = vmatprep.subr.bf16.mxu0 %v1135_v7  ;;  %745 = vmatprep.subr.bf16.mxu1 %v1137_v8  ;;  %v1143_v12 = vld [vmem:[%s1346_s11 + $0x4c] ss:$16 sps:$4 sm:$0xff]   ;;  %v1145_v13 = vld [vmem:[%s1346_s11 + $0x40] ss:$16 sps:$4 sm:$0xff]   ;;  %v1146_v14 = vld [vmem:[%s1346_s11 + $0x48] ss:$16 sps:$4 sm:$0xff]  }
  0x2b   : > { %v1147_v15 = vld [vmem:[%s1346_s11 + $0x64] ss:$16 sps:$4 sm:$0xff]   ;;  %v1149_v16 = vld [vmem:[%s1346_s11 + $0x6c] ss:$16 sps:$4 sm:$0xff]   ;;  %v1151_v17 = vld [vmem:[%s1346_s11 + $0x60] ss:$16 sps:$4 sm:$0xff]  }
  0x2c   : > { %v1152_v18 = vld [vmem:[%s1346_s11 + $0x68] ss:$16 sps:$4 sm:$0xff]   ;;  %v1153_v19 = vld [vmem:[%s1346_s11 + $0x84] ss:$16 sps:$4 sm:$0xff]   ;;  %v1155_v20 = vld [vmem:[%s1346_s11 + $0x8c] ss:$16 sps:$4 sm:$0xff]  }
  0x2d   : > { %703 = vmatpush1.bf16.msra.mxu0 %v1139_v9  ;;  %746 = vmatpush1.bf16.msra.mxu1 %v1140_v10  ;;  %v1157_v21 = vld [vmem:[%s1346_s11 + $0x80] ss:$16 sps:$4 sm:$0xff]   ;;  %v1158_v22 = vld [vmem:[%s1346_s11 + $0x88] ss:$16 sps:$4 sm:$0xff]   ;;  %v1159_v23 = vld [vmem:[%s1346_s11 + $0xa4] ss:$16 sps:$4 sm:$0xff]  }
  0x2e   : > { %704 = vmatprep.subr.bf16.mxu0 %v1141_v11  ;;  %747 = vmatprep.subr.bf16.mxu1 %v1143_v12  ;;  %v1161_v24 = vld [vmem:[%s1346_s11 + $0xac] ss:$16 sps:$4 sm:$0xff]   ;;  %v1163_v25 = vld [vmem:[%s1346_s11 + $0xa0] ss:$16 sps:$4 sm:$0xff]   ;;  %v1164_v26 = vld [vmem:[%s1346_s11 + $0xa8] ss:$16 sps:$4 sm:$0xff]  }
  0x2f   : > { %v1165_v27 = vld [vmem:[%s1346_s11 + $0xc4] ss:$16 sps:$4 sm:$0xff]   ;;  %v1167_v28 = vld [vmem:[%s1346_s11 + $0xcc] ss:$16 sps:$4 sm:$0xff]   ;;  %v1169_v29 = vld [vmem:[%s1346_s11 + $0xc0] ss:$16 sps:$4 sm:$0xff]  }
  0x30   : > { %v1170_v30 = vld [vmem:[%s1346_s11 + $0xc8] ss:$16 sps:$4 sm:$0xff]   ;;  %v1171_v31 = vld [vmem:[%s1346_s11 + $0xe4] ss:$16 sps:$4 sm:$0xff]   ;;  %v1173_v32 = vld [vmem:[%s1346_s11 + $0xec] ss:$16 sps:$4 sm:$0xff]  }
  0x31   : > { %705 = vmatpush1.bf16.msra.mxu0 %v1145_v13  ;;  %748 = vmatpush1.bf16.msra.mxu1 %v1146_v14  ;;  %v1175_v33 = vld [vmem:[%s1346_s11 + $0xe0] ss:$16 sps:$4 sm:$0xff]   ;;  %v1176_v34 = vld [vmem:[%s1346_s11 + $0xe8] ss:$16 sps:$4 sm:$0xff]   ;;  %v1177_v35 = vld [vmem:[%s1346_s11 + $0x104] ss:$16 sps:$4 sm:$0xff]  }
  0x32   : > { %706 = vmatprep.subr.bf16.mxu0 %v1147_v15  ;;  %749 = vmatprep.subr.bf16.mxu1 %v1149_v16  ;;  %v1179_v36 = vld [vmem:[%s1346_s11 + $0x10c] ss:$16 sps:$4 sm:$0xff]   ;;  %v1181_v37 = vld [vmem:[%s1346_s11 + $0x100] ss:$16 sps:$4 sm:$0xff]   ;;  %v1182_v38 = vld [vmem:[%s1346_s11 + $0x108] ss:$16 sps:$4 sm:$0xff]  }
  0x33   : > { %v1183_v39 = vld [vmem:[%s1346_s11 + $0x124] ss:$16 sps:$4 sm:$0xff]   ;;  %v1185_v40 = vld [vmem:[%s1346_s11 + $0x12c] ss:$16 sps:$4 sm:$0xff]   ;;  %v1187_v41 = vld [vmem:[%s1346_s11 + $0x120] ss:$16 sps:$4 sm:$0xff]  }
  0x34   : > { %v1188_v42 = vld [vmem:[%s1346_s11 + $0x128] ss:$16 sps:$4 sm:$0xff]   ;;  %v1189_v43 = vld [vmem:[%s1346_s11 + $0x144] ss:$16 sps:$4 sm:$0xff]   ;;  %v1191_v44 = vld [vmem:[%s1346_s11 + $0x14c] ss:$16 sps:$4 sm:$0xff]  }
  0x35   : > { %707 = vmatpush1.bf16.msra.mxu0 %v1151_v17  ;;  %750 = vmatpush1.bf16.msra.mxu1 %v1152_v18  ;;  %v1193_v45 = vld [vmem:[%s1346_s11 + $0x140] ss:$16 sps:$4 sm:$0xff]   ;;  %v1194_v46 = vld [vmem:[%s1346_s11 + $0x148] ss:$16 sps:$4 sm:$0xff]   ;;  %v1195_v47 = vld [vmem:[%s1346_s11 + $0x164] ss:$16 sps:$4 sm:$0xff]  }
  0x36   : > { %708 = vmatprep.subr.bf16.mxu0 %v1153_v19  ;;  %751 = vmatprep.subr.bf16.mxu1 %v1155_v20  ;;  %v1197_v48 = vld [vmem:[%s1346_s11 + $0x16c] ss:$16 sps:$4 sm:$0xff]   ;;  %v1199_v50 = vld [vmem:[%s1346_s11 + $0x160] ss:$16 sps:$4 sm:$0xff]   ;;  %v1200_v51 = vld [vmem:[%s1346_s11 + $0x168] ss:$16 sps:$4 sm:$0xff]  }
  0x37   : > { %v1227_v49 = vld [vmem:[%s238_s12 + $0x4] ss:$8 sps:$4 sm:$0xff]   ;;  %v1205_v54 = vld [vmem:[%s1346_s11 + $0x180] ss:$16 sps:$4 sm:$0xff]   ;;  %v1206_v55 = vld [vmem:[%s1346_s11 + $0x188] ss:$16 sps:$4 sm:$0xff]  }
  0x38   : > { %v1201_v52 = vld [vmem:[%s1346_s11 + $0x184] ss:$16 sps:$4 sm:$0xff]   ;;  %v1203_v53 = vld [vmem:[%s1346_s11 + $0x18c] ss:$16 sps:$4 sm:$0xff]   ;;  %732 = vmatprep.mubr.bf16.mxu0 %v1227_v49  ;;  %775 = vmatprep.mubr.bf16.mxu1 %v1227_v49  ;;  %v1211_v58 = vld [vmem:[%s1346_s11 + $0x1a0] ss:$16 sps:$4 sm:$0xff]  }
  0x39   : > { %709 = vmatpush1.bf16.msra.mxu0 %v1157_v21  ;;  %752 = vmatpush1.bf16.msra.mxu1 %v1158_v22  ;;  %v1207_v56 = vld [vmem:[%s1346_s11 + $0x1a4] ss:$16 sps:$4 sm:$0xff]   ;;  %v1209_v57 = vld [vmem:[%s1346_s11 + $0x1ac] ss:$16 sps:$4 sm:$0xff]   ;;  %v1212_v59 = vld [vmem:[%s1346_s11 + $0x1a8] ss:$16 sps:$4 sm:$0xff]  }
  0x3a   : > { %710 = vmatprep.subr.bf16.mxu0 %v1159_v23  ;;  %753 = vmatprep.subr.bf16.mxu1 %v1161_v24  ;;  %v1213_v60 = vld [vmem:[%s1346_s11 + $0x1c4] ss:$16 sps:$4 sm:$0xff]   ;;  %v1215_v61 = vld [vmem:[%s1346_s11 + $0x1cc] ss:$16 sps:$4 sm:$0xff]   ;;  %v1217_v62 = vld [vmem:[%s1346_s11 + $0x1c0] ss:$16 sps:$4 sm:$0xff]  }
  0x3b   : > { %v1218_v63 = vld [vmem:[%s1346_s11 + $0x1c8] ss:$16 sps:$4 sm:$0xff]   ;;  %v1219_v0 = vld [vmem:[%s1346_s11 + $0x1e4] ss:$16 sps:$4 sm:$0xff]   ;;  %v1221_v1 = vld [vmem:[%s1346_s11 + $0x1ec] ss:$16 sps:$4 sm:$0xff]  }
  0x3c   : > { %v1223_v2 = vld [vmem:[%s1346_s11 + $0x1e0] ss:$16 sps:$4 sm:$0xff]   ;;  %v1224_v3 = vld [vmem:[%s1346_s11 + $0x1e8] ss:$16 sps:$4 sm:$0xff]   ;;  %p1073_p11 = scmp.ne.s32.totalorder %s1258_s17, 8 }
  0x3d   : > { %711 = vmatpush1.bf16.msra.mxu0 %v1163_v25  ;;  %754 = vmatpush1.bf16.msra.mxu1 %v1164_v26  ;;  %v1225_v4 = vld [vmem:[%s238_s12] ss:$8 sps:$4 sm:$0xff]  }
  0x3e   : > { %712 = vmatprep.subr.bf16.mxu0 %v1165_v27  ;;  %755 = vmatprep.subr.bf16.mxu1 %v1167_v28  ;;  %v296_v5 = vld [vmem:[#allocation2] sm:$0xff]  ;;  %v298_v6 = vld [vmem:[#allocation2 + $0x10] sm:$0xff]  ;;  %v297_v7 = vld [vmem:[#allocation2 + $0x8] sm:$0xff] }
  0x3f   : > { %v299_v8 = vld [vmem:[#allocation2 + $0x18] sm:$0xff]  ;;  %v300_v11 = vld [vmem:[#allocation2 + $0x20] sm:$0xff]  ;;  %v302_v12 = vld [vmem:[#allocation2 + $0x30] sm:$0xff] }
  0x40   : > { %v301_v17 = vld [vmem:[#allocation2 + $0x28] sm:$0xff]  ;;  %v303_v18 = vld [vmem:[#allocation2 + $0x38] sm:$0xff] }
  0x41   : > { %713 = vmatpush1.bf16.msra.mxu0 %v1169_v29  ;;  %756 = vmatpush1.bf16.msra.mxu1 %v1170_v30  ;;  %v816_v29 = vlaneseq (!%p1073_p11) }
  0x42   : > { %714 = vmatprep.subr.bf16.mxu0 %v1171_v31  ;;  %757 = vmatprep.subr.bf16.mxu1 %v1173_v32  ;;  %v814_v31 = vld [vmem:[%s1454_s2] sm:$0xf] (!%p1073_p11) }
  0x43   : > { %v817_v30 = vshrl.u32 (!%p1073_p11), %v816_v29, 7  ;;  %v844_v32 = vld [vmem:[%s1455_s3] sm:$0xf] (!%p1073_p11) }
  0x45   : > { %715 = vmatpush1.bf16.msra.mxu0 %v1175_v33  ;;  %758 = vmatpush1.bf16.msra.mxu1 %v1176_v34 }
  0x46   : > { %716 = vmatprep.subr.bf16.mxu0 %v1177_v35  ;;  %759 = vmatprep.subr.bf16.mxu1 %v1179_v36  ;;  %v818_v35 = vsub.s32 (!%p1073_p11), 0, %v817_v30  ;;  %v822_v36 = vsub.s32 (!%p1073_p11), 1, %v817_v30 }
  0x49   : > { %717 = vmatpush1.bf16.msra.mxu0 %v1181_v37  ;;  %760 = vmatpush1.bf16.msra.mxu1 %v1182_v38  ;;  %v826_v37 = vsub.s32 (!%p1073_p11), 2, %v817_v30  ;;  %v830_v38 = vsub.s32 (!%p1073_p11), 3, %v817_v30 }
  0x4a   : > { %718 = vmatprep.subr.bf16.mxu0 %v1183_v39  ;;  %761 = vmatprep.subr.bf16.mxu1 %v1185_v40 }
  0x4b   : > { %v827_v49 = vrot.slane (!%p1073_p11), %v814_v31, %v826_v37 }
  0x4d   : > { %719 = vmatpush1.bf16.msra.mxu0 %v1187_v41  ;;  %762 = vmatpush1.bf16.msra.mxu1 %v1188_v42  ;;  %v819_v42 = vrot.slane (!%p1073_p11), %v814_v31, %v818_v35 }
  0x4e   : > { %720 = vmatprep.subr.bf16.mxu0 %v1189_v43  ;;  %763 = vmatprep.subr.bf16.mxu1 %v1191_v44  ;;  %v823_v43 = vrot.slane (!%p1073_p11), %v814_v31, %v822_v36  ;;  %v849_v44 = vrot.slane (!%p1073_p11), %v844_v32, %v818_v35 }
  0x51   : > { %721 = vmatpush1.bf16.msra.mxu0 %v1193_v45  ;;  %764 = vmatpush1.bf16.msra.mxu1 %v1194_v46  ;;  %v853_v45 = vrot.slane (!%p1073_p11), %v844_v32, %v822_v36 }
  0x52   : > { %722 = vmatprep.subr.bf16.mxu0 %v1195_v47  ;;  %765 = vmatprep.subr.bf16.mxu1 %v1197_v48 }
  0x55   : > { %723 = vmatpush1.bf16.msra.mxu0 %v1199_v50  ;;  %766 = vmatpush1.bf16.msra.mxu1 %v1200_v51  ;;  %v831_v50 = vrot.slane (!%p1073_p11), %v814_v31, %v830_v38  ;;  %v857_v51 = vrot.slane (!%p1073_p11), %v844_v32, %v826_v37 }
  0x56   : > { %724 = vmatprep.subr.bf16.mxu0 %v1201_v52  ;;  %767 = vmatprep.subr.bf16.mxu1 %v1203_v53  ;;  %v861_v52 = vrot.slane (!%p1073_p11), %v844_v32, %v830_v38 }
  0x59   : > { %725 = vmatpush1.bf16.msra.mxu0 %v1205_v54  ;;  %768 = vmatpush1.bf16.msra.mxu1 %v1206_v55 }
  0x5a   : > { %726 = vmatprep.subr.bf16.mxu0 %v1207_v56  ;;  %769 = vmatprep.subr.bf16.mxu1 %v1209_v57 }
  0x5d   : > { %727 = vmatpush1.bf16.msra.mxu0 %v1211_v58  ;;  %770 = vmatpush1.bf16.msra.mxu1 %v1212_v59 }
  0x5e   : > { %728 = vmatprep.subr.bf16.mxu0 %v1213_v60  ;;  %771 = vmatprep.subr.bf16.mxu1 %v1215_v61 }
  0x61   : > { %729 = vmatpush1.bf16.msra.mxu0 %v1217_v62  ;;  %772 = vmatpush1.bf16.msra.mxu1 %v1218_v63 }
  0x62   : > { %730 = vmatprep.subr.bf16.mxu0 %v1219_v0  ;;  %773 = vmatprep.subr.bf16.mxu1 %v1221_v1 }
  0x65   : > { %731 = vmatpush1.bf16.msra.mxu0 %v1223_v2  ;;  %774 = vmatpush1.bf16.msra.mxu1 %v1224_v3 }
  0x68   : > { %733 = vmatmul.mubr.bf16.vlgmr.msra.gmra.mrb[0].mxu0 %v1225_v4  ;;  %776 = vmatmul.mubr.bf16.vlgmr.msra.gmra.mrb[0].mxu1 %v1225_v4 }
 0x13b   : > { %v734_v9 = vpop.f32.mrb[0].mxu0  ;;  %v777_v10 = vpop.f32.mrb[0].mxu1  ;;  %805 = sbr.rel (%p1073_p11) target bundleno = 338 (0x152), region = 82 }
 0x13c   : > { %v786_v13 = vadd.f32 %v734_v9, %v296_v5  ;;  %v788_v14 = vadd.f32 %v777_v10, %v298_v6  ;;  %v736_v15 = vpop.f32.mrb[1].mxu0  ;;  %v779_v16 = vpop.f32.mrb[1].mxu1 }
 0x13d   : > { %v787_v19 = vadd.f32 %v736_v15, %v297_v7  ;;  %v789_v20 = vadd.f32 %v779_v16, %v299_v8  ;;  %v738_v21 = vpop.f32.mrb[2].mxu0  ;;  %v781_v22 = vpop.f32.mrb[2].mxu1 }
 0x13e   : > { %794 = vst [vmem:[#allocation2] sm:$0xff] %v786_v13  ;;  %796 = vst [vmem:[#allocation2 + $0x10] sm:$0xff] %v788_v14  ;;  %v790_v23 = vadd.f32 %v738_v21, %v300_v11  ;;  %v792_v24 = vadd.f32 %v781_v22, %v302_v12  ;;  %v740_v25 = vpop.f32.mrb[3].mxu0  ;;  %v783_v26 = vpop.f32.mrb[3].mxu1 }
 0x13f   : > { %795 = vst [vmem:[#allocation2 + $0x8] sm:$0xff] %v787_v19  ;;  %797 = vst [vmem:[#allocation2 + $0x18] sm:$0xff] %v789_v20  ;;  %v791_v27 = vadd.f32 %v740_v25, %v301_v17  ;;  %v793_v28 = vadd.f32 %v783_v26, %v303_v18 }
 0x140   : > { %798 = vst [vmem:[#allocation2 + $0x20] sm:$0xff] %v790_v23  ;;  %800 = vst [vmem:[#allocation2 + $0x30] sm:$0xff] %v792_v24 }
 0x141   : > { %799 = vst [vmem:[#allocation2 + $0x28] sm:$0xff] %v791_v27  ;;  %801 = vst [vmem:[#allocation2 + $0x38] sm:$0xff] %v793_v28 }
 0x145   : > { %v806_v33 = vld [vmem:[#allocation2] sm:$0xff]  ;;  %v808_v39 = vld [vmem:[#allocation2 + $0x10] sm:$0xff] }
 0x146   : > { %v807_v34 = vld [vmem:[#allocation2 + $0x8] sm:$0xff]  ;;  %v809_v46 = vld [vmem:[#allocation2 + $0x18] sm:$0xff]  ;;  %v836_v53 = vmul.f32 %v819_v42, %v806_v33  ;;  %v838_v57 = vmul.f32 %v827_v49, %v808_v39 }
 0x147   : > { %v810_v40 = vld [vmem:[#allocation2 + $0x20] sm:$0xff]  ;;  %v812_v47 = vld [vmem:[#allocation2 + $0x30] sm:$0xff]  ;;  %v837_v54 = vmul.f32 %v823_v43, %v807_v34  ;;  %v839_v58 = vmul.f32 %v831_v50, %v809_v46 }
 0x148   : > { %v811_v41 = vld [vmem:[#allocation2 + $0x28] sm:$0xff]  ;;  %v813_v48 = vld [vmem:[#allocation2 + $0x38] sm:$0xff]  ;;  %v840_v55 = vmul.f32 %v819_v42, %v810_v40  ;;  %v842_v59 = vmul.f32 %v827_v49, %v812_v47  ;;  %v866_v61 = vadd.f32 %v849_v44, %v836_v53  ;;  %v868_v1 = vadd.f32 %v857_v51, %v838_v57 }
 0x149   : > { %v841_v56 = vmul.f32 %v823_v43, %v811_v41  ;;  %v843_v60 = vmul.f32 %v831_v50, %v813_v48  ;;  %v867_v62 = vadd.f32 %v853_v45, %v837_v54  ;;  %v869_v2 = vadd.f32 %v861_v52, %v839_v58 }
 0x14a   : > { %v870_v63 = vadd.f32 %v849_v44, %v840_v55  ;;  %v872_v3 = vadd.f32 %v857_v51, %v842_v59  ;;  %v874_v5 = vmax.f32 %v866_v61, 0.0  ;;  %v876_v9 = vmax.f32 %v868_v1, 0.0 }
 0x14b   : > { %v871_v0 = vadd.f32 %v853_v45, %v841_v56  ;;  %v873_v4 = vadd.f32 %v861_v52, %v843_v60  ;;  %v875_v6 = vmax.f32 %v867_v62, 0.0  ;;  %v877_v10 = vmax.f32 %v869_v2, 0.0 }
 0x14c   : > { %v878_v7 = vmax.f32 %v870_v63, 0.0  ;;  %v880_v11 = vmax.f32 %v872_v3, 0.0 }
 0x14d   : > { %v879_v8 = vmax.f32 %v871_v0, 0.0  ;;  %v881_v12 = vmax.f32 %v873_v4, 0.0  ;;  %v1084_v13 = vpack.c.bf16 %v875_v6, %v874_v5  ;;  %v1085_v15 = vpack.c.bf16 %v877_v10, %v876_v9 }
 0x14f   : > { %v1086_v14 = vpack.c.bf16 %v879_v8, %v878_v7  ;;  %v1087_v16 = vpack.c.bf16 %v881_v12, %v880_v11  ;;  %906 = vst [vmem:[%s1456_s4] sm:$0xff] %v1084_v13  ;;  %907 = vst [vmem:[%s1456_s4 + $0x8] sm:$0xff] %v1085_v15 }
 0x151   : > { %908 = vst [vmem:[%s1456_s4 + $0x10] sm:$0xff] %v1086_v14  ;;  %909 = vst [vmem:[%s1456_s4 + $0x18] sm:$0xff] %v1087_v16 }
 0x152 PF: > { %s14_s19 = sadd.s32 1, %s1266_s19   ;;  %s1457_s15 = smov %s1254_s16 }
 0x153   : > { %p11_p12 = scmp.ge.s32.totalorder %s14_s19, 11   ;;  %s1458_s16 = smov %s1329_s23 }
 0x154   : > { %s1459_s17 = smov %s1262_s18  ;;  %s1460_s18 = smov %s1462_s20 }
 0x155   :  { %13 = sbr.rel (!%p11_p12) target bundleno = 3 (0x3), region = 120 }

// kernel: bisenet_forward.32
= control target key start
LH: loop header
LB: loop body
LE: loop exit
PB: predicated region body
PF: predicated region fallthrough
CT: control target
= control target key end

     0   :  { %v102_v0 = vlaneseq  ;;  %vm32_vm0 = vcmask 1043456   ;;  %v158_v3 = vmov 1983009808   ;;  %vm136_vm1 = vcmask 1041409   ;;  %s191_s0 = inlined_call_operand.vmem [shape: bf16[2,4,512], index: 0, kind: input, shape index: {}]   ;;  %s192_s1 = inlined_call_operand.vmem [shape: f32[2,512], index: 1, kind: output, shape index: {}]  }
   0x1   :  { %v14_v1 = vld [vmem:[%s191_s0] sm:$0xff]  ;;  %v15_v2 = vld [vmem:[%s191_s0 + $0x8] sm:$0xff]  ;;  %v175_v4 = vunpack.c.l.s4 %v158_v3  ;;  %vm138_vm2 = vcmask 1043459   ;;  %vm140_vm3 = vcmask 1045509   ;;  %vm142_vm4 = vcmask 1047559  }
   0x2   :  { %v16_v5 = vunpack.c.l.bf16 %v14_v1  ;;  %v17_v6 = vunpack.c.h.bf16 %v14_v1  ;;  %v18_v7 = vunpack.c.l.bf16 %v15_v2  ;;  %v19_v8 = vunpack.c.h.bf16 %v15_v2 }
   0x3   :  { %v101_v9 = vunpack.c.0.s8 %v175_v4  ;;  %v103_v10 = vshrl.u32 %v102_v0, 7 }
   0x4   :  { %v24_v11 = vcombine.high %v16_v5, %v16_v5  ;;  %v25_v12 = vcombine.high %v17_v6, %v17_v6  ;;  %v26_v13 = vcombine.high %v18_v7, %v18_v7  ;;  %v27_v14 = vcombine.high %v19_v8, %v19_v8 }
   0x5   :  { %v33_v15 = vsel %vm32_vm0, %v16_v5, 0.0  ;;  %v47_v16 = vsel %vm32_vm0, %v17_v6, 0.0  ;;  %v61_v17 = vsel %vm32_vm0, %v18_v7, 0.0  ;;  %v75_v18 = vsel %vm32_vm0, %v19_v8, 0.0 }
   0x6   :  { %v34_v19 = vrot.slane %v33_v15, 4  ;;  %v40_v20 = vsel %vm32_vm0, %v24_v11, 0.0  ;;  %v48_v21 = vrot.slane %v47_v16, 4  ;;  %v54_v22 = vsel %vm32_vm0, %v25_v12, 0.0 }
   0x7   :  { %v41_v23 = vrot.slane %v40_v20, 4  ;;  %v55_v24 = vrot.slane %v54_v22, 4  ;;  %v62_v25 = vrot.slane %v61_v17, 4  ;;  %v68_v26 = vsel %vm32_vm0, %v26_v13, 0.0 }
   0x8   :  { %v35_v27 = vadd.f32 %v34_v19, %v33_v15  ;;  %v49_v28 = vadd.f32 %v48_v21, %v47_v16  ;;  %v69_v29 = vrot.slane %v68_v26, 4  ;;  %v76_v30 = vrot.slane %v75_v18, 4 }
   0x9   :  { %v42_v31 = vadd.f32 %v41_v23, %v40_v20  ;;  %v56_v32 = vadd.f32 %v55_v24, %v54_v22  ;;  %v63_v33 = vadd.f32 %v62_v25, %v61_v17  ;;  %v82_v34 = vsel %vm32_vm0, %v27_v14, 0.0 }
   0xa   :  { %v36_v35 = vrot.slane %v35_v27, 2  ;;  %v50_v36 = vrot.slane %v49_v28, 2  ;;  %v70_v37 = vadd.f32 %v69_v29, %v68_v26  ;;  %v77_v38 = vadd.f32 %v76_v30, %v75_v18 }
   0xb   :  { %v43_v39 = vrot.slane %v42_v31, 2  ;;  %v57_v40 = vrot.slane %v56_v32, 2  ;;  %v64_v41 = vrot.slane %v63_v33, 2  ;;  %v83_v42 = vrot.slane %v82_v34, 4 }
   0xc   :  { %v37_v43 = vadd.f32 %v36_v35, %v35_v27  ;;  %v51_v44 = vadd.f32 %v50_v36, %v49_v28  ;;  %v71_v45 = vrot.slane %v70_v37, 2  ;;  %v78_v46 = vrot.slane %v77_v38, 2 }
   0xd   :  { %v44_v47 = vadd.f32 %v43_v39, %v42_v31  ;;  %v58_v48 = vadd.f32 %v57_v40, %v56_v32  ;;  %v65_v49 = vadd.f32 %v64_v41, %v63_v33  ;;  %v84_v50 = vadd.f32 %v83_v42, %v82_v34 }
   0xe   :  { %v38_v51 = vrot.slane %v37_v43, 1  ;;  %v52_v52 = vrot.slane %v51_v44, 1  ;;  %v72_v53 = vadd.f32 %v71_v45, %v70_v37  ;;  %v79_v54 = vadd.f32 %v78_v46, %v77_v38 }
   0xf   :  { %v45_v55 = vrot.slane %v44_v47, 1  ;;  %v59_v56 = vrot.slane %v58_v48, 1  ;;  %v66_v57 = vrot.slane %v65_v49, 1  ;;  %v85_v58 = vrot.slane %v84_v50, 2 }
  0x10   :  { %v39_v59 = vadd.f32 %v38_v51, %v37_v43  ;;  %v53_v60 = vadd.f32 %v52_v52, %v51_v44  ;;  %v73_v61 = vrot.slane %v72_v53, 1  ;;  %v80_v62 = vrot.slane %v79_v54, 1 }
  0x11   :  { %v46_v63 = vadd.f32 %v45_v55, %v44_v47  ;;  %v60_v0 = vadd.f32 %v59_v56, %v58_v48  ;;  %v67_v1 = vadd.f32 %v66_v57, %v65_v49  ;;  %v86_v2 = vadd.f32 %v85_v58, %v84_v50 }
  0x12   :  { %v74_v3 = vadd.f32 %v73_v61, %v72_v53  ;;  %v81_v5 = vadd.f32 %v80_v62, %v79_v54  ;;  %v104_v11 = vsub.s32 %v101_v9, %v103_v10 }
  0x13   :  { %v87_v6 = vrot.slane %v86_v2, 1  ;;  %v97_v7 = vcombine.low %v39_v59, %v46_v63  ;;  %v98_v8 = vcombine.low %v53_v60, %v60_v0 }
  0x14   :  { %v114_v12 = vcombine.low %v67_v1, %v74_v3 }
  0x15   :  { %v88_v13 = vadd.f32 %v87_v6, %v86_v2  ;;  %v105_v14 = vrot.slane %v97_v7, %v104_v11  ;;  %v112_v15 = vrot.slane %v98_v8, %v104_v11 }
  0x16   :  { %v122_v17 = vrot.slane %v114_v12, %v104_v11 }
  0x17   :  { %v115_v16 = vcombine.low %v81_v5, %v88_v13  ;;  %v113_v19 = vcombine.low %v105_v14, %v112_v15 }
  0x19   :  { %v129_v18 = vrot.slane %v115_v16, %v104_v11 }
  0x1b   :  { %v130_v20 = vcombine.low %v122_v17, %v129_v18 }
  0x1d   :  { %v135_v21 = vrot.slane %v130_v20, 7 }
  0x1f   :  { %v137_v22 = vsel %vm136_vm1, %v135_v21, %v113_v19 }
  0x20   :  { %v139_v23 = vsel %vm138_vm2, %v135_v21, %v137_v22 }
  0x21   :  { %v141_v24 = vsel %vm140_vm3, %v135_v21, %v139_v23 }
  0x22   :  { %v143_v25 = vsel %vm142_vm4, %v135_v21, %v141_v24 }
  0x23   :  { %v151_v4 = vmul.f32 0.25, %v143_v25 }
  0x25   :  { %152 = vst [vmem:[%s192_s1] sm:$0xff] %v151_v4 }

// kernel: bisenet_forward.33
= control target key start
LH: loop header
LB: loop body
LE: loop exit
PB: predicated region body
PF: predicated region fallthrough
CT: control target
= control target key end

     0   :  { %s1977_s1 = inlined_call_operand.vmem [shape: bf16[512,512], index: 1, kind: input, shape index: {}]   ;;  %s1978_s0 = inlined_call_operand.vmem [shape: bf16[16,512], index: 0, kind: input, shape index: {}]   ;;  %s1979_s2 = inlined_call_operand.vmem [shape: f32[1,512], index: 2, kind: input, shape index: {}]   ;;  %s1980_s3 = inlined_call_operand.vmem [shape: f32[1,512], index: 3, kind: input, shape index: {}]   ;;  %s1981_s4 = inlined_call_operand.vmem [shape: f32[16,512], index: 4, kind: output, shape index: {}]  }
   0x1   :  { %v1296_v0 = vld [vmem:[%s1977_s1 + $0x4] ss:$16 sps:$4 sm:$0xff]   ;;  %v1298_v1 = vld [vmem:[%s1977_s1 + $0xc] ss:$16 sps:$4 sm:$0xff]   ;;  %v1300_v2 = vld [vmem:[%s1977_s1] ss:$16 sps:$4 sm:$0xff]  }
   0x2   :  { %829 = vmatprep.subr.bf16.mxu0 %v1296_v0  ;;  %v1301_v3 = vld [vmem:[%s1977_s1 + $0x8] ss:$16 sps:$4 sm:$0xff]   ;;  %915 = vmatprep.subr.bf16.mxu1 %v1298_v1  ;;  %v1302_v4 = vld [vmem:[%s1977_s1 + $0x24] ss:$16 sps:$4 sm:$0xff]   ;;  %v1304_v5 = vld [vmem:[%s1977_s1 + $0x2c] ss:$16 sps:$4 sm:$0xff]  }
   0x3   :  { %830 = vmatpush1.bf16.msra.mxu0 %v1300_v2  ;;  %916 = vmatpush1.bf16.msra.mxu1 %v1301_v3  ;;  %v1306_v6 = vld [vmem:[%s1977_s1 + $0x20] ss:$16 sps:$4 sm:$0xff]   ;;  %v1307_v7 = vld [vmem:[%s1977_s1 + $0x28] ss:$16 sps:$4 sm:$0xff]   ;;  %v1308_v8 = vld [vmem:[%s1977_s1 + $0x44] ss:$16 sps:$4 sm:$0xff]  }
   0x4   :  { %831 = vmatprep.subr.bf16.mxu0 %v1302_v4  ;;  %917 = vmatprep.subr.bf16.mxu1 %v1304_v5  ;;  %v1310_v9 = vld [vmem:[%s1977_s1 + $0x4c] ss:$16 sps:$4 sm:$0xff]   ;;  %v1312_v10 = vld [vmem:[%s1977_s1 + $0x40] ss:$16 sps:$4 sm:$0xff]   ;;  %v1313_v11 = vld [vmem:[%s1977_s1 + $0x48] ss:$16 sps:$4 sm:$0xff]  }
   0x5   :  { %v1314_v12 = vld [vmem:[%s1977_s1 + $0x64] ss:$16 sps:$4 sm:$0xff]   ;;  %v1316_v13 = vld [vmem:[%s1977_s1 + $0x6c] ss:$16 sps:$4 sm:$0xff]   ;;  %v1318_v14 = vld [vmem:[%s1977_s1 + $0x60] ss:$16 sps:$4 sm:$0xff]  }
   0x6   :  { %v1319_v15 = vld [vmem:[%s1977_s1 + $0x68] ss:$16 sps:$4 sm:$0xff]   ;;  %v1320_v16 = vld [vmem:[%s1977_s1 + $0x84] ss:$16 sps:$4 sm:$0xff]   ;;  %v1322_v17 = vld [vmem:[%s1977_s1 + $0x8c] ss:$16 sps:$4 sm:$0xff]  }
   0x7   :  { %832 = vmatpush1.bf16.msra.mxu0 %v1306_v6  ;;  %918 = vmatpush1.bf16.msra.mxu1 %v1307_v7  ;;  %v1324_v18 = vld [vmem:[%s1977_s1 + $0x80] ss:$16 sps:$4 sm:$0xff]   ;;  %v1325_v19 = vld [vmem:[%s1977_s1 + $0x88] ss:$16 sps:$4 sm:$0xff]   ;;  %v1326_v20 = vld [vmem:[%s1977_s1 + $0xa4] ss:$16 sps:$4 sm:$0xff]  }
   0x8   :  { %833 = vmatprep.subr.bf16.mxu0 %v1308_v8  ;;  %919 = vmatprep.subr.bf16.mxu1 %v1310_v9  ;;  %v1328_v21 = vld [vmem:[%s1977_s1 + $0xac] ss:$16 sps:$4 sm:$0xff]   ;;  %v1330_v22 = vld [vmem:[%s1977_s1 + $0xa0] ss:$16 sps:$4 sm:$0xff]   ;;  %v1331_v23 = vld [vmem:[%s1977_s1 + $0xa8] ss:$16 sps:$4 sm:$0xff]  }
   0x9   :  { %v1332_v24 = vld [vmem:[%s1977_s1 + $0xc4] ss:$16 sps:$4 sm:$0xff]   ;;  %v1334_v25 = vld [vmem:[%s1977_s1 + $0xcc] ss:$16 sps:$4 sm:$0xff]   ;;  %v1336_v26 = vld [vmem:[%s1977_s1 + $0xc0] ss:$16 sps:$4 sm:$0xff]  }
   0xa   :  { %v1337_v27 = vld [vmem:[%s1977_s1 + $0xc8] ss:$16 sps:$4 sm:$0xff]   ;;  %v1338_v28 = vld [vmem:[%s1977_s1 + $0xe4] ss:$16 sps:$4 sm:$0xff]   ;;  %v1340_v29 = vld [vmem:[%s1977_s1 + $0xec] ss:$16 sps:$4 sm:$0xff]  }
   0xb   :  { %834 = vmatpush1.bf16.msra.mxu0 %v1312_v10  ;;  %920 = vmatpush1.bf16.msra.mxu1 %v1313_v11  ;;  %v1342_v30 = vld [vmem:[%s1977_s1 + $0xe0] ss:$16 sps:$4 sm:$0xff]   ;;  %v1343_v31 = vld [vmem:[%s1977_s1 + $0xe8] ss:$16 sps:$4 sm:$0xff]   ;;  %v1344_v32 = vld [vmem:[%s1977_s1 + $0x104] ss:$16 sps:$4 sm:$0xff]  }
   0xc   :  { %835 = vmatprep.subr.bf16.mxu0 %v1314_v12  ;;  %921 = vmatprep.subr.bf16.mxu1 %v1316_v13  ;;  %v1346_v33 = vld [vmem:[%s1977_s1 + $0x10c] ss:$16 sps:$4 sm:$0xff]   ;;  %v1348_v34 = vld [vmem:[%s1977_s1 + $0x100] ss:$16 sps:$4 sm:$0xff]   ;;  %v1349_v35 = vld [vmem:[%s1977_s1 + $0x108] ss:$16 sps:$4 sm:$0xff]  }
   0xd   :  { %v1350_v36 = vld [vmem:[%s1977_s1 + $0x124] ss:$16 sps:$4 sm:$0xff]   ;;  %v1352_v37 = vld [vmem:[%s1977_s1 + $0x12c] ss:$16 sps:$4 sm:$0xff]   ;;  %v1354_v38 = vld [vmem:[%s1977_s1 + $0x120] ss:$16 sps:$4 sm:$0xff]  }
   0xe   :  { %v1355_v39 = vld [vmem:[%s1977_s1 + $0x128] ss:$16 sps:$4 sm:$0xff]   ;;  %v1356_v40 = vld [vmem:[%s1977_s1 + $0x144] ss:$16 sps:$4 sm:$0xff]   ;;  %v1358_v41 = vld [vmem:[%s1977_s1 + $0x14c] ss:$16 sps:$4 sm:$0xff]  }
   0xf   :  { %836 = vmatpush1.bf16.msra.mxu0 %v1318_v14  ;;  %922 = vmatpush1.bf16.msra.mxu1 %v1319_v15  ;;  %v1360_v42 = vld [vmem:[%s1977_s1 + $0x140] ss:$16 sps:$4 sm:$0xff]   ;;  %v1361_v43 = vld [vmem:[%s1977_s1 + $0x148] ss:$16 sps:$4 sm:$0xff]   ;;  %v1362_v44 = vld [vmem:[%s1977_s1 + $0x164] ss:$16 sps:$4 sm:$0xff]  }
  0x10   :  { %837 = vmatprep.subr.bf16.mxu0 %v1320_v16  ;;  %923 = vmatprep.subr.bf16.mxu1 %v1322_v17  ;;  %v1364_v45 = vld [vmem:[%s1977_s1 + $0x16c] ss:$16 sps:$4 sm:$0xff]   ;;  %v1366_v46 = vld [vmem:[%s1977_s1 + $0x160] ss:$16 sps:$4 sm:$0xff]   ;;  %v1367_v47 = vld [vmem:[%s1977_s1 + $0x168] ss:$16 sps:$4 sm:$0xff]  }
  0x11   :  { %v1394_v48 = vld [vmem:[%s1978_s0 + $0x4] ss:$16 sps:$4 sm:$0xff]   ;;  %v1370_v50 = vld [vmem:[%s1977_s1 + $0x18c] ss:$16 sps:$4 sm:$0xff]   ;;  %v1372_v51 = vld [vmem:[%s1977_s1 + $0x180] ss:$16 sps:$4 sm:$0xff]  }
  0x12   :  { %v1368_v49 = vld [vmem:[%s1977_s1 + $0x184] ss:$16 sps:$4 sm:$0xff]   ;;  %861 = vmatprep.mubr.bf16.mxu0 %v1394_v48  ;;  %947 = vmatprep.mubr.bf16.mxu1 %v1394_v48  ;;  %v1373_v52 = vld [vmem:[%s1977_s1 + $0x188] ss:$16 sps:$4 sm:$0xff]   ;;  %v1376_v54 = vld [vmem:[%s1977_s1 + $0x1ac] ss:$16 sps:$4 sm:$0xff]  }
  0x13   :  { %838 = vmatpush1.bf16.msra.mxu0 %v1324_v18  ;;  %924 = vmatpush1.bf16.msra.mxu1 %v1325_v19  ;;  %v1374_v53 = vld [vmem:[%s1977_s1 + $0x1a4] ss:$16 sps:$4 sm:$0xff]   ;;  %v1378_v55 = vld [vmem:[%s1977_s1 + $0x1a0] ss:$16 sps:$4 sm:$0xff]   ;;  %v1379_v56 = vld [vmem:[%s1977_s1 + $0x1a8] ss:$16 sps:$4 sm:$0xff]  }
  0x14   :  { %839 = vmatprep.subr.bf16.mxu0 %v1326_v20  ;;  %925 = vmatprep.subr.bf16.mxu1 %v1328_v21  ;;  %v1380_v57 = vld [vmem:[%s1977_s1 + $0x1c4] ss:$16 sps:$4 sm:$0xff]   ;;  %v1382_v58 = vld [vmem:[%s1977_s1 + $0x1cc] ss:$16 sps:$4 sm:$0xff]   ;;  %v1384_v59 = vld [vmem:[%s1977_s1 + $0x1c0] ss:$16 sps:$4 sm:$0xff]  }
  0x15   :  { %v1385_v60 = vld [vmem:[%s1977_s1 + $0x1c8] ss:$16 sps:$4 sm:$0xff]   ;;  %v1386_v61 = vld [vmem:[%s1977_s1 + $0x1e4] ss:$16 sps:$4 sm:$0xff]   ;;  %v1388_v62 = vld [vmem:[%s1977_s1 + $0x1ec] ss:$16 sps:$4 sm:$0xff]  }
  0x16   :  { %v1390_v63 = vld [vmem:[%s1977_s1 + $0x1e0] ss:$16 sps:$4 sm:$0xff]   ;;  %v1391_v0 = vld [vmem:[%s1977_s1 + $0x1e8] ss:$16 sps:$4 sm:$0xff]   ;;  %v1397_v1 = vld [vmem:[%s1977_s1 + $0x204] ss:$16 sps:$4 sm:$0xff]  }
  0x17   :  { %840 = vmatpush1.bf16.msra.mxu0 %v1330_v22  ;;  %926 = vmatpush1.bf16.msra.mxu1 %v1331_v23  ;;  %v1400_v2 = vld [vmem:[%s1977_s1 + $0x20c] ss:$16 sps:$4 sm:$0xff]   ;;  %v1392_v3 = vld [vmem:[%s1978_s0] ss:$16 sps:$4 sm:$0xff]   ;;  %v1398_v5 = vld [vmem:[%s1977_s1 + $0x208] ss:$16 sps:$4 sm:$0xff]  }
  0x18   :  { %841 = vmatprep.subr.bf16.mxu0 %v1332_v24  ;;  %927 = vmatprep.subr.bf16.mxu1 %v1334_v25  ;;  %v1395_v4 = vld [vmem:[%s1977_s1 + $0x200] ss:$16 sps:$4 sm:$0xff]   ;;  %v1403_v6 = vld [vmem:[%s1977_s1 + $0x224] ss:$16 sps:$4 sm:$0xff]   ;;  %v1406_v7 = vld [vmem:[%s1977_s1 + $0x22c] ss:$16 sps:$4 sm:$0xff]  }
  0x19   :  { %v1401_v8 = vld [vmem:[%s1977_s1 + $0x220] ss:$16 sps:$4 sm:$0xff]   ;;  %v1404_v9 = vld [vmem:[%s1977_s1 + $0x228] ss:$16 sps:$4 sm:$0xff]   ;;  %v1409_v10 = vld [vmem:[%s1977_s1 + $0x244] ss:$16 sps:$4 sm:$0xff]  }
  0x1a   :  { %v1412_v11 = vld [vmem:[%s1977_s1 + $0x24c] ss:$16 sps:$4 sm:$0xff]   ;;  %v1407_v12 = vld [vmem:[%s1977_s1 + $0x240] ss:$16 sps:$4 sm:$0xff]   ;;  %v1410_v13 = vld [vmem:[%s1977_s1 + $0x248] ss:$16 sps:$4 sm:$0xff]  }
  0x1b   :  { %842 = vmatpush1.bf16.msra.mxu0 %v1336_v26  ;;  %928 = vmatpush1.bf16.msra.mxu1 %v1337_v27  ;;  %v1415_v14 = vld [vmem:[%s1977_s1 + $0x264] ss:$16 sps:$4 sm:$0xff]   ;;  %v1418_v15 = vld [vmem:[%s1977_s1 + $0x26c] ss:$16 sps:$4 sm:$0xff]   ;;  %v1413_v16 = vld [vmem:[%s1977_s1 + $0x260] ss:$16 sps:$4 sm:$0xff]  }
  0x1c   :  { %843 = vmatprep.subr.bf16.mxu0 %v1338_v28  ;;  %929 = vmatprep.subr.bf16.mxu1 %v1340_v29  ;;  %v1416_v17 = vld [vmem:[%s1977_s1 + $0x268] ss:$16 sps:$4 sm:$0xff]   ;;  %v1421_v18 = vld [vmem:[%s1977_s1 + $0x284] ss:$16 sps:$4 sm:$0xff]   ;;  %v1424_v19 = vld [vmem:[%s1977_s1 + $0x28c] ss:$16 sps:$4 sm:$0xff]  }
  0x1d   :  { %v1419_v20 = vld [vmem:[%s1977_s1 + $0x280] ss:$16 sps:$4 sm:$0xff]   ;;  %v1422_v21 = vld [vmem:[%s1977_s1 + $0x288] ss:$16 sps:$4 sm:$0xff]   ;;  %v1427_v22 = vld [vmem:[%s1977_s1 + $0x2a4] ss:$16 sps:$4 sm:$0xff]  }
  0x1e   :  { %v1430_v23 = vld [vmem:[%s1977_s1 + $0x2ac] ss:$16 sps:$4 sm:$0xff]   ;;  %v1425_v24 = vld [vmem:[%s1977_s1 + $0x2a0] ss:$16 sps:$4 sm:$0xff]   ;;  %v1428_v25 = vld [vmem:[%s1977_s1 + $0x2a8] ss:$16 sps:$4 sm:$0xff]  }
  0x1f   :  { %844 = vmatpush1.bf16.msra.mxu0 %v1342_v30  ;;  %930 = vmatpush1.bf16.msra.mxu1 %v1343_v31  ;;  %v1433_v26 = vld [vmem:[%s1977_s1 + $0x2c4] ss:$16 sps:$4 sm:$0xff]   ;;  %v1436_v27 = vld [vmem:[%s1977_s1 + $0x2cc] ss:$16 sps:$4 sm:$0xff]   ;;  %v1431_v29 = vld [vmem:[%s1977_s1 + $0x2c0] ss:$16 sps:$4 sm:$0xff]  }
  0x20   :  { %845 = vmatprep.subr.bf16.mxu0 %v1344_v32  ;;  %931 = vmatprep.subr.bf16.mxu1 %v1346_v33  ;;  %v1493_v28 = vld [vmem:[%s1978_s0 + $0xc] ss:$16 sps:$4 sm:$0xff]   ;;  %v1434_v30 = vld [vmem:[%s1977_s1 + $0x2c8] ss:$16 sps:$4 sm:$0xff]   ;;  %v1439_v31 = vld [vmem:[%s1977_s1 + $0x2e4] ss:$16 sps:$4 sm:$0xff]  }
  0x21   :  { %v1442_v32 = vld [vmem:[%s1977_s1 + $0x2ec] ss:$16 sps:$4 sm:$0xff]   ;;  %v1437_v33 = vld [vmem:[%s1977_s1 + $0x2e0] ss:$16 sps:$4 sm:$0xff]  }
  0x22   :  { %v1466_v48 = vld [vmem:[%s1977_s1 + $0x36c] ss:$16 sps:$4 sm:$0xff]  }
  0x23   :  { %846 = vmatpush1.bf16.msra.mxu0 %v1348_v34  ;;  %932 = vmatpush1.bf16.msra.mxu1 %v1349_v35  ;;  %v1440_v34 = vld [vmem:[%s1977_s1 + $0x2e8] ss:$16 sps:$4 sm:$0xff]   ;;  %v1445_v35 = vld [vmem:[%s1977_s1 + $0x304] ss:$16 sps:$4 sm:$0xff]  }
  0x24   :  { %847 = vmatprep.subr.bf16.mxu0 %v1350_v36  ;;  %933 = vmatprep.subr.bf16.mxu1 %v1352_v37  ;;  %v1448_v36 = vld [vmem:[%s1977_s1 + $0x30c] ss:$16 sps:$4 sm:$0xff]   ;;  %v1443_v37 = vld [vmem:[%s1977_s1 + $0x300] ss:$16 sps:$4 sm:$0xff]  }
  0x27   :  { %848 = vmatpush1.bf16.msra.mxu0 %v1354_v38  ;;  %934 = vmatpush1.bf16.msra.mxu1 %v1355_v39  ;;  %v1446_v38 = vld [vmem:[%s1977_s1 + $0x308] ss:$16 sps:$4 sm:$0xff]   ;;  %v1451_v39 = vld [vmem:[%s1977_s1 + $0x324] ss:$16 sps:$4 sm:$0xff]  }
  0x28   :  { %849 = vmatprep.subr.bf16.mxu0 %v1356_v40  ;;  %935 = vmatprep.subr.bf16.mxu1 %v1358_v41  ;;  %v1454_v40 = vld [vmem:[%s1977_s1 + $0x32c] ss:$16 sps:$4 sm:$0xff]   ;;  %v1449_v41 = vld [vmem:[%s1977_s1 + $0x320] ss:$16 sps:$4 sm:$0xff]  }
  0x2b   :  { %850 = vmatpush1.bf16.msra.mxu0 %v1360_v42  ;;  %936 = vmatpush1.bf16.msra.mxu1 %v1361_v43  ;;  %v1452_v42 = vld [vmem:[%s1977_s1 + $0x328] ss:$16 sps:$4 sm:$0xff]   ;;  %v1457_v43 = vld [vmem:[%s1977_s1 + $0x344] ss:$16 sps:$4 sm:$0xff]  }
  0x2c   :  { %851 = vmatprep.subr.bf16.mxu0 %v1362_v44  ;;  %937 = vmatprep.subr.bf16.mxu1 %v1364_v45  ;;  %v1460_v44 = vld [vmem:[%s1977_s1 + $0x34c] ss:$16 sps:$4 sm:$0xff]   ;;  %v1455_v45 = vld [vmem:[%s1977_s1 + $0x340] ss:$16 sps:$4 sm:$0xff]  }
  0x2f   :  { %852 = vmatpush1.bf16.msra.mxu0 %v1366_v46  ;;  %938 = vmatpush1.bf16.msra.mxu1 %v1367_v47  ;;  %v1458_v46 = vld [vmem:[%s1977_s1 + $0x348] ss:$16 sps:$4 sm:$0xff]   ;;  %v1463_v47 = vld [vmem:[%s1977_s1 + $0x364] ss:$16 sps:$4 sm:$0xff]  }
  0x30   :  { %853 = vmatprep.subr.bf16.mxu0 %v1368_v49  ;;  %939 = vmatprep.subr.bf16.mxu1 %v1370_v50  ;;  %v1461_v49 = vld [vmem:[%s1977_s1 + $0x360] ss:$16 sps:$4 sm:$0xff]   ;;  %v1464_v50 = vld [vmem:[%s1977_s1 + $0x368] ss:$16 sps:$4 sm:$0xff]  }
  0x33   :  { %854 = vmatpush1.bf16.msra.mxu0 %v1372_v51  ;;  %940 = vmatpush1.bf16.msra.mxu1 %v1373_v52  ;;  %v1469_v51 = vld [vmem:[%s1977_s1 + $0x384] ss:$16 sps:$4 sm:$0xff]   ;;  %v1472_v52 = vld [vmem:[%s1977_s1 + $0x38c] ss:$16 sps:$4 sm:$0xff]  }
  0x34   :  { %855 = vmatprep.subr.bf16.mxu0 %v1374_v53  ;;  %941 = vmatprep.subr.bf16.mxu1 %v1376_v54  ;;  %v1467_v53 = vld [vmem:[%s1977_s1 + $0x380] ss:$16 sps:$4 sm:$0xff]   ;;  %v1470_v54 = vld [vmem:[%s1977_s1 + $0x388] ss:$16 sps:$4 sm:$0xff]  }
  0x37   :  { %856 = vmatpush1.bf16.msra.mxu0 %v1378_v55  ;;  %942 = vmatpush1.bf16.msra.mxu1 %v1379_v56  ;;  %v1475_v55 = vld [vmem:[%s1977_s1 + $0x3a4] ss:$16 sps:$4 sm:$0xff]   ;;  %v1478_v56 = vld [vmem:[%s1977_s1 + $0x3ac] ss:$16 sps:$4 sm:$0xff]  }
  0x38   :  { %857 = vmatprep.subr.bf16.mxu0 %v1380_v57  ;;  %943 = vmatprep.subr.bf16.mxu1 %v1382_v58  ;;  %v1473_v57 = vld [vmem:[%s1977_s1 + $0x3a0] ss:$16 sps:$4 sm:$0xff]   ;;  %v1476_v58 = vld [vmem:[%s1977_s1 + $0x3a8] ss:$16 sps:$4 sm:$0xff]  }
  0x3b   :  { %858 = vmatpush1.bf16.msra.mxu0 %v1384_v59  ;;  %944 = vmatpush1.bf16.msra.mxu1 %v1385_v60  ;;  %v1481_v59 = vld [vmem:[%s1977_s1 + $0x3c4] ss:$16 sps:$4 sm:$0xff]   ;;  %v1484_v60 = vld [vmem:[%s1977_s1 + $0x3cc] ss:$16 sps:$4 sm:$0xff]  }
  0x3c   :  { %859 = vmatprep.subr.bf16.mxu0 %v1386_v61  ;;  %945 = vmatprep.subr.bf16.mxu1 %v1388_v62  ;;  %v1479_v61 = vld [vmem:[%s1977_s1 + $0x3c0] ss:$16 sps:$4 sm:$0xff]   ;;  %v1482_v62 = vld [vmem:[%s1977_s1 + $0x3c8] ss:$16 sps:$4 sm:$0xff]  }
  0x3f   :  { %860 = vmatpush1.bf16.msra.mxu0 %v1390_v63  ;;  %946 = vmatpush1.bf16.msra.mxu1 %v1391_v0  ;;  %v1487_v63 = vld [vmem:[%s1977_s1 + $0x3e4] ss:$16 sps:$4 sm:$0xff]   ;;  %v1490_v0 = vld [vmem:[%s1977_s1 + $0x3ec] ss:$16 sps:$4 sm:$0xff]  }
  0x40   :  { %872 = vmatprep.subr.bf16.mxu0 %v1397_v1  ;;  %958 = vmatprep.subr.bf16.mxu1 %v1400_v2  ;;  %v1485_v1 = vld [vmem:[%s1977_s1 + $0x3e0] ss:$16 sps:$4 sm:$0xff]   ;;  %v1488_v2 = vld [vmem:[%s1977_s1 + $0x3e8] ss:$16 sps:$4 sm:$0xff]  }
  0x42   :  { %862 = vmatmul.mubr.bf16.vlgmr.msra.gmra.mrb[0].mxu0 %v1392_v3  ;;  %948 = vmatmul.mubr.bf16.vlgmr.msra.gmra.mrb[0].mxu1 %v1392_v3  ;;  %v1491_v3 = vld [vmem:[%s1978_s0 + $0x8] ss:$16 sps:$4 sm:$0xff]  }
  0x43   :  { %873 = vmatpush1.bf16.msra.mxu0 %v1395_v4  ;;  %959 = vmatpush1.bf16.msra.mxu1 %v1398_v5  ;;  %v1030_v4 = vlaneseq }
  0x44   :  { %874 = vmatprep.subr.bf16.mxu0 %v1403_v6  ;;  %960 = vmatprep.subr.bf16.mxu1 %v1406_v7 }
  0x45   :  { %904 = vmatprep.mubr.bf16.mxu0 %v1493_v28  ;;  %990 = vmatprep.mubr.bf16.mxu1 %v1493_v28  ;;  %v1031_v5 = vshrl.u32 %v1030_v4, 7 }
  0x47   :  { %875 = vmatpush1.bf16.msra.mxu0 %v1401_v8  ;;  %961 = vmatpush1.bf16.msra.mxu1 %v1404_v9  ;;  %v1032_v6 = vsub.s32 0, %v1031_v5  ;;  %v1040_v7 = vsub.s32 2, %v1031_v5  ;;  %v1028_v8 = vld [vmem:[%s1979_s2] sm:$0xf]  ;;  %v1036_v9 = vsub.s32 1, %v1031_v5 }
  0x48   :  { %876 = vmatprep.subr.bf16.mxu0 %v1409_v10  ;;  %962 = vmatprep.subr.bf16.mxu1 %v1412_v11  ;;  %v1044_v10 = vsub.s32 3, %v1031_v5  ;;  %v1058_v11 = vld [vmem:[%s1980_s3] sm:$0xf] }
  0x4b   :  { %877 = vmatpush1.bf16.msra.mxu0 %v1407_v12  ;;  %963 = vmatpush1.bf16.msra.mxu1 %v1410_v13  ;;  %v1033_v12 = vrot.slane %v1028_v8, %v1032_v6  ;;  %v1041_v13 = vrot.slane %v1028_v8, %v1040_v7 }
  0x4c   :  { %878 = vmatprep.subr.bf16.mxu0 %v1415_v14  ;;  %964 = vmatprep.subr.bf16.mxu1 %v1418_v15  ;;  %v1037_v14 = vrot.slane %v1028_v8, %v1036_v9  ;;  %v1045_v15 = vrot.slane %v1028_v8, %v1044_v10 }
  0x4f   :  { %879 = vmatpush1.bf16.msra.mxu0 %v1413_v16  ;;  %965 = vmatpush1.bf16.msra.mxu1 %v1416_v17  ;;  %v1063_v16 = vrot.slane %v1058_v11, %v1032_v6  ;;  %v1071_v17 = vrot.slane %v1058_v11, %v1040_v7 }
  0x50   :  { %880 = vmatprep.subr.bf16.mxu0 %v1421_v18  ;;  %966 = vmatprep.subr.bf16.mxu1 %v1424_v19 }
  0x53   :  { %881 = vmatpush1.bf16.msra.mxu0 %v1419_v20  ;;  %967 = vmatpush1.bf16.msra.mxu1 %v1422_v21  ;;  %v1067_v20 = vrot.slane %v1058_v11, %v1036_v9  ;;  %v1075_v21 = vrot.slane %v1058_v11, %v1044_v10 }
  0x54   :  { %882 = vmatprep.subr.bf16.mxu0 %v1427_v22  ;;  %968 = vmatprep.subr.bf16.mxu1 %v1430_v23 }
  0x57   :  { %883 = vmatpush1.bf16.msra.mxu0 %v1425_v24  ;;  %969 = vmatpush1.bf16.msra.mxu1 %v1428_v25 }
  0x58   :  { %884 = vmatprep.subr.bf16.mxu0 %v1433_v26  ;;  %970 = vmatprep.subr.bf16.mxu1 %v1436_v27 }
  0x5b   :  { %885 = vmatpush1.bf16.msra.mxu0 %v1431_v29  ;;  %971 = vmatpush1.bf16.msra.mxu1 %v1434_v30 }
  0x5c   :  { %886 = vmatprep.subr.bf16.mxu0 %v1439_v31  ;;  %972 = vmatprep.subr.bf16.mxu1 %v1442_v32 }
  0x5f   :  { %887 = vmatpush1.bf16.msra.mxu0 %v1437_v33  ;;  %973 = vmatpush1.bf16.msra.mxu1 %v1440_v34 }
  0x60   :  { %888 = vmatprep.subr.bf16.mxu0 %v1445_v35  ;;  %974 = vmatprep.subr.bf16.mxu1 %v1448_v36 }
  0x63   :  { %889 = vmatpush1.bf16.msra.mxu0 %v1443_v37  ;;  %975 = vmatpush1.bf16.msra.mxu1 %v1446_v38 }
  0x64   :  { %890 = vmatprep.subr.bf16.mxu0 %v1451_v39  ;;  %976 = vmatprep.subr.bf16.mxu1 %v1454_v40 }
  0x67   :  { %891 = vmatpush1.bf16.msra.mxu0 %v1449_v41  ;;  %977 = vmatpush1.bf16.msra.mxu1 %v1452_v42 }
  0x68   :  { %892 = vmatprep.subr.bf16.mxu0 %v1457_v43  ;;  %978 = vmatprep.subr.bf16.mxu1 %v1460_v44 }
  0x6b   :  { %893 = vmatpush1.bf16.msra.mxu0 %v1455_v45  ;;  %979 = vmatpush1.bf16.msra.mxu1 %v1458_v46 }
  0x6c   :  { %894 = vmatprep.subr.bf16.mxu0 %v1463_v47  ;;  %980 = vmatprep.subr.bf16.mxu1 %v1466_v48 }
  0x6f   :  { %895 = vmatpush1.bf16.msra.mxu0 %v1461_v49  ;;  %981 = vmatpush1.bf16.msra.mxu1 %v1464_v50 }
  0x70   :  { %896 = vmatprep.subr.bf16.mxu0 %v1469_v51  ;;  %982 = vmatprep.subr.bf16.mxu1 %v1472_v52 }
  0x73   :  { %897 = vmatpush1.bf16.msra.mxu0 %v1467_v53  ;;  %983 = vmatpush1.bf16.msra.mxu1 %v1470_v54 }
  0x74   :  { %898 = vmatprep.subr.bf16.mxu0 %v1475_v55  ;;  %984 = vmatprep.subr.bf16.mxu1 %v1478_v56 }
  0x77   :  { %899 = vmatpush1.bf16.msra.mxu0 %v1473_v57  ;;  %985 = vmatpush1.bf16.msra.mxu1 %v1476_v58 }
  0x78   :  { %900 = vmatprep.subr.bf16.mxu0 %v1481_v59  ;;  %986 = vmatprep.subr.bf16.mxu1 %v1484_v60 }
  0x7b   :  { %901 = vmatpush1.bf16.msra.mxu0 %v1479_v61  ;;  %987 = vmatpush1.bf16.msra.mxu1 %v1482_v62 }
  0x7c   :  { %902 = vmatprep.subr.bf16.mxu0 %v1487_v63  ;;  %988 = vmatprep.subr.bf16.mxu1 %v1490_v0 }
  0x7f   :  { %903 = vmatpush1.bf16.msra.mxu0 %v1485_v1  ;;  %989 = vmatpush1.bf16.msra.mxu1 %v1488_v2 }
  0x82   :  { %905 = vmatmul.mubr.bf16.vlgmr.msra.gmra.mrb[0].mxu0 %v1491_v3  ;;  %991 = vmatmul.mubr.bf16.vlgmr.msra.gmra.mrb[0].mxu1 %v1491_v3 }
 0x155   :  { %v906_v18 = vpop.f32.mrb[0].mxu0  ;;  %v992_v19 = vpop.f32.mrb[0].mxu1 }
 0x156   :  { %v1050_v22 = vmul.f32 %v1033_v12, %v906_v18  ;;  %v1052_v23 = vmul.f32 %v1041_v13, %v992_v19  ;;  %v908_v24 = vpop.f32.mrb[1].mxu0  ;;  %v994_v25 = vpop.f32.mrb[1].mxu1 }
 0x157   :  { %v1051_v26 = vmul.f32 %v1037_v14, %v908_v24  ;;  %v1053_v27 = vmul.f32 %v1045_v15, %v994_v25  ;;  %v910_v28 = vpop.f32.mrb[2].mxu0  ;;  %v996_v29 = vpop.f32.mrb[2].mxu1 }
 0x158   :  { %v1080_v30 = vadd.f32 %v1063_v16, %v1050_v22  ;;  %v1082_v31 = vadd.f32 %v1071_v17, %v1052_v23  ;;  %v1054_v32 = vmul.f32 %v1033_v12, %v910_v28  ;;  %v1056_v33 = vmul.f32 %v1041_v13, %v996_v29  ;;  %v912_v34 = vpop.f32.mrb[3].mxu0  ;;  %v998_v35 = vpop.f32.mrb[3].mxu1 }
 0x159   :  { %v1081_v36 = vadd.f32 %v1067_v20, %v1051_v26  ;;  %v1083_v37 = vadd.f32 %v1075_v21, %v1053_v27  ;;  %v1055_v38 = vmul.f32 %v1037_v14, %v912_v34  ;;  %v1057_v39 = vmul.f32 %v1045_v15, %v998_v35 }
 0x15a   :  { %v1280_v40 = vmul.f32 -1.442695, %v1080_v30  ;;  %v1282_v41 = vmul.f32 -1.442695, %v1082_v31  ;;  %v1084_v42 = vadd.f32 %v1063_v16, %v1054_v32  ;;  %v1086_v43 = vadd.f32 %v1071_v17, %v1056_v33 }
 0x15b   :  { %v1281_v44 = vmul.f32 -1.442695, %v1081_v36  ;;  %v1283_v45 = vmul.f32 -1.442695, %v1083_v37  ;;  %v1085_v46 = vadd.f32 %v1067_v20, %v1055_v38  ;;  %v1087_v47 = vadd.f32 %v1075_v21, %v1057_v39 }
 0x15c   :  { %1494 = vpow2.f32 %v1280_v40  ;;  %v1284_v48 = vmul.f32 -1.442695, %v1084_v42  ;;  %v1286_v49 = vmul.f32 -1.442695, %v1086_v43 }
 0x15d   :  { %1496 = vpow2.f32 %v1282_v41  ;;  %v1285_v50 = vmul.f32 -1.442695, %v1085_v46  ;;  %v1287_v51 = vmul.f32 -1.442695, %v1087_v47 }
 0x15e   :  { %1498 = vpow2.f32 %v1281_v44 }
 0x15f   :  { %1500 = vpow2.f32 %v1283_v45 }
 0x160   :  { %1502 = vpow2.f32 %v1284_v48 }
 0x161   :  { %1504 = vpow2.f32 %v1286_v49 }
 0x162   :  { %1506 = vpow2.f32 %v1285_v50 }
 0x163   :  { %1508 = vpow2.f32 %v1287_v51 }
 0x166   :  { %v1495_v52 = vpop.eup %1494 }
 0x167   :  { %v1497_v53 = vpop.eup %1496  ;;  %v1112_v54 = vadd.f32 1.0, %v1495_v52 }
 0x168   :  { %v1499_v55 = vpop.eup %1498  ;;  %v1114_v56 = vadd.f32 1.0, %v1497_v53 }
 0x169   :  { %v1501_v57 = vpop.eup %1500  ;;  %1510 = vrcp.f32 %v1112_v54  ;;  %v1113_v58 = vadd.f32 1.0, %v1499_v55 }
 0x16a   :  { %v1503_v59 = vpop.eup %1502  ;;  %1512 = vrcp.f32 %v1114_v56  ;;  %v1115_v60 = vadd.f32 1.0, %v1501_v57 }
 0x16b   :  { %v1505_v61 = vpop.eup %1504  ;;  %1514 = vrcp.f32 %v1113_v58  ;;  %v1116_v62 = vadd.f32 1.0, %v1503_v59 }
 0x16c   :  { %v1507_v63 = vpop.eup %1506  ;;  %1516 = vrcp.f32 %v1115_v60  ;;  %v1118_v0 = vadd.f32 1.0, %v1505_v61 }
 0x16d   :  { %v1509_v1 = vpop.eup %1508  ;;  %1518 = vrcp.f32 %v1116_v62  ;;  %v1117_v2 = vadd.f32 1.0, %v1507_v63 }
 0x16e   :  { %1520 = vrcp.f32 %v1118_v0  ;;  %v1119_v3 = vadd.f32 1.0, %v1509_v1 }
 0x16f   :  { %1522 = vrcp.f32 %v1117_v2 }
 0x170   :  { %1524 = vrcp.f32 %v1119_v3 }
 0x173   :  { %v1511_v4 = vpop.eup %1510 }
 0x174   :  { %v1513_v5 = vpop.eup %1512  ;;  %1136 = vst [vmem:[%s1981_s4] sm:$0xff] %v1511_v4 }
 0x175   :  { %v1515_v6 = vpop.eup %1514  ;;  %1138 = vst [vmem:[%s1981_s4 + $0x10] sm:$0xff] %v1513_v5 }
 0x176   :  { %v1517_v7 = vpop.eup %1516  ;;  %1137 = vst [vmem:[%s1981_s4 + $0x8] sm:$0xff] %v1515_v6 }
 0x177   :  { %v1519_v8 = vpop.eup %1518  ;;  %1139 = vst [vmem:[%s1981_s4 + $0x18] sm:$0xff] %v1517_v7 }
 0x178   :  { %v1521_v9 = vpop.eup %1520  ;;  %1140 = vst [vmem:[%s1981_s4 + $0x20] sm:$0xff] %v1519_v8 }
 0x179   :  { %v1523_v10 = vpop.eup %1522  ;;  %1142 = vst [vmem:[%s1981_s4 + $0x30] sm:$0xff] %v1521_v9 }
 0x17a   :  { %v1525_v11 = vpop.eup %1524  ;;  %1141 = vst [vmem:[%s1981_s4 + $0x28] sm:$0xff] %v1523_v10 }
 0x17b   :  { %1143 = vst [vmem:[%s1981_s4 + $0x38] sm:$0xff] %v1525_v11 }

// kernel: bisenet_forward.34
= control target key start
LH: loop header
LB: loop body
LE: loop exit
PB: predicated region body
PF: predicated region fallthrough
CT: control target
= control target key end

     0   :  { %v21_v0 = vlaneseq  ;;  %v140_v5 = vmov 1983009808   ;;  %s174_s0 = inlined_call_operand.vmem [shape: bf16[2,4,512], index: 0, kind: input, shape index: {}]   ;;  %s175_s1 = inlined_call_operand.vmem [shape: f32[2,1,512], index: 1, kind: input, shape index: {}]   ;;  %s176_s2 = inlined_call_operand.vmem [shape: bf16[2,4,512], index: 2, kind: output, shape index: {}]  }
   0x1   :  { %v11_v1 = vld [vmem:[%s174_s0] sm:$0xff]  ;;  %v12_v3 = vld [vmem:[%s174_s0 + $0x8] sm:$0xff]  ;;  %v96_v6 = vunpack.c.l.s4 %v140_v5 }
   0x2   :  { %v22_v2 = vshrl.u32 %v21_v0, 7  ;;  %v17_v4 = vld [vmem:[%s175_s1] sm:$0xf]  ;;  %v18_v11 = vld [vmem:[%s175_s1 + $0x4] sm:$0xf]  ;;  %v13_v12 = vunpack.c.l.bf16 %v11_v1  ;;  %v14_v13 = vunpack.c.h.bf16 %v11_v1  ;;  %v15_v14 = vunpack.c.l.bf16 %v12_v3 }
   0x3   :  { %v16_v15 = vunpack.c.h.bf16 %v12_v3  ;;  %v97_v26 = vunpack.c.0.s8 %v96_v6 }
   0x4   :  { %v23_v7 = vsub.s32 0, %v22_v2  ;;  %v27_v8 = vsub.s32 1, %v22_v2  ;;  %v31_v9 = vsub.s32 2, %v22_v2  ;;  %v35_v10 = vsub.s32 3, %v22_v2 }
   0x5   :  { %v100_v35 = vsub.s32 %v97_v26, %v22_v2 }
   0x6   :  { %v24_v16 = vrot.slane %v17_v4, %v23_v7  ;;  %v28_v17 = vrot.slane %v17_v4, %v27_v8  ;;  %v32_v18 = vrot.slane %v17_v4, %v31_v9  ;;  %v36_v19 = vrot.slane %v17_v4, %v35_v10 }
   0x7   :  { %v40_v20 = vrot.slane %v18_v11, %v23_v7  ;;  %v44_v21 = vrot.slane %v18_v11, %v27_v8  ;;  %v48_v22 = vrot.slane %v18_v11, %v31_v9  ;;  %v52_v23 = vrot.slane %v18_v11, %v35_v10 }
   0x8   :  { %v53_v24 = vcombine.low %v24_v16, %v28_v17  ;;  %v54_v25 = vcombine.low %v32_v18, %v36_v19 }
   0x9   :  { %v55_v27 = vcombine.low %v40_v20, %v44_v21  ;;  %v56_v28 = vcombine.low %v48_v22, %v52_v23 }
   0xa   :  { %v61_v29 = vmul.f32 %v53_v24, %v13_v12  ;;  %v62_v30 = vmul.f32 %v54_v25, %v14_v13 }
   0xb   :  { %v63_v31 = vmul.f32 %v55_v27, %v15_v14  ;;  %v64_v32 = vmul.f32 %v56_v28, %v16_v15 }
   0xc   :  { %v69_v33 = vcombine.high %v61_v29, %v61_v29  ;;  %v70_v34 = vcombine.high %v62_v30, %v62_v30 }
   0xd   :  { %v71_v36 = vcombine.high %v63_v31, %v63_v31  ;;  %v72_v37 = vcombine.high %v64_v32, %v64_v32 }
   0xe   :  { %v135_v38 = vpack.c.bf16 %v69_v33, %v61_v29  ;;  %v136_v39 = vpack.c.bf16 %v70_v34, %v62_v30 }
   0xf   :  { %v137_v40 = vpack.c.bf16 %v71_v36, %v63_v31  ;;  %v138_v41 = vpack.c.bf16 %v72_v37, %v64_v32 }
  0x10   :  { %v101_v42 = vrot.slane %v135_v38, %v100_v35  ;;  %v108_v43 = vrot.slane %v136_v39, %v100_v35 }
  0x11   :  { %v118_v44 = vrot.slane %v137_v40, %v100_v35  ;;  %v125_v45 = vrot.slane %v138_v41, %v100_v35 }
  0x12   :  { %v109_v46 = vcombine.low %v101_v42, %v108_v43 }
  0x13   :  { %v126_v47 = vcombine.low %v118_v44, %v125_v45 }
  0x14   :  { %129 = vst [vmem:[%s176_s2] sm:$0xff] %v109_v46 }
  0x15   :  { %130 = vst [vmem:[%s176_s2 + $0x8] sm:$0xff] %v126_v47 }

// kernel: bisenet_forward.35
= control target key start
LH: loop header
LB: loop body
LE: loop exit
PB: predicated region body
PF: predicated region fallthrough
CT: control target
= control target key end

     0   :  { %s1755_s15 = smov 0   ;;  %s1757_s16 = smov 0   ;;  %s2024_s0 = inlined_call_operand.vmem [shape: bf16[128,9216], index: 0, kind: input, shape index: {}]   ;;  %s2025_s1 = inlined_call_operand.vmem [shape: bf16[9216,128], index: 1, kind: input, shape index: {}]   ;;  %s2026_s2 = inlined_call_operand.vmem [shape: f32[1,128], index: 2, kind: input, shape index: {}]   ;;  %s2027_s3 = inlined_call_operand.vmem [shape: f32[1,128], index: 3, kind: input, shape index: {}]   ;;  %s2028_s4 = inlined_call_operand.vmem [shape: bf16[128,128], index: 4, kind: output, shape index: {}]  }
   0x1   :  { %s1759_s17 = smov 0   ;;  %s1761_s18 = smov 0  }
   0x2   :  { %s1763_s19 = smov 0  }
   0x3 LB: > { %s23_s20 = sadd.s32 1, %s1723_s18  ;;  %p42_p1 = scmp.ne.s32.totalorder %s1715_s16, %s1711_s15  ;;  %s1727_s19 = sphi %s1763_s19, %s14_s19   ;;  %s1723_s18 = sphi %s1761_s18, %s2032_s18   ;;  %s1719_s17 = sphi %s1759_s17, %s2031_s17   ;;  %s1715_s16 = sphi %s1757_s16, %s2030_s16   ;;  %s1711_s15 = sphi %s1755_s15, %s2029_s15  }
   0x4   : > { %p24_p0 = scmp.ge.s32.totalorder %s23_s20, 18  ;;  %p43_p2 = scmp.eq.s32.totalorder %s1727_s19, 0 }
   0x5   : > { %s35_s22 = sadd.s32 1, %s1715_s16  ;;  %p1280_p5 = scmp.ge.s32.totalorder %s1727_s19, 18 }
   0x6   : > { %s2034_s20 = smov (%p24_p0, %s23_s20), 0  ;;  %p44_p3 = por %p43_p2, %p42_p1 }
   0x7   : > { %s31_s21 = ssub.s32 %s1723_s18, %s2034_s20  ;;  %168 = sbr.rel (%p1280_p5) target bundleno = 34 (0x22), region = 24 }
   0x8   : > { %p33_p4 = scmp.eq.s32.totalorder %s31_s21, 0 }
   0xa   : > { %s1790_s23 = scalar_select %p33_p4, %s1715_s16, %s35_s22  }
   0xe   : > { %171 = sbr.rel (!%p44_p3) target bundleno = 34 (0x22), region = 28  ;;  %s173_s24 = sand.u32 (%p44_p3), 1, %s1715_s16  }
   0xf   : > { %s1376_s25 = sshll.u32 (%p44_p3), %s1723_s18, 4  ;;  %s1281_s26 = sshll.u32 (%p44_p3), %s173_s24, 8 }
  0x10   : > { %s1798_s29 = scalar_lea.vmem (%p44_p3), %s2024_s0, %s1376_s25  ;;  %s1803_s30 = scalar_lea.vmem (%p44_p3), [#allocation3], %s1281_s26 }
  0x11   : > { %v194_v0 = vld [vmem:[%s1798_s29] sm:$0xff] (%p44_p3)  ;;  %v196_v1 = vld [vmem:[%s1798_s29 + $0x8] sm:$0xff] (%p44_p3) }
  0x12   : > { %v198_v2 = vld [vmem:[%s1798_s29 + $0x120] sm:$0xff] (%p44_p3)  ;;  %195 = vst [vmem:[%s1803_s30] sm:$0xff] (%p44_p3), %v194_v0  ;;  %197 = vst [vmem:[%s1803_s30 + $0x8] sm:$0xff] (%p44_p3), %v196_v1  ;;  %v200_v3 = vld [vmem:[%s1798_s29 + $0x128] sm:$0xff] (%p44_p3) }
  0x13   : > { %199 = vst [vmem:[%s1803_s30 + $0x10] sm:$0xff] (%p44_p3), %v198_v2  ;;  %v202_v4 = vld [vmem:[%s1798_s29 + $0x240] sm:$0xff] (%p44_p3)  ;;  %v204_v5 = vld [vmem:[%s1798_s29 + $0x248] sm:$0xff] (%p44_p3)  ;;  %201 = vst [vmem:[%s1803_s30 + $0x18] sm:$0xff] (%p44_p3), %v200_v3 }
  0x14   : > { %203 = vst [vmem:[%s1803_s30 + $0x20] sm:$0xff] (%p44_p3), %v202_v4  ;;  %205 = vst [vmem:[%s1803_s30 + $0x28] sm:$0xff] (%p44_p3), %v204_v5  ;;  %v206_v6 = vld [vmem:[%s1798_s29 + $0x360] sm:$0xff] (%p44_p3)  ;;  %v208_v7 = vld [vmem:[%s1798_s29 + $0x368] sm:$0xff] (%p44_p3) }
  0x15   : > { %v210_v8 = vld [vmem:[%s1798_s29 + $0x480] sm:$0xff]  ;;  %207 = vst [vmem:[%s1803_s30 + $0x30] sm:$0xff] %v206_v6  ;;  %209 = vst [vmem:[%s1803_s30 + $0x38] sm:$0xff] %v208_v7  ;;  %v212_v9 = vld [vmem:[%s1798_s29 + $0x488] sm:$0xff] }
  0x16   : > { %211 = vst [vmem:[%s1803_s30 + $0x40] sm:$0xff] %v210_v8  ;;  %v214_v10 = vld [vmem:[%s1798_s29 + $0x5a0] sm:$0xff]  ;;  %v216_v11 = vld [vmem:[%s1798_s29 + $0x5a8] sm:$0xff]  ;;  %213 = vst [vmem:[%s1803_s30 + $0x48] sm:$0xff] %v212_v9 }
  0x17   : > { %215 = vst [vmem:[%s1803_s30 + $0x50] sm:$0xff] %v214_v10  ;;  %217 = vst [vmem:[%s1803_s30 + $0x58] sm:$0xff] %v216_v11  ;;  %v218_v12 = vld [vmem:[%s1798_s29 + $0x6c0] sm:$0xff]  ;;  %v220_v13 = vld [vmem:[%s1798_s29 + $0x6c8] sm:$0xff] }
  0x18   : > { %v222_v14 = vld [vmem:[%s1798_s29 + $0x7e0] sm:$0xff]  ;;  %219 = vst [vmem:[%s1803_s30 + $0x60] sm:$0xff] %v218_v12  ;;  %221 = vst [vmem:[%s1803_s30 + $0x68] sm:$0xff] %v220_v13  ;;  %v224_v15 = vld [vmem:[%s1798_s29 + $0x7e8] sm:$0xff] }
  0x19   : > { %223 = vst [vmem:[%s1803_s30 + $0x70] sm:$0xff] %v222_v14  ;;  %v226_v16 = vld [vmem:[%s1798_s29 + $0x900] sm:$0xff]  ;;  %v228_v17 = vld [vmem:[%s1798_s29 + $0x908] sm:$0xff]  ;;  %225 = vst [vmem:[%s1803_s30 + $0x78] sm:$0xff] %v224_v15 }
  0x1a   : > { %227 = vst [vmem:[%s1803_s30 + $0x80] sm:$0xff] %v226_v16  ;;  %229 = vst [vmem:[%s1803_s30 + $0x88] sm:$0xff] %v228_v17  ;;  %v230_v18 = vld [vmem:[%s1798_s29 + $0xa20] sm:$0xff]  ;;  %v232_v19 = vld [vmem:[%s1798_s29 + $0xa28] sm:$0xff] }
  0x1b   : > { %v234_v20 = vld [vmem:[%s1798_s29 + $0xb40] sm:$0xff]  ;;  %231 = vst [vmem:[%s1803_s30 + $0x90] sm:$0xff] %v230_v18  ;;  %233 = vst [vmem:[%s1803_s30 + $0x98] sm:$0xff] %v232_v19  ;;  %v236_v21 = vld [vmem:[%s1798_s29 + $0xb48] sm:$0xff] }
  0x1c   : > { %235 = vst [vmem:[%s1803_s30 + $0xa0] sm:$0xff] %v234_v20  ;;  %v238_v22 = vld [vmem:[%s1798_s29 + $0xc60] sm:$0xff]  ;;  %v240_v23 = vld [vmem:[%s1798_s29 + $0xc68] sm:$0xff]  ;;  %237 = vst [vmem:[%s1803_s30 + $0xa8] sm:$0xff] %v236_v21 }
  0x1d   : > { %239 = vst [vmem:[%s1803_s30 + $0xb0] sm:$0xff] %v238_v22  ;;  %241 = vst [vmem:[%s1803_s30 + $0xb8] sm:$0xff] %v240_v23  ;;  %v242_v24 = vld [vmem:[%s1798_s29 + $0xd80] sm:$0xff]  ;;  %v244_v25 = vld [vmem:[%s1798_s29 + $0xd88] sm:$0xff] }
  0x1e   : > { %v246_v26 = vld [vmem:[%s1798_s29 + $0xea0] sm:$0xff]  ;;  %243 = vst [vmem:[%s1803_s30 + $0xc0] sm:$0xff] %v242_v24  ;;  %245 = vst [vmem:[%s1803_s30 + $0xc8] sm:$0xff] %v244_v25  ;;  %v248_v27 = vld [vmem:[%s1798_s29 + $0xea8] sm:$0xff] }
  0x1f   : > { %247 = vst [vmem:[%s1803_s30 + $0xd0] sm:$0xff] %v246_v26  ;;  %v250_v28 = vld [vmem:[%s1798_s29 + $0xfc0] sm:$0xff]  ;;  %v252_v29 = vld [vmem:[%s1798_s29 + $0xfc8] sm:$0xff]  ;;  %249 = vst [vmem:[%s1803_s30 + $0xd8] sm:$0xff] %v248_v27 }
  0x20   : > { %251 = vst [vmem:[%s1803_s30 + $0xe0] sm:$0xff] %v250_v28  ;;  %253 = vst [vmem:[%s1803_s30 + $0xe8] sm:$0xff] %v252_v29  ;;  %v254_v30 = vld [vmem:[%s1798_s29 + $0x10e0] sm:$0xff]  ;;  %v256_v31 = vld [vmem:[%s1798_s29 + $0x10e8] sm:$0xff] }
  0x21   : > { %255 = vst [vmem:[%s1803_s30 + $0xf0] sm:$0xff] %v254_v30  ;;  %257 = vst [vmem:[%s1803_s30 + $0xf8] sm:$0xff] %v256_v31 }
  0x22 PF: > { %p1284_p6 = scmp.ge.s32.totalorder %s1727_s19, 1  ;;  %p271_p7 = scmp.lt.s32.totalorder %s1727_s19, 19 }
  0x24   : > { %p272_p8 = pnand %p1284_p6, %p271_p7 }
  0x25   : > { %s278_s5 = sand.u32 (!%p272_p8), 1, %s1711_s15   ;;  %s1286_s6 = sshll.u32 (!%p272_p8), %s1719_s17, 6 }
  0x26   : > { %275 = sbr.rel (%p272_p8) target bundleno = 384 (0x180), region = 55  ;;  %s1285_s7 = sshll.u32 (!%p272_p8), %s278_s5, 8 }
  0x27   : > { %p311_p9 = scmp.lt.s32.totalorder (!%p272_p8), %s1286_s6, 1151  ;;  %s1875_s12 = scalar_lea.vmem (!%p272_p8), [#allocation3], %s1285_s7 }
  0x28   : > { %p1288_p10 = scmp.ne.s32.totalorder (!%p272_p8), %s1719_s17, 0 }
  0x2d   : > { %s2036_s6 = smov (!%p311_p9, %s1286_s6), 1151  ;;  %326 = sbr.rel (%p1288_p10) target bundleno = 55 (0x37), region = 63 }
  0x2e   : > { %s1287_s8 = sshll.u32 %s2036_s6, 2  ;;  %v1729_v32 = vmov (!%p1288_p10), 0.0  }
  0x2f   : > { %s1873_s11 = scalar_lea.vmem %s2025_s1, %s1287_s8  ;;  %327 = vst [vmem:[#allocation2] sm:$0xff] (!%p1288_p10), %v1729_v32  ;;  %328 = vst [vmem:[#allocation2 + $0x8] sm:$0xff] (!%p1288_p10), %v1729_v32 }
  0x30   : > { %329 = vst [vmem:[#allocation2 + $0x10] sm:$0xff] (!%p1288_p10), %v1729_v32  ;;  %330 = vst [vmem:[#allocation2 + $0x18] sm:$0xff] (!%p1288_p10), %v1729_v32 }
  0x31   : > { %331 = vst [vmem:[#allocation2 + $0x20] sm:$0xff] (!%p1288_p10), %v1729_v32  ;;  %332 = vst [vmem:[#allocation2 + $0x28] sm:$0xff] (!%p1288_p10), %v1729_v32 }
  0x32   : > { %333 = vst [vmem:[#allocation2 + $0x30] sm:$0xff] (!%p1288_p10), %v1729_v32  ;;  %334 = vst [vmem:[#allocation2 + $0x38] sm:$0xff] (!%p1288_p10), %v1729_v32 }
  0x33   : > { %335 = vst [vmem:[#allocation2 + $0x40] sm:$0xff] (!%p1288_p10), %v1729_v32  ;;  %336 = vst [vmem:[#allocation2 + $0x48] sm:$0xff] (!%p1288_p10), %v1729_v32 }
  0x34   : > { %337 = vst [vmem:[#allocation2 + $0x50] sm:$0xff] %v1729_v32  ;;  %338 = vst [vmem:[#allocation2 + $0x58] sm:$0xff] %v1729_v32 }
  0x35   : > { %339 = vst [vmem:[#allocation2 + $0x60] sm:$0xff] %v1729_v32  ;;  %340 = vst [vmem:[#allocation2 + $0x68] sm:$0xff] %v1729_v32 }
  0x36   : > { %341 = vst [vmem:[#allocation2 + $0x70] sm:$0xff] %v1729_v32  ;;  %342 = vst [vmem:[#allocation2 + $0x78] sm:$0xff] %v1729_v32 }
  0x37 PF: > { %v1609_v33 = vld [vmem:[%s1873_s11 + $0x40] sm:$0xff]   ;;  %v1613_v37 = vld [vmem:[%s1873_s11 + $0x48] sm:$0xff]   ;;  %v1617_v41 = vld [vmem:[%s1873_s11 + $0x50] sm:$0xff]   ;;  %p1353_p11 = scmp.ne.s32.totalorder %s1719_s17, 17 }
  0x38   : > { %v1610_v34 = vld [vmem:[%s1873_s11 + $0xc0] sm:$0xff]   ;;  %1440 = vmatprep.subr.bf16.mxu0 %v1609_v33  ;;  %v1614_v38 = vld [vmem:[%s1873_s11 + $0xc8] sm:$0xff]   ;;  %v1618_v42 = vld [vmem:[%s1873_s11 + $0xd0] sm:$0xff]  }
  0x39   : > { %v1611_v35 = vld [vmem:[%s1873_s11] sm:$0xff]   ;;  %1504 = vmatprep.subr.bf16.mxu1 %v1610_v34  ;;  %v1615_v39 = vld [vmem:[%s1873_s11 + $0x8] sm:$0xff]   ;;  %v1619_v43 = vld [vmem:[%s1873_s11 + $0x10] sm:$0xff]  }
  0x3a   : > { %v1612_v36 = vld [vmem:[%s1873_s11 + $0x80] sm:$0xff]   ;;  %1441 = vmatpush3.bf16.msra.mxu0 %v1611_v35  ;;  %v1616_v40 = vld [vmem:[%s1873_s11 + $0x88] sm:$0xff]   ;;  %v1620_v44 = vld [vmem:[%s1873_s11 + $0x90] sm:$0xff]  }
  0x3b   : > { %1505 = vmatpush3.bf16.msra.mxu1 %v1612_v36  ;;  %1442 = vmatprep.subr.bf16.mxu0 %v1613_v37  ;;  %v1621_v45 = vld [vmem:[%s1873_s11 + $0x58] sm:$0xff]   ;;  %v1625_v49 = vld [vmem:[%s1873_s11 + $0x60] sm:$0xff]   ;;  %v1629_v53 = vld [vmem:[%s1873_s11 + $0x68] sm:$0xff]  }
  0x3c   : > { %1506 = vmatprep.subr.bf16.mxu1 %v1614_v38  ;;  %v1622_v46 = vld [vmem:[%s1873_s11 + $0xd8] sm:$0xff]   ;;  %v1626_v50 = vld [vmem:[%s1873_s11 + $0xe0] sm:$0xff]   ;;  %v1630_v54 = vld [vmem:[%s1873_s11 + $0xe8] sm:$0xff]  }
  0x3d   : > { %v1623_v47 = vld [vmem:[%s1873_s11 + $0x18] sm:$0xff]   ;;  %v1627_v51 = vld [vmem:[%s1873_s11 + $0x20] sm:$0xff]   ;;  %v1631_v55 = vld [vmem:[%s1873_s11 + $0x28] sm:$0xff]  }
  0x3e   : > { %1443 = vmatpush3.bf16.msra.mxu0 %v1615_v39  ;;  %v1624_v48 = vld [vmem:[%s1873_s11 + $0x98] sm:$0xff]   ;;  %v1628_v52 = vld [vmem:[%s1873_s11 + $0xa0] sm:$0xff]   ;;  %v1632_v56 = vld [vmem:[%s1873_s11 + $0xa8] sm:$0xff]  }
  0x3f   : > { %1507 = vmatpush3.bf16.msra.mxu1 %v1616_v40  ;;  %1444 = vmatprep.subr.bf16.mxu0 %v1617_v41  ;;  %v1633_v57 = vld [vmem:[%s1873_s11 + $0x70] sm:$0xff]   ;;  %v1637_v61 = vld [vmem:[%s1873_s11 + $0x78] sm:$0xff]  }
  0x40   : > { %1508 = vmatprep.subr.bf16.mxu1 %v1618_v42  ;;  %v1634_v58 = vld [vmem:[%s1873_s11 + $0xf0] sm:$0xff]   ;;  %v1638_v62 = vld [vmem:[%s1873_s11 + $0xf8] sm:$0xff]   ;;  %v343_v42 = vld [vmem:[#allocation2] sm:$0xff] }
  0x41   : > { %v1635_v59 = vld [vmem:[%s1873_s11 + $0x30] sm:$0xff]   ;;  %v1639_v63 = vld [vmem:[%s1873_s11 + $0x38] sm:$0xff]  }
  0x42   : > { %1445 = vmatpush3.bf16.msra.mxu0 %v1619_v43  ;;  %v1636_v60 = vld [vmem:[%s1873_s11 + $0xb0] sm:$0xff]   ;;  %v1640_v0 = vld [vmem:[%s1873_s11 + $0xb8] sm:$0xff]  }
  0x43   : > { %1509 = vmatpush3.bf16.msra.mxu1 %v1620_v44  ;;  %1446 = vmatprep.subr.bf16.mxu0 %v1621_v45  ;;  %v1641_v1 = vld [vmem:[%s1875_s12] ss:$16 sps:$4 sm:$0xff]   ;;  %v1643_v2 = vld [vmem:[%s1875_s12 + $0x4] ss:$16 sps:$4 sm:$0xff]   ;;  %v1644_v3 = vld [vmem:[%s1875_s12 + $0x8] ss:$16 sps:$4 sm:$0xff]  }
  0x44   : > { %1510 = vmatprep.subr.bf16.mxu1 %v1622_v46  ;;  %v1646_v4 = vld [vmem:[%s1875_s12 + $0xc] ss:$16 sps:$4 sm:$0xff]   ;;  %839 = vmatprep.mubr.bf16.mxu0 %v1643_v2  ;;  %v1647_v5 = vld [vmem:[%s1875_s12 + $0x24] ss:$16 sps:$4 sm:$0xff]   ;;  %v1651_v7 = vld [vmem:[%s1875_s12 + $0x20] ss:$16 sps:$4 sm:$0xff]  }
  0x45   : > { %936 = vmatprep.mubr.bf16.mxu1 %v1646_v4  ;;  %v1649_v6 = vld [vmem:[%s1875_s12 + $0x2c] ss:$16 sps:$4 sm:$0xff]   ;;  %v1652_v8 = vld [vmem:[%s1875_s12 + $0x28] ss:$16 sps:$4 sm:$0xff]   ;;  %v1653_v9 = vld [vmem:[%s1875_s12 + $0x44] ss:$16 sps:$4 sm:$0xff]  }
  0x46   : > { %1447 = vmatpush3.bf16.msra.mxu0 %v1623_v47  ;;  %v1655_v10 = vld [vmem:[%s1875_s12 + $0x4c] ss:$16 sps:$4 sm:$0xff]   ;;  %v1657_v11 = vld [vmem:[%s1875_s12 + $0x40] ss:$16 sps:$4 sm:$0xff]   ;;  %v1658_v12 = vld [vmem:[%s1875_s12 + $0x48] ss:$16 sps:$4 sm:$0xff]  }
  0x47   : > { %1511 = vmatpush3.bf16.msra.mxu1 %v1624_v48  ;;  %1448 = vmatprep.subr.bf16.mxu0 %v1625_v49  ;;  %v1659_v13 = vld [vmem:[%s1875_s12 + $0x64] ss:$16 sps:$4 sm:$0xff]   ;;  %v1661_v14 = vld [vmem:[%s1875_s12 + $0x6c] ss:$16 sps:$4 sm:$0xff]   ;;  %v1663_v15 = vld [vmem:[%s1875_s12 + $0x60] ss:$16 sps:$4 sm:$0xff]  }
  0x48   : > { %1512 = vmatprep.subr.bf16.mxu1 %v1626_v50  ;;  %v1664_v16 = vld [vmem:[%s1875_s12 + $0x68] ss:$16 sps:$4 sm:$0xff]   ;;  %v1665_v17 = vld [vmem:[%s1875_s12 + $0x84] ss:$16 sps:$4 sm:$0xff]   ;;  %v1667_v18 = vld [vmem:[%s1875_s12 + $0x8c] ss:$16 sps:$4 sm:$0xff]  }
  0x49   : > { %v1669_v19 = vld [vmem:[%s1875_s12 + $0x80] ss:$16 sps:$4 sm:$0xff]   ;;  %v1670_v20 = vld [vmem:[%s1875_s12 + $0x88] ss:$16 sps:$4 sm:$0xff]   ;;  %v1671_v21 = vld [vmem:[%s1875_s12 + $0xa4] ss:$16 sps:$4 sm:$0xff]  }
  0x4a   : > { %1449 = vmatpush3.bf16.msra.mxu0 %v1627_v51  ;;  %v1673_v22 = vld [vmem:[%s1875_s12 + $0xac] ss:$16 sps:$4 sm:$0xff]   ;;  %v1675_v23 = vld [vmem:[%s1875_s12 + $0xa0] ss:$16 sps:$4 sm:$0xff]   ;;  %v1676_v24 = vld [vmem:[%s1875_s12 + $0xa8] ss:$16 sps:$4 sm:$0xff]  }
  0x4b   : > { %1513 = vmatpush3.bf16.msra.mxu1 %v1628_v52  ;;  %1450 = vmatprep.subr.bf16.mxu0 %v1629_v53  ;;  %v1677_v25 = vld [vmem:[%s1875_s12 + $0xc4] ss:$16 sps:$4 sm:$0xff]   ;;  %v1679_v26 = vld [vmem:[%s1875_s12 + $0xcc] ss:$16 sps:$4 sm:$0xff]   ;;  %v1681_v27 = vld [vmem:[%s1875_s12 + $0xc0] ss:$16 sps:$4 sm:$0xff]  }
  0x4c   : > { %1514 = vmatprep.subr.bf16.mxu1 %v1630_v54  ;;  %v1682_v28 = vld [vmem:[%s1875_s12 + $0xc8] ss:$16 sps:$4 sm:$0xff]   ;;  %v1683_v29 = vld [vmem:[%s1875_s12 + $0xe4] ss:$16 sps:$4 sm:$0xff]   ;;  %v1685_v30 = vld [vmem:[%s1875_s12 + $0xec] ss:$16 sps:$4 sm:$0xff]  }
  0x4d   : > { %v1687_v31 = vld [vmem:[%s1875_s12 + $0xe0] ss:$16 sps:$4 sm:$0xff]   ;;  %v1688_v32 = vld [vmem:[%s1875_s12 + $0xe8] ss:$16 sps:$4 sm:$0xff]  }
  0x4e   : > { %1451 = vmatpush3.bf16.msra.mxu0 %v1631_v55  ;;  %v344_v47 = vld [vmem:[#allocation2 + $0x8] sm:$0xff] }
  0x4f   : > { %1515 = vmatpush3.bf16.msra.mxu1 %v1632_v56  ;;  %1452 = vmatprep.subr.bf16.mxu0 %v1633_v57 }
  0x50   : > { %1516 = vmatprep.subr.bf16.mxu1 %v1634_v58 }
  0x52   : > { %1453 = vmatpush3.bf16.msra.mxu0 %v1635_v59 }
  0x53   : > { %1517 = vmatpush3.bf16.msra.mxu1 %v1636_v60  ;;  %1454 = vmatprep.subr.bf16.mxu0 %v1637_v61  ;;  %v345_v60 = vld [vmem:[#allocation2 + $0x10] sm:$0xff] }
  0x54   : > { %1518 = vmatprep.subr.bf16.mxu1 %v1638_v62 }
  0x56   : > { %1455 = vmatpush3.bf16.msra.mxu0 %v1639_v63 }
  0x57   : > { %1519 = vmatpush3.bf16.msra.mxu1 %v1640_v0 }
  0x59   : > { %840 = vmatmul.mubr.bf16.vlgmr.msra.gmra.mrb[0].mxu0 %v1641_v1  ;;  %v346_v1 = vld [vmem:[#allocation2 + $0x18] sm:$0xff] }
  0x5a   : > { %937 = vmatmul.mubr.bf16.vlgmr.msra.gmra.mrb[0].mxu1 %v1644_v3  ;;  %847 = vmatprep.mubr.bf16.mxu0 %v1647_v5 }
  0x5b   : > { %944 = vmatprep.mubr.bf16.mxu1 %v1649_v6 }
  0x61   : > { %848 = vmatmul.mubr.bf16.gmra.mrb[4].mxu0 %v1651_v7 }
  0x62   : > { %945 = vmatmul.mubr.bf16.gmra.mrb[4].mxu1 %v1652_v8  ;;  %855 = vmatprep.mubr.bf16.mxu0 %v1653_v9 }
  0x63   : > { %952 = vmatprep.mubr.bf16.mxu1 %v1655_v10 }
  0x69   : > { %856 = vmatmul.mubr.bf16.gmra.mrb[8].mxu0 %v1657_v11 }
  0x6a   : > { %953 = vmatmul.mubr.bf16.gmra.mrb[8].mxu1 %v1658_v12  ;;  %863 = vmatprep.mubr.bf16.mxu0 %v1659_v13 }
  0x6b   : > { %960 = vmatprep.mubr.bf16.mxu1 %v1661_v14  ;;  %v347_v14 = vld [vmem:[#allocation2 + $0x20] sm:$0xff] }
  0x71   : > { %864 = vmatmul.mubr.bf16.gmra.mrb[12].mxu0 %v1663_v15 }
  0x72   : > { %961 = vmatmul.mubr.bf16.gmra.mrb[12].mxu1 %v1664_v16  ;;  %871 = vmatprep.mubr.bf16.mxu0 %v1665_v17 }
  0x73   : > { %968 = vmatprep.mubr.bf16.mxu1 %v1667_v18 }
  0x79   : > { %872 = vmatmul.mubr.bf16.gmra.mrb[16].mxu0 %v1669_v19  ;;  %v348_v19 = vld [vmem:[#allocation2 + $0x28] sm:$0xff] }
  0x7a   : > { %969 = vmatmul.mubr.bf16.gmra.mrb[16].mxu1 %v1670_v20  ;;  %879 = vmatprep.mubr.bf16.mxu0 %v1671_v21 }
  0x7b   : > { %976 = vmatprep.mubr.bf16.mxu1 %v1673_v22 }
  0x81   : > { %880 = vmatmul.mubr.bf16.gmra.mrb[20].mxu0 %v1675_v23 }
  0x82   : > { %977 = vmatmul.mubr.bf16.gmra.mrb[20].mxu1 %v1676_v24  ;;  %887 = vmatprep.mubr.bf16.mxu0 %v1677_v25 }
  0x83   : > { %984 = vmatprep.mubr.bf16.mxu1 %v1679_v26 }
  0x89   : > { %888 = vmatmul.mubr.bf16.gmra.mrb[24].mxu0 %v1681_v27 }
  0x8a   : > { %985 = vmatmul.mubr.bf16.gmra.mrb[24].mxu1 %v1682_v28  ;;  %895 = vmatprep.mubr.bf16.mxu0 %v1683_v29 }
  0x8b   : > { %992 = vmatprep.mubr.bf16.mxu1 %v1685_v30 }
  0x91   : > { %896 = vmatmul.mubr.bf16.gmra.mrb[28].mxu0 %v1687_v31 }
  0x92   : > { %993 = vmatmul.mubr.bf16.gmra.mrb[28].mxu1 %v1688_v32  ;;  %v349_v32 = vld [vmem:[#allocation2 + $0x30] sm:$0xff] }
 0x12c   : > { %v1456_v33 = vpop.f32.mrb[0].mxu0 }
 0x12d   : > { %v1520_v34 = vpop.f32.mrb[0].mxu1  ;;  %v1457_v35 = vpop.f32.mrb[1].mxu0 }
 0x12e   : > { %v1458_v36 = vadd.f32 %v1457_v35, %v1456_v33  ;;  %v1521_v37 = vpop.f32.mrb[1].mxu1  ;;  %v1459_v38 = vpop.f32.mrb[2].mxu0 }
 0x12f   : > { %v1522_v39 = vadd.f32 %v1521_v37, %v1520_v34  ;;  %v1523_v40 = vpop.f32.mrb[2].mxu1  ;;  %v1460_v41 = vpop.f32.mrb[3].mxu0  ;;  %v350_v37 = vld [vmem:[#allocation2 + $0x38] sm:$0xff] }
 0x130   : > { %v1461_v43 = vadd.f32 %v1460_v41, %v1459_v38  ;;  %v1524_v44 = vpop.f32.mrb[3].mxu1 }
 0x131   : > { %v939_v45 = vadd.f32 %v1522_v39, %v1458_v36  ;;  %v1525_v46 = vadd.f32 %v1524_v44, %v1523_v40 }
 0x133   : > { %v1001_v48 = vadd.f32 %v939_v45, %v343_v42  ;;  %v942_v49 = vadd.f32 %v1525_v46, %v1461_v43 }
 0x134   : > { %v1462_v50 = vpop.f32.mrb[4].mxu0 }
 0x135   : > { %1017 = vst [vmem:[#allocation2] sm:$0xff] %v1001_v48  ;;  %v1002_v51 = vadd.f32 %v942_v49, %v344_v47  ;;  %v1526_v52 = vpop.f32.mrb[4].mxu1  ;;  %v1463_v53 = vpop.f32.mrb[5].mxu0 }
 0x136   : > { %v1464_v54 = vadd.f32 %v1463_v53, %v1462_v50  ;;  %v1527_v55 = vpop.f32.mrb[5].mxu1  ;;  %v1465_v56 = vpop.f32.mrb[6].mxu0  ;;  %v351_v50 = vld [vmem:[#allocation2 + $0x40] sm:$0xff] }
 0x137   : > { %1018 = vst [vmem:[#allocation2 + $0x8] sm:$0xff] %v1002_v51  ;;  %v1528_v57 = vadd.f32 %v1527_v55, %v1526_v52  ;;  %v1529_v58 = vpop.f32.mrb[6].mxu1  ;;  %v1466_v59 = vpop.f32.mrb[7].mxu0  ;;  %v352_v55 = vld [vmem:[#allocation2 + $0x48] sm:$0xff] }
 0x138   : > { %v1467_v61 = vadd.f32 %v1466_v59, %v1465_v56  ;;  %v1530_v62 = vpop.f32.mrb[7].mxu1 }
 0x139   : > { %v947_v63 = vadd.f32 %v1528_v57, %v1464_v54  ;;  %v1531_v0 = vadd.f32 %v1530_v62, %v1529_v58 }
 0x13b   : > { %v1003_v2 = vadd.f32 %v947_v63, %v345_v60  ;;  %v950_v3 = vadd.f32 %v1531_v0, %v1467_v61 }
 0x13c   : > { %v1468_v4 = vpop.f32.mrb[8].mxu0 }
 0x13d   : > { %1019 = vst [vmem:[#allocation2 + $0x10] sm:$0xff] %v1003_v2  ;;  %v1004_v5 = vadd.f32 %v950_v3, %v346_v1  ;;  %v1532_v6 = vpop.f32.mrb[8].mxu1  ;;  %v1469_v7 = vpop.f32.mrb[9].mxu0 }
 0x13e   : > { %v1470_v8 = vadd.f32 %v1469_v7, %v1468_v4  ;;  %v1533_v9 = vpop.f32.mrb[9].mxu1  ;;  %v1471_v10 = vpop.f32.mrb[10].mxu0  ;;  %v353_v4 = vld [vmem:[#allocation2 + $0x50] sm:$0xff] }
 0x13f   : > { %1020 = vst [vmem:[#allocation2 + $0x18] sm:$0xff] %v1004_v5  ;;  %v1534_v11 = vadd.f32 %v1533_v9, %v1532_v6  ;;  %v1535_v12 = vpop.f32.mrb[10].mxu1  ;;  %v1472_v13 = vpop.f32.mrb[11].mxu0  ;;  %v354_v9 = vld [vmem:[#allocation2 + $0x58] sm:$0xff] }
 0x140   : > { %v1473_v15 = vadd.f32 %v1472_v13, %v1471_v10  ;;  %v1536_v16 = vpop.f32.mrb[11].mxu1 }
 0x141   : > { %v955_v17 = vadd.f32 %v1534_v11, %v1470_v8  ;;  %v1537_v18 = vadd.f32 %v1536_v16, %v1535_v12 }
 0x143   : > { %v1005_v20 = vadd.f32 %v955_v17, %v347_v14  ;;  %v958_v21 = vadd.f32 %v1537_v18, %v1473_v15 }
 0x144   : > { %v1474_v22 = vpop.f32.mrb[12].mxu0 }
 0x145   : > { %1021 = vst [vmem:[#allocation2 + $0x20] sm:$0xff] %v1005_v20  ;;  %v1006_v23 = vadd.f32 %v958_v21, %v348_v19  ;;  %v1538_v24 = vpop.f32.mrb[12].mxu1  ;;  %v1475_v25 = vpop.f32.mrb[13].mxu0 }
 0x146   : > { %v1476_v26 = vadd.f32 %v1475_v25, %v1474_v22  ;;  %v1539_v27 = vpop.f32.mrb[13].mxu1  ;;  %v1477_v28 = vpop.f32.mrb[14].mxu0  ;;  %v355_v22 = vld [vmem:[#allocation2 + $0x60] sm:$0xff] }
 0x147   : > { %1022 = vst [vmem:[#allocation2 + $0x28] sm:$0xff] %v1006_v23  ;;  %v1540_v29 = vadd.f32 %v1539_v27, %v1538_v24  ;;  %v1541_v30 = vpop.f32.mrb[14].mxu1  ;;  %v1478_v31 = vpop.f32.mrb[15].mxu0  ;;  %v356_v27 = vld [vmem:[#allocation2 + $0x68] sm:$0xff] }
 0x148   : > { %v1479_v33 = vadd.f32 %v1478_v31, %v1477_v28  ;;  %v1542_v34 = vpop.f32.mrb[15].mxu1 }
 0x149   : > { %v963_v35 = vadd.f32 %v1540_v29, %v1476_v26  ;;  %v1543_v36 = vadd.f32 %v1542_v34, %v1541_v30 }
 0x14b   : > { %v1007_v38 = vadd.f32 %v963_v35, %v349_v32  ;;  %v966_v39 = vadd.f32 %v1543_v36, %v1479_v33 }
 0x14c   : > { %v1480_v40 = vpop.f32.mrb[16].mxu0 }
 0x14d   : > { %1023 = vst [vmem:[#allocation2 + $0x30] sm:$0xff] %v1007_v38  ;;  %v1008_v41 = vadd.f32 %v966_v39, %v350_v37  ;;  %v1544_v42 = vpop.f32.mrb[16].mxu1  ;;  %v1481_v43 = vpop.f32.mrb[17].mxu0 }
 0x14e   : > { %v1482_v44 = vadd.f32 %v1481_v43, %v1480_v40  ;;  %v1545_v45 = vpop.f32.mrb[17].mxu1  ;;  %v1483_v46 = vpop.f32.mrb[18].mxu0  ;;  %v357_v40 = vld [vmem:[#allocation2 + $0x70] sm:$0xff] }
 0x14f   : > { %1024 = vst [vmem:[#allocation2 + $0x38] sm:$0xff] %v1008_v41  ;;  %v1546_v47 = vadd.f32 %v1545_v45, %v1544_v42  ;;  %v1547_v48 = vpop.f32.mrb[18].mxu1  ;;  %v1484_v49 = vpop.f32.mrb[19].mxu0  ;;  %v358_v45 = vld [vmem:[#allocation2 + $0x78] sm:$0xff] }
 0x150   : > { %v1485_v51 = vadd.f32 %v1484_v49, %v1483_v46  ;;  %v1548_v52 = vpop.f32.mrb[19].mxu1  ;;  %v1037_v49 = vld [vmem:[#allocation2] sm:$0xff] (!%p1353_p11) }
 0x151   : > { %v971_v53 = vadd.f32 %v1546_v47, %v1482_v44  ;;  %v1549_v54 = vadd.f32 %v1548_v52, %v1547_v48 }
 0x153   : > { %v1009_v56 = vadd.f32 %v971_v53, %v351_v50  ;;  %v974_v57 = vadd.f32 %v1549_v54, %v1485_v51  ;;  %v1038_v50 = vld [vmem:[#allocation2 + $0x8] sm:$0xff] (!%p1353_p11)  ;;  %v1946_v51 = vld [vmem:[%s2026_s2] ss:$0 sm:$0xff] (!%p1353_p11) }
 0x154   : > { %v1486_v58 = vpop.f32.mrb[20].mxu0  ;;  %v1060_v52 = vmul.f32 (!%p1353_p11), %v1946_v51, %v1037_v49  ;;  %v1061_v53 = vmul.f32 (!%p1353_p11), %v1946_v51, %v1038_v50  ;;  %v1953_v54 = vld [vmem:[%s2027_s3] ss:$0 sm:$0xff] (!%p1353_p11) }
 0x155   : > { %1025 = vst [vmem:[#allocation2 + $0x40] sm:$0xff] %v1009_v56  ;;  %v1010_v59 = vadd.f32 %v974_v57, %v352_v55  ;;  %v1550_v60 = vpop.f32.mrb[20].mxu1  ;;  %v1487_v61 = vpop.f32.mrb[21].mxu0  ;;  %v1039_v55 = vld [vmem:[#allocation2 + $0x10] sm:$0xff] (!%p1353_p11)  ;;  %v1040_v56 = vld [vmem:[#allocation2 + $0x18] sm:$0xff] (!%p1353_p11) }
 0x156   : > { %v1488_v62 = vadd.f32 %v1487_v61, %v1486_v58  ;;  %v1551_v63 = vpop.f32.mrb[21].mxu1  ;;  %v1489_v0 = vpop.f32.mrb[22].mxu0  ;;  %v1062_v57 = vmul.f32 (!%p1353_p11), %v1946_v51, %v1039_v55  ;;  %v1063_v58 = vmul.f32 (!%p1353_p11), %v1946_v51, %v1040_v56  ;;  %v1043_v61 = vld [vmem:[#allocation2 + $0x30] sm:$0xff] (!%p1353_p11) }
 0x157   : > { %1026 = vst [vmem:[#allocation2 + $0x48] sm:$0xff] %v1010_v59  ;;  %v1552_v1 = vadd.f32 %v1551_v63, %v1550_v60  ;;  %v1553_v2 = vpop.f32.mrb[22].mxu1  ;;  %v1490_v3 = vpop.f32.mrb[23].mxu0  ;;  %v1041_v59 = vld [vmem:[#allocation2 + $0x20] sm:$0xff] (!%p1353_p11)  ;;  %v1042_v60 = vld [vmem:[#allocation2 + $0x28] sm:$0xff] (!%p1353_p11)  ;;  %v1084_v63 = vadd.f32 (!%p1353_p11), %v1953_v54, %v1061_v53 }
 0x158   : > { %v1491_v5 = vadd.f32 %v1490_v3, %v1489_v0  ;;  %v1554_v6 = vpop.f32.mrb[23].mxu1  ;;  %v1064_v0 = vmul.f32 (!%p1353_p11), %v1946_v51, %v1041_v59  ;;  %v1085_v3 = vadd.f32 (!%p1353_p11), %v1953_v54, %v1062_v57 }
 0x159   : > { %v979_v7 = vadd.f32 %v1552_v1, %v1488_v62  ;;  %v1555_v8 = vadd.f32 %v1554_v6, %v1553_v2  ;;  %v1083_v62 = vadd.f32 (!%p1353_p11), %v1953_v54, %v1060_v52  ;;  %v1065_v1 = vmul.f32 (!%p1353_p11), %v1946_v51, %v1042_v60  ;;  %v1044_v2 = vld [vmem:[#allocation2 + $0x38] sm:$0xff] (!%p1353_p11) }
 0x15a   : > { %v1067_v6 = vmul.f32 (!%p1353_p11), %v1946_v51, %v1044_v2 }
 0x15b   : > { %v1011_v10 = vadd.f32 %v979_v7, %v353_v4  ;;  %v982_v11 = vadd.f32 %v1555_v8, %v1491_v5  ;;  %v1086_v4 = vadd.f32 (!%p1353_p11), %v1953_v54, %v1063_v58  ;;  %v1066_v5 = vmul.f32 (!%p1353_p11), %v1946_v51, %v1043_v61 }
 0x15c   : > { %v1492_v12 = vpop.f32.mrb[24].mxu0  ;;  %v1045_v7 = vld [vmem:[#allocation2 + $0x40] sm:$0xff] (!%p1353_p11)  ;;  %v1099_v8 = vmax.f32 (!%p1353_p11), %v1083_v62, 0.0 }
 0x15d   : > { %1027 = vst [vmem:[#allocation2 + $0x50] sm:$0xff] %v1011_v10  ;;  %v1012_v13 = vadd.f32 %v982_v11, %v354_v9  ;;  %v1556_v14 = vpop.f32.mrb[24].mxu1  ;;  %v1493_v15 = vpop.f32.mrb[25].mxu0  ;;  %v1100_v9 = vmax.f32 (!%p1353_p11), %v1084_v63, 0.0  ;;  %v1087_v10 = vadd.f32 (!%p1353_p11), %v1953_v54, %v1064_v0  ;;  %v1088_v11 = vadd.f32 (!%p1353_p11), %v1953_v54, %v1065_v1 }
 0x15e   : > { %v1494_v16 = vadd.f32 %v1493_v15, %v1492_v12  ;;  %v1557_v17 = vpop.f32.mrb[25].mxu1  ;;  %v1495_v18 = vpop.f32.mrb[26].mxu0  ;;  %v1046_v12 = vld [vmem:[#allocation2 + $0x48] sm:$0xff] (!%p1353_p11)  ;;  %v1089_v15 = vadd.f32 (!%p1353_p11), %v1953_v54, %v1066_v5 }
 0x15f   : > { %1028 = vst [vmem:[#allocation2 + $0x58] sm:$0xff] %v1012_v13  ;;  %v1558_v19 = vadd.f32 %v1557_v17, %v1556_v14  ;;  %v1559_v20 = vpop.f32.mrb[26].mxu1  ;;  %v1496_v21 = vpop.f32.mrb[27].mxu0  ;;  %v1101_v13 = vmax.f32 (!%p1353_p11), %v1085_v3, 0.0  ;;  %v1102_v14 = vmax.f32 (!%p1353_p11), %v1086_v4, 0.0 }
 0x160   : > { %v1497_v23 = vadd.f32 %v1496_v21, %v1495_v18  ;;  %v1560_v24 = vpop.f32.mrb[27].mxu1  ;;  %v1104_v21 = vmax.f32 (!%p1353_p11), %v1088_v11, 0.0 }
 0x161   : > { %v987_v25 = vadd.f32 %v1558_v19, %v1494_v16  ;;  %v1561_v26 = vadd.f32 %v1560_v24, %v1559_v20  ;;  %v1090_v16 = vadd.f32 (!%p1353_p11), %v1953_v54, %v1067_v6  ;;  %v1396_v19 = vpack.c.bf16 (!%p1353_p11), %v1100_v9, %v1099_v8 }
 0x162   : > { %v1103_v20 = vmax.f32 (!%p1353_p11), %v1087_v10, 0.0 }
 0x163   : > { %v1013_v28 = vadd.f32 %v987_v25, %v355_v22  ;;  %v990_v29 = vadd.f32 %v1561_v26, %v1497_v23  ;;  %v1068_v22 = vmul.f32 (!%p1353_p11), %v1946_v51, %v1045_v7  ;;  %v1401_v25 = vpack.c.bf16 (!%p1353_p11), %v1102_v14, %v1101_v13  ;;  %1397 = vst [vmem:[%s2028_s4] sm:$0xff] (!%p1353_p11), %v1396_v19  }
 0x164   : > { %v1498_v30 = vpop.f32.mrb[28].mxu0  ;;  %v1047_v17 = vld [vmem:[#allocation2 + $0x50] sm:$0xff] (!%p1353_p11)  ;;  %v1105_v26 = vmax.f32 (!%p1353_p11), %v1089_v15, 0.0 }
 0x165   : > { %1029 = vst [vmem:[#allocation2 + $0x60] sm:$0xff] %v1013_v28  ;;  %v1014_v31 = vadd.f32 %v990_v29, %v356_v27  ;;  %v1562_v32 = vpop.f32.mrb[28].mxu1  ;;  %v1499_v33 = vpop.f32.mrb[29].mxu0  ;;  %v1106_v27 = vmax.f32 (!%p1353_p11), %v1090_v16, 0.0  ;;  %v1069_v28 = vmul.f32 (!%p1353_p11), %v1946_v51, %v1046_v12  ;;  %1433 = vst [vmem:[%s2028_s4 + $0x8] sm:$0xff] (!%p1353_p11), %v1401_v25  }
 0x166   : > { %v1500_v34 = vadd.f32 %v1499_v33, %v1498_v30  ;;  %v1563_v35 = vpop.f32.mrb[29].mxu1  ;;  %v1501_v36 = vpop.f32.mrb[30].mxu0  ;;  %v1048_v18 = vld [vmem:[#allocation2 + $0x58] sm:$0xff] (!%p1353_p11)  ;;  %v1406_v30 = vpack.c.bf16 (!%p1353_p11), %v1104_v21, %v1103_v20 }
 0x167   : > { %1030 = vst [vmem:[#allocation2 + $0x68] sm:$0xff] %v1014_v31  ;;  %v1564_v37 = vadd.f32 %v1563_v35, %v1562_v32  ;;  %v1565_v38 = vpop.f32.mrb[30].mxu1  ;;  %v1502_v39 = vpop.f32.mrb[31].mxu0  ;;  %v1091_v31 = vadd.f32 (!%p1353_p11), %v1953_v54, %v1068_v22  ;;  %v1070_v32 = vmul.f32 (!%p1353_p11), %v1946_v51, %v1047_v17  ;;  %v1071_v33 = vmul.f32 (!%p1353_p11), %v1946_v51, %v1048_v18 }
 0x168   : > { %v1503_v41 = vadd.f32 %v1502_v39, %v1501_v36  ;;  %v1566_v42 = vpop.f32.mrb[31].mxu1  ;;  %v1411_v35 = vpack.c.bf16 (!%p1353_p11), %v1106_v27, %v1105_v26  ;;  %v1092_v36 = vadd.f32 (!%p1353_p11), %v1953_v54, %v1069_v28  ;;  %1434 = vst [vmem:[%s2028_s4 + $0x10] sm:$0xff] (!%p1353_p11), %v1406_v30  }
 0x169   : > { %v995_v43 = vadd.f32 %v1564_v37, %v1500_v34  ;;  %v1567_v44 = vadd.f32 %v1566_v42, %v1565_v38  ;;  %1036 = sbr.rel (%p1353_p11) target bundleno = 384 (0x180), region = 67  ;;  %v1107_v39 = vmax.f32 (!%p1353_p11), %v1091_v31, 0.0 }
 0x16a   : > { %1435 = vst [vmem:[%s2028_s4 + $0x18] sm:$0xff] (!%p1353_p11), %v1411_v35  }
 0x16b   : > { %v1015_v46 = vadd.f32 %v995_v43, %v357_v40  ;;  %v998_v47 = vadd.f32 %v1567_v44, %v1503_v41  ;;  %v1093_v40 = vadd.f32 (!%p1353_p11), %v1953_v54, %v1070_v32  ;;  %v1094_v41 = vadd.f32 (!%p1353_p11), %v1953_v54, %v1071_v33 }
 0x16c   : > { %v1049_v23 = vld [vmem:[#allocation2 + $0x60] sm:$0xff] (!%p1353_p11)  ;;  %v1108_v43 = vmax.f32 (!%p1353_p11), %v1092_v36, 0.0 }
 0x16d   : > { %1031 = vst [vmem:[#allocation2 + $0x70] sm:$0xff] %v1015_v46  ;;  %v1016_v48 = vadd.f32 %v998_v47, %v358_v45  ;;  %v1072_v37 = vmul.f32 (!%p1353_p11), %v1946_v51, %v1049_v23  ;;  %v1109_v47 = vmax.f32 (!%p1353_p11), %v1093_v40, 0.0 }
 0x16e   : > { %v1050_v24 = vld [vmem:[#allocation2 + $0x68] sm:$0xff] (!%p1353_p11)  ;;  %v1416_v50 = vpack.c.bf16 (!%p1353_p11), %v1108_v43, %v1107_v39 }
 0x16f   : > { %1032 = vst [vmem:[#allocation2 + $0x78] sm:$0xff] %v1016_v48  ;;  %v1073_v38 = vmul.f32 (!%p1353_p11), %v1946_v51, %v1050_v24  ;;  %v1095_v44 = vadd.f32 (!%p1353_p11), %v1953_v54, %v1072_v37  ;;  %v1110_v48 = vmax.f32 (!%p1353_p11), %v1094_v41, 0.0 }
 0x170   : > { %1436 = vst [vmem:[%s2028_s4 + $0x20] sm:$0xff] %v1416_v50  }
 0x171   : > { %v1096_v45 = vadd.f32 %v1953_v54, %v1073_v38  ;;  %v1111_v52 = vmax.f32 %v1095_v44, 0.0  ;;  %v1421_v56 = vpack.c.bf16 %v1110_v48, %v1109_v47 }
 0x173   : > { %v1112_v53 = vmax.f32 %v1096_v45, 0.0  ;;  %1437 = vst [vmem:[%s2028_s4 + $0x28] sm:$0xff] %v1421_v56  }
 0x174   : > { %v1051_v29 = vld [vmem:[#allocation2 + $0x70] sm:$0xff] }
 0x175   : > { %v1074_v42 = vmul.f32 %v1946_v51, %v1051_v29  ;;  %v1426_v58 = vpack.c.bf16 %v1112_v53, %v1111_v52 }
 0x176   : > { %v1052_v34 = vld [vmem:[#allocation2 + $0x78] sm:$0xff] }
 0x177   : > { %v1075_v46 = vmul.f32 %v1946_v51, %v1052_v34  ;;  %v1097_v49 = vadd.f32 %v1953_v54, %v1074_v42  ;;  %1438 = vst [vmem:[%s2028_s4 + $0x30] sm:$0xff] %v1426_v58  }
 0x179   : > { %v1098_v55 = vadd.f32 %v1953_v54, %v1075_v46  ;;  %v1113_v57 = vmax.f32 %v1097_v49, 0.0 }
 0x17b   : > { %v1114_v59 = vmax.f32 %v1098_v55, 0.0 }
 0x17d   : > { %v1431_v51 = vpack.c.bf16 %v1114_v59, %v1113_v57 }
 0x17f   : > { %1439 = vst [vmem:[%s2028_s4 + $0x38] sm:$0xff] %v1431_v51  }
 0x180 PF: > { %s14_s19 = sadd.s32 1, %s1727_s19   ;;  %s2029_s15 = smov %s1715_s16 }
 0x181   : > { %p11_p12 = scmp.ge.s32.totalorder %s14_s19, 20   ;;  %s2030_s16 = smov %s1790_s23 }
 0x182   : > { %s2031_s17 = smov %s1723_s18  ;;  %s2032_s18 = smov %s2034_s20 }
 0x183   :  { %13 = sbr.rel (!%p11_p12) target bundleno = 3 (0x3), region = 105 }

// kernel: bisenet_forward.36
= control target key start
LH: loop header
LB: loop body
LE: loop exit
PB: predicated region body
PF: predicated region fallthrough
CT: control target
= control target key end

     0   :  { %v129_v0 = vmov 0.0   ;;  %vm74_vm0 = vcmask 1041409   ;;  %s167_s0 = inlined_call_operand.vmem [shape: bf16[2,64,128], index: 0, kind: input, shape index: {}]   ;;  %s168_s1 = inlined_call_operand.vmem [shape: f32[2,128], index: 1, kind: output, shape index: {}]  }
   0x1   :  { %12 = vst [vmem:[#allocation2] sm:$0x3] %v129_v0  ;;  %v90_v1 = vld [vmem:[%s167_s0] sm:$0xff]   ;;  %v121_v2 = vld [vmem:[%s167_s0 + $0x8] sm:$0xff]   ;;  %v122_v11 = vld [vmem:[%s167_s0 + $0x10] sm:$0xff]  }
   0x2   :  { %v91_v3 = vunpack.c.l.bf16 %v90_v1  ;;  %v92_v4 = vunpack.c.h.bf16 %v90_v1  ;;  %v124_v5 = vld [vmem:[%s167_s0 + $0x20] sm:$0xff]   ;;  %v125_v6 = vld [vmem:[%s167_s0 + $0x28] sm:$0xff]   ;;  %v95_v7 = vunpack.c.l.bf16 %v121_v2  ;;  %v126_v12 = vld [vmem:[%s167_s0 + $0x30] sm:$0xff]   ;;  %v96_v13 = vunpack.c.h.bf16 %v121_v2 }
   0x3   :  { %v107_v8 = vunpack.c.l.bf16 %v124_v5  ;;  %v108_v9 = vunpack.c.h.bf16 %v124_v5  ;;  %v111_v10 = vunpack.c.l.bf16 %v125_v6  ;;  %v112_v14 = vunpack.c.h.bf16 %v125_v6  ;;  %v123_v21 = vld [vmem:[%s167_s0 + $0x18] sm:$0xff]  }
   0x4   :  { %v46_v15 = vadd.f32 %v92_v4, %v91_v3  ;;  %v99_v17 = vunpack.c.l.bf16 %v122_v11  ;;  %v115_v18 = vunpack.c.l.bf16 %v126_v12  ;;  %v127_v22 = vld [vmem:[%s167_s0 + $0x38] sm:$0xff]   ;;  %v100_v23 = vunpack.c.h.bf16 %v122_v11 }
   0x5   :  { %v59_v16 = vadd.f32 %v108_v9, %v107_v8  ;;  %v116_v24 = vunpack.c.h.bf16 %v126_v12  ;;  %v103_v27 = vunpack.c.l.bf16 %v123_v21  ;;  %v119_v28 = vunpack.c.l.bf16 %v127_v22 }
   0x6   :  { %v47_v19 = vadd.f32 %v95_v7, %v46_v15  ;;  %v104_v31 = vunpack.c.h.bf16 %v123_v21  ;;  %v120_v32 = vunpack.c.h.bf16 %v127_v22 }
   0x7   :  { %v60_v20 = vadd.f32 %v111_v10, %v59_v16 }
   0x8   :  { %v48_v25 = vadd.f32 %v96_v13, %v47_v19  ;;  %v13_v49 = vld [vmem:[#allocation2] sm:$0x3] }
   0x9   :  { %v61_v26 = vadd.f32 %v112_v14, %v60_v20 }
   0xa   :  { %v49_v29 = vadd.f32 %v99_v17, %v48_v25 }
   0xb   :  { %v62_v30 = vadd.f32 %v115_v18, %v61_v26 }
   0xc   :  { %v50_v33 = vadd.f32 %v100_v23, %v49_v29 }
   0xd   :  { %v63_v34 = vadd.f32 %v116_v24, %v62_v30 }
   0xe   :  { %v51_v35 = vadd.f32 %v103_v27, %v50_v33 }
   0xf   :  { %v64_v36 = vadd.f32 %v119_v28, %v63_v34 }
  0x10   :  { %v52_v37 = vadd.f32 %v104_v31, %v51_v35 }
  0x11   :  { %v65_v38 = vadd.f32 %v120_v32, %v64_v36 }
  0x12   :  { %v53_v39 = vrot.slane %v52_v37, 4 }
  0x13   :  { %v66_v40 = vrot.slane %v65_v38, 4 }
  0x14   :  { %v54_v41 = vadd.f32 %v53_v39, %v52_v37 }
  0x15   :  { %v67_v42 = vadd.f32 %v66_v40, %v65_v38 }
  0x16   :  { %v55_v43 = vrot.slane %v54_v41, 2 }
  0x17   :  { %v68_v44 = vrot.slane %v67_v42, 2 }
  0x18   :  { %v56_v45 = vadd.f32 %v55_v43, %v54_v41 }
  0x19   :  { %v69_v46 = vadd.f32 %v68_v44, %v67_v42 }
  0x1a   :  { %v57_v47 = vrot.slane %v56_v45, 1 }
  0x1b   :  { %v70_v48 = vrot.slane %v69_v46, 1 }
  0x1c   :  { %v58_v50 = vadd.f32 %v57_v47, %v56_v45 }
  0x1d   :  { %v71_v51 = vadd.f32 %v70_v48, %v69_v46 }
  0x1f   :  { %v75_v52 = vsel %vm74_vm0, %v71_v51, %v58_v50 }
  0x20   :  { %v77_v53 = vadd.f32 %v75_v52, %v13_v49 }
  0x22   :  { %78 = vst [vmem:[#allocation2] sm:$0x3] %v77_v53 }
  0x29   :  { %v82_v54 = vld [vmem:[#allocation2] sm:$0x3] }
  0x2a   :  { %v83_v55 = vmul.f32 0.015625, %v82_v54 }
  0x2c   :  { %84 = vst [vmem:[%s168_s1] sm:$0x3] %v83_v55 }

// kernel: bisenet_forward.37
= control target key start
LH: loop header
LB: loop body
LE: loop exit
PB: predicated region body
PF: predicated region fallthrough
CT: control target
= control target key end

     0   :  { %v225_v0 = vmov 0.0   ;;  %vm226_vm0 = vmmov 0   ;;  %s291_s1 = inlined_call_operand.vmem [shape: bf16[128,128], index: 1, kind: input, shape index: {}]   ;;  %s292_s0 = inlined_call_operand.vmem [shape: bf16[16,128], index: 0, kind: input, shape index: {}]   ;;  %s293_s2 = inlined_call_operand.vmem [shape: f32[1,128], index: 2, kind: input, shape index: {}]   ;;  %s294_s3 = inlined_call_operand.vmem [shape: f32[1,128], index: 3, kind: input, shape index: {}]   ;;  %s295_s4 = inlined_call_operand.vmem [shape: f32[16,128], index: 4, kind: output, shape index: {}]  }
   0x1   :  { %194 = vmatprep.subr.bf16.mxu0 %v225_v0  ;;  %v216_v1 = vld [vmem:[%s291_s1] sm:$0xff]   ;;  %210 = vmatprep.mubr.msk.bf16.mxu0 %vm226_vm0, %v225_v0  ;;  %v217_v2 = vld [vmem:[%s291_s1 + $0x8] sm:$0xff]   ;;  %v218_v3 = vld [vmem:[%s291_s1 + $0x10] sm:$0xff]  }
   0x2   :  { %195 = vmatpush3.bf16.msra.mxu0 %v216_v1  ;;  %v219_v4 = vld [vmem:[%s291_s1 + $0x18] sm:$0xff]   ;;  %v220_v5 = vld [vmem:[%s291_s1 + $0x20] sm:$0xff]   ;;  %v221_v6 = vld [vmem:[%s291_s1 + $0x28] sm:$0xff]  }
   0x3   :  { %196 = vmatprep.subr.bf16.mxu0 %v225_v0  ;;  %v222_v7 = vld [vmem:[%s291_s1 + $0x30] sm:$0xff]   ;;  %v223_v8 = vld [vmem:[%s291_s1 + $0x38] sm:$0xff]   ;;  %v224_v9 = vld [vmem:[%s292_s0] sm:$0xff]  }
   0x4   :  { %v183_v10 = vld [vmem:[%s293_s2] ss:$0 sm:$0xff] }
   0x5   :  { %v184_v12 = vld [vmem:[%s294_s3] ss:$0 sm:$0xff] }
   0x6   :  { %197 = vmatpush3.bf16.msra.mxu0 %v217_v2 }
   0x7   :  { %198 = vmatprep.subr.bf16.mxu0 %v225_v0 }
   0xa   :  { %199 = vmatpush3.bf16.msra.mxu0 %v218_v3 }
   0xb   :  { %200 = vmatprep.subr.bf16.mxu0 %v225_v0 }
   0xe   :  { %201 = vmatpush3.bf16.msra.mxu0 %v219_v4 }
   0xf   :  { %202 = vmatprep.subr.bf16.mxu0 %v225_v0 }
  0x12   :  { %203 = vmatpush3.bf16.msra.mxu0 %v220_v5 }
  0x13   :  { %204 = vmatprep.subr.bf16.mxu0 %v225_v0 }
  0x16   :  { %205 = vmatpush3.bf16.msra.mxu0 %v221_v6 }
  0x17   :  { %206 = vmatprep.subr.bf16.mxu0 %v225_v0 }
  0x1a   :  { %207 = vmatpush3.bf16.msra.mxu0 %v222_v7 }
  0x1b   :  { %208 = vmatprep.subr.bf16.mxu0 %v225_v0 }
  0x1e   :  { %209 = vmatpush3.bf16.msra.mxu0 %v223_v8 }
  0x21   :  { %211 = vmatmul.mubr.bf16.vlgmr.msra.gmra.mrb[0].mxu0 %v224_v9 }
  0xf4   :  { %v132_v11 = vpop.f32.mrb[0].mxu0 }
  0xf5   :  { %v155_v13 = vmul.f32 %v183_v10, %v132_v11  ;;  %v212_v14 = vpop.f32.mrb[1].mxu0 }
  0xf6   :  { %v135_v15 = vpop.f32.mrb[2].mxu0 }
  0xf7   :  { %v164_v16 = vadd.f32 %v184_v12, %v155_v13  ;;  %v156_v17 = vmul.f32 %v183_v10, %v135_v15  ;;  %v213_v18 = vpop.f32.mrb[3].mxu0 }
  0xf9   :  { %v166_v19 = vmax.f32 %v164_v16, 0.0  ;;  %v165_v20 = vadd.f32 %v184_v12, %v156_v17 }
  0xfb   :  { %168 = vst [vmem:[%s295_s4] sm:$0xff] %v166_v19  ;;  %v167_v21 = vmax.f32 %v165_v20, 0.0 }
  0xfd   :  { %169 = vst [vmem:[%s295_s4 + $0x8] sm:$0xff] %v167_v21 }

// kernel: bisenet_forward.39
= control target key start
LH: loop header
LB: loop body
LE: loop exit
PB: predicated region body
PF: predicated region fallthrough
CT: control target
= control target key end

     0   :  { %v49_v0 = vlaneseq  ;;  %s346_s0 = inlined_call_operand.vmem [shape: bf16[2,64,128], index: 0, kind: input, shape index: {}]   ;;  %s347_s1 = inlined_call_operand.vmem [shape: f32[2,1,128], index: 1, kind: input, shape index: {}]   ;;  %s348_s2 = inlined_call_operand.vmem [shape: bf16[2,64,128], index: 2, kind: output, shape index: {}]  }
   0x1   :  { %v192_v1 = vld [vmem:[%s346_s0] sm:$0xff]   ;;  %v263_v3 = vld [vmem:[%s346_s0 + $0x8] sm:$0xff]   ;;  %v264_v6 = vld [vmem:[%s346_s0 + $0x10] sm:$0xff]  }
   0x2   :  { %v43_v2 = vld [vmem:[%s347_s1] sm:$0x1]  ;;  %v50_v5 = vshrl.u32 %v49_v0, 7  ;;  %v265_v7 = vld [vmem:[%s346_s0 + $0x18] sm:$0xff]   ;;  %v193_v9 = vunpack.c.l.bf16 %v192_v1  ;;  %v194_v10 = vunpack.c.h.bf16 %v192_v1  ;;  %v197_v11 = vunpack.c.l.bf16 %v263_v3  ;;  %v44_v13 = vld [vmem:[%s347_s1 + $0x1] sm:$0x1] }
   0x3   :  { %v45_v4 = vadd.f32 1.0, %v43_v2  ;;  %v266_v8 = vld [vmem:[%s346_s0 + $0x20] sm:$0xff]   ;;  %v198_v12 = vunpack.c.h.bf16 %v263_v3  ;;  %v267_v14 = vld [vmem:[%s346_s0 + $0x28] sm:$0xff]   ;;  %v268_v15 = vld [vmem:[%s346_s0 + $0x30] sm:$0xff]   ;;  %v201_v17 = vunpack.c.l.bf16 %v264_v6  ;;  %v202_v18 = vunpack.c.h.bf16 %v264_v6 }
   0x4   :  { %v51_v16 = vsub.s32 0, %v50_v5  ;;  %v205_v19 = vunpack.c.l.bf16 %v265_v7  ;;  %v269_v20 = vld [vmem:[%s346_s0 + $0x38] sm:$0xff]   ;;  %v206_v21 = vunpack.c.h.bf16 %v265_v7  ;;  %v209_v22 = vunpack.c.l.bf16 %v266_v8 }
   0x5   :  { %v210_v23 = vunpack.c.h.bf16 %v266_v8  ;;  %v46_v24 = vadd.f32 1.0, %v44_v13  ;;  %v213_v26 = vunpack.c.l.bf16 %v267_v14  ;;  %v214_v27 = vunpack.c.h.bf16 %v267_v14 }
   0x6   :  { %v52_v25 = vrot.slane %v45_v4, %v51_v16  ;;  %v217_v28 = vunpack.c.l.bf16 %v268_v15  ;;  %v218_v30 = vunpack.c.h.bf16 %v268_v15  ;;  %v221_v31 = vunpack.c.l.bf16 %v269_v20 }
   0x7   :  { %v56_v29 = vrot.slane %v46_v24, %v51_v16  ;;  %v222_v32 = vunpack.c.h.bf16 %v269_v20 }
   0x8   :  { %v59_v33 = vmul.f32 %v193_v9, %v52_v25  ;;  %v60_v34 = vmul.f32 %v194_v10, %v52_v25  ;;  %v61_v35 = vmul.f32 %v197_v11, %v52_v25  ;;  %v62_v36 = vmul.f32 %v198_v12, %v52_v25 }
   0x9   :  { %v63_v37 = vmul.f32 %v201_v17, %v52_v25  ;;  %v64_v38 = vmul.f32 %v202_v18, %v52_v25  ;;  %v65_v39 = vmul.f32 %v205_v19, %v52_v25  ;;  %v66_v40 = vmul.f32 %v206_v21, %v52_v25 }
   0xa   :  { %v226_v41 = vpack.c.bf16 %v60_v34, %v59_v33  ;;  %v231_v42 = vpack.c.bf16 %v62_v36, %v61_v35  ;;  %v67_v43 = vmul.f32 %v209_v22, %v56_v29  ;;  %v68_v44 = vmul.f32 %v210_v23, %v56_v29 }
   0xb   :  { %v236_v45 = vpack.c.bf16 %v64_v38, %v63_v37  ;;  %v241_v46 = vpack.c.bf16 %v66_v40, %v65_v39  ;;  %v69_v47 = vmul.f32 %v213_v26, %v56_v29  ;;  %v70_v48 = vmul.f32 %v214_v27, %v56_v29 }
   0xc   :  { %227 = vst [vmem:[%s348_s2] sm:$0xff] %v226_v41   ;;  %270 = vst [vmem:[%s348_s2 + $0x8] sm:$0xff] %v231_v42   ;;  %v246_v49 = vpack.c.bf16 %v68_v44, %v67_v43  ;;  %v71_v50 = vmul.f32 %v217_v28, %v56_v29  ;;  %v72_v51 = vmul.f32 %v218_v30, %v56_v29 }
   0xd   :  { %v73_v52 = vmul.f32 %v221_v31, %v56_v29  ;;  %271 = vst [vmem:[%s348_s2 + $0x10] sm:$0xff] %v236_v45   ;;  %272 = vst [vmem:[%s348_s2 + $0x18] sm:$0xff] %v241_v46   ;;  %v251_v53 = vpack.c.bf16 %v70_v48, %v69_v47  ;;  %v74_v54 = vmul.f32 %v222_v32, %v56_v29 }
   0xe   :  { %273 = vst [vmem:[%s348_s2 + $0x20] sm:$0xff] %v246_v49   ;;  %v256_v55 = vpack.c.bf16 %v72_v51, %v71_v50 }
   0xf   :  { %274 = vst [vmem:[%s348_s2 + $0x28] sm:$0xff] %v251_v53   ;;  %v261_v56 = vpack.c.bf16 %v74_v54, %v73_v52 }
  0x10   :  { %275 = vst [vmem:[%s348_s2 + $0x30] sm:$0xff] %v256_v55  }
  0x11   :  { %276 = vst [vmem:[%s348_s2 + $0x38] sm:$0xff] %v261_v56  }

// kernel: bisenet_forward.38
= control target key start
LH: loop header
LB: loop body
LE: loop exit
PB: predicated region body
PF: predicated region fallthrough
CT: control target
= control target key end

     0   :  { %v245_v0 = vmov 0.0   ;;  %vm246_vm0 = vmmov 0   ;;  %s311_s1 = inlined_call_operand.vmem [shape: bf16[128,128], index: 1, kind: input, shape index: {}]   ;;  %s312_s0 = inlined_call_operand.vmem [shape: bf16[16,128], index: 0, kind: input, shape index: {}]   ;;  %s313_s2 = inlined_call_operand.vmem [shape: f32[1,128], index: 2, kind: input, shape index: {}]   ;;  %s314_s3 = inlined_call_operand.vmem [shape: f32[1,128], index: 3, kind: input, shape index: {}]   ;;  %s315_s4 = inlined_call_operand.vmem [shape: f32[16,128], index: 4, kind: output, shape index: {}]  }
   0x1   :  { %206 = vmatprep.subr.bf16.mxu0 %v245_v0  ;;  %v228_v1 = vld [vmem:[%s311_s1] sm:$0xff]   ;;  %222 = vmatprep.mubr.msk.bf16.mxu0 %vm246_vm0, %v245_v0  ;;  %v229_v2 = vld [vmem:[%s311_s1 + $0x8] sm:$0xff]   ;;  %v230_v3 = vld [vmem:[%s311_s1 + $0x10] sm:$0xff]  }
   0x2   :  { %207 = vmatpush3.bf16.msra.mxu0 %v228_v1  ;;  %v231_v4 = vld [vmem:[%s311_s1 + $0x18] sm:$0xff]   ;;  %v232_v5 = vld [vmem:[%s311_s1 + $0x20] sm:$0xff]   ;;  %v233_v6 = vld [vmem:[%s311_s1 + $0x28] sm:$0xff]  }
   0x3   :  { %208 = vmatprep.subr.bf16.mxu0 %v245_v0  ;;  %v234_v7 = vld [vmem:[%s311_s1 + $0x30] sm:$0xff]   ;;  %v235_v8 = vld [vmem:[%s311_s1 + $0x38] sm:$0xff]   ;;  %v236_v9 = vld [vmem:[%s312_s0] sm:$0xff]  }
   0x4   :  { %v193_v10 = vld [vmem:[%s313_s2] ss:$0 sm:$0xff] }
   0x5   :  { %v194_v12 = vld [vmem:[%s314_s3] ss:$0 sm:$0xff] }
   0x6   :  { %209 = vmatpush3.bf16.msra.mxu0 %v229_v2 }
   0x7   :  { %210 = vmatprep.subr.bf16.mxu0 %v245_v0 }
   0xa   :  { %211 = vmatpush3.bf16.msra.mxu0 %v230_v3 }
   0xb   :  { %212 = vmatprep.subr.bf16.mxu0 %v245_v0 }
   0xe   :  { %213 = vmatpush3.bf16.msra.mxu0 %v231_v4 }
   0xf   :  { %214 = vmatprep.subr.bf16.mxu0 %v245_v0 }
  0x12   :  { %215 = vmatpush3.bf16.msra.mxu0 %v232_v5 }
  0x13   :  { %216 = vmatprep.subr.bf16.mxu0 %v245_v0 }
  0x16   :  { %217 = vmatpush3.bf16.msra.mxu0 %v233_v6 }
  0x17   :  { %218 = vmatprep.subr.bf16.mxu0 %v245_v0 }
  0x1a   :  { %219 = vmatpush3.bf16.msra.mxu0 %v234_v7 }
  0x1b   :  { %220 = vmatprep.subr.bf16.mxu0 %v245_v0 }
  0x1e   :  { %221 = vmatpush3.bf16.msra.mxu0 %v235_v8 }
  0x21   :  { %223 = vmatmul.mubr.bf16.vlgmr.msra.gmra.mrb[0].mxu0 %v236_v9 }
  0xf4   :  { %v132_v11 = vpop.f32.mrb[0].mxu0 }
  0xf5   :  { %v155_v13 = vmul.f32 %v193_v10, %v132_v11  ;;  %v224_v14 = vpop.f32.mrb[1].mxu0 }
  0xf6   :  { %v135_v15 = vpop.f32.mrb[2].mxu0 }
  0xf7   :  { %v164_v16 = vadd.f32 %v194_v12, %v155_v13  ;;  %v156_v17 = vmul.f32 %v193_v10, %v135_v15  ;;  %v225_v18 = vpop.f32.mrb[3].mxu0 }
  0xf9   :  { %v195_v19 = vmul.f32 -1.442695, %v164_v16  ;;  %v165_v20 = vadd.f32 %v194_v12, %v156_v17 }
  0xfb   :  { %237 = vpow2.f32 %v195_v19  ;;  %v196_v21 = vmul.f32 -1.442695, %v165_v20 }
  0xfd   :  { %239 = vpow2.f32 %v196_v21 }
 0x105   :  { %v238_v22 = vpop.eup %237 }
 0x106   :  { %v172_v23 = vadd.f32 1.0, %v238_v22 }
 0x107   :  { %v240_v24 = vpop.eup %239 }
 0x108   :  { %241 = vrcp.f32 %v172_v23  ;;  %v173_v25 = vadd.f32 1.0, %v240_v24 }
 0x10a   :  { %243 = vrcp.f32 %v173_v25 }
 0x112   :  { %v242_v26 = vpop.eup %241 }
 0x113   :  { %178 = vst [vmem:[%s315_s4] sm:$0xff] %v242_v26 }
 0x114   :  { %v244_v27 = vpop.eup %243 }
 0x115   :  { %179 = vst [vmem:[%s315_s4 + $0x8] sm:$0xff] %v244_v27 }

// kernel: bisenet_forward.40
= control target key start
LH: loop header
LB: loop body
LE: loop exit
PB: predicated region body
PF: predicated region fallthrough
CT: control target
= control target key end

     0   :  { %s621_s1 = inlined_call_operand.vmem [shape: bf16[128,128], index: 1, kind: input, shape index: {}]   ;;  %s622_s0 = inlined_call_operand.vmem [shape: bf16[128,128], index: 0, kind: input, shape index: {}]   ;;  %s623_s2 = inlined_call_operand.vmem [shape: f32[1,128], index: 2, kind: input, shape index: {}]   ;;  %s624_s3 = inlined_call_operand.vmem [shape: f32[1,128], index: 3, kind: input, shape index: {}]   ;;  %s625_s4 = inlined_call_operand.vmem [shape: f32[128,128], index: 4, kind: output, shape index: {}]  }
   0x1   :  { %v478_v0 = vld [vmem:[%s621_s1] sm:$0xff]   ;;  %v479_v1 = vld [vmem:[%s621_s1 + $0x8] sm:$0xff]   ;;  %v480_v2 = vld [vmem:[%s621_s1 + $0x10] sm:$0xff]  }
   0x2   :  { %430 = vmatprep.subr.bf16.mxu0 %v478_v0  ;;  %462 = vmatprep.subr.bf16.mxu1 %v478_v0  ;;  %v481_v3 = vld [vmem:[%s621_s1 + $0x18] sm:$0xff]   ;;  %v486_v4 = vld [vmem:[%s622_s0] sm:$0xff]   ;;  %v483_v7 = vld [vmem:[%s621_s1 + $0x28] sm:$0xff]  }
   0x3   :  { %431 = vmatpush3.bf16.msra.mxu0 %v478_v0  ;;  %470 = vmatpush3.bf16.msra.mxu1 %v478_v0  ;;  %v487_v5 = vld [vmem:[%s622_s0 + $0x20] sm:$0xff]   ;;  %v484_v8 = vld [vmem:[%s621_s1 + $0x30] sm:$0xff]   ;;  %v485_v9 = vld [vmem:[%s621_s1 + $0x38] sm:$0xff]  }
   0x4   :  { %432 = vmatprep.subr.bf16.mxu0 %v479_v1  ;;  %463 = vmatprep.subr.bf16.mxu1 %v479_v1  ;;  %v482_v6 = vld [vmem:[%s621_s1 + $0x20] sm:$0xff]   ;;  %v488_v10 = vld [vmem:[%s622_s0 + $0x8] sm:$0xff]   ;;  %v490_v12 = vld [vmem:[%s622_s0 + $0x10] sm:$0xff]  }
   0x5   :  { %446 = vmatprep.mubr.bf16.mxu0 %v486_v4  ;;  %454 = vmatprep.mubr.bf16.mxu1 %v487_v5  ;;  %v489_v11 = vld [vmem:[%s622_s0 + $0x28] sm:$0xff]   ;;  %v491_v13 = vld [vmem:[%s622_s0 + $0x30] sm:$0xff]   ;;  %v492_v14 = vld [vmem:[%s622_s0 + $0x18] sm:$0xff]  }
   0x6   :  { %v493_v15 = vld [vmem:[%s622_s0 + $0x38] sm:$0xff]   ;;  %v412_v16 = vld [vmem:[%s623_s2] ss:$0 sm:$0xff] }
   0x7   :  { %433 = vmatpush3.bf16.msra.mxu0 %v479_v1  ;;  %471 = vmatpush3.bf16.msra.mxu1 %v479_v1  ;;  %v413_v18 = vld [vmem:[%s624_s3] ss:$0 sm:$0xff] }
   0x8   :  { %434 = vmatprep.subr.bf16.mxu0 %v480_v2  ;;  %464 = vmatprep.subr.bf16.mxu1 %v480_v2 }
   0xb   :  { %435 = vmatpush3.bf16.msra.mxu0 %v480_v2  ;;  %472 = vmatpush3.bf16.msra.mxu1 %v480_v2 }
   0xc   :  { %436 = vmatprep.subr.bf16.mxu0 %v481_v3  ;;  %465 = vmatprep.subr.bf16.mxu1 %v481_v3 }
   0xf   :  { %437 = vmatpush3.bf16.msra.mxu0 %v481_v3  ;;  %473 = vmatpush3.bf16.msra.mxu1 %v481_v3 }
  0x10   :  { %438 = vmatprep.subr.bf16.mxu0 %v482_v6  ;;  %466 = vmatprep.subr.bf16.mxu1 %v482_v6 }
  0x13   :  { %439 = vmatpush3.bf16.msra.mxu0 %v482_v6  ;;  %474 = vmatpush3.bf16.msra.mxu1 %v482_v6 }
  0x14   :  { %440 = vmatprep.subr.bf16.mxu0 %v483_v7  ;;  %467 = vmatprep.subr.bf16.mxu1 %v483_v7 }
  0x17   :  { %441 = vmatpush3.bf16.msra.mxu0 %v483_v7  ;;  %475 = vmatpush3.bf16.msra.mxu1 %v483_v7 }
  0x18   :  { %442 = vmatprep.subr.bf16.mxu0 %v484_v8  ;;  %468 = vmatprep.subr.bf16.mxu1 %v484_v8 }
  0x1b   :  { %443 = vmatpush3.bf16.msra.mxu0 %v484_v8  ;;  %476 = vmatpush3.bf16.msra.mxu1 %v484_v8 }
  0x1c   :  { %444 = vmatprep.subr.bf16.mxu0 %v485_v9  ;;  %469 = vmatprep.subr.bf16.mxu1 %v485_v9 }
  0x1f   :  { %445 = vmatpush3.bf16.msra.mxu0 %v485_v9  ;;  %477 = vmatpush3.bf16.msra.mxu1 %v485_v9 }
  0x22   :  { %447 = vmatmul.mubr.bf16.vlgmr.msra.gmra.mrb[0].mxu0 %v488_v10  ;;  %455 = vmatmul.mubr.bf16.vlgmr.msra.gmra.mrb[0].mxu1 %v489_v11 }
  0x23   :  { %450 = vmatprep.mubr.bf16.mxu0 %v490_v12  ;;  %458 = vmatprep.mubr.bf16.mxu1 %v491_v13 }
  0x2a   :  { %451 = vmatmul.mubr.bf16.gmra.mrb[4].mxu0 %v492_v14  ;;  %459 = vmatmul.mubr.bf16.gmra.mrb[4].mxu1 %v493_v15 }
  0xf5   :  { %v448_v17 = vpop.f32.mrb[0].mxu0  ;;  %v456_v19 = vpop.f32.mrb[0].mxu1 }
  0xf6   :  { %v339_v20 = vmul.f32 %v448_v17, %v412_v16  ;;  %v347_v21 = vmul.f32 %v456_v19, %v412_v16  ;;  %v216_v22 = vpop.f32.mrb[1].mxu0  ;;  %v248_v23 = vpop.f32.mrb[1].mxu1 }
  0xf7   :  { %v337_v24 = vmul.f32 %v412_v16, %v216_v22  ;;  %v345_v25 = vmul.f32 %v412_v16, %v248_v23  ;;  %v449_v26 = vpop.f32.mrb[2].mxu0  ;;  %v457_v27 = vpop.f32.mrb[2].mxu1 }
  0xf8   :  { %v362_v28 = vadd.f32 %v413_v18, %v339_v20  ;;  %v370_v29 = vadd.f32 %v413_v18, %v347_v21  ;;  %v340_v30 = vmul.f32 %v449_v26, %v412_v16  ;;  %v348_v31 = vmul.f32 %v457_v27, %v412_v16  ;;  %v219_v32 = vpop.f32.mrb[3].mxu0  ;;  %v251_v33 = vpop.f32.mrb[3].mxu1 }
  0xf9   :  { %v360_v34 = vadd.f32 %v413_v18, %v337_v24  ;;  %v368_v35 = vadd.f32 %v413_v18, %v345_v25  ;;  %v338_v36 = vmul.f32 %v412_v16, %v219_v32  ;;  %v346_v37 = vmul.f32 %v412_v16, %v251_v33 }
  0xfa   :  { %378 = vst [vmem:[%s625_s4 + $0x10] sm:$0xff] %v362_v28  ;;  %386 = vst [vmem:[%s625_s4 + $0x50] sm:$0xff] %v370_v29  ;;  %v363_v38 = vadd.f32 %v413_v18, %v340_v30  ;;  %v371_v39 = vadd.f32 %v413_v18, %v348_v31 }
  0xfb   :  { %376 = vst [vmem:[%s625_s4] sm:$0xff] %v360_v34  ;;  %384 = vst [vmem:[%s625_s4 + $0x40] sm:$0xff] %v368_v35  ;;  %v361_v40 = vadd.f32 %v413_v18, %v338_v36  ;;  %v369_v41 = vadd.f32 %v413_v18, %v346_v37 }
  0xfc   :  { %379 = vst [vmem:[%s625_s4 + $0x18] sm:$0xff] %v363_v38  ;;  %387 = vst [vmem:[%s625_s4 + $0x58] sm:$0xff] %v371_v39 }
  0xfd   :  { %377 = vst [vmem:[%s625_s4 + $0x8] sm:$0xff] %v361_v40  ;;  %385 = vst [vmem:[%s625_s4 + $0x48] sm:$0xff] %v369_v41  ;;  %v452_v42 = vpop.f32.mrb[4].mxu0  ;;  %v460_v43 = vpop.f32.mrb[4].mxu1 }
  0xfe   :  { %v343_v44 = vmul.f32 %v452_v42, %v412_v16  ;;  %v351_v45 = vmul.f32 %v460_v43, %v412_v16  ;;  %v232_v46 = vpop.f32.mrb[5].mxu0  ;;  %v264_v47 = vpop.f32.mrb[5].mxu1 }
  0xff   :  { %v341_v48 = vmul.f32 %v412_v16, %v232_v46  ;;  %v349_v49 = vmul.f32 %v412_v16, %v264_v47  ;;  %v453_v50 = vpop.f32.mrb[6].mxu0  ;;  %v461_v51 = vpop.f32.mrb[6].mxu1 }
 0x100   :  { %v366_v52 = vadd.f32 %v413_v18, %v343_v44  ;;  %v374_v53 = vadd.f32 %v413_v18, %v351_v45  ;;  %v344_v54 = vmul.f32 %v453_v50, %v412_v16  ;;  %v352_v55 = vmul.f32 %v461_v51, %v412_v16  ;;  %v235_v56 = vpop.f32.mrb[7].mxu0  ;;  %v267_v57 = vpop.f32.mrb[7].mxu1 }
 0x101   :  { %v364_v58 = vadd.f32 %v413_v18, %v341_v48  ;;  %v372_v59 = vadd.f32 %v413_v18, %v349_v49  ;;  %v342_v60 = vmul.f32 %v412_v16, %v235_v56  ;;  %v350_v61 = vmul.f32 %v412_v16, %v267_v57 }
 0x102   :  { %382 = vst [vmem:[%s625_s4 + $0x30] sm:$0xff] %v366_v52  ;;  %390 = vst [vmem:[%s625_s4 + $0x70] sm:$0xff] %v374_v53  ;;  %v367_v62 = vadd.f32 %v413_v18, %v344_v54  ;;  %v375_v63 = vadd.f32 %v413_v18, %v352_v55 }
 0x103   :  { %380 = vst [vmem:[%s625_s4 + $0x20] sm:$0xff] %v364_v58  ;;  %388 = vst [vmem:[%s625_s4 + $0x60] sm:$0xff] %v372_v59  ;;  %v365_v0 = vadd.f32 %v413_v18, %v342_v60  ;;  %v373_v1 = vadd.f32 %v413_v18, %v350_v61 }
 0x104   :  { %383 = vst [vmem:[%s625_s4 + $0x38] sm:$0xff] %v367_v62  ;;  %391 = vst [vmem:[%s625_s4 + $0x78] sm:$0xff] %v375_v63 }
 0x105   :  { %381 = vst [vmem:[%s625_s4 + $0x28] sm:$0xff] %v365_v0  ;;  %389 = vst [vmem:[%s625_s4 + $0x68] sm:$0xff] %v373_v1 }

</bundles_post_ra>
